<compile_context>
chip_gen: v7x
topology: tpu7x:2x2x1
jax: 0.10.0
libtpu: 0.0.40
codegen_flags: <defaults>
</compile_context>

<pallas_src>
import jax
import jax.numpy as jnp
from jax.experimental import pallas as pl
from jax.experimental.pallas import tpu as pltpu

# ----------------------------- hyper params --------------------------------
B = 2          # batch
T = 16         # input_dim (max sequence length)
D = 8          # number of grammar rules (one-hot width)
LATENT = 8     # latent_dim
C1, C2, C3 = 6, 6, 8   # encoder conv channels
K = 3          # conv kernel size (valid conv)
ENC_H = 32     # encoder dense hidden
DEC_H = 32     # decoder GRU hidden
T3 = T - 3 * (K - 1)            # per-batch time extent after the 3 valid convs (= 10)
STACK3 = B * T - 3 * (K - 1)    # stacked rows after the 3 valid convs (= 26)
NWIN = STACK3 - T3 + 1          # flatten windows; rows 0 and T are the real batches (= 17)

_MXU = jnp.bfloat16   # MXU operand dtype (f32 accumulate). Flip to jnp.float32 if desired.


def _full_spec(shape):
    """Whole-array block, constant index map (block resident across the grid)."""
    n = len(shape)
    return pl.BlockSpec(shape, lambda *_: (0,) * n)


# --------------------------- single fused kernel -----------------------------
def _sgvae_kernel(x_ref, eps_ref,
                  c1w_ref, c1b_ref, c2w_ref, c2b_ref, c3w_ref, c3b_ref,
                  encw_ref, encb_ref, msw_ref, msb_ref,
                  decw_ref, decb_ref,
                  wih1_ref, bih1_ref, whh1_ref, bhh1_ref,
                  w2_ref, b2_ref, w3_ref, b3_ref,
                  outw_ref, outb_ref,
                  mu_ref, sg_ref, z_ref, o_ref,
                  h3_scr):
    f32 = jnp.float32
    H = DEC_H

    def mm(a, w_ref):
        # bf16 MXU operands, f32 accumulation
        return jnp.dot(a.astype(_MXU), w_ref[...], preferred_element_type=f32)

    # ------------------------------ encoder ---------------------------------
    def conv_relu(h, w_ref, b_ref):
        # valid Conv1d as one im2col matmul: lane-concat the K shifted slices
        t_out = h.shape[0] - (K - 1)
        cols = jnp.concatenate([h[k:k + t_out, :] for k in range(K)], axis=-1)
        return jnp.maximum(mm(cols, w_ref) + b_ref[...], 0.0)

    h = x_ref[...]                        # (B*T, D): batches stacked at stride T
    h = conv_relu(h, c1w_ref, c1b_ref)    # (30, C1)   rows >= T stay batch-1 valid
    h = conv_relu(h, c2w_ref, c2b_ref)    # (28, C2)   seam rows are junk, never consumed
    h = conv_relu(h, c3w_ref, c3b_ref)    # (26, C3)

    # flatten + Dense(ReLU): one im2col matmul over T3-row windows; window row
    # b*T is batch b's flattened conv3 output.
    flat = jnp.concatenate([h[t:t + NWIN, :] for t in range(T3)], axis=-1)   # (17, T3*C3)
    henc_all = jnp.maximum(mm(flat, encw_ref) + encb_ref[...], 0.0)          # (17, ENC_H)
    henc = jnp.concatenate([henc_all[0:1, :], henc_all[T:T + 1, :]], axis=0)  # (B, ENC_H)

    # fused mu / sigma(logvar) heads: columns [mu | sigma]
    musg = mm(henc, msw_ref) + msb_ref[...]            # (B, 2*LATENT)
    mu = musg[:, :LATENT]
    sg = musg[:, LATENT:]
    z = mu + jnp.exp(0.5 * sg) * eps_ref[...]          # reparametrization trick

    mu_ref[...] = mu
    sg_ref[...] = sg
    z_ref[...] = z

    # ------------------------------ decoder ---------------------------------
    h0 = jnp.maximum(mm(z, decw_ref) + decb_ref[...], 0.0)     # (B, DEC_H)

    # layer-1 input projection (input constant over time) hoisted out of the loop
    gx1 = mm(h0, wih1_ref) + bih1_ref[...]                      # (B, 3H)

    def cell_l1(h_prev):
        # torch GRU: n = tanh(Wx x + bx + r * (Wh h + bh)); h' = (1-z)*n + z*h
        gh = mm(h_prev, whh1_ref) + bhh1_ref[...]
        r = jax.nn.sigmoid(gx1[:, :H] + gh[:, :H])
        zg = jax.nn.sigmoid(gx1[:, H:2 * H] + gh[:, H:2 * H])
        n = jnp.tanh(gx1[:, 2 * H:] + r * gh[:, 2 * H:])
        return (1.0 - zg) * n + zg * h_prev

    def cell_fused(x_in, h_prev, w_ref, b_ref):
        # single (B, 2H) x (2H, 4H) matmul; columns [r | z | n_x | n_h]
        g = mm(jnp.concatenate([x_in, h_prev], axis=-1), w_ref) + b_ref[...]
        r = jax.nn.sigmoid(g[:, :H])
        zg = jax.nn.sigmoid(g[:, H:2 * H])
        n = jnp.tanh(g[:, 2 * H:3 * H] + r * g[:, 3 * H:])
        return (1.0 - zg) * n + zg * h_prev

    h1 = jnp.zeros((B, H), f32)
    h2 = jnp.zeros((B, H), f32)
    h3 = jnp.zeros((B, H), f32)
    h1_hist = [None] * T
    h2_hist = [None] * T

    # wavefront schedule: at super-step s, layer1 is at time s, layer2 at s-1,
    # layer3 at s-2, so the three per-step matmuls are mutually independent.
    for s in range(T + 2):
        if s < T:
            h1 = cell_l1(h1)
            h1_hist[s] = h1
        if 1 <= s <= T:
            h2 = cell_fused(h1_hist[s - 1], h2, w2_ref, b2_ref)
            h2_hist[s - 1] = h2
        if 2 <= s <= T + 1:
            t = s - 2
            h3 = cell_fused(h2_hist[t], h3, w3_ref, b3_ref)
            # stash in (b, t) row order so the wrapper reshape needs no transpose
            h3_scr[t:t + 1, :] = h3[0:1, :]
            h3_scr[T + t:T + t + 1, :] = h3[1:2, :]

    # time-distributed output dense: ONE matmul for all (b, t), off the recurrence path
    o_ref[...] = mm(h3_scr[...], outw_ref) + outb_ref[...]      # (B*T, D)


# ------------------------------- SGVAE forward ------------------------------
def sgvae_forward(p, x, eps):
    x2d = x.reshape(B * T, D)        # stack batches on the sublane axis (free reshape)
    args = (x2d, eps,
            p["conv1_w"], p["conv1_b"], p["conv2_w"], p["conv2_b"],
            p["conv3_w"], p["conv3_b"], p["enc_w"], p["enc_b"],
            p["musg_w"], p["musg_b"], p["dec_w"], p["dec_b"],
            p["gru1_wih"], p["gru1_bih"], p["gru1_whh"], p["gru1_bhh"],
            p["gru2_w"], p["gru2_b"], p["gru3_w"], p["gru3_b"],
            p["out_w"], p["out_b"])
    out_shapes = (
        jax.ShapeDtypeStruct((B, LATENT), jnp.float32),   # mu
        jax.ShapeDtypeStruct((B, LATENT), jnp.float32),   # sigma (logvar)
        jax.ShapeDtypeStruct((B, LATENT), jnp.float32),   # z
        jax.ShapeDtypeStruct((B * T, D), jnp.float32),    # logits, (b, t) row order
    )
    mu, sigma, z, logits2d = pl.pallas_call(
        _sgvae_kernel,
        out_shape=out_shapes,
        grid=(1,),
        in_specs=[_full_spec(a.shape) for a in args],
        out_specs=tuple(_full_spec(s.shape) for s in out_shapes),
        scratch_shapes=[pltpu.VMEM((B * T, DEC_H), jnp.float32)],
        compiler_params=pltpu.CompilerParams(dimension_semantics=("arbitrary",)),
    )(*args)
    logits = logits2d.reshape(B, T, D)                    # free (contiguous) reshape
    return z, mu, sigma, logits
# NOTE: kl() and conditional() are not part of the PyTorch forward() and are
# not implemented here.
# TODO(synk): conditional() depends on external grammar.masks / ind_of_ind
# tables and is not reachable from forward(); omitted.


# ---------------------------- parameter setup -------------------------------
def init_params(key):
    ks = jax.random.split(key, 26)
    s = 0.1

    def nrm(k, shape):
        return s * jax.random.normal(k, shape, dtype=jnp.float32)

    def fuse_gru(kw_i, kw_h, kb_i, kb_h, in_dim):
        # torch GRU: weight_ih (3H, in), weight_hh (3H, H), gate order [r|z|n];
        # here transposed to (in, 3H)/(H, 3H) column blocks and fused into a
        # (in+H, 4H) matrix with columns [r | z | n_x | n_h] (zero blocks keep
        # exact torch gate semantics: n = tanh(n_x + r * n_h)).
        Hh = DEC_H
        wih = nrm(kw_i, (in_dim, 3 * Hh))
        whh = nrm(kw_h, (Hh, 3 * Hh))
        bih = nrm(kb_i, (1, 3 * Hh))
        bhh = nrm(kb_h, (1, 3 * Hh))
        w_big = jnp.concatenate([
            jnp.concatenate([wih[:, :Hh], wih[:, Hh:2 * Hh], wih[:, 2 * Hh:],
                             jnp.zeros((in_dim, Hh), jnp.float32)], axis=1),
            jnp.concatenate([whh[:, :Hh], whh[:, Hh:2 * Hh],
                             jnp.zeros((Hh, Hh), jnp.float32), whh[:, 2 * Hh:]], axis=1),
        ], axis=0)
        b_big = jnp.concatenate([bih[:, :Hh] + bhh[:, :Hh],
                                 bih[:, Hh:2 * Hh] + bhh[:, Hh:2 * Hh],
                                 bih[:, 2 * Hh:], bhh[:, 2 * Hh:]], axis=1)
        return w_big, b_big

    p = {}
    # encoder conv weights in im2col layout (K*C_in, C_out):
    #   w_flat[k*C_in + ci, co] == torch_conv_weight[co, ci, k]
    p["conv1_w"] = nrm(ks[0], (K * D, C1));   p["conv1_b"] = nrm(ks[1], (1, C1))
    p["conv2_w"] = nrm(ks[2], (K * C1, C2));  p["conv2_b"] = nrm(ks[3], (1, C2))
    p["conv3_w"] = nrm(ks[4], (K * C2, C3));  p["conv3_b"] = nrm(ks[5], (1, C3))
    # flatten dense weight, flat index j = t*C3 + c (time-major).
    # NOTE: torch's .view(B, -1) of a (B, C, T) conv output is channel-major;
    # permute rows accordingly when loading real torch weights.
    p["enc_w"] = nrm(ks[6], (T3 * C3, ENC_H)); p["enc_b"] = nrm(ks[7], (1, ENC_H))
    # fused mu / sigma (logvar) heads: columns [mu | sigma]
    p["musg_w"] = nrm(ks[8], (ENC_H, 2 * LATENT))
    p["musg_b"] = nrm(ks[9], (1, 2 * LATENT))
    # decoder latent dense
    p["dec_w"] = nrm(ks[10], (LATENT, DEC_H)); p["dec_b"] = nrm(ks[11], (1, DEC_H))
    # GRU layer 1: input projection hoisted in-kernel -> keep wih / whh separate,
    # gate columns ordered [r | z | n]
    p["gru1_wih"] = nrm(ks[12], (DEC_H, 3 * DEC_H))
    p["gru1_bih"] = nrm(ks[13], (1, 3 * DEC_H))
    p["gru1_whh"] = nrm(ks[14], (DEC_H, 3 * DEC_H))
    p["gru1_bhh"] = nrm(ks[15], (1, 3 * DEC_H))
    # GRU layers 2 & 3: fully fused [x|h] -> [r|z|n_x|n_h]
    p["gru2_w"], p["gru2_b"] = fuse_gru(ks[16], ks[17], ks[18], ks[19], DEC_H)
    p["gru3_w"], p["gru3_b"] = fuse_gru(ks[20], ks[21], ks[22], ks[23], DEC_H)
    # time-distributed output dense
    p["out_w"] = nrm(ks[24], (DEC_H, D)); p["out_b"] = nrm(ks[25], (1, D))

    # MXU operands in bf16 (f32 accumulation); biases and all gate math stay f32
    for name in ("conv1_w", "conv2_w", "conv3_w", "enc_w", "musg_w", "dec_w",
                 "gru1_wih", "gru1_whh", "gru2_w", "gru3_w", "out_w"):
        p[name] = p[name].astype(_MXU)
    return p


# ----------------------------------- main ------------------------------------
if __name__ == "__main__":
    root = jax.random.PRNGKey(0)
    k_param, k_data, k_eps = jax.random.split(root, 3)

    params = init_params(k_param)

    # deterministic one-hot input x: (B, T, D)
    idx = jax.random.randint(k_data, (B, T), 0, D)
    x = jax.nn.one_hot(idx, D, dtype=jnp.float32)

    # epsilon for the reparametrization trick (torch.randn equivalent)
    eps = jax.random.normal(k_eps, (B, LATENT), dtype=jnp.float32)

    fwd = jax.jit(sgvae_forward)
    z, mu, sigma, logits = fwd(params, x, eps)
    jax.block_until_ready((z, mu, sigma, logits))

    assert z.shape == (B, LATENT)
    assert mu.shape == (B, LATENT)
    assert sigma.shape == (B, LATENT)
    assert logits.shape == (B, T, D)
    assert all(bool(jnp.all(jnp.isfinite(a))) for a in (z, mu, sigma, logits))

    print("KERNEL_OK")
</pallas_src>

<mosaic_0001>
module attributes {stable_mosaic.version = 11 : i64} {
  func.func @_sgvae_kernel(%arg0: i32, %arg1: memref<32x8xf32, #tpu.memory_space<vmem>>, %arg2: memref<2x8xf32, #tpu.memory_space<vmem>>, %arg3: memref<24x6xbf16, #tpu.memory_space<vmem>>, %arg4: memref<1x6xf32, #tpu.memory_space<vmem>>, %arg5: memref<18x6xbf16, #tpu.memory_space<vmem>>, %arg6: memref<1x6xf32, #tpu.memory_space<vmem>>, %arg7: memref<18x8xbf16, #tpu.memory_space<vmem>>, %arg8: memref<1x8xf32, #tpu.memory_space<vmem>>, %arg9: memref<80x32xbf16, #tpu.memory_space<vmem>>, %arg10: memref<1x32xf32, #tpu.memory_space<vmem>>, %arg11: memref<32x16xbf16, #tpu.memory_space<vmem>>, %arg12: memref<1x16xf32, #tpu.memory_space<vmem>>, %arg13: memref<8x32xbf16, #tpu.memory_space<vmem>>, %arg14: memref<1x32xf32, #tpu.memory_space<vmem>>, %arg15: memref<32x96xbf16, #tpu.memory_space<vmem>>, %arg16: memref<1x96xf32, #tpu.memory_space<vmem>>, %arg17: memref<32x96xbf16, #tpu.memory_space<vmem>>, %arg18: memref<1x96xf32, #tpu.memory_space<vmem>>, %arg19: memref<64x128xbf16, #tpu.memory_space<vmem>>, %arg20: memref<1x128xf32, #tpu.memory_space<vmem>>, %arg21: memref<64x128xbf16, #tpu.memory_space<vmem>>, %arg22: memref<1x128xf32, #tpu.memory_space<vmem>>, %arg23: memref<32x8xbf16, #tpu.memory_space<vmem>>, %arg24: memref<1x8xf32, #tpu.memory_space<vmem>>, %arg25: memref<2x8xf32, #tpu.memory_space<vmem>>, %arg26: memref<2x8xf32, #tpu.memory_space<vmem>>, %arg27: memref<2x8xf32, #tpu.memory_space<vmem>>, %arg28: memref<32x8xf32, #tpu.memory_space<vmem>>, %arg29: memref<32x32xf32, #tpu.memory_space<vmem>>) attributes {dimension_semantics = [#tpu.dimension_semantics<arbitrary>], iteration_bounds = array<i64: 1>, scalar_prefetch = 0 : i64, scratch_operands = 1 : i64, tpu.core_type = #tpu.core_type<tc>, window_params = [{pipeline_mode = #tpu.pipeline_mode<synchronous>, transform_indices = @transform_0, window_bounds = array<i64: 32, 8>}, {pipeline_mode = #tpu.pipeline_mode<synchronous>, transform_indices = @transform_1, window_bounds = array<i64: 2, 8>}, {pipeline_mode = #tpu.pipeline_mode<synchronous>, transform_indices = @transform_2, window_bounds = array<i64: 24, 6>}, {pipeline_mode = #tpu.pipeline_mode<synchronous>, transform_indices = @transform_3, window_bounds = array<i64: 1, 6>}, {pipeline_mode = #tpu.pipeline_mode<synchronous>, transform_indices = @transform_4, window_bounds = array<i64: 18, 6>}, {pipeline_mode = #tpu.pipeline_mode<synchronous>, transform_indices = @transform_5, window_bounds = array<i64: 1, 6>}, {pipeline_mode = #tpu.pipeline_mode<synchronous>, transform_indices = @transform_6, window_bounds = array<i64: 18, 8>}, {pipeline_mode = #tpu.pipeline_mode<synchronous>, transform_indices = @transform_7, window_bounds = array<i64: 1, 8>}, {pipeline_mode = #tpu.pipeline_mode<synchronous>, transform_indices = @transform_8, window_bounds = array<i64: 80, 32>}, {pipeline_mode = #tpu.pipeline_mode<synchronous>, transform_indices = @transform_9, window_bounds = array<i64: 1, 32>}, {pipeline_mode = #tpu.pipeline_mode<synchronous>, transform_indices = @transform_10, window_bounds = array<i64: 32, 16>}, {pipeline_mode = #tpu.pipeline_mode<synchronous>, transform_indices = @transform_11, window_bounds = array<i64: 1, 16>}, {pipeline_mode = #tpu.pipeline_mode<synchronous>, transform_indices = @transform_12, window_bounds = array<i64: 8, 32>}, {pipeline_mode = #tpu.pipeline_mode<synchronous>, transform_indices = @transform_13, window_bounds = array<i64: 1, 32>}, {pipeline_mode = #tpu.pipeline_mode<synchronous>, transform_indices = @transform_14, window_bounds = array<i64: 32, 96>}, {pipeline_mode = #tpu.pipeline_mode<synchronous>, transform_indices = @transform_15, window_bounds = array<i64: 1, 96>}, {pipeline_mode = #tpu.pipeline_mode<synchronous>, transform_indices = @transform_16, window_bounds = array<i64: 32, 96>}, {pipeline_mode = #tpu.pipeline_mode<synchronous>, transform_indices = @transform_17, window_bounds = array<i64: 1, 96>}, {pipeline_mode = #tpu.pipeline_mode<synchronous>, transform_indices = @transform_18, window_bounds = array<i64: 64, 128>}, {pipeline_mode = #tpu.pipeline_mode<synchronous>, transform_indices = @transform_19, window_bounds = array<i64: 1, 128>}, {pipeline_mode = #tpu.pipeline_mode<synchronous>, transform_indices = @transform_20, window_bounds = array<i64: 64, 128>}, {pipeline_mode = #tpu.pipeline_mode<synchronous>, transform_indices = @transform_21, window_bounds = array<i64: 1, 128>}, {pipeline_mode = #tpu.pipeline_mode<synchronous>, transform_indices = @transform_22, window_bounds = array<i64: 32, 8>}, {pipeline_mode = #tpu.pipeline_mode<synchronous>, transform_indices = @transform_23, window_bounds = array<i64: 1, 8>}, {pipeline_mode = #tpu.pipeline_mode<synchronous>, transform_indices = @transform_24, window_bounds = array<i64: 2, 8>}, {pipeline_mode = #tpu.pipeline_mode<synchronous>, transform_indices = @transform_25, window_bounds = array<i64: 2, 8>}, {pipeline_mode = #tpu.pipeline_mode<synchronous>, transform_indices = @transform_26, window_bounds = array<i64: 2, 8>}, {pipeline_mode = #tpu.pipeline_mode<synchronous>, transform_indices = @transform_27, window_bounds = array<i64: 32, 8>}]} {
    %c0 = arith.constant 0 : index
    %c0_0 = arith.constant 0 : index
    %0 = vector.load %arg1[%c0, %c0_0] : memref<32x8xf32, #tpu.memory_space<vmem>>, vector<32x8xf32>
    %1 = vector.extract_strided_slice %0 {offsets = [0, 0], sizes = [30, 8], strides = [1, 1]} : vector<32x8xf32> to vector<30x8xf32>
    %2 = vector.extract_strided_slice %0 {offsets = [1, 0], sizes = [30, 8], strides = [1, 1]} : vector<32x8xf32> to vector<30x8xf32>
    %3 = vector.extract_strided_slice %0 {offsets = [2, 0], sizes = [30, 8], strides = [1, 1]} : vector<32x8xf32> to vector<30x8xf32>
    %4 = tpu.concatenate %1, %2, %3 in 1 : vector<30x8xf32>, vector<30x8xf32>, vector<30x8xf32> -> vector<30x24xf32>
    %5 = arith.truncf %4 : vector<30x24xf32> to vector<30x24xbf16>
    %c0_1 = arith.constant 0 : index
    %c0_2 = arith.constant 0 : index
    %6 = vector.load %arg3[%c0_1, %c0_2] : memref<24x6xbf16, #tpu.memory_space<vmem>>, vector<24x6xbf16>
    %cst = arith.constant dense<0.000000e+00> : vector<30x6xf32>
    %7 = tpu.matmul %5, %6, %cst {dimension_numbers = #tpu.dot_dimension_numbers<[1], [0], [0], [1], [0, 0, 1, 1], [], []>} : vector<30x24xbf16>, vector<24x6xbf16>, vector<30x6xf32> -> vector<30x6xf32>
    %c0_3 = arith.constant 0 : index
    %c0_4 = arith.constant 0 : index
    %8 = vector.load %arg4[%c0_3, %c0_4] : memref<1x6xf32, #tpu.memory_space<vmem>>, vector<1x6xf32>
    %9 = vector.broadcast %8 : vector<1x6xf32> to vector<30x6xf32>
    %10 = arith.addf %7, %9 : vector<30x6xf32>
    %cst_5 = arith.constant 0.000000e+00 : f32
    %11 = vector.broadcast %cst_5 : f32 to vector<30x6xf32>
    %12 = arith.maximumf %10, %11 : vector<30x6xf32>
    %13 = vector.extract_strided_slice %12 {offsets = [0, 0], sizes = [28, 6], strides = [1, 1]} : vector<30x6xf32> to vector<28x6xf32>
    %14 = vector.extract_strided_slice %12 {offsets = [1, 0], sizes = [28, 6], strides = [1, 1]} : vector<30x6xf32> to vector<28x6xf32>
    %15 = vector.extract_strided_slice %12 {offsets = [2, 0], sizes = [28, 6], strides = [1, 1]} : vector<30x6xf32> to vector<28x6xf32>
    %16 = tpu.concatenate %13, %14, %15 in 1 : vector<28x6xf32>, vector<28x6xf32>, vector<28x6xf32> -> vector<28x18xf32>
    %17 = arith.truncf %16 : vector<28x18xf32> to vector<28x18xbf16>
    %c0_6 = arith.constant 0 : index
    %c0_7 = arith.constant 0 : index
    %18 = vector.load %arg5[%c0_6, %c0_7] : memref<18x6xbf16, #tpu.memory_space<vmem>>, vector<18x6xbf16>
    %cst_8 = arith.constant dense<0.000000e+00> : vector<28x6xf32>
    %19 = tpu.matmul %17, %18, %cst_8 {dimension_numbers = #tpu.dot_dimension_numbers<[1], [0], [0], [1], [0, 0, 1, 1], [], []>} : vector<28x18xbf16>, vector<18x6xbf16>, vector<28x6xf32> -> vector<28x6xf32>
    %c0_9 = arith.constant 0 : index
    %c0_10 = arith.constant 0 : index
    %20 = vector.load %arg6[%c0_9, %c0_10] : memref<1x6xf32, #tpu.memory_space<vmem>>, vector<1x6xf32>
    %21 = vector.broadcast %20 : vector<1x6xf32> to vector<28x6xf32>
    %22 = arith.addf %19, %21 : vector<28x6xf32>
    %cst_11 = arith.constant 0.000000e+00 : f32
    %23 = vector.broadcast %cst_11 : f32 to vector<28x6xf32>
    %24 = arith.maximumf %22, %23 : vector<28x6xf32>
    %25 = vector.extract_strided_slice %24 {offsets = [0, 0], sizes = [26, 6], strides = [1, 1]} : vector<28x6xf32> to vector<26x6xf32>
    %26 = vector.extract_strided_slice %24 {offsets = [1, 0], sizes = [26, 6], strides = [1, 1]} : vector<28x6xf32> to vector<26x6xf32>
    %27 = vector.extract_strided_slice %24 {offsets = [2, 0], sizes = [26, 6], strides = [1, 1]} : vector<28x6xf32> to vector<26x6xf32>
    %28 = tpu.concatenate %25, %26, %27 in 1 : vector<26x6xf32>, vector<26x6xf32>, vector<26x6xf32> -> vector<26x18xf32>
    %29 = arith.truncf %28 : vector<26x18xf32> to vector<26x18xbf16>
    %c0_12 = arith.constant 0 : index
    %c0_13 = arith.constant 0 : index
    %30 = vector.load %arg7[%c0_12, %c0_13] : memref<18x8xbf16, #tpu.memory_space<vmem>>, vector<18x8xbf16>
    %cst_14 = arith.constant dense<0.000000e+00> : vector<26x8xf32>
    %31 = tpu.matmul %29, %30, %cst_14 {dimension_numbers = #tpu.dot_dimension_numbers<[1], [0], [0], [1], [0, 0, 1, 1], [], []>} : vector<26x18xbf16>, vector<18x8xbf16>, vector<26x8xf32> -> vector<26x8xf32>
    %c0_15 = arith.constant 0 : index
    %c0_16 = arith.constant 0 : index
    %32 = vector.load %arg8[%c0_15, %c0_16] : memref<1x8xf32, #tpu.memory_space<vmem>>, vector<1x8xf32>
    %33 = vector.broadcast %32 : vector<1x8xf32> to vector<26x8xf32>
    %34 = arith.addf %31, %33 : vector<26x8xf32>
    %cst_17 = arith.constant 0.000000e+00 : f32
    %35 = vector.broadcast %cst_17 : f32 to vector<26x8xf32>
    %36 = arith.maximumf %34, %35 : vector<26x8xf32>
    %37 = vector.extract_strided_slice %36 {offsets = [0, 0], sizes = [17, 8], strides = [1, 1]} : vector<26x8xf32> to vector<17x8xf32>
    %38 = vector.extract_strided_slice %36 {offsets = [1, 0], sizes = [17, 8], strides = [1, 1]} : vector<26x8xf32> to vector<17x8xf32>
    %39 = vector.extract_strided_slice %36 {offsets = [2, 0], sizes = [17, 8], strides = [1, 1]} : vector<26x8xf32> to vector<17x8xf32>
    %40 = vector.extract_strided_slice %36 {offsets = [3, 0], sizes = [17, 8], strides = [1, 1]} : vector<26x8xf32> to vector<17x8xf32>
    %41 = vector.extract_strided_slice %36 {offsets = [4, 0], sizes = [17, 8], strides = [1, 1]} : vector<26x8xf32> to vector<17x8xf32>
    %42 = vector.extract_strided_slice %36 {offsets = [5, 0], sizes = [17, 8], strides = [1, 1]} : vector<26x8xf32> to vector<17x8xf32>
    %43 = vector.extract_strided_slice %36 {offsets = [6, 0], sizes = [17, 8], strides = [1, 1]} : vector<26x8xf32> to vector<17x8xf32>
    %44 = vector.extract_strided_slice %36 {offsets = [7, 0], sizes = [17, 8], strides = [1, 1]} : vector<26x8xf32> to vector<17x8xf32>
    %45 = vector.extract_strided_slice %36 {offsets = [8, 0], sizes = [17, 8], strides = [1, 1]} : vector<26x8xf32> to vector<17x8xf32>
    %46 = vector.extract_strided_slice %36 {offsets = [9, 0], sizes = [17, 8], strides = [1, 1]} : vector<26x8xf32> to vector<17x8xf32>
    %47 = tpu.concatenate %37, %38, %39, %40, %41, %42, %43, %44, %45, %46 in 1 : vector<17x8xf32>, vector<17x8xf32>, vector<17x8xf32>, vector<17x8xf32>, vector<17x8xf32>, vector<17x8xf32>, vector<17x8xf32>, vector<17x8xf32>, vector<17x8xf32>, vector<17x8xf32> -> vector<17x80xf32>
    %48 = arith.truncf %47 : vector<17x80xf32> to vector<17x80xbf16>
    %c0_18 = arith.constant 0 : index
    %c0_19 = arith.constant 0 : index
    %49 = vector.load %arg9[%c0_18, %c0_19] : memref<80x32xbf16, #tpu.memory_space<vmem>>, vector<80x32xbf16>
    %cst_20 = arith.constant dense<0.000000e+00> : vector<17x32xf32>
    %50 = tpu.matmul %48, %49, %cst_20 {dimension_numbers = #tpu.dot_dimension_numbers<[1], [0], [0], [1], [0, 0, 1, 1], [], []>} : vector<17x80xbf16>, vector<80x32xbf16>, vector<17x32xf32> -> vector<17x32xf32>
    %c0_21 = arith.constant 0 : index
    %c0_22 = arith.constant 0 : index
    %51 = vector.load %arg10[%c0_21, %c0_22] : memref<1x32xf32, #tpu.memory_space<vmem>>, vector<1x32xf32>
    %52 = vector.broadcast %51 : vector<1x32xf32> to vector<17x32xf32>
    %53 = arith.addf %50, %52 : vector<17x32xf32>
    %cst_23 = arith.constant 0.000000e+00 : f32
    %54 = vector.broadcast %cst_23 : f32 to vector<17x32xf32>
    %55 = arith.maximumf %53, %54 : vector<17x32xf32>
    %56 = vector.extract_strided_slice %55 {offsets = [0, 0], sizes = [1, 32], strides = [1, 1]} : vector<17x32xf32> to vector<1x32xf32>
    %57 = vector.extract_strided_slice %55 {offsets = [16, 0], sizes = [1, 32], strides = [1, 1]} : vector<17x32xf32> to vector<1x32xf32>
    %58 = tpu.concatenate %56, %57 in 0 : vector<1x32xf32>, vector<1x32xf32> -> vector<2x32xf32>
    %59 = arith.truncf %58 : vector<2x32xf32> to vector<2x32xbf16>
    %c0_24 = arith.constant 0 : index
    %c0_25 = arith.constant 0 : index
    %60 = vector.load %arg11[%c0_24, %c0_25] : memref<32x16xbf16, #tpu.memory_space<vmem>>, vector<32x16xbf16>
    %cst_26 = arith.constant dense<0.000000e+00> : vector<2x16xf32>
    %61 = tpu.matmul %59, %60, %cst_26 {dimension_numbers = #tpu.dot_dimension_numbers<[1], [0], [0], [1], [0, 0, 1, 1], [], []>} : vector<2x32xbf16>, vector<32x16xbf16>, vector<2x16xf32> -> vector<2x16xf32>
    %c0_27 = arith.constant 0 : index
    %c0_28 = arith.constant 0 : index
    %62 = vector.load %arg12[%c0_27, %c0_28] : memref<1x16xf32, #tpu.memory_space<vmem>>, vector<1x16xf32>
    %63 = vector.broadcast %62 : vector<1x16xf32> to vector<2x16xf32>
    %64 = arith.addf %61, %63 : vector<2x16xf32>
    %65 = vector.extract_strided_slice %64 {offsets = [0, 0], sizes = [2, 8], strides = [1, 1]} : vector<2x16xf32> to vector<2x8xf32>
    %66 = vector.extract_strided_slice %64 {offsets = [0, 8], sizes = [2, 8], strides = [1, 1]} : vector<2x16xf32> to vector<2x8xf32>
    %cst_29 = arith.constant 5.000000e-01 : f32
    %67 = vector.broadcast %cst_29 : f32 to vector<2x8xf32>
    %68 = arith.mulf %67, %66 : vector<2x8xf32>
    %69 = math.exp %68 : vector<2x8xf32>
    %c0_30 = arith.constant 0 : index
    %c0_31 = arith.constant 0 : index
    %70 = vector.load %arg2[%c0_30, %c0_31] : memref<2x8xf32, #tpu.memory_space<vmem>>, vector<2x8xf32>
    %71 = arith.mulf %69, %70 : vector<2x8xf32>
    %72 = arith.addf %65, %71 : vector<2x8xf32>
    %c0_32 = arith.constant 0 : index
    %c0_33 = arith.constant 0 : index
    %73 = vector.load %arg25[%c0_32, %c0_33] : memref<2x8xf32, #tpu.memory_space<vmem>>, vector<2x8xf32>
    tpu.vector_store %arg25[%c0_32, %c0_33], %65 {strides = array<i32>} : memref<2x8xf32, #tpu.memory_space<vmem>>, vector<2x8xf32>,
    %c0_34 = arith.constant 0 : index
    %c0_35 = arith.constant 0 : index
    %74 = vector.load %arg26[%c0_34, %c0_35] : memref<2x8xf32, #tpu.memory_space<vmem>>, vector<2x8xf32>
    tpu.vector_store %arg26[%c0_34, %c0_35], %66 {strides = array<i32>} : memref<2x8xf32, #tpu.memory_space<vmem>>, vector<2x8xf32>,
    %c0_36 = arith.constant 0 : index
    %c0_37 = arith.constant 0 : index
    %75 = vector.load %arg27[%c0_36, %c0_37] : memref<2x8xf32, #tpu.memory_space<vmem>>, vector<2x8xf32>
    tpu.vector_store %arg27[%c0_36, %c0_37], %72 {strides = array<i32>} : memref<2x8xf32, #tpu.memory_space<vmem>>, vector<2x8xf32>,
    %76 = arith.truncf %72 : vector<2x8xf32> to vector<2x8xbf16>
    %c0_38 = arith.constant 0 : index
    %c0_39 = arith.constant 0 : index
    %77 = vector.load %arg13[%c0_38, %c0_39] : memref<8x32xbf16, #tpu.memory_space<vmem>>, vector<8x32xbf16>
    %cst_40 = arith.constant dense<0.000000e+00> : vector<2x32xf32>
    %78 = tpu.matmul %76, %77, %cst_40 {dimension_numbers = #tpu.dot_dimension_numbers<[1], [0], [0], [1], [0, 0, 1, 1], [], []>} : vector<2x8xbf16>, vector<8x32xbf16>, vector<2x32xf32> -> vector<2x32xf32>
    %c0_41 = arith.constant 0 : index
    %c0_42 = arith.constant 0 : index
    %79 = vector.load %arg14[%c0_41, %c0_42] : memref<1x32xf32, #tpu.memory_space<vmem>>, vector<1x32xf32>
    %80 = vector.broadcast %79 : vector<1x32xf32> to vector<2x32xf32>
    %81 = arith.addf %78, %80 : vector<2x32xf32>
    %cst_43 = arith.constant 0.000000e+00 : f32
    %82 = vector.broadcast %cst_43 : f32 to vector<2x32xf32>
    %83 = arith.maximumf %81, %82 : vector<2x32xf32>
    %84 = arith.truncf %83 : vector<2x32xf32> to vector<2x32xbf16>
    %c0_44 = arith.constant 0 : index
    %c0_45 = arith.constant 0 : index
    %85 = vector.load %arg15[%c0_44, %c0_45] : memref<32x96xbf16, #tpu.memory_space<vmem>>, vector<32x96xbf16>
    %cst_46 = arith.constant dense<0.000000e+00> : vector<2x96xf32>
    %86 = tpu.matmul %84, %85, %cst_46 {dimension_numbers = #tpu.dot_dimension_numbers<[1], [0], [0], [1], [0, 0, 1, 1], [], []>} : vector<2x32xbf16>, vector<32x96xbf16>, vector<2x96xf32> -> vector<2x96xf32>
    %c0_47 = arith.constant 0 : index
    %c0_48 = arith.constant 0 : index
    %87 = vector.load %arg16[%c0_47, %c0_48] : memref<1x96xf32, #tpu.memory_space<vmem>>, vector<1x96xf32>
    %88 = vector.broadcast %87 : vector<1x96xf32> to vector<2x96xf32>
    %89 = arith.addf %86, %88 : vector<2x96xf32>
    %cst_49 = arith.constant 0.000000e+00 : f32
    %90 = vector.broadcast %cst_49 : f32 to vector<2x32xf32>
    %cst_50 = arith.constant 0.000000e+00 : f32
    %91 = vector.broadcast %cst_50 : f32 to vector<2x32xf32>
    %cst_51 = arith.constant 0.000000e+00 : f32
    %92 = vector.broadcast %cst_51 : f32 to vector<2x32xf32>
    %93 = arith.truncf %90 : vector<2x32xf32> to vector<2x32xbf16>
    %c0_52 = arith.constant 0 : index
    %c0_53 = arith.constant 0 : index
    %94 = vector.load %arg17[%c0_52, %c0_53] : memref<32x96xbf16, #tpu.memory_space<vmem>>, vector<32x96xbf16>
    %cst_54 = arith.constant dense<0.000000e+00> : vector<2x96xf32>
    %95 = tpu.matmul %93, %94, %cst_54 {dimension_numbers = #tpu.dot_dimension_numbers<[1], [0], [0], [1], [0, 0, 1, 1], [], []>} : vector<2x32xbf16>, vector<32x96xbf16>, vector<2x96xf32> -> vector<2x96xf32>
    %c0_55 = arith.constant 0 : index
    %c0_56 = arith.constant 0 : index
    %96 = vector.load %arg18[%c0_55, %c0_56] : memref<1x96xf32, #tpu.memory_space<vmem>>, vector<1x96xf32>
    %97 = vector.broadcast %96 : vector<1x96xf32> to vector<2x96xf32>
    %98 = arith.addf %95, %97 : vector<2x96xf32>
    %99 = vector.extract_strided_slice %89 {offsets = [0, 0], sizes = [2, 32], strides = [1, 1]} : vector<2x96xf32> to vector<2x32xf32>
    %100 = vector.extract_strided_slice %98 {offsets = [0, 0], sizes = [2, 32], strides = [1, 1]} : vector<2x96xf32> to vector<2x32xf32>
    %101 = arith.addf %99, %100 : vector<2x32xf32>
    %102 = arith.negf %101 : vector<2x32xf32>
    %103 = math.exp %102 : vector<2x32xf32>
    %cst_57 = arith.constant 1.000000e+00 : f32
    %104 = vector.broadcast %cst_57 : f32 to vector<2x32xf32>
    %105 = arith.addf %104, %103 : vector<2x32xf32>
    %106 = arith.divf %104, %105 : vector<2x32xf32>
    %107 = vector.extract_strided_slice %89 {offsets = [0, 32], sizes = [2, 32], strides = [1, 1]} : vector<2x96xf32> to vector<2x32xf32>
    %108 = vector.extract_strided_slice %98 {offsets = [0, 32], sizes = [2, 32], strides = [1, 1]} : vector<2x96xf32> to vector<2x32xf32>
    %109 = arith.addf %107, %108 : vector<2x32xf32>
    %110 = arith.negf %109 : vector<2x32xf32>
    %111 = math.exp %110 : vector<2x32xf32>
    %cst_58 = arith.constant 1.000000e+00 : f32
    %112 = vector.broadcast %cst_58 : f32 to vector<2x32xf32>
    %113 = arith.addf %112, %111 : vector<2x32xf32>
    %114 = arith.divf %112, %113 : vector<2x32xf32>
    %115 = vector.extract_strided_slice %89 {offsets = [0, 64], sizes = [2, 32], strides = [1, 1]} : vector<2x96xf32> to vector<2x32xf32>
    %116 = vector.extract_strided_slice %98 {offsets = [0, 64], sizes = [2, 32], strides = [1, 1]} : vector<2x96xf32> to vector<2x32xf32>
    %117 = arith.mulf %106, %116 : vector<2x32xf32>
    %118 = arith.addf %115, %117 : vector<2x32xf32>
    %119 = math.tanh %118 : vector<2x32xf32>
    %cst_59 = arith.constant 1.000000e+00 : f32
    %120 = vector.broadcast %cst_59 : f32 to vector<2x32xf32>
    %121 = arith.subf %120, %114 : vector<2x32xf32>
    %122 = arith.mulf %121, %119 : vector<2x32xf32>
    %123 = arith.mulf %114, %90 : vector<2x32xf32>
    %124 = arith.addf %122, %123 : vector<2x32xf32>
    %125 = arith.truncf %124 : vector<2x32xf32> to vector<2x32xbf16>
    %c0_60 = arith.constant 0 : index
    %c0_61 = arith.constant 0 : index
    %126 = vector.load %arg17[%c0_60, %c0_61] : memref<32x96xbf16, #tpu.memory_space<vmem>>, vector<32x96xbf16>
    %cst_62 = arith.constant dense<0.000000e+00> : vector<2x96xf32>
    %127 = tpu.matmul %125, %126, %cst_62 {dimension_numbers = #tpu.dot_dimension_numbers<[1], [0], [0], [1], [0, 0, 1, 1], [], []>} : vector<2x32xbf16>, vector<32x96xbf16>, vector<2x96xf32> -> vector<2x96xf32>
    %c0_63 = arith.constant 0 : index
    %c0_64 = arith.constant 0 : index
    %128 = vector.load %arg18[%c0_63, %c0_64] : memref<1x96xf32, #tpu.memory_space<vmem>>, vector<1x96xf32>
    %129 = vector.broadcast %128 : vector<1x96xf32> to vector<2x96xf32>
    %130 = arith.addf %127, %129 : vector<2x96xf32>
    %131 = vector.extract_strided_slice %89 {offsets = [0, 0], sizes = [2, 32], strides = [1, 1]} : vector<2x96xf32> to vector<2x32xf32>
    %132 = vector.extract_strided_slice %130 {offsets = [0, 0], sizes = [2, 32], strides = [1, 1]} : vector<2x96xf32> to vector<2x32xf32>
    %133 = arith.addf %131, %132 : vector<2x32xf32>
    %134 = arith.negf %133 : vector<2x32xf32>
    %135 = math.exp %134 : vector<2x32xf32>
    %cst_65 = arith.constant 1.000000e+00 : f32
    %136 = vector.broadcast %cst_65 : f32 to vector<2x32xf32>
    %137 = arith.addf %136, %135 : vector<2x32xf32>
    %138 = arith.divf %136, %137 : vector<2x32xf32>
    %139 = vector.extract_strided_slice %89 {offsets = [0, 32], sizes = [2, 32], strides = [1, 1]} : vector<2x96xf32> to vector<2x32xf32>
    %140 = vector.extract_strided_slice %130 {offsets = [0, 32], sizes = [2, 32], strides = [1, 1]} : vector<2x96xf32> to vector<2x32xf32>
    %141 = arith.addf %139, %140 : vector<2x32xf32>
    %142 = arith.negf %141 : vector<2x32xf32>
    %143 = math.exp %142 : vector<2x32xf32>
    %cst_66 = arith.constant 1.000000e+00 : f32
    %144 = vector.broadcast %cst_66 : f32 to vector<2x32xf32>
    %145 = arith.addf %144, %143 : vector<2x32xf32>
    %146 = arith.divf %144, %145 : vector<2x32xf32>
    %147 = vector.extract_strided_slice %89 {offsets = [0, 64], sizes = [2, 32], strides = [1, 1]} : vector<2x96xf32> to vector<2x32xf32>
    %148 = vector.extract_strided_slice %130 {offsets = [0, 64], sizes = [2, 32], strides = [1, 1]} : vector<2x96xf32> to vector<2x32xf32>
    %149 = arith.mulf %138, %148 : vector<2x32xf32>
    %150 = arith.addf %147, %149 : vector<2x32xf32>
    %151 = math.tanh %150 : vector<2x32xf32>
    %cst_67 = arith.constant 1.000000e+00 : f32
    %152 = vector.broadcast %cst_67 : f32 to vector<2x32xf32>
    %153 = arith.subf %152, %146 : vector<2x32xf32>
    %154 = arith.mulf %153, %151 : vector<2x32xf32>
    %155 = arith.mulf %146, %124 : vector<2x32xf32>
    %156 = arith.addf %154, %155 : vector<2x32xf32>
    %157 = tpu.concatenate %124, %91 in 1 : vector<2x32xf32>, vector<2x32xf32> -> vector<2x64xf32>
    %158 = arith.truncf %157 : vector<2x64xf32> to vector<2x64xbf16>
    %c0_68 = arith.constant 0 : index
    %c0_69 = arith.constant 0 : index
    %159 = vector.load %arg19[%c0_68, %c0_69] : memref<64x128xbf16, #tpu.memory_space<vmem>>, vector<64x128xbf16>
    %cst_70 = arith.constant dense<0.000000e+00> : vector<2x128xf32>
    %160 = tpu.matmul %158, %159, %cst_70 {dimension_numbers = #tpu.dot_dimension_numbers<[1], [0], [0], [1], [0, 0, 1, 1], [], []>} : vector<2x64xbf16>, vector<64x128xbf16>, vector<2x128xf32> -> vector<2x128xf32>
    %c0_71 = arith.constant 0 : index
    %c0_72 = arith.constant 0 : index
    %161 = vector.load %arg20[%c0_71, %c0_72] : memref<1x128xf32, #tpu.memory_space<vmem>>, vector<1x128xf32>
    %162 = vector.broadcast %161 : vector<1x128xf32> to vector<2x128xf32>
    %163 = arith.addf %160, %162 : vector<2x128xf32>
    %164 = vector.extract_strided_slice %163 {offsets = [0, 0], sizes = [2, 32], strides = [1, 1]} : vector<2x128xf32> to vector<2x32xf32>
    %165 = arith.negf %164 : vector<2x32xf32>
    %166 = math.exp %165 : vector<2x32xf32>
    %cst_73 = arith.constant 1.000000e+00 : f32
    %167 = vector.broadcast %cst_73 : f32 to vector<2x32xf32>
    %168 = arith.addf %167, %166 : vector<2x32xf32>
    %169 = arith.divf %167, %168 : vector<2x32xf32>
    %170 = vector.extract_strided_slice %163 {offsets = [0, 32], sizes = [2, 32], strides = [1, 1]} : vector<2x128xf32> to vector<2x32xf32>
    %171 = arith.negf %170 : vector<2x32xf32>
    %172 = math.exp %171 : vector<2x32xf32>
    %cst_74 = arith.constant 1.000000e+00 : f32
    %173 = vector.broadcast %cst_74 : f32 to vector<2x32xf32>
    %174 = arith.addf %173, %172 : vector<2x32xf32>
    %175 = arith.divf %173, %174 : vector<2x32xf32>
    %176 = vector.extract_strided_slice %163 {offsets = [0, 64], sizes = [2, 32], strides = [1, 1]} : vector<2x128xf32> to vector<2x32xf32>
    %177 = vector.extract_strided_slice %163 {offsets = [0, 96], sizes = [2, 32], strides = [1, 1]} : vector<2x128xf32> to vector<2x32xf32>
    %178 = arith.mulf %169, %177 : vector<2x32xf32>
    %179 = arith.addf %176, %178 : vector<2x32xf32>
    %180 = math.tanh %179 : vector<2x32xf32>
    %cst_75 = arith.constant 1.000000e+00 : f32
    %181 = vector.broadcast %cst_75 : f32 to vector<2x32xf32>
    %182 = arith.subf %181, %175 : vector<2x32xf32>
    %183 = arith.mulf %182, %180 : vector<2x32xf32>
    %184 = arith.mulf %175, %91 : vector<2x32xf32>
    %185 = arith.addf %183, %184 : vector<2x32xf32>
    %186 = arith.truncf %156 : vector<2x32xf32> to vector<2x32xbf16>
    %c0_76 = arith.constant 0 : index
    %c0_77 = arith.constant 0 : index
    %187 = vector.load %arg17[%c0_76, %c0_77] : memref<32x96xbf16, #tpu.memory_space<vmem>>, vector<32x96xbf16>
    %cst_78 = arith.constant dense<0.000000e+00> : vector<2x96xf32>
    %188 = tpu.matmul %186, %187, %cst_78 {dimension_numbers = #tpu.dot_dimension_numbers<[1], [0], [0], [1], [0, 0, 1, 1], [], []>} : vector<2x32xbf16>, vector<32x96xbf16>, vector<2x96xf32> -> vector<2x96xf32>
    %c0_79 = arith.constant 0 : index
    %c0_80 = arith.constant 0 : index
    %189 = vector.load %arg18[%c0_79, %c0_80] : memref<1x96xf32, #tpu.memory_space<vmem>>, vector<1x96xf32>
    %190 = vector.broadcast %189 : vector<1x96xf32> to vector<2x96xf32>
    %191 = arith.addf %188, %190 : vector<2x96xf32>
    %192 = vector.extract_strided_slice %89 {offsets = [0, 0], sizes = [2, 32], strides = [1, 1]} : vector<2x96xf32> to vector<2x32xf32>
    %193 = vector.extract_strided_slice %191 {offsets = [0, 0], sizes = [2, 32], strides = [1, 1]} : vector<2x96xf32> to vector<2x32xf32>
    %194 = arith.addf %192, %193 : vector<2x32xf32>
    %195 = arith.negf %194 : vector<2x32xf32>
    %196 = math.exp %195 : vector<2x32xf32>
    %cst_81 = arith.constant 1.000000e+00 : f32
    %197 = vector.broadcast %cst_81 : f32 to vector<2x32xf32>
    %198 = arith.addf %197, %196 : vector<2x32xf32>
    %199 = arith.divf %197, %198 : vector<2x32xf32>
    %200 = vector.extract_strided_slice %89 {offsets = [0, 32], sizes = [2, 32], strides = [1, 1]} : vector<2x96xf32> to vector<2x32xf32>
    %201 = vector.extract_strided_slice %191 {offsets = [0, 32], sizes = [2, 32], strides = [1, 1]} : vector<2x96xf32> to vector<2x32xf32>
    %202 = arith.addf %200, %201 : vector<2x32xf32>
    %203 = arith.negf %202 : vector<2x32xf32>
    %204 = math.exp %203 : vector<2x32xf32>
    %cst_82 = arith.constant 1.000000e+00 : f32
    %205 = vector.broadcast %cst_82 : f32 to vector<2x32xf32>
    %206 = arith.addf %205, %204 : vector<2x32xf32>
    %207 = arith.divf %205, %206 : vector<2x32xf32>
    %208 = vector.extract_strided_slice %89 {offsets = [0, 64], sizes = [2, 32], strides = [1, 1]} : vector<2x96xf32> to vector<2x32xf32>
    %209 = vector.extract_strided_slice %191 {offsets = [0, 64], sizes = [2, 32], strides = [1, 1]} : vector<2x96xf32> to vector<2x32xf32>
    %210 = arith.mulf %199, %209 : vector<2x32xf32>
    %211 = arith.addf %208, %210 : vector<2x32xf32>
    %212 = math.tanh %211 : vector<2x32xf32>
    %cst_83 = arith.constant 1.000000e+00 : f32
    %213 = vector.broadcast %cst_83 : f32 to vector<2x32xf32>
    %214 = arith.subf %213, %207 : vector<2x32xf32>
    %215 = arith.mulf %214, %212 : vector<2x32xf32>
    %216 = arith.mulf %207, %156 : vector<2x32xf32>
    %217 = arith.addf %215, %216 : vector<2x32xf32>
    %218 = tpu.concatenate %156, %185 in 1 : vector<2x32xf32>, vector<2x32xf32> -> vector<2x64xf32>
    %219 = arith.truncf %218 : vector<2x64xf32> to vector<2x64xbf16>
    %c0_84 = arith.constant 0 : index
    %c0_85 = arith.constant 0 : index
    %220 = vector.load %arg19[%c0_84, %c0_85] : memref<64x128xbf16, #tpu.memory_space<vmem>>, vector<64x128xbf16>
    %cst_86 = arith.constant dense<0.000000e+00> : vector<2x128xf32>
    %221 = tpu.matmul %219, %220, %cst_86 {dimension_numbers = #tpu.dot_dimension_numbers<[1], [0], [0], [1], [0, 0, 1, 1], [], []>} : vector<2x64xbf16>, vector<64x128xbf16>, vector<2x128xf32> -> vector<2x128xf32>
    %c0_87 = arith.constant 0 : index
    %c0_88 = arith.constant 0 : index
    %222 = vector.load %arg20[%c0_87, %c0_88] : memref<1x128xf32, #tpu.memory_space<vmem>>, vector<1x128xf32>
    %223 = vector.broadcast %222 : vector<1x128xf32> to vector<2x128xf32>
    %224 = arith.addf %221, %223 : vector<2x128xf32>
    %225 = vector.extract_strided_slice %224 {offsets = [0, 0], sizes = [2, 32], strides = [1, 1]} : vector<2x128xf32> to vector<2x32xf32>
    %226 = arith.negf %225 : vector<2x32xf32>
    %227 = math.exp %226 : vector<2x32xf32>
    %cst_89 = arith.constant 1.000000e+00 : f32
    %228 = vector.broadcast %cst_89 : f32 to vector<2x32xf32>
    %229 = arith.addf %228, %227 : vector<2x32xf32>
    %230 = arith.divf %228, %229 : vector<2x32xf32>
    %231 = vector.extract_strided_slice %224 {offsets = [0, 32], sizes = [2, 32], strides = [1, 1]} : vector<2x128xf32> to vector<2x32xf32>
    %232 = arith.negf %231 : vector<2x32xf32>
    %233 = math.exp %232 : vector<2x32xf32>
    %cst_90 = arith.constant 1.000000e+00 : f32
    %234 = vector.broadcast %cst_90 : f32 to vector<2x32xf32>
    %235 = arith.addf %234, %233 : vector<2x32xf32>
    %236 = arith.divf %234, %235 : vector<2x32xf32>
    %237 = vector.extract_strided_slice %224 {offsets = [0, 64], sizes = [2, 32], strides = [1, 1]} : vector<2x128xf32> to vector<2x32xf32>
    %238 = vector.extract_strided_slice %224 {offsets = [0, 96], sizes = [2, 32], strides = [1, 1]} : vector<2x128xf32> to vector<2x32xf32>
    %239 = arith.mulf %230, %238 : vector<2x32xf32>
    %240 = arith.addf %237, %239 : vector<2x32xf32>
    %241 = math.tanh %240 : vector<2x32xf32>
    %cst_91 = arith.constant 1.000000e+00 : f32
    %242 = vector.broadcast %cst_91 : f32 to vector<2x32xf32>
    %243 = arith.subf %242, %236 : vector<2x32xf32>
    %244 = arith.mulf %243, %241 : vector<2x32xf32>
    %245 = arith.mulf %236, %185 : vector<2x32xf32>
    %246 = arith.addf %244, %245 : vector<2x32xf32>
    %247 = tpu.concatenate %185, %92 in 1 : vector<2x32xf32>, vector<2x32xf32> -> vector<2x64xf32>
    %248 = arith.truncf %247 : vector<2x64xf32> to vector<2x64xbf16>
    %c0_92 = arith.constant 0 : index
    %c0_93 = arith.constant 0 : index
    %249 = vector.load %arg21[%c0_92, %c0_93] : memref<64x128xbf16, #tpu.memory_space<vmem>>, vector<64x128xbf16>
    %cst_94 = arith.constant dense<0.000000e+00> : vector<2x128xf32>
    %250 = tpu.matmul %248, %249, %cst_94 {dimension_numbers = #tpu.dot_dimension_numbers<[1], [0], [0], [1], [0, 0, 1, 1], [], []>} : vector<2x64xbf16>, vector<64x128xbf16>, vector<2x128xf32> -> vector<2x128xf32>
    %c0_95 = arith.constant 0 : index
    %c0_96 = arith.constant 0 : index
    %251 = vector.load %arg22[%c0_95, %c0_96] : memref<1x128xf32, #tpu.memory_space<vmem>>, vector<1x128xf32>
    %252 = vector.broadcast %251 : vector<1x128xf32> to vector<2x128xf32>
    %253 = arith.addf %250, %252 : vector<2x128xf32>
    %254 = vector.extract_strided_slice %253 {offsets = [0, 0], sizes = [2, 32], strides = [1, 1]} : vector<2x128xf32> to vector<2x32xf32>
    %255 = arith.negf %254 : vector<2x32xf32>
    %256 = math.exp %255 : vector<2x32xf32>
    %cst_97 = arith.constant 1.000000e+00 : f32
    %257 = vector.broadcast %cst_97 : f32 to vector<2x32xf32>
    %258 = arith.addf %257, %256 : vector<2x32xf32>
    %259 = arith.divf %257, %258 : vector<2x32xf32>
    %260 = vector.extract_strided_slice %253 {offsets = [0, 32], sizes = [2, 32], strides = [1, 1]} : vector<2x128xf32> to vector<2x32xf32>
    %261 = arith.negf %260 : vector<2x32xf32>
    %262 = math.exp %261 : vector<2x32xf32>
    %cst_98 = arith.constant 1.000000e+00 : f32
    %263 = vector.broadcast %cst_98 : f32 to vector<2x32xf32>
    %264 = arith.addf %263, %262 : vector<2x32xf32>
    %265 = arith.divf %263, %264 : vector<2x32xf32>
    %266 = vector.extract_strided_slice %253 {offsets = [0, 64], sizes = [2, 32], strides = [1, 1]} : vector<2x128xf32> to vector<2x32xf32>
    %267 = vector.extract_strided_slice %253 {offsets = [0, 96], sizes = [2, 32], strides = [1, 1]} : vector<2x128xf32> to vector<2x32xf32>
    %268 = arith.mulf %259, %267 : vector<2x32xf32>
    %269 = arith.addf %266, %268 : vector<2x32xf32>
    %270 = math.tanh %269 : vector<2x32xf32>
    %cst_99 = arith.constant 1.000000e+00 : f32
    %271 = vector.broadcast %cst_99 : f32 to vector<2x32xf32>
    %272 = arith.subf %271, %265 : vector<2x32xf32>
    %273 = arith.mulf %272, %270 : vector<2x32xf32>
    %274 = arith.mulf %265, %92 : vector<2x32xf32>
    %275 = arith.addf %273, %274 : vector<2x32xf32>
    %276 = vector.extract_strided_slice %275 {offsets = [0, 0], sizes = [1, 32], strides = [1, 1]} : vector<2x32xf32> to vector<1x32xf32>
    %c0_100 = arith.constant 0 : index
    %c0_101 = arith.constant 0 : index
    %277 = vector.load %arg29[%c0_100, %c0_101] : memref<32x32xf32, #tpu.memory_space<vmem>>, vector<1x32xf32>
    tpu.vector_store %arg29[%c0_100, %c0_101], %276 {strides = array<i32>} : memref<32x32xf32, #tpu.memory_space<vmem>>, vector<1x32xf32>,
    %278 = vector.extract_strided_slice %275 {offsets = [1, 0], sizes = [1, 32], strides = [1, 1]} : vector<2x32xf32> to vector<1x32xf32>
    %c16 = arith.constant 16 : index
    %c0_102 = arith.constant 0 : index
    %279 = vector.load %arg29[%c16, %c0_102] : memref<32x32xf32, #tpu.memory_space<vmem>>, vector<1x32xf32>
    tpu.vector_store %arg29[%c16, %c0_102], %278 {strides = array<i32>} : memref<32x32xf32, #tpu.memory_space<vmem>>, vector<1x32xf32>,
    %280 = arith.truncf %217 : vector<2x32xf32> to vector<2x32xbf16>
    %c0_103 = arith.constant 0 : index
    %c0_104 = arith.constant 0 : index
    %281 = vector.load %arg17[%c0_103, %c0_104] : memref<32x96xbf16, #tpu.memory_space<vmem>>, vector<32x96xbf16>
    %cst_105 = arith.constant dense<0.000000e+00> : vector<2x96xf32>
    %282 = tpu.matmul %280, %281, %cst_105 {dimension_numbers = #tpu.dot_dimension_numbers<[1], [0], [0], [1], [0, 0, 1, 1], [], []>} : vector<2x32xbf16>, vector<32x96xbf16>, vector<2x96xf32> -> vector<2x96xf32>
    %c0_106 = arith.constant 0 : index
    %c0_107 = arith.constant 0 : index
    %283 = vector.load %arg18[%c0_106, %c0_107] : memref<1x96xf32, #tpu.memory_space<vmem>>, vector<1x96xf32>
    %284 = vector.broadcast %283 : vector<1x96xf32> to vector<2x96xf32>
    %285 = arith.addf %282, %284 : vector<2x96xf32>
    %286 = vector.extract_strided_slice %89 {offsets = [0, 0], sizes = [2, 32], strides = [1, 1]} : vector<2x96xf32> to vector<2x32xf32>
    %287 = vector.extract_strided_slice %285 {offsets = [0, 0], sizes = [2, 32], strides = [1, 1]} : vector<2x96xf32> to vector<2x32xf32>
    %288 = arith.addf %286, %287 : vector<2x32xf32>
    %289 = arith.negf %288 : vector<2x32xf32>
    %290 = math.exp %289 : vector<2x32xf32>
    %cst_108 = arith.constant 1.000000e+00 : f32
    %291 = vector.broadcast %cst_108 : f32 to vector<2x32xf32>
    %292 = arith.addf %291, %290 : vector<2x32xf32>
    %293 = arith.divf %291, %292 : vector<2x32xf32>
    %294 = vector.extract_strided_slice %89 {offsets = [0, 32], sizes = [2, 32], strides = [1, 1]} : vector<2x96xf32> to vector<2x32xf32>
    %295 = vector.extract_strided_slice %285 {offsets = [0, 32], sizes = [2, 32], strides = [1, 1]} : vector<2x96xf32> to vector<2x32xf32>
    %296 = arith.addf %294, %295 : vector<2x32xf32>
    %297 = arith.negf %296 : vector<2x32xf32>
    %298 = math.exp %297 : vector<2x32xf32>
    %cst_109 = arith.constant 1.000000e+00 : f32
    %299 = vector.broadcast %cst_109 : f32 to vector<2x32xf32>
    %300 = arith.addf %299, %298 : vector<2x32xf32>
    %301 = arith.divf %299, %300 : vector<2x32xf32>
    %302 = vector.extract_strided_slice %89 {offsets = [0, 64], sizes = [2, 32], strides = [1, 1]} : vector<2x96xf32> to vector<2x32xf32>
    %303 = vector.extract_strided_slice %285 {offsets = [0, 64], sizes = [2, 32], strides = [1, 1]} : vector<2x96xf32> to vector<2x32xf32>
    %304 = arith.mulf %293, %303 : vector<2x32xf32>
    %305 = arith.addf %302, %304 : vector<2x32xf32>
    %306 = math.tanh %305 : vector<2x32xf32>
    %cst_110 = arith.constant 1.000000e+00 : f32
    %307 = vector.broadcast %cst_110 : f32 to vector<2x32xf32>
    %308 = arith.subf %307, %301 : vector<2x32xf32>
    %309 = arith.mulf %308, %306 : vector<2x32xf32>
    %310 = arith.mulf %301, %217 : vector<2x32xf32>
    %311 = arith.addf %309, %310 : vector<2x32xf32>
    %312 = tpu.concatenate %217, %246 in 1 : vector<2x32xf32>, vector<2x32xf32> -> vector<2x64xf32>
    %313 = arith.truncf %312 : vector<2x64xf32> to vector<2x64xbf16>
    %c0_111 = arith.constant 0 : index
    %c0_112 = arith.constant 0 : index
    %314 = vector.load %arg19[%c0_111, %c0_112] : memref<64x128xbf16, #tpu.memory_space<vmem>>, vector<64x128xbf16>
    %cst_113 = arith.constant dense<0.000000e+00> : vector<2x128xf32>
    %315 = tpu.matmul %313, %314, %cst_113 {dimension_numbers = #tpu.dot_dimension_numbers<[1], [0], [0], [1], [0, 0, 1, 1], [], []>} : vector<2x64xbf16>, vector<64x128xbf16>, vector<2x128xf32> -> vector<2x128xf32>
    %c0_114 = arith.constant 0 : index
    %c0_115 = arith.constant 0 : index
    %316 = vector.load %arg20[%c0_114, %c0_115] : memref<1x128xf32, #tpu.memory_space<vmem>>, vector<1x128xf32>
    %317 = vector.broadcast %316 : vector<1x128xf32> to vector<2x128xf32>
    %318 = arith.addf %315, %317 : vector<2x128xf32>
    %319 = vector.extract_strided_slice %318 {offsets = [0, 0], sizes = [2, 32], strides = [1, 1]} : vector<2x128xf32> to vector<2x32xf32>
    %320 = arith.negf %319 : vector<2x32xf32>
    %321 = math.exp %320 : vector<2x32xf32>
    %cst_116 = arith.constant 1.000000e+00 : f32
    %322 = vector.broadcast %cst_116 : f32 to vector<2x32xf32>
    %323 = arith.addf %322, %321 : vector<2x32xf32>
    %324 = arith.divf %322, %323 : vector<2x32xf32>
    %325 = vector.extract_strided_slice %318 {offsets = [0, 32], sizes = [2, 32], strides = [1, 1]} : vector<2x128xf32> to vector<2x32xf32>
    %326 = arith.negf %325 : vector<2x32xf32>
    %327 = math.exp %326 : vector<2x32xf32>
    %cst_117 = arith.constant 1.000000e+00 : f32
    %328 = vector.broadcast %cst_117 : f32 to vector<2x32xf32>
    %329 = arith.addf %328, %327 : vector<2x32xf32>
    %330 = arith.divf %328, %329 : vector<2x32xf32>
    %331 = vector.extract_strided_slice %318 {offsets = [0, 64], sizes = [2, 32], strides = [1, 1]} : vector<2x128xf32> to vector<2x32xf32>
    %332 = vector.extract_strided_slice %318 {offsets = [0, 96], sizes = [2, 32], strides = [1, 1]} : vector<2x128xf32> to vector<2x32xf32>
    %333 = arith.mulf %324, %332 : vector<2x32xf32>
    %334 = arith.addf %331, %333 : vector<2x32xf32>
    %335 = math.tanh %334 : vector<2x32xf32>
    %cst_118 = arith.constant 1.000000e+00 : f32
    %336 = vector.broadcast %cst_118 : f32 to vector<2x32xf32>
    %337 = arith.subf %336, %330 : vector<2x32xf32>
    %338 = arith.mulf %337, %335 : vector<2x32xf32>
    %339 = arith.mulf %330, %246 : vector<2x32xf32>
    %340 = arith.addf %338, %339 : vector<2x32xf32>
    %341 = tpu.concatenate %246, %275 in 1 : vector<2x32xf32>, vector<2x32xf32> -> vector<2x64xf32>
    %342 = arith.truncf %341 : vector<2x64xf32> to vector<2x64xbf16>
    %c0_119 = arith.constant 0 : index
    %c0_120 = arith.constant 0 : index
    %343 = vector.load %arg21[%c0_119, %c0_120] : memref<64x128xbf16, #tpu.memory_space<vmem>>, vector<64x128xbf16>
    %cst_121 = arith.constant dense<0.000000e+00> : vector<2x128xf32>
    %344 = tpu.matmul %342, %343, %cst_121 {dimension_numbers = #tpu.dot_dimension_numbers<[1], [0], [0], [1], [0, 0, 1, 1], [], []>} : vector<2x64xbf16>, vector<64x128xbf16>, vector<2x128xf32> -> vector<2x128xf32>
    %c0_122 = arith.constant 0 : index
    %c0_123 = arith.constant 0 : index
    %345 = vector.load %arg22[%c0_122, %c0_123] : memref<1x128xf32, #tpu.memory_space<vmem>>, vector<1x128xf32>
    %346 = vector.broadcast %345 : vector<1x128xf32> to vector<2x128xf32>
    %347 = arith.addf %344, %346 : vector<2x128xf32>
    %348 = vector.extract_strided_slice %347 {offsets = [0, 0], sizes = [2, 32], strides = [1, 1]} : vector<2x128xf32> to vector<2x32xf32>
    %349 = arith.negf %348 : vector<2x32xf32>
    %350 = math.exp %349 : vector<2x32xf32>
    %cst_124 = arith.constant 1.000000e+00 : f32
    %351 = vector.broadcast %cst_124 : f32 to vector<2x32xf32>
    %352 = arith.addf %351, %350 : vector<2x32xf32>
    %353 = arith.divf %351, %352 : vector<2x32xf32>
    %354 = vector.extract_strided_slice %347 {offsets = [0, 32], sizes = [2, 32], strides = [1, 1]} : vector<2x128xf32> to vector<2x32xf32>
    %355 = arith.negf %354 : vector<2x32xf32>
    %356 = math.exp %355 : vector<2x32xf32>
    %cst_125 = arith.constant 1.000000e+00 : f32
    %357 = vector.broadcast %cst_125 : f32 to vector<2x32xf32>
    %358 = arith.addf %357, %356 : vector<2x32xf32>
    %359 = arith.divf %357, %358 : vector<2x32xf32>
    %360 = vector.extract_strided_slice %347 {offsets = [0, 64], sizes = [2, 32], strides = [1, 1]} : vector<2x128xf32> to vector<2x32xf32>
    %361 = vector.extract_strided_slice %347 {offsets = [0, 96], sizes = [2, 32], strides = [1, 1]} : vector<2x128xf32> to vector<2x32xf32>
    %362 = arith.mulf %353, %361 : vector<2x32xf32>
    %363 = arith.addf %360, %362 : vector<2x32xf32>
    %364 = math.tanh %363 : vector<2x32xf32>
    %cst_126 = arith.constant 1.000000e+00 : f32
    %365 = vector.broadcast %cst_126 : f32 to vector<2x32xf32>
    %366 = arith.subf %365, %359 : vector<2x32xf32>
    %367 = arith.mulf %366, %364 : vector<2x32xf32>
    %368 = arith.mulf %359, %275 : vector<2x32xf32>
    %369 = arith.addf %367, %368 : vector<2x32xf32>
    %370 = vector.extract_strided_slice %369 {offsets = [0, 0], sizes = [1, 32], strides = [1, 1]} : vector<2x32xf32> to vector<1x32xf32>
    %c1 = arith.constant 1 : index
    %c0_127 = arith.constant 0 : index
    %371 = vector.load %arg29[%c1, %c0_127] : memref<32x32xf32, #tpu.memory_space<vmem>>, vector<1x32xf32>
    tpu.vector_store %arg29[%c1, %c0_127], %370 {strides = array<i32>} : memref<32x32xf32, #tpu.memory_space<vmem>>, vector<1x32xf32>,
    %372 = vector.extract_strided_slice %369 {offsets = [1, 0], sizes = [1, 32], strides = [1, 1]} : vector<2x32xf32> to vector<1x32xf32>
    %c17 = arith.constant 17 : index
    %c0_128 = arith.constant 0 : index
    %373 = vector.load %arg29[%c17, %c0_128] : memref<32x32xf32, #tpu.memory_space<vmem>>, vector<1x32xf32>
    tpu.vector_store %arg29[%c17, %c0_128], %372 {strides = array<i32>} : memref<32x32xf32, #tpu.memory_space<vmem>>, vector<1x32xf32>,
    %374 = arith.truncf %311 : vector<2x32xf32> to vector<2x32xbf16>
    %c0_129 = arith.constant 0 : index
    %c0_130 = arith.constant 0 : index
    %375 = vector.load %arg17[%c0_129, %c0_130] : memref<32x96xbf16, #tpu.memory_space<vmem>>, vector<32x96xbf16>
    %cst_131 = arith.constant dense<0.000000e+00> : vector<2x96xf32>
    %376 = tpu.matmul %374, %375, %cst_131 {dimension_numbers = #tpu.dot_dimension_numbers<[1], [0], [0], [1], [0, 0, 1, 1], [], []>} : vector<2x32xbf16>, vector<32x96xbf16>, vector<2x96xf32> -> vector<2x96xf32>
    %c0_132 = arith.constant 0 : index
    %c0_133 = arith.constant 0 : index
    %377 = vector.load %arg18[%c0_132, %c0_133] : memref<1x96xf32, #tpu.memory_space<vmem>>, vector<1x96xf32>
    %378 = vector.broadcast %377 : vector<1x96xf32> to vector<2x96xf32>
    %379 = arith.addf %376, %378 : vector<2x96xf32>
    %380 = vector.extract_strided_slice %89 {offsets = [0, 0], sizes = [2, 32], strides = [1, 1]} : vector<2x96xf32> to vector<2x32xf32>
    %381 = vector.extract_strided_slice %379 {offsets = [0, 0], sizes = [2, 32], strides = [1, 1]} : vector<2x96xf32> to vector<2x32xf32>
    %382 = arith.addf %380, %381 : vector<2x32xf32>
    %383 = arith.negf %382 : vector<2x32xf32>
    %384 = math.exp %383 : vector<2x32xf32>
    %cst_134 = arith.constant 1.000000e+00 : f32
    %385 = vector.broadcast %cst_134 : f32 to vector<2x32xf32>
    %386 = arith.addf %385, %384 : vector<2x32xf32>
    %387 = arith.divf %385, %386 : vector<2x32xf32>
    %388 = vector.extract_strided_slice %89 {offsets = [0, 32], sizes = [2, 32], strides = [1, 1]} : vector<2x96xf32> to vector<2x32xf32>
    %389 = vector.extract_strided_slice %379 {offsets = [0, 32], sizes = [2, 32], strides = [1, 1]} : vector<2x96xf32> to vector<2x32xf32>
    %390 = arith.addf %388, %389 : vector<2x32xf32>
    %391 = arith.negf %390 : vector<2x32xf32>
    %392 = math.exp %391 : vector<2x32xf32>
    %cst_135 = arith.constant 1.000000e+00 : f32
    %393 = vector.broadcast %cst_135 : f32 to vector<2x32xf32>
    %394 = arith.addf %393, %392 : vector<2x32xf32>
    %395 = arith.divf %393, %394 : vector<2x32xf32>
    %396 = vector.extract_strided_slice %89 {offsets = [0, 64], sizes = [2, 32], strides = [1, 1]} : vector<2x96xf32> to vector<2x32xf32>
    %397 = vector.extract_strided_slice %379 {offsets = [0, 64], sizes = [2, 32], strides = [1, 1]} : vector<2x96xf32> to vector<2x32xf32>
    %398 = arith.mulf %387, %397 : vector<2x32xf32>
    %399 = arith.addf %396, %398 : vector<2x32xf32>
    %400 = math.tanh %399 : vector<2x32xf32>
    %cst_136 = arith.constant 1.000000e+00 : f32
    %401 = vector.broadcast %cst_136 : f32 to vector<2x32xf32>
    %402 = arith.subf %401, %395 : vector<2x32xf32>
    %403 = arith.mulf %402, %400 : vector<2x32xf32>
    %404 = arith.mulf %395, %311 : vector<2x32xf32>
    %405 = arith.addf %403, %404 : vector<2x32xf32>
    %406 = tpu.concatenate %311, %340 in 1 : vector<2x32xf32>, vector<2x32xf32> -> vector<2x64xf32>
    %407 = arith.truncf %406 : vector<2x64xf32> to vector<2x64xbf16>
    %c0_137 = arith.constant 0 : index
    %c0_138 = arith.constant 0 : index
    %408 = vector.load %arg19[%c0_137, %c0_138] : memref<64x128xbf16, #tpu.memory_space<vmem>>, vector<64x128xbf16>
    %cst_139 = arith.constant dense<0.000000e+00> : vector<2x128xf32>
    %409 = tpu.matmul %407, %408, %cst_139 {dimension_numbers = #tpu.dot_dimension_numbers<[1], [0], [0], [1], [0, 0, 1, 1], [], []>} : vector<2x64xbf16>, vector<64x128xbf16>, vector<2x128xf32> -> vector<2x128xf32>
    %c0_140 = arith.constant 0 : index
    %c0_141 = arith.constant 0 : index
    %410 = vector.load %arg20[%c0_140, %c0_141] : memref<1x128xf32, #tpu.memory_space<vmem>>, vector<1x128xf32>
    %411 = vector.broadcast %410 : vector<1x128xf32> to vector<2x128xf32>
    %412 = arith.addf %409, %411 : vector<2x128xf32>
    %413 = vector.extract_strided_slice %412 {offsets = [0, 0], sizes = [2, 32], strides = [1, 1]} : vector<2x128xf32> to vector<2x32xf32>
    %414 = arith.negf %413 : vector<2x32xf32>
    %415 = math.exp %414 : vector<2x32xf32>
    %cst_142 = arith.constant 1.000000e+00 : f32
    %416 = vector.broadcast %cst_142 : f32 to vector<2x32xf32>
    %417 = arith.addf %416, %415 : vector<2x32xf32>
    %418 = arith.divf %416, %417 : vector<2x32xf32>
    %419 = vector.extract_strided_slice %412 {offsets = [0, 32], sizes = [2, 32], strides = [1, 1]} : vector<2x128xf32> to vector<2x32xf32>
    %420 = arith.negf %419 : vector<2x32xf32>
    %421 = math.exp %420 : vector<2x32xf32>
    %cst_143 = arith.constant 1.000000e+00 : f32
    %422 = vector.broadcast %cst_143 : f32 to vector<2x32xf32>
    %423 = arith.addf %422, %421 : vector<2x32xf32>
    %424 = arith.divf %422, %423 : vector<2x32xf32>
    %425 = vector.extract_strided_slice %412 {offsets = [0, 64], sizes = [2, 32], strides = [1, 1]} : vector<2x128xf32> to vector<2x32xf32>
    %426 = vector.extract_strided_slice %412 {offsets = [0, 96], sizes = [2, 32], strides = [1, 1]} : vector<2x128xf32> to vector<2x32xf32>
    %427 = arith.mulf %418, %426 : vector<2x32xf32>
    %428 = arith.addf %425, %427 : vector<2x32xf32>
    %429 = math.tanh %428 : vector<2x32xf32>
    %cst_144 = arith.constant 1.000000e+00 : f32
    %430 = vector.broadcast %cst_144 : f32 to vector<2x32xf32>
    %431 = arith.subf %430, %424 : vector<2x32xf32>
    %432 = arith.mulf %431, %429 : vector<2x32xf32>
    %433 = arith.mulf %424, %340 : vector<2x32xf32>
    %434 = arith.addf %432, %433 : vector<2x32xf32>
    %435 = tpu.concatenate %340, %369 in 1 : vector<2x32xf32>, vector<2x32xf32> -> vector<2x64xf32>
    %436 = arith.truncf %435 : vector<2x64xf32> to vector<2x64xbf16>
    %c0_145 = arith.constant 0 : index
    %c0_146 = arith.constant 0 : index
    %437 = vector.load %arg21[%c0_145, %c0_146] : memref<64x128xbf16, #tpu.memory_space<vmem>>, vector<64x128xbf16>
    %cst_147 = arith.constant dense<0.000000e+00> : vector<2x128xf32>
    %438 = tpu.matmul %436, %437, %cst_147 {dimension_numbers = #tpu.dot_dimension_numbers<[1], [0], [0], [1], [0, 0, 1, 1], [], []>} : vector<2x64xbf16>, vector<64x128xbf16>, vector<2x128xf32> -> vector<2x128xf32>
    %c0_148 = arith.constant 0 : index
    %c0_149 = arith.constant 0 : index
    %439 = vector.load %arg22[%c0_148, %c0_149] : memref<1x128xf32, #tpu.memory_space<vmem>>, vector<1x128xf32>
    %440 = vector.broadcast %439 : vector<1x128xf32> to vector<2x128xf32>
    %441 = arith.addf %438, %440 : vector<2x128xf32>
    %442 = vector.extract_strided_slice %441 {offsets = [0, 0], sizes = [2, 32], strides = [1, 1]} : vector<2x128xf32> to vector<2x32xf32>
    %443 = arith.negf %442 : vector<2x32xf32>
    %444 = math.exp %443 : vector<2x32xf32>
    %cst_150 = arith.constant 1.000000e+00 : f32
    %445 = vector.broadcast %cst_150 : f32 to vector<2x32xf32>
    %446 = arith.addf %445, %444 : vector<2x32xf32>
    %447 = arith.divf %445, %446 : vector<2x32xf32>
    %448 = vector.extract_strided_slice %441 {offsets = [0, 32], sizes = [2, 32], strides = [1, 1]} : vector<2x128xf32> to vector<2x32xf32>
    %449 = arith.negf %448 : vector<2x32xf32>
    %450 = math.exp %449 : vector<2x32xf32>
    %cst_151 = arith.constant 1.000000e+00 : f32
    %451 = vector.broadcast %cst_151 : f32 to vector<2x32xf32>
    %452 = arith.addf %451, %450 : vector<2x32xf32>
    %453 = arith.divf %451, %452 : vector<2x32xf32>
    %454 = vector.extract_strided_slice %441 {offsets = [0, 64], sizes = [2, 32], strides = [1, 1]} : vector<2x128xf32> to vector<2x32xf32>
    %455 = vector.extract_strided_slice %441 {offsets = [0, 96], sizes = [2, 32], strides = [1, 1]} : vector<2x128xf32> to vector<2x32xf32>
    %456 = arith.mulf %447, %455 : vector<2x32xf32>
    %457 = arith.addf %454, %456 : vector<2x32xf32>
    %458 = math.tanh %457 : vector<2x32xf32>
    %cst_152 = arith.constant 1.000000e+00 : f32
    %459 = vector.broadcast %cst_152 : f32 to vector<2x32xf32>
    %460 = arith.subf %459, %453 : vector<2x32xf32>
    %461 = arith.mulf %460, %458 : vector<2x32xf32>
    %462 = arith.mulf %453, %369 : vector<2x32xf32>
    %463 = arith.addf %461, %462 : vector<2x32xf32>
    %464 = vector.extract_strided_slice %463 {offsets = [0, 0], sizes = [1, 32], strides = [1, 1]} : vector<2x32xf32> to vector<1x32xf32>
    %c2 = arith.constant 2 : index
    %c0_153 = arith.constant 0 : index
    %465 = vector.load %arg29[%c2, %c0_153] : memref<32x32xf32, #tpu.memory_space<vmem>>, vector<1x32xf32>
    tpu.vector_store %arg29[%c2, %c0_153], %464 {strides = array<i32>} : memref<32x32xf32, #tpu.memory_space<vmem>>, vector<1x32xf32>,
    %466 = vector.extract_strided_slice %463 {offsets = [1, 0], sizes = [1, 32], strides = [1, 1]} : vector<2x32xf32> to vector<1x32xf32>
    %c18 = arith.constant 18 : index
    %c0_154 = arith.constant 0 : index
    %467 = vector.load %arg29[%c18, %c0_154] : memref<32x32xf32, #tpu.memory_space<vmem>>, vector<1x32xf32>
    tpu.vector_store %arg29[%c18, %c0_154], %466 {strides = array<i32>} : memref<32x32xf32, #tpu.memory_space<vmem>>, vector<1x32xf32>,
    %468 = arith.truncf %405 : vector<2x32xf32> to vector<2x32xbf16>
    %c0_155 = arith.constant 0 : index
    %c0_156 = arith.constant 0 : index
    %469 = vector.load %arg17[%c0_155, %c0_156] : memref<32x96xbf16, #tpu.memory_space<vmem>>, vector<32x96xbf16>
    %cst_157 = arith.constant dense<0.000000e+00> : vector<2x96xf32>
    %470 = tpu.matmul %468, %469, %cst_157 {dimension_numbers = #tpu.dot_dimension_numbers<[1], [0], [0], [1], [0, 0, 1, 1], [], []>} : vector<2x32xbf16>, vector<32x96xbf16>, vector<2x96xf32> -> vector<2x96xf32>
    %c0_158 = arith.constant 0 : index
    %c0_159 = arith.constant 0 : index
    %471 = vector.load %arg18[%c0_158, %c0_159] : memref<1x96xf32, #tpu.memory_space<vmem>>, vector<1x96xf32>
    %472 = vector.broadcast %471 : vector<1x96xf32> to vector<2x96xf32>
    %473 = arith.addf %470, %472 : vector<2x96xf32>
    %474 = vector.extract_strided_slice %89 {offsets = [0, 0], sizes = [2, 32], strides = [1, 1]} : vector<2x96xf32> to vector<2x32xf32>
    %475 = vector.extract_strided_slice %473 {offsets = [0, 0], sizes = [2, 32], strides = [1, 1]} : vector<2x96xf32> to vector<2x32xf32>
    %476 = arith.addf %474, %475 : vector<2x32xf32>
    %477 = arith.negf %476 : vector<2x32xf32>
    %478 = math.exp %477 : vector<2x32xf32>
    %cst_160 = arith.constant 1.000000e+00 : f32
    %479 = vector.broadcast %cst_160 : f32 to vector<2x32xf32>
    %480 = arith.addf %479, %478 : vector<2x32xf32>
    %481 = arith.divf %479, %480 : vector<2x32xf32>
    %482 = vector.extract_strided_slice %89 {offsets = [0, 32], sizes = [2, 32], strides = [1, 1]} : vector<2x96xf32> to vector<2x32xf32>
    %483 = vector.extract_strided_slice %473 {offsets = [0, 32], sizes = [2, 32], strides = [1, 1]} : vector<2x96xf32> to vector<2x32xf32>
    %484 = arith.addf %482, %483 : vector<2x32xf32>
    %485 = arith.negf %484 : vector<2x32xf32>
    %486 = math.exp %485 : vector<2x32xf32>
    %cst_161 = arith.constant 1.000000e+00 : f32
    %487 = vector.broadcast %cst_161 : f32 to vector<2x32xf32>
    %488 = arith.addf %487, %486 : vector<2x32xf32>
    %489 = arith.divf %487, %488 : vector<2x32xf32>
    %490 = vector.extract_strided_slice %89 {offsets = [0, 64], sizes = [2, 32], strides = [1, 1]} : vector<2x96xf32> to vector<2x32xf32>
    %491 = vector.extract_strided_slice %473 {offsets = [0, 64], sizes = [2, 32], strides = [1, 1]} : vector<2x96xf32> to vector<2x32xf32>
    %492 = arith.mulf %481, %491 : vector<2x32xf32>
    %493 = arith.addf %490, %492 : vector<2x32xf32>
    %494 = math.tanh %493 : vector<2x32xf32>
    %cst_162 = arith.constant 1.000000e+00 : f32
    %495 = vector.broadcast %cst_162 : f32 to vector<2x32xf32>
    %496 = arith.subf %495, %489 : vector<2x32xf32>
    %497 = arith.mulf %496, %494 : vector<2x32xf32>
    %498 = arith.mulf %489, %405 : vector<2x32xf32>
    %499 = arith.addf %497, %498 : vector<2x32xf32>
    %500 = tpu.concatenate %405, %434 in 1 : vector<2x32xf32>, vector<2x32xf32> -> vector<2x64xf32>
    %501 = arith.truncf %500 : vector<2x64xf32> to vector<2x64xbf16>
    %c0_163 = arith.constant 0 : index
    %c0_164 = arith.constant 0 : index
    %502 = vector.load %arg19[%c0_163, %c0_164] : memref<64x128xbf16, #tpu.memory_space<vmem>>, vector<64x128xbf16>
    %cst_165 = arith.constant dense<0.000000e+00> : vector<2x128xf32>
    %503 = tpu.matmul %501, %502, %cst_165 {dimension_numbers = #tpu.dot_dimension_numbers<[1], [0], [0], [1], [0, 0, 1, 1], [], []>} : vector<2x64xbf16>, vector<64x128xbf16>, vector<2x128xf32> -> vector<2x128xf32>
    %c0_166 = arith.constant 0 : index
    %c0_167 = arith.constant 0 : index
    %504 = vector.load %arg20[%c0_166, %c0_167] : memref<1x128xf32, #tpu.memory_space<vmem>>, vector<1x128xf32>
    %505 = vector.broadcast %504 : vector<1x128xf32> to vector<2x128xf32>
    %506 = arith.addf %503, %505 : vector<2x128xf32>
    %507 = vector.extract_strided_slice %506 {offsets = [0, 0], sizes = [2, 32], strides = [1, 1]} : vector<2x128xf32> to vector<2x32xf32>
    %508 = arith.negf %507 : vector<2x32xf32>
    %509 = math.exp %508 : vector<2x32xf32>
    %cst_168 = arith.constant 1.000000e+00 : f32
    %510 = vector.broadcast %cst_168 : f32 to vector<2x32xf32>
    %511 = arith.addf %510, %509 : vector<2x32xf32>
    %512 = arith.divf %510, %511 : vector<2x32xf32>
    %513 = vector.extract_strided_slice %506 {offsets = [0, 32], sizes = [2, 32], strides = [1, 1]} : vector<2x128xf32> to vector<2x32xf32>
    %514 = arith.negf %513 : vector<2x32xf32>
    %515 = math.exp %514 : vector<2x32xf32>
    %cst_169 = arith.constant 1.000000e+00 : f32
    %516 = vector.broadcast %cst_169 : f32 to vector<2x32xf32>
    %517 = arith.addf %516, %515 : vector<2x32xf32>
    %518 = arith.divf %516, %517 : vector<2x32xf32>
    %519 = vector.extract_strided_slice %506 {offsets = [0, 64], sizes = [2, 32], strides = [1, 1]} : vector<2x128xf32> to vector<2x32xf32>
    %520 = vector.extract_strided_slice %506 {offsets = [0, 96], sizes = [2, 32], strides = [1, 1]} : vector<2x128xf32> to vector<2x32xf32>
    %521 = arith.mulf %512, %520 : vector<2x32xf32>
    %522 = arith.addf %519, %521 : vector<2x32xf32>
    %523 = math.tanh %522 : vector<2x32xf32>
    %cst_170 = arith.constant 1.000000e+00 : f32
    %524 = vector.broadcast %cst_170 : f32 to vector<2x32xf32>
    %525 = arith.subf %524, %518 : vector<2x32xf32>
    %526 = arith.mulf %525, %523 : vector<2x32xf32>
    %527 = arith.mulf %518, %434 : vector<2x32xf32>
    %528 = arith.addf %526, %527 : vector<2x32xf32>
    %529 = tpu.concatenate %434, %463 in 1 : vector<2x32xf32>, vector<2x32xf32> -> vector<2x64xf32>
    %530 = arith.truncf %529 : vector<2x64xf32> to vector<2x64xbf16>
    %c0_171 = arith.constant 0 : index
    %c0_172 = arith.constant 0 : index
    %531 = vector.load %arg21[%c0_171, %c0_172] : memref<64x128xbf16, #tpu.memory_space<vmem>>, vector<64x128xbf16>
    %cst_173 = arith.constant dense<0.000000e+00> : vector<2x128xf32>
    %532 = tpu.matmul %530, %531, %cst_173 {dimension_numbers = #tpu.dot_dimension_numbers<[1], [0], [0], [1], [0, 0, 1, 1], [], []>} : vector<2x64xbf16>, vector<64x128xbf16>, vector<2x128xf32> -> vector<2x128xf32>
    %c0_174 = arith.constant 0 : index
    %c0_175 = arith.constant 0 : index
    %533 = vector.load %arg22[%c0_174, %c0_175] : memref<1x128xf32, #tpu.memory_space<vmem>>, vector<1x128xf32>
    %534 = vector.broadcast %533 : vector<1x128xf32> to vector<2x128xf32>
    %535 = arith.addf %532, %534 : vector<2x128xf32>
    %536 = vector.extract_strided_slice %535 {offsets = [0, 0], sizes = [2, 32], strides = [1, 1]} : vector<2x128xf32> to vector<2x32xf32>
    %537 = arith.negf %536 : vector<2x32xf32>
    %538 = math.exp %537 : vector<2x32xf32>
    %cst_176 = arith.constant 1.000000e+00 : f32
    %539 = vector.broadcast %cst_176 : f32 to vector<2x32xf32>
    %540 = arith.addf %539, %538 : vector<2x32xf32>
    %541 = arith.divf %539, %540 : vector<2x32xf32>
    %542 = vector.extract_strided_slice %535 {offsets = [0, 32], sizes = [2, 32], strides = [1, 1]} : vector<2x128xf32> to vector<2x32xf32>
    %543 = arith.negf %542 : vector<2x32xf32>
    %544 = math.exp %543 : vector<2x32xf32>
    %cst_177 = arith.constant 1.000000e+00 : f32
    %545 = vector.broadcast %cst_177 : f32 to vector<2x32xf32>
    %546 = arith.addf %545, %544 : vector<2x32xf32>
    %547 = arith.divf %545, %546 : vector<2x32xf32>
    %548 = vector.extract_strided_slice %535 {offsets = [0, 64], sizes = [2, 32], strides = [1, 1]} : vector<2x128xf32> to vector<2x32xf32>
    %549 = vector.extract_strided_slice %535 {offsets = [0, 96], sizes = [2, 32], strides = [1, 1]} : vector<2x128xf32> to vector<2x32xf32>
    %550 = arith.mulf %541, %549 : vector<2x32xf32>
    %551 = arith.addf %548, %550 : vector<2x32xf32>
    %552 = math.tanh %551 : vector<2x32xf32>
    %cst_178 = arith.constant 1.000000e+00 : f32
    %553 = vector.broadcast %cst_178 : f32 to vector<2x32xf32>
    %554 = arith.subf %553, %547 : vector<2x32xf32>
    %555 = arith.mulf %554, %552 : vector<2x32xf32>
    %556 = arith.mulf %547, %463 : vector<2x32xf32>
    %557 = arith.addf %555, %556 : vector<2x32xf32>
    %558 = vector.extract_strided_slice %557 {offsets = [0, 0], sizes = [1, 32], strides = [1, 1]} : vector<2x32xf32> to vector<1x32xf32>
    %c3 = arith.constant 3 : index
    %c0_179 = arith.constant 0 : index
    %559 = vector.load %arg29[%c3, %c0_179] : memref<32x32xf32, #tpu.memory_space<vmem>>, vector<1x32xf32>
    tpu.vector_store %arg29[%c3, %c0_179], %558 {strides = array<i32>} : memref<32x32xf32, #tpu.memory_space<vmem>>, vector<1x32xf32>,
    %560 = vector.extract_strided_slice %557 {offsets = [1, 0], sizes = [1, 32], strides = [1, 1]} : vector<2x32xf32> to vector<1x32xf32>
    %c19 = arith.constant 19 : index
    %c0_180 = arith.constant 0 : index
    %561 = vector.load %arg29[%c19, %c0_180] : memref<32x32xf32, #tpu.memory_space<vmem>>, vector<1x32xf32>
    tpu.vector_store %arg29[%c19, %c0_180], %560 {strides = array<i32>} : memref<32x32xf32, #tpu.memory_space<vmem>>, vector<1x32xf32>,
    %562 = arith.truncf %499 : vector<2x32xf32> to vector<2x32xbf16>
    %c0_181 = arith.constant 0 : index
    %c0_182 = arith.constant 0 : index
    %563 = vector.load %arg17[%c0_181, %c0_182] : memref<32x96xbf16, #tpu.memory_space<vmem>>, vector<32x96xbf16>
    %cst_183 = arith.constant dense<0.000000e+00> : vector<2x96xf32>
    %564 = tpu.matmul %562, %563, %cst_183 {dimension_numbers = #tpu.dot_dimension_numbers<[1], [0], [0], [1], [0, 0, 1, 1], [], []>} : vector<2x32xbf16>, vector<32x96xbf16>, vector<2x96xf32> -> vector<2x96xf32>
    %c0_184 = arith.constant 0 : index
    %c0_185 = arith.constant 0 : index
    %565 = vector.load %arg18[%c0_184, %c0_185] : memref<1x96xf32, #tpu.memory_space<vmem>>, vector<1x96xf32>
    %566 = vector.broadcast %565 : vector<1x96xf32> to vector<2x96xf32>
    %567 = arith.addf %564, %566 : vector<2x96xf32>
    %568 = vector.extract_strided_slice %89 {offsets = [0, 0], sizes = [2, 32], strides = [1, 1]} : vector<2x96xf32> to vector<2x32xf32>
    %569 = vector.extract_strided_slice %567 {offsets = [0, 0], sizes = [2, 32], strides = [1, 1]} : vector<2x96xf32> to vector<2x32xf32>
    %570 = arith.addf %568, %569 : vector<2x32xf32>
    %571 = arith.negf %570 : vector<2x32xf32>
    %572 = math.exp %571 : vector<2x32xf32>
    %cst_186 = arith.constant 1.000000e+00 : f32
    %573 = vector.broadcast %cst_186 : f32 to vector<2x32xf32>
    %574 = arith.addf %573, %572 : vector<2x32xf32>
    %575 = arith.divf %573, %574 : vector<2x32xf32>
    %576 = vector.extract_strided_slice %89 {offsets = [0, 32], sizes = [2, 32], strides = [1, 1]} : vector<2x96xf32> to vector<2x32xf32>
    %577 = vector.extract_strided_slice %567 {offsets = [0, 32], sizes = [2, 32], strides = [1, 1]} : vector<2x96xf32> to vector<2x32xf32>
    %578 = arith.addf %576, %577 : vector<2x32xf32>
    %579 = arith.negf %578 : vector<2x32xf32>
    %580 = math.exp %579 : vector<2x32xf32>
    %cst_187 = arith.constant 1.000000e+00 : f32
    %581 = vector.broadcast %cst_187 : f32 to vector<2x32xf32>
    %582 = arith.addf %581, %580 : vector<2x32xf32>
    %583 = arith.divf %581, %582 : vector<2x32xf32>
    %584 = vector.extract_strided_slice %89 {offsets = [0, 64], sizes = [2, 32], strides = [1, 1]} : vector<2x96xf32> to vector<2x32xf32>
    %585 = vector.extract_strided_slice %567 {offsets = [0, 64], sizes = [2, 32], strides = [1, 1]} : vector<2x96xf32> to vector<2x32xf32>
    %586 = arith.mulf %575, %585 : vector<2x32xf32>
    %587 = arith.addf %584, %586 : vector<2x32xf32>
    %588 = math.tanh %587 : vector<2x32xf32>
    %cst_188 = arith.constant 1.000000e+00 : f32
    %589 = vector.broadcast %cst_188 : f32 to vector<2x32xf32>
    %590 = arith.subf %589, %583 : vector<2x32xf32>
    %591 = arith.mulf %590, %588 : vector<2x32xf32>
    %592 = arith.mulf %583, %499 : vector<2x32xf32>
    %593 = arith.addf %591, %592 : vector<2x32xf32>
    %594 = tpu.concatenate %499, %528 in 1 : vector<2x32xf32>, vector<2x32xf32> -> vector<2x64xf32>
    %595 = arith.truncf %594 : vector<2x64xf32> to vector<2x64xbf16>
    %c0_189 = arith.constant 0 : index
    %c0_190 = arith.constant 0 : index
    %596 = vector.load %arg19[%c0_189, %c0_190] : memref<64x128xbf16, #tpu.memory_space<vmem>>, vector<64x128xbf16>
    %cst_191 = arith.constant dense<0.000000e+00> : vector<2x128xf32>
    %597 = tpu.matmul %595, %596, %cst_191 {dimension_numbers = #tpu.dot_dimension_numbers<[1], [0], [0], [1], [0, 0, 1, 1], [], []>} : vector<2x64xbf16>, vector<64x128xbf16>, vector<2x128xf32> -> vector<2x128xf32>
    %c0_192 = arith.constant 0 : index
    %c0_193 = arith.constant 0 : index
    %598 = vector.load %arg20[%c0_192, %c0_193] : memref<1x128xf32, #tpu.memory_space<vmem>>, vector<1x128xf32>
    %599 = vector.broadcast %598 : vector<1x128xf32> to vector<2x128xf32>
    %600 = arith.addf %597, %599 : vector<2x128xf32>
    %601 = vector.extract_strided_slice %600 {offsets = [0, 0], sizes = [2, 32], strides = [1, 1]} : vector<2x128xf32> to vector<2x32xf32>
    %602 = arith.negf %601 : vector<2x32xf32>
    %603 = math.exp %602 : vector<2x32xf32>
    %cst_194 = arith.constant 1.000000e+00 : f32
    %604 = vector.broadcast %cst_194 : f32 to vector<2x32xf32>
    %605 = arith.addf %604, %603 : vector<2x32xf32>
    %606 = arith.divf %604, %605 : vector<2x32xf32>
    %607 = vector.extract_strided_slice %600 {offsets = [0, 32], sizes = [2, 32], strides = [1, 1]} : vector<2x128xf32> to vector<2x32xf32>
    %608 = arith.negf %607 : vector<2x32xf32>
    %609 = math.exp %608 : vector<2x32xf32>
    %cst_195 = arith.constant 1.000000e+00 : f32
    %610 = vector.broadcast %cst_195 : f32 to vector<2x32xf32>
    %611 = arith.addf %610, %609 : vector<2x32xf32>
    %612 = arith.divf %610, %611 : vector<2x32xf32>
    %613 = vector.extract_strided_slice %600 {offsets = [0, 64], sizes = [2, 32], strides = [1, 1]} : vector<2x128xf32> to vector<2x32xf32>
    %614 = vector.extract_strided_slice %600 {offsets = [0, 96], sizes = [2, 32], strides = [1, 1]} : vector<2x128xf32> to vector<2x32xf32>
    %615 = arith.mulf %606, %614 : vector<2x32xf32>
    %616 = arith.addf %613, %615 : vector<2x32xf32>
    %617 = math.tanh %616 : vector<2x32xf32>
    %cst_196 = arith.constant 1.000000e+00 : f32
    %618 = vector.broadcast %cst_196 : f32 to vector<2x32xf32>
    %619 = arith.subf %618, %612 : vector<2x32xf32>
    %620 = arith.mulf %619, %617 : vector<2x32xf32>
    %621 = arith.mulf %612, %528 : vector<2x32xf32>
    %622 = arith.addf %620, %621 : vector<2x32xf32>
    %623 = tpu.concatenate %528, %557 in 1 : vector<2x32xf32>, vector<2x32xf32> -> vector<2x64xf32>
    %624 = arith.truncf %623 : vector<2x64xf32> to vector<2x64xbf16>
    %c0_197 = arith.constant 0 : index
    %c0_198 = arith.constant 0 : index
    %625 = vector.load %arg21[%c0_197, %c0_198] : memref<64x128xbf16, #tpu.memory_space<vmem>>, vector<64x128xbf16>
    %cst_199 = arith.constant dense<0.000000e+00> : vector<2x128xf32>
    %626 = tpu.matmul %624, %625, %cst_199 {dimension_numbers = #tpu.dot_dimension_numbers<[1], [0], [0], [1], [0, 0, 1, 1], [], []>} : vector<2x64xbf16>, vector<64x128xbf16>, vector<2x128xf32> -> vector<2x128xf32>
    %c0_200 = arith.constant 0 : index
    %c0_201 = arith.constant 0 : index
    %627 = vector.load %arg22[%c0_200, %c0_201] : memref<1x128xf32, #tpu.memory_space<vmem>>, vector<1x128xf32>
    %628 = vector.broadcast %627 : vector<1x128xf32> to vector<2x128xf32>
    %629 = arith.addf %626, %628 : vector<2x128xf32>
    %630 = vector.extract_strided_slice %629 {offsets = [0, 0], sizes = [2, 32], strides = [1, 1]} : vector<2x128xf32> to vector<2x32xf32>
    %631 = arith.negf %630 : vector<2x32xf32>
    %632 = math.exp %631 : vector<2x32xf32>
    %cst_202 = arith.constant 1.000000e+00 : f32
    %633 = vector.broadcast %cst_202 : f32 to vector<2x32xf32>
    %634 = arith.addf %633, %632 : vector<2x32xf32>
    %635 = arith.divf %633, %634 : vector<2x32xf32>
    %636 = vector.extract_strided_slice %629 {offsets = [0, 32], sizes = [2, 32], strides = [1, 1]} : vector<2x128xf32> to vector<2x32xf32>
    %637 = arith.negf %636 : vector<2x32xf32>
    %638 = math.exp %637 : vector<2x32xf32>
    %cst_203 = arith.constant 1.000000e+00 : f32
    %639 = vector.broadcast %cst_203 : f32 to vector<2x32xf32>
    %640 = arith.addf %639, %638 : vector<2x32xf32>
    %641 = arith.divf %639, %640 : vector<2x32xf32>
    %642 = vector.extract_strided_slice %629 {offsets = [0, 64], sizes = [2, 32], strides = [1, 1]} : vector<2x128xf32> to vector<2x32xf32>
    %643 = vector.extract_strided_slice %629 {offsets = [0, 96], sizes = [2, 32], strides = [1, 1]} : vector<2x128xf32> to vector<2x32xf32>
    %644 = arith.mulf %635, %643 : vector<2x32xf32>
    %645 = arith.addf %642, %644 : vector<2x32xf32>
    %646 = math.tanh %645 : vector<2x32xf32>
    %cst_204 = arith.constant 1.000000e+00 : f32
    %647 = vector.broadcast %cst_204 : f32 to vector<2x32xf32>
    %648 = arith.subf %647, %641 : vector<2x32xf32>
    %649 = arith.mulf %648, %646 : vector<2x32xf32>
    %650 = arith.mulf %641, %557 : vector<2x32xf32>
    %651 = arith.addf %649, %650 : vector<2x32xf32>
    %652 = vector.extract_strided_slice %651 {offsets = [0, 0], sizes = [1, 32], strides = [1, 1]} : vector<2x32xf32> to vector<1x32xf32>
    %c4 = arith.constant 4 : index
    %c0_205 = arith.constant 0 : index
    %653 = vector.load %arg29[%c4, %c0_205] : memref<32x32xf32, #tpu.memory_space<vmem>>, vector<1x32xf32>
    tpu.vector_store %arg29[%c4, %c0_205], %652 {strides = array<i32>} : memref<32x32xf32, #tpu.memory_space<vmem>>, vector<1x32xf32>,
    %654 = vector.extract_strided_slice %651 {offsets = [1, 0], sizes = [1, 32], strides = [1, 1]} : vector<2x32xf32> to vector<1x32xf32>
    %c20 = arith.constant 20 : index
    %c0_206 = arith.constant 0 : index
    %655 = vector.load %arg29[%c20, %c0_206] : memref<32x32xf32, #tpu.memory_space<vmem>>, vector<1x32xf32>
    tpu.vector_store %arg29[%c20, %c0_206], %654 {strides = array<i32>} : memref<32x32xf32, #tpu.memory_space<vmem>>, vector<1x32xf32>,
    %656 = arith.truncf %593 : vector<2x32xf32> to vector<2x32xbf16>
    %c0_207 = arith.constant 0 : index
    %c0_208 = arith.constant 0 : index
    %657 = vector.load %arg17[%c0_207, %c0_208] : memref<32x96xbf16, #tpu.memory_space<vmem>>, vector<32x96xbf16>
    %cst_209 = arith.constant dense<0.000000e+00> : vector<2x96xf32>
    %658 = tpu.matmul %656, %657, %cst_209 {dimension_numbers = #tpu.dot_dimension_numbers<[1], [0], [0], [1], [0, 0, 1, 1], [], []>} : vector<2x32xbf16>, vector<32x96xbf16>, vector<2x96xf32> -> vector<2x96xf32>
    %c0_210 = arith.constant 0 : index
    %c0_211 = arith.constant 0 : index
    %659 = vector.load %arg18[%c0_210, %c0_211] : memref<1x96xf32, #tpu.memory_space<vmem>>, vector<1x96xf32>
    %660 = vector.broadcast %659 : vector<1x96xf32> to vector<2x96xf32>
    %661 = arith.addf %658, %660 : vector<2x96xf32>
    %662 = vector.extract_strided_slice %89 {offsets = [0, 0], sizes = [2, 32], strides = [1, 1]} : vector<2x96xf32> to vector<2x32xf32>
    %663 = vector.extract_strided_slice %661 {offsets = [0, 0], sizes = [2, 32], strides = [1, 1]} : vector<2x96xf32> to vector<2x32xf32>
    %664 = arith.addf %662, %663 : vector<2x32xf32>
    %665 = arith.negf %664 : vector<2x32xf32>
    %666 = math.exp %665 : vector<2x32xf32>
    %cst_212 = arith.constant 1.000000e+00 : f32
    %667 = vector.broadcast %cst_212 : f32 to vector<2x32xf32>
    %668 = arith.addf %667, %666 : vector<2x32xf32>
    %669 = arith.divf %667, %668 : vector<2x32xf32>
    %670 = vector.extract_strided_slice %89 {offsets = [0, 32], sizes = [2, 32], strides = [1, 1]} : vector<2x96xf32> to vector<2x32xf32>
    %671 = vector.extract_strided_slice %661 {offsets = [0, 32], sizes = [2, 32], strides = [1, 1]} : vector<2x96xf32> to vector<2x32xf32>
    %672 = arith.addf %670, %671 : vector<2x32xf32>
    %673 = arith.negf %672 : vector<2x32xf32>
    %674 = math.exp %673 : vector<2x32xf32>
    %cst_213 = arith.constant 1.000000e+00 : f32
    %675 = vector.broadcast %cst_213 : f32 to vector<2x32xf32>
    %676 = arith.addf %675, %674 : vector<2x32xf32>
    %677 = arith.divf %675, %676 : vector<2x32xf32>
    %678 = vector.extract_strided_slice %89 {offsets = [0, 64], sizes = [2, 32], strides = [1, 1]} : vector<2x96xf32> to vector<2x32xf32>
    %679 = vector.extract_strided_slice %661 {offsets = [0, 64], sizes = [2, 32], strides = [1, 1]} : vector<2x96xf32> to vector<2x32xf32>
    %680 = arith.mulf %669, %679 : vector<2x32xf32>
    %681 = arith.addf %678, %680 : vector<2x32xf32>
    %682 = math.tanh %681 : vector<2x32xf32>
    %cst_214 = arith.constant 1.000000e+00 : f32
    %683 = vector.broadcast %cst_214 : f32 to vector<2x32xf32>
    %684 = arith.subf %683, %677 : vector<2x32xf32>
    %685 = arith.mulf %684, %682 : vector<2x32xf32>
    %686 = arith.mulf %677, %593 : vector<2x32xf32>
    %687 = arith.addf %685, %686 : vector<2x32xf32>
    %688 = tpu.concatenate %593, %622 in 1 : vector<2x32xf32>, vector<2x32xf32> -> vector<2x64xf32>
    %689 = arith.truncf %688 : vector<2x64xf32> to vector<2x64xbf16>
    %c0_215 = arith.constant 0 : index
    %c0_216 = arith.constant 0 : index
    %690 = vector.load %arg19[%c0_215, %c0_216] : memref<64x128xbf16, #tpu.memory_space<vmem>>, vector<64x128xbf16>
    %cst_217 = arith.constant dense<0.000000e+00> : vector<2x128xf32>
    %691 = tpu.matmul %689, %690, %cst_217 {dimension_numbers = #tpu.dot_dimension_numbers<[1], [0], [0], [1], [0, 0, 1, 1], [], []>} : vector<2x64xbf16>, vector<64x128xbf16>, vector<2x128xf32> -> vector<2x128xf32>
    %c0_218 = arith.constant 0 : index
    %c0_219 = arith.constant 0 : index
    %692 = vector.load %arg20[%c0_218, %c0_219] : memref<1x128xf32, #tpu.memory_space<vmem>>, vector<1x128xf32>
    %693 = vector.broadcast %692 : vector<1x128xf32> to vector<2x128xf32>
    %694 = arith.addf %691, %693 : vector<2x128xf32>
    %695 = vector.extract_strided_slice %694 {offsets = [0, 0], sizes = [2, 32], strides = [1, 1]} : vector<2x128xf32> to vector<2x32xf32>
    %696 = arith.negf %695 : vector<2x32xf32>
    %697 = math.exp %696 : vector<2x32xf32>
    %cst_220 = arith.constant 1.000000e+00 : f32
    %698 = vector.broadcast %cst_220 : f32 to vector<2x32xf32>
    %699 = arith.addf %698, %697 : vector<2x32xf32>
    %700 = arith.divf %698, %699 : vector<2x32xf32>
    %701 = vector.extract_strided_slice %694 {offsets = [0, 32], sizes = [2, 32], strides = [1, 1]} : vector<2x128xf32> to vector<2x32xf32>
    %702 = arith.negf %701 : vector<2x32xf32>
    %703 = math.exp %702 : vector<2x32xf32>
    %cst_221 = arith.constant 1.000000e+00 : f32
    %704 = vector.broadcast %cst_221 : f32 to vector<2x32xf32>
    %705 = arith.addf %704, %703 : vector<2x32xf32>
    %706 = arith.divf %704, %705 : vector<2x32xf32>
    %707 = vector.extract_strided_slice %694 {offsets = [0, 64], sizes = [2, 32], strides = [1, 1]} : vector<2x128xf32> to vector<2x32xf32>
    %708 = vector.extract_strided_slice %694 {offsets = [0, 96], sizes = [2, 32], strides = [1, 1]} : vector<2x128xf32> to vector<2x32xf32>
    %709 = arith.mulf %700, %708 : vector<2x32xf32>
    %710 = arith.addf %707, %709 : vector<2x32xf32>
    %711 = math.tanh %710 : vector<2x32xf32>
    %cst_222 = arith.constant 1.000000e+00 : f32
    %712 = vector.broadcast %cst_222 : f32 to vector<2x32xf32>
    %713 = arith.subf %712, %706 : vector<2x32xf32>
    %714 = arith.mulf %713, %711 : vector<2x32xf32>
    %715 = arith.mulf %706, %622 : vector<2x32xf32>
    %716 = arith.addf %714, %715 : vector<2x32xf32>
    %717 = tpu.concatenate %622, %651 in 1 : vector<2x32xf32>, vector<2x32xf32> -> vector<2x64xf32>
    %718 = arith.truncf %717 : vector<2x64xf32> to vector<2x64xbf16>
    %c0_223 = arith.constant 0 : index
    %c0_224 = arith.constant 0 : index
    %719 = vector.load %arg21[%c0_223, %c0_224] : memref<64x128xbf16, #tpu.memory_space<vmem>>, vector<64x128xbf16>
    %cst_225 = arith.constant dense<0.000000e+00> : vector<2x128xf32>
    %720 = tpu.matmul %718, %719, %cst_225 {dimension_numbers = #tpu.dot_dimension_numbers<[1], [0], [0], [1], [0, 0, 1, 1], [], []>} : vector<2x64xbf16>, vector<64x128xbf16>, vector<2x128xf32> -> vector<2x128xf32>
    %c0_226 = arith.constant 0 : index
    %c0_227 = arith.constant 0 : index
    %721 = vector.load %arg22[%c0_226, %c0_227] : memref<1x128xf32, #tpu.memory_space<vmem>>, vector<1x128xf32>
    %722 = vector.broadcast %721 : vector<1x128xf32> to vector<2x128xf32>
    %723 = arith.addf %720, %722 : vector<2x128xf32>
    %724 = vector.extract_strided_slice %723 {offsets = [0, 0], sizes = [2, 32], strides = [1, 1]} : vector<2x128xf32> to vector<2x32xf32>
    %725 = arith.negf %724 : vector<2x32xf32>
    %726 = math.exp %725 : vector<2x32xf32>
    %cst_228 = arith.constant 1.000000e+00 : f32
    %727 = vector.broadcast %cst_228 : f32 to vector<2x32xf32>
    %728 = arith.addf %727, %726 : vector<2x32xf32>
    %729 = arith.divf %727, %728 : vector<2x32xf32>
    %730 = vector.extract_strided_slice %723 {offsets = [0, 32], sizes = [2, 32], strides = [1, 1]} : vector<2x128xf32> to vector<2x32xf32>
    %731 = arith.negf %730 : vector<2x32xf32>
    %732 = math.exp %731 : vector<2x32xf32>
    %cst_229 = arith.constant 1.000000e+00 : f32
    %733 = vector.broadcast %cst_229 : f32 to vector<2x32xf32>
    %734 = arith.addf %733, %732 : vector<2x32xf32>
    %735 = arith.divf %733, %734 : vector<2x32xf32>
    %736 = vector.extract_strided_slice %723 {offsets = [0, 64], sizes = [2, 32], strides = [1, 1]} : vector<2x128xf32> to vector<2x32xf32>
    %737 = vector.extract_strided_slice %723 {offsets = [0, 96], sizes = [2, 32], strides = [1, 1]} : vector<2x128xf32> to vector<2x32xf32>
    %738 = arith.mulf %729, %737 : vector<2x32xf32>
    %739 = arith.addf %736, %738 : vector<2x32xf32>
    %740 = math.tanh %739 : vector<2x32xf32>
    %cst_230 = arith.constant 1.000000e+00 : f32
    %741 = vector.broadcast %cst_230 : f32 to vector<2x32xf32>
    %742 = arith.subf %741, %735 : vector<2x32xf32>
    %743 = arith.mulf %742, %740 : vector<2x32xf32>
    %744 = arith.mulf %735, %651 : vector<2x32xf32>
    %745 = arith.addf %743, %744 : vector<2x32xf32>
    %746 = vector.extract_strided_slice %745 {offsets = [0, 0], sizes = [1, 32], strides = [1, 1]} : vector<2x32xf32> to vector<1x32xf32>
    %c5 = arith.constant 5 : index
    %c0_231 = arith.constant 0 : index
    %747 = vector.load %arg29[%c5, %c0_231] : memref<32x32xf32, #tpu.memory_space<vmem>>, vector<1x32xf32>
    tpu.vector_store %arg29[%c5, %c0_231], %746 {strides = array<i32>} : memref<32x32xf32, #tpu.memory_space<vmem>>, vector<1x32xf32>,
    %748 = vector.extract_strided_slice %745 {offsets = [1, 0], sizes = [1, 32], strides = [1, 1]} : vector<2x32xf32> to vector<1x32xf32>
    %c21 = arith.constant 21 : index
    %c0_232 = arith.constant 0 : index
    %749 = vector.load %arg29[%c21, %c0_232] : memref<32x32xf32, #tpu.memory_space<vmem>>, vector<1x32xf32>
    tpu.vector_store %arg29[%c21, %c0_232], %748 {strides = array<i32>} : memref<32x32xf32, #tpu.memory_space<vmem>>, vector<1x32xf32>,
    %750 = arith.truncf %687 : vector<2x32xf32> to vector<2x32xbf16>
    %c0_233 = arith.constant 0 : index
    %c0_234 = arith.constant 0 : index
    %751 = vector.load %arg17[%c0_233, %c0_234] : memref<32x96xbf16, #tpu.memory_space<vmem>>, vector<32x96xbf16>
    %cst_235 = arith.constant dense<0.000000e+00> : vector<2x96xf32>
    %752 = tpu.matmul %750, %751, %cst_235 {dimension_numbers = #tpu.dot_dimension_numbers<[1], [0], [0], [1], [0, 0, 1, 1], [], []>} : vector<2x32xbf16>, vector<32x96xbf16>, vector<2x96xf32> -> vector<2x96xf32>
    %c0_236 = arith.constant 0 : index
    %c0_237 = arith.constant 0 : index
    %753 = vector.load %arg18[%c0_236, %c0_237] : memref<1x96xf32, #tpu.memory_space<vmem>>, vector<1x96xf32>
    %754 = vector.broadcast %753 : vector<1x96xf32> to vector<2x96xf32>
    %755 = arith.addf %752, %754 : vector<2x96xf32>
    %756 = vector.extract_strided_slice %89 {offsets = [0, 0], sizes = [2, 32], strides = [1, 1]} : vector<2x96xf32> to vector<2x32xf32>
    %757 = vector.extract_strided_slice %755 {offsets = [0, 0], sizes = [2, 32], strides = [1, 1]} : vector<2x96xf32> to vector<2x32xf32>
    %758 = arith.addf %756, %757 : vector<2x32xf32>
    %759 = arith.negf %758 : vector<2x32xf32>
    %760 = math.exp %759 : vector<2x32xf32>
    %cst_238 = arith.constant 1.000000e+00 : f32
    %761 = vector.broadcast %cst_238 : f32 to vector<2x32xf32>
    %762 = arith.addf %761, %760 : vector<2x32xf32>
    %763 = arith.divf %761, %762 : vector<2x32xf32>
    %764 = vector.extract_strided_slice %89 {offsets = [0, 32], sizes = [2, 32], strides = [1, 1]} : vector<2x96xf32> to vector<2x32xf32>
    %765 = vector.extract_strided_slice %755 {offsets = [0, 32], sizes = [2, 32], strides = [1, 1]} : vector<2x96xf32> to vector<2x32xf32>
    %766 = arith.addf %764, %765 : vector<2x32xf32>
    %767 = arith.negf %766 : vector<2x32xf32>
    %768 = math.exp %767 : vector<2x32xf32>
    %cst_239 = arith.constant 1.000000e+00 : f32
    %769 = vector.broadcast %cst_239 : f32 to vector<2x32xf32>
    %770 = arith.addf %769, %768 : vector<2x32xf32>
    %771 = arith.divf %769, %770 : vector<2x32xf32>
    %772 = vector.extract_strided_slice %89 {offsets = [0, 64], sizes = [2, 32], strides = [1, 1]} : vector<2x96xf32> to vector<2x32xf32>
    %773 = vector.extract_strided_slice %755 {offsets = [0, 64], sizes = [2, 32], strides = [1, 1]} : vector<2x96xf32> to vector<2x32xf32>
    %774 = arith.mulf %763, %773 : vector<2x32xf32>
    %775 = arith.addf %772, %774 : vector<2x32xf32>
    %776 = math.tanh %775 : vector<2x32xf32>
    %cst_240 = arith.constant 1.000000e+00 : f32
    %777 = vector.broadcast %cst_240 : f32 to vector<2x32xf32>
    %778 = arith.subf %777, %771 : vector<2x32xf32>
    %779 = arith.mulf %778, %776 : vector<2x32xf32>
    %780 = arith.mulf %771, %687 : vector<2x32xf32>
    %781 = arith.addf %779, %780 : vector<2x32xf32>
    %782 = tpu.concatenate %687, %716 in 1 : vector<2x32xf32>, vector<2x32xf32> -> vector<2x64xf32>
    %783 = arith.truncf %782 : vector<2x64xf32> to vector<2x64xbf16>
    %c0_241 = arith.constant 0 : index
    %c0_242 = arith.constant 0 : index
    %784 = vector.load %arg19[%c0_241, %c0_242] : memref<64x128xbf16, #tpu.memory_space<vmem>>, vector<64x128xbf16>
    %cst_243 = arith.constant dense<0.000000e+00> : vector<2x128xf32>
    %785 = tpu.matmul %783, %784, %cst_243 {dimension_numbers = #tpu.dot_dimension_numbers<[1], [0], [0], [1], [0, 0, 1, 1], [], []>} : vector<2x64xbf16>, vector<64x128xbf16>, vector<2x128xf32> -> vector<2x128xf32>
    %c0_244 = arith.constant 0 : index
    %c0_245 = arith.constant 0 : index
    %786 = vector.load %arg20[%c0_244, %c0_245] : memref<1x128xf32, #tpu.memory_space<vmem>>, vector<1x128xf32>
    %787 = vector.broadcast %786 : vector<1x128xf32> to vector<2x128xf32>
    %788 = arith.addf %785, %787 : vector<2x128xf32>
    %789 = vector.extract_strided_slice %788 {offsets = [0, 0], sizes = [2, 32], strides = [1, 1]} : vector<2x128xf32> to vector<2x32xf32>
    %790 = arith.negf %789 : vector<2x32xf32>
    %791 = math.exp %790 : vector<2x32xf32>
    %cst_246 = arith.constant 1.000000e+00 : f32
    %792 = vector.broadcast %cst_246 : f32 to vector<2x32xf32>
    %793 = arith.addf %792, %791 : vector<2x32xf32>
    %794 = arith.divf %792, %793 : vector<2x32xf32>
    %795 = vector.extract_strided_slice %788 {offsets = [0, 32], sizes = [2, 32], strides = [1, 1]} : vector<2x128xf32> to vector<2x32xf32>
    %796 = arith.negf %795 : vector<2x32xf32>
    %797 = math.exp %796 : vector<2x32xf32>
    %cst_247 = arith.constant 1.000000e+00 : f32
    %798 = vector.broadcast %cst_247 : f32 to vector<2x32xf32>
    %799 = arith.addf %798, %797 : vector<2x32xf32>
    %800 = arith.divf %798, %799 : vector<2x32xf32>
    %801 = vector.extract_strided_slice %788 {offsets = [0, 64], sizes = [2, 32], strides = [1, 1]} : vector<2x128xf32> to vector<2x32xf32>
    %802 = vector.extract_strided_slice %788 {offsets = [0, 96], sizes = [2, 32], strides = [1, 1]} : vector<2x128xf32> to vector<2x32xf32>
    %803 = arith.mulf %794, %802 : vector<2x32xf32>
    %804 = arith.addf %801, %803 : vector<2x32xf32>
    %805 = math.tanh %804 : vector<2x32xf32>
    %cst_248 = arith.constant 1.000000e+00 : f32
    %806 = vector.broadcast %cst_248 : f32 to vector<2x32xf32>
    %807 = arith.subf %806, %800 : vector<2x32xf32>
    %808 = arith.mulf %807, %805 : vector<2x32xf32>
    %809 = arith.mulf %800, %716 : vector<2x32xf32>
    %810 = arith.addf %808, %809 : vector<2x32xf32>
    %811 = tpu.concatenate %716, %745 in 1 : vector<2x32xf32>, vector<2x32xf32> -> vector<2x64xf32>
    %812 = arith.truncf %811 : vector<2x64xf32> to vector<2x64xbf16>
    %c0_249 = arith.constant 0 : index
    %c0_250 = arith.constant 0 : index
    %813 = vector.load %arg21[%c0_249, %c0_250] : memref<64x128xbf16, #tpu.memory_space<vmem>>, vector<64x128xbf16>
    %cst_251 = arith.constant dense<0.000000e+00> : vector<2x128xf32>
    %814 = tpu.matmul %812, %813, %cst_251 {dimension_numbers = #tpu.dot_dimension_numbers<[1], [0], [0], [1], [0, 0, 1, 1], [], []>} : vector<2x64xbf16>, vector<64x128xbf16>, vector<2x128xf32> -> vector<2x128xf32>
    %c0_252 = arith.constant 0 : index
    %c0_253 = arith.constant 0 : index
    %815 = vector.load %arg22[%c0_252, %c0_253] : memref<1x128xf32, #tpu.memory_space<vmem>>, vector<1x128xf32>
    %816 = vector.broadcast %815 : vector<1x128xf32> to vector<2x128xf32>
    %817 = arith.addf %814, %816 : vector<2x128xf32>
    %818 = vector.extract_strided_slice %817 {offsets = [0, 0], sizes = [2, 32], strides = [1, 1]} : vector<2x128xf32> to vector<2x32xf32>
    %819 = arith.negf %818 : vector<2x32xf32>
    %820 = math.exp %819 : vector<2x32xf32>
    %cst_254 = arith.constant 1.000000e+00 : f32
    %821 = vector.broadcast %cst_254 : f32 to vector<2x32xf32>
    %822 = arith.addf %821, %820 : vector<2x32xf32>
    %823 = arith.divf %821, %822 : vector<2x32xf32>
    %824 = vector.extract_strided_slice %817 {offsets = [0, 32], sizes = [2, 32], strides = [1, 1]} : vector<2x128xf32> to vector<2x32xf32>
    %825 = arith.negf %824 : vector<2x32xf32>
    %826 = math.exp %825 : vector<2x32xf32>
    %cst_255 = arith.constant 1.000000e+00 : f32
    %827 = vector.broadcast %cst_255 : f32 to vector<2x32xf32>
    %828 = arith.addf %827, %826 : vector<2x32xf32>
    %829 = arith.divf %827, %828 : vector<2x32xf32>
    %830 = vector.extract_strided_slice %817 {offsets = [0, 64], sizes = [2, 32], strides = [1, 1]} : vector<2x128xf32> to vector<2x32xf32>
    %831 = vector.extract_strided_slice %817 {offsets = [0, 96], sizes = [2, 32], strides = [1, 1]} : vector<2x128xf32> to vector<2x32xf32>
    %832 = arith.mulf %823, %831 : vector<2x32xf32>
    %833 = arith.addf %830, %832 : vector<2x32xf32>
    %834 = math.tanh %833 : vector<2x32xf32>
    %cst_256 = arith.constant 1.000000e+00 : f32
    %835 = vector.broadcast %cst_256 : f32 to vector<2x32xf32>
    %836 = arith.subf %835, %829 : vector<2x32xf32>
    %837 = arith.mulf %836, %834 : vector<2x32xf32>
    %838 = arith.mulf %829, %745 : vector<2x32xf32>
    %839 = arith.addf %837, %838 : vector<2x32xf32>
    %840 = vector.extract_strided_slice %839 {offsets = [0, 0], sizes = [1, 32], strides = [1, 1]} : vector<2x32xf32> to vector<1x32xf32>
    %c6 = arith.constant 6 : index
    %c0_257 = arith.constant 0 : index
    %841 = vector.load %arg29[%c6, %c0_257] : memref<32x32xf32, #tpu.memory_space<vmem>>, vector<1x32xf32>
    tpu.vector_store %arg29[%c6, %c0_257], %840 {strides = array<i32>} : memref<32x32xf32, #tpu.memory_space<vmem>>, vector<1x32xf32>,
    %842 = vector.extract_strided_slice %839 {offsets = [1, 0], sizes = [1, 32], strides = [1, 1]} : vector<2x32xf32> to vector<1x32xf32>
    %c22 = arith.constant 22 : index
    %c0_258 = arith.constant 0 : index
    %843 = vector.load %arg29[%c22, %c0_258] : memref<32x32xf32, #tpu.memory_space<vmem>>, vector<1x32xf32>
    tpu.vector_store %arg29[%c22, %c0_258], %842 {strides = array<i32>} : memref<32x32xf32, #tpu.memory_space<vmem>>, vector<1x32xf32>,
    %844 = arith.truncf %781 : vector<2x32xf32> to vector<2x32xbf16>
    %c0_259 = arith.constant 0 : index
    %c0_260 = arith.constant 0 : index
    %845 = vector.load %arg17[%c0_259, %c0_260] : memref<32x96xbf16, #tpu.memory_space<vmem>>, vector<32x96xbf16>
    %cst_261 = arith.constant dense<0.000000e+00> : vector<2x96xf32>
    %846 = tpu.matmul %844, %845, %cst_261 {dimension_numbers = #tpu.dot_dimension_numbers<[1], [0], [0], [1], [0, 0, 1, 1], [], []>} : vector<2x32xbf16>, vector<32x96xbf16>, vector<2x96xf32> -> vector<2x96xf32>
    %c0_262 = arith.constant 0 : index
    %c0_263 = arith.constant 0 : index
    %847 = vector.load %arg18[%c0_262, %c0_263] : memref<1x96xf32, #tpu.memory_space<vmem>>, vector<1x96xf32>
    %848 = vector.broadcast %847 : vector<1x96xf32> to vector<2x96xf32>
    %849 = arith.addf %846, %848 : vector<2x96xf32>
    %850 = vector.extract_strided_slice %89 {offsets = [0, 0], sizes = [2, 32], strides = [1, 1]} : vector<2x96xf32> to vector<2x32xf32>
    %851 = vector.extract_strided_slice %849 {offsets = [0, 0], sizes = [2, 32], strides = [1, 1]} : vector<2x96xf32> to vector<2x32xf32>
    %852 = arith.addf %850, %851 : vector<2x32xf32>
    %853 = arith.negf %852 : vector<2x32xf32>
    %854 = math.exp %853 : vector<2x32xf32>
    %cst_264 = arith.constant 1.000000e+00 : f32
    %855 = vector.broadcast %cst_264 : f32 to vector<2x32xf32>
    %856 = arith.addf %855, %854 : vector<2x32xf32>
    %857 = arith.divf %855, %856 : vector<2x32xf32>
    %858 = vector.extract_strided_slice %89 {offsets = [0, 32], sizes = [2, 32], strides = [1, 1]} : vector<2x96xf32> to vector<2x32xf32>
    %859 = vector.extract_strided_slice %849 {offsets = [0, 32], sizes = [2, 32], strides = [1, 1]} : vector<2x96xf32> to vector<2x32xf32>
    %860 = arith.addf %858, %859 : vector<2x32xf32>
    %861 = arith.negf %860 : vector<2x32xf32>
    %862 = math.exp %861 : vector<2x32xf32>
    %cst_265 = arith.constant 1.000000e+00 : f32
    %863 = vector.broadcast %cst_265 : f32 to vector<2x32xf32>
    %864 = arith.addf %863, %862 : vector<2x32xf32>
    %865 = arith.divf %863, %864 : vector<2x32xf32>
    %866 = vector.extract_strided_slice %89 {offsets = [0, 64], sizes = [2, 32], strides = [1, 1]} : vector<2x96xf32> to vector<2x32xf32>
    %867 = vector.extract_strided_slice %849 {offsets = [0, 64], sizes = [2, 32], strides = [1, 1]} : vector<2x96xf32> to vector<2x32xf32>
    %868 = arith.mulf %857, %867 : vector<2x32xf32>
    %869 = arith.addf %866, %868 : vector<2x32xf32>
    %870 = math.tanh %869 : vector<2x32xf32>
    %cst_266 = arith.constant 1.000000e+00 : f32
    %871 = vector.broadcast %cst_266 : f32 to vector<2x32xf32>
    %872 = arith.subf %871, %865 : vector<2x32xf32>
    %873 = arith.mulf %872, %870 : vector<2x32xf32>
    %874 = arith.mulf %865, %781 : vector<2x32xf32>
    %875 = arith.addf %873, %874 : vector<2x32xf32>
    %876 = tpu.concatenate %781, %810 in 1 : vector<2x32xf32>, vector<2x32xf32> -> vector<2x64xf32>
    %877 = arith.truncf %876 : vector<2x64xf32> to vector<2x64xbf16>
    %c0_267 = arith.constant 0 : index
    %c0_268 = arith.constant 0 : index
    %878 = vector.load %arg19[%c0_267, %c0_268] : memref<64x128xbf16, #tpu.memory_space<vmem>>, vector<64x128xbf16>
    %cst_269 = arith.constant dense<0.000000e+00> : vector<2x128xf32>
    %879 = tpu.matmul %877, %878, %cst_269 {dimension_numbers = #tpu.dot_dimension_numbers<[1], [0], [0], [1], [0, 0, 1, 1], [], []>} : vector<2x64xbf16>, vector<64x128xbf16>, vector<2x128xf32> -> vector<2x128xf32>
    %c0_270 = arith.constant 0 : index
    %c0_271 = arith.constant 0 : index
    %880 = vector.load %arg20[%c0_270, %c0_271] : memref<1x128xf32, #tpu.memory_space<vmem>>, vector<1x128xf32>
    %881 = vector.broadcast %880 : vector<1x128xf32> to vector<2x128xf32>
    %882 = arith.addf %879, %881 : vector<2x128xf32>
    %883 = vector.extract_strided_slice %882 {offsets = [0, 0], sizes = [2, 32], strides = [1, 1]} : vector<2x128xf32> to vector<2x32xf32>
    %884 = arith.negf %883 : vector<2x32xf32>
    %885 = math.exp %884 : vector<2x32xf32>
    %cst_272 = arith.constant 1.000000e+00 : f32
    %886 = vector.broadcast %cst_272 : f32 to vector<2x32xf32>
    %887 = arith.addf %886, %885 : vector<2x32xf32>
    %888 = arith.divf %886, %887 : vector<2x32xf32>
    %889 = vector.extract_strided_slice %882 {offsets = [0, 32], sizes = [2, 32], strides = [1, 1]} : vector<2x128xf32> to vector<2x32xf32>
    %890 = arith.negf %889 : vector<2x32xf32>
    %891 = math.exp %890 : vector<2x32xf32>
    %cst_273 = arith.constant 1.000000e+00 : f32
    %892 = vector.broadcast %cst_273 : f32 to vector<2x32xf32>
    %893 = arith.addf %892, %891 : vector<2x32xf32>
    %894 = arith.divf %892, %893 : vector<2x32xf32>
    %895 = vector.extract_strided_slice %882 {offsets = [0, 64], sizes = [2, 32], strides = [1, 1]} : vector<2x128xf32> to vector<2x32xf32>
    %896 = vector.extract_strided_slice %882 {offsets = [0, 96], sizes = [2, 32], strides = [1, 1]} : vector<2x128xf32> to vector<2x32xf32>
    %897 = arith.mulf %888, %896 : vector<2x32xf32>
    %898 = arith.addf %895, %897 : vector<2x32xf32>
    %899 = math.tanh %898 : vector<2x32xf32>
    %cst_274 = arith.constant 1.000000e+00 : f32
    %900 = vector.broadcast %cst_274 : f32 to vector<2x32xf32>
    %901 = arith.subf %900, %894 : vector<2x32xf32>
    %902 = arith.mulf %901, %899 : vector<2x32xf32>
    %903 = arith.mulf %894, %810 : vector<2x32xf32>
    %904 = arith.addf %902, %903 : vector<2x32xf32>
    %905 = tpu.concatenate %810, %839 in 1 : vector<2x32xf32>, vector<2x32xf32> -> vector<2x64xf32>
    %906 = arith.truncf %905 : vector<2x64xf32> to vector<2x64xbf16>
    %c0_275 = arith.constant 0 : index
    %c0_276 = arith.constant 0 : index
    %907 = vector.load %arg21[%c0_275, %c0_276] : memref<64x128xbf16, #tpu.memory_space<vmem>>, vector<64x128xbf16>
    %cst_277 = arith.constant dense<0.000000e+00> : vector<2x128xf32>
    %908 = tpu.matmul %906, %907, %cst_277 {dimension_numbers = #tpu.dot_dimension_numbers<[1], [0], [0], [1], [0, 0, 1, 1], [], []>} : vector<2x64xbf16>, vector<64x128xbf16>, vector<2x128xf32> -> vector<2x128xf32>
    %c0_278 = arith.constant 0 : index
    %c0_279 = arith.constant 0 : index
    %909 = vector.load %arg22[%c0_278, %c0_279] : memref<1x128xf32, #tpu.memory_space<vmem>>, vector<1x128xf32>
    %910 = vector.broadcast %909 : vector<1x128xf32> to vector<2x128xf32>
    %911 = arith.addf %908, %910 : vector<2x128xf32>
    %912 = vector.extract_strided_slice %911 {offsets = [0, 0], sizes = [2, 32], strides = [1, 1]} : vector<2x128xf32> to vector<2x32xf32>
    %913 = arith.negf %912 : vector<2x32xf32>
    %914 = math.exp %913 : vector<2x32xf32>
    %cst_280 = arith.constant 1.000000e+00 : f32
    %915 = vector.broadcast %cst_280 : f32 to vector<2x32xf32>
    %916 = arith.addf %915, %914 : vector<2x32xf32>
    %917 = arith.divf %915, %916 : vector<2x32xf32>
    %918 = vector.extract_strided_slice %911 {offsets = [0, 32], sizes = [2, 32], strides = [1, 1]} : vector<2x128xf32> to vector<2x32xf32>
    %919 = arith.negf %918 : vector<2x32xf32>
    %920 = math.exp %919 : vector<2x32xf32>
    %cst_281 = arith.constant 1.000000e+00 : f32
    %921 = vector.broadcast %cst_281 : f32 to vector<2x32xf32>
    %922 = arith.addf %921, %920 : vector<2x32xf32>
    %923 = arith.divf %921, %922 : vector<2x32xf32>
    %924 = vector.extract_strided_slice %911 {offsets = [0, 64], sizes = [2, 32], strides = [1, 1]} : vector<2x128xf32> to vector<2x32xf32>
    %925 = vector.extract_strided_slice %911 {offsets = [0, 96], sizes = [2, 32], strides = [1, 1]} : vector<2x128xf32> to vector<2x32xf32>
    %926 = arith.mulf %917, %925 : vector<2x32xf32>
    %927 = arith.addf %924, %926 : vector<2x32xf32>
    %928 = math.tanh %927 : vector<2x32xf32>
    %cst_282 = arith.constant 1.000000e+00 : f32
    %929 = vector.broadcast %cst_282 : f32 to vector<2x32xf32>
    %930 = arith.subf %929, %923 : vector<2x32xf32>
    %931 = arith.mulf %930, %928 : vector<2x32xf32>
    %932 = arith.mulf %923, %839 : vector<2x32xf32>
    %933 = arith.addf %931, %932 : vector<2x32xf32>
    %934 = vector.extract_strided_slice %933 {offsets = [0, 0], sizes = [1, 32], strides = [1, 1]} : vector<2x32xf32> to vector<1x32xf32>
    %c7 = arith.constant 7 : index
    %c0_283 = arith.constant 0 : index
    %935 = vector.load %arg29[%c7, %c0_283] : memref<32x32xf32, #tpu.memory_space<vmem>>, vector<1x32xf32>
    tpu.vector_store %arg29[%c7, %c0_283], %934 {strides = array<i32>} : memref<32x32xf32, #tpu.memory_space<vmem>>, vector<1x32xf32>,
    %936 = vector.extract_strided_slice %933 {offsets = [1, 0], sizes = [1, 32], strides = [1, 1]} : vector<2x32xf32> to vector<1x32xf32>
    %c23 = arith.constant 23 : index
    %c0_284 = arith.constant 0 : index
    %937 = vector.load %arg29[%c23, %c0_284] : memref<32x32xf32, #tpu.memory_space<vmem>>, vector<1x32xf32>
    tpu.vector_store %arg29[%c23, %c0_284], %936 {strides = array<i32>} : memref<32x32xf32, #tpu.memory_space<vmem>>, vector<1x32xf32>,
    %938 = arith.truncf %875 : vector<2x32xf32> to vector<2x32xbf16>
    %c0_285 = arith.constant 0 : index
    %c0_286 = arith.constant 0 : index
    %939 = vector.load %arg17[%c0_285, %c0_286] : memref<32x96xbf16, #tpu.memory_space<vmem>>, vector<32x96xbf16>
    %cst_287 = arith.constant dense<0.000000e+00> : vector<2x96xf32>
    %940 = tpu.matmul %938, %939, %cst_287 {dimension_numbers = #tpu.dot_dimension_numbers<[1], [0], [0], [1], [0, 0, 1, 1], [], []>} : vector<2x32xbf16>, vector<32x96xbf16>, vector<2x96xf32> -> vector<2x96xf32>
    %c0_288 = arith.constant 0 : index
    %c0_289 = arith.constant 0 : index
    %941 = vector.load %arg18[%c0_288, %c0_289] : memref<1x96xf32, #tpu.memory_space<vmem>>, vector<1x96xf32>
    %942 = vector.broadcast %941 : vector<1x96xf32> to vector<2x96xf32>
    %943 = arith.addf %940, %942 : vector<2x96xf32>
    %944 = vector.extract_strided_slice %89 {offsets = [0, 0], sizes = [2, 32], strides = [1, 1]} : vector<2x96xf32> to vector<2x32xf32>
    %945 = vector.extract_strided_slice %943 {offsets = [0, 0], sizes = [2, 32], strides = [1, 1]} : vector<2x96xf32> to vector<2x32xf32>
    %946 = arith.addf %944, %945 : vector<2x32xf32>
    %947 = arith.negf %946 : vector<2x32xf32>
    %948 = math.exp %947 : vector<2x32xf32>
    %cst_290 = arith.constant 1.000000e+00 : f32
    %949 = vector.broadcast %cst_290 : f32 to vector<2x32xf32>
    %950 = arith.addf %949, %948 : vector<2x32xf32>
    %951 = arith.divf %949, %950 : vector<2x32xf32>
    %952 = vector.extract_strided_slice %89 {offsets = [0, 32], sizes = [2, 32], strides = [1, 1]} : vector<2x96xf32> to vector<2x32xf32>
    %953 = vector.extract_strided_slice %943 {offsets = [0, 32], sizes = [2, 32], strides = [1, 1]} : vector<2x96xf32> to vector<2x32xf32>
    %954 = arith.addf %952, %953 : vector<2x32xf32>
    %955 = arith.negf %954 : vector<2x32xf32>
    %956 = math.exp %955 : vector<2x32xf32>
    %cst_291 = arith.constant 1.000000e+00 : f32
    %957 = vector.broadcast %cst_291 : f32 to vector<2x32xf32>
    %958 = arith.addf %957, %956 : vector<2x32xf32>
    %959 = arith.divf %957, %958 : vector<2x32xf32>
    %960 = vector.extract_strided_slice %89 {offsets = [0, 64], sizes = [2, 32], strides = [1, 1]} : vector<2x96xf32> to vector<2x32xf32>
    %961 = vector.extract_strided_slice %943 {offsets = [0, 64], sizes = [2, 32], strides = [1, 1]} : vector<2x96xf32> to vector<2x32xf32>
    %962 = arith.mulf %951, %961 : vector<2x32xf32>
    %963 = arith.addf %960, %962 : vector<2x32xf32>
    %964 = math.tanh %963 : vector<2x32xf32>
    %cst_292 = arith.constant 1.000000e+00 : f32
    %965 = vector.broadcast %cst_292 : f32 to vector<2x32xf32>
    %966 = arith.subf %965, %959 : vector<2x32xf32>
    %967 = arith.mulf %966, %964 : vector<2x32xf32>
    %968 = arith.mulf %959, %875 : vector<2x32xf32>
    %969 = arith.addf %967, %968 : vector<2x32xf32>
    %970 = tpu.concatenate %875, %904 in 1 : vector<2x32xf32>, vector<2x32xf32> -> vector<2x64xf32>
    %971 = arith.truncf %970 : vector<2x64xf32> to vector<2x64xbf16>
    %c0_293 = arith.constant 0 : index
    %c0_294 = arith.constant 0 : index
    %972 = vector.load %arg19[%c0_293, %c0_294] : memref<64x128xbf16, #tpu.memory_space<vmem>>, vector<64x128xbf16>
    %cst_295 = arith.constant dense<0.000000e+00> : vector<2x128xf32>
    %973 = tpu.matmul %971, %972, %cst_295 {dimension_numbers = #tpu.dot_dimension_numbers<[1], [0], [0], [1], [0, 0, 1, 1], [], []>} : vector<2x64xbf16>, vector<64x128xbf16>, vector<2x128xf32> -> vector<2x128xf32>
    %c0_296 = arith.constant 0 : index
    %c0_297 = arith.constant 0 : index
    %974 = vector.load %arg20[%c0_296, %c0_297] : memref<1x128xf32, #tpu.memory_space<vmem>>, vector<1x128xf32>
    %975 = vector.broadcast %974 : vector<1x128xf32> to vector<2x128xf32>
    %976 = arith.addf %973, %975 : vector<2x128xf32>
    %977 = vector.extract_strided_slice %976 {offsets = [0, 0], sizes = [2, 32], strides = [1, 1]} : vector<2x128xf32> to vector<2x32xf32>
    %978 = arith.negf %977 : vector<2x32xf32>
    %979 = math.exp %978 : vector<2x32xf32>
    %cst_298 = arith.constant 1.000000e+00 : f32
    %980 = vector.broadcast %cst_298 : f32 to vector<2x32xf32>
    %981 = arith.addf %980, %979 : vector<2x32xf32>
    %982 = arith.divf %980, %981 : vector<2x32xf32>
    %983 = vector.extract_strided_slice %976 {offsets = [0, 32], sizes = [2, 32], strides = [1, 1]} : vector<2x128xf32> to vector<2x32xf32>
    %984 = arith.negf %983 : vector<2x32xf32>
    %985 = math.exp %984 : vector<2x32xf32>
    %cst_299 = arith.constant 1.000000e+00 : f32
    %986 = vector.broadcast %cst_299 : f32 to vector<2x32xf32>
    %987 = arith.addf %986, %985 : vector<2x32xf32>
    %988 = arith.divf %986, %987 : vector<2x32xf32>
    %989 = vector.extract_strided_slice %976 {offsets = [0, 64], sizes = [2, 32], strides = [1, 1]} : vector<2x128xf32> to vector<2x32xf32>
    %990 = vector.extract_strided_slice %976 {offsets = [0, 96], sizes = [2, 32], strides = [1, 1]} : vector<2x128xf32> to vector<2x32xf32>
    %991 = arith.mulf %982, %990 : vector<2x32xf32>
    %992 = arith.addf %989, %991 : vector<2x32xf32>
    %993 = math.tanh %992 : vector<2x32xf32>
    %cst_300 = arith.constant 1.000000e+00 : f32
    %994 = vector.broadcast %cst_300 : f32 to vector<2x32xf32>
    %995 = arith.subf %994, %988 : vector<2x32xf32>
    %996 = arith.mulf %995, %993 : vector<2x32xf32>
    %997 = arith.mulf %988, %904 : vector<2x32xf32>
    %998 = arith.addf %996, %997 : vector<2x32xf32>
    %999 = tpu.concatenate %904, %933 in 1 : vector<2x32xf32>, vector<2x32xf32> -> vector<2x64xf32>
    %1000 = arith.truncf %999 : vector<2x64xf32> to vector<2x64xbf16>
    %c0_301 = arith.constant 0 : index
    %c0_302 = arith.constant 0 : index
    %1001 = vector.load %arg21[%c0_301, %c0_302] : memref<64x128xbf16, #tpu.memory_space<vmem>>, vector<64x128xbf16>
    %cst_303 = arith.constant dense<0.000000e+00> : vector<2x128xf32>
    %1002 = tpu.matmul %1000, %1001, %cst_303 {dimension_numbers = #tpu.dot_dimension_numbers<[1], [0], [0], [1], [0, 0, 1, 1], [], []>} : vector<2x64xbf16>, vector<64x128xbf16>, vector<2x128xf32> -> vector<2x128xf32>
    %c0_304 = arith.constant 0 : index
    %c0_305 = arith.constant 0 : index
    %1003 = vector.load %arg22[%c0_304, %c0_305] : memref<1x128xf32, #tpu.memory_space<vmem>>, vector<1x128xf32>
    %1004 = vector.broadcast %1003 : vector<1x128xf32> to vector<2x128xf32>
    %1005 = arith.addf %1002, %1004 : vector<2x128xf32>
    %1006 = vector.extract_strided_slice %1005 {offsets = [0, 0], sizes = [2, 32], strides = [1, 1]} : vector<2x128xf32> to vector<2x32xf32>
    %1007 = arith.negf %1006 : vector<2x32xf32>
    %1008 = math.exp %1007 : vector<2x32xf32>
    %cst_306 = arith.constant 1.000000e+00 : f32
    %1009 = vector.broadcast %cst_306 : f32 to vector<2x32xf32>
    %1010 = arith.addf %1009, %1008 : vector<2x32xf32>
    %1011 = arith.divf %1009, %1010 : vector<2x32xf32>
    %1012 = vector.extract_strided_slice %1005 {offsets = [0, 32], sizes = [2, 32], strides = [1, 1]} : vector<2x128xf32> to vector<2x32xf32>
    %1013 = arith.negf %1012 : vector<2x32xf32>
    %1014 = math.exp %1013 : vector<2x32xf32>
    %cst_307 = arith.constant 1.000000e+00 : f32
    %1015 = vector.broadcast %cst_307 : f32 to vector<2x32xf32>
    %1016 = arith.addf %1015, %1014 : vector<2x32xf32>
    %1017 = arith.divf %1015, %1016 : vector<2x32xf32>
    %1018 = vector.extract_strided_slice %1005 {offsets = [0, 64], sizes = [2, 32], strides = [1, 1]} : vector<2x128xf32> to vector<2x32xf32>
    %1019 = vector.extract_strided_slice %1005 {offsets = [0, 96], sizes = [2, 32], strides = [1, 1]} : vector<2x128xf32> to vector<2x32xf32>
    %1020 = arith.mulf %1011, %1019 : vector<2x32xf32>
    %1021 = arith.addf %1018, %1020 : vector<2x32xf32>
    %1022 = math.tanh %1021 : vector<2x32xf32>
    %cst_308 = arith.constant 1.000000e+00 : f32
    %1023 = vector.broadcast %cst_308 : f32 to vector<2x32xf32>
    %1024 = arith.subf %1023, %1017 : vector<2x32xf32>
    %1025 = arith.mulf %1024, %1022 : vector<2x32xf32>
    %1026 = arith.mulf %1017, %933 : vector<2x32xf32>
    %1027 = arith.addf %1025, %1026 : vector<2x32xf32>
    %1028 = vector.extract_strided_slice %1027 {offsets = [0, 0], sizes = [1, 32], strides = [1, 1]} : vector<2x32xf32> to vector<1x32xf32>
    %c8 = arith.constant 8 : index
    %c0_309 = arith.constant 0 : index
    %1029 = vector.load %arg29[%c8, %c0_309] : memref<32x32xf32, #tpu.memory_space<vmem>>, vector<1x32xf32>
    tpu.vector_store %arg29[%c8, %c0_309], %1028 {strides = array<i32>} : memref<32x32xf32, #tpu.memory_space<vmem>>, vector<1x32xf32>,
    %1030 = vector.extract_strided_slice %1027 {offsets = [1, 0], sizes = [1, 32], strides = [1, 1]} : vector<2x32xf32> to vector<1x32xf32>
    %c24 = arith.constant 24 : index
    %c0_310 = arith.constant 0 : index
    %1031 = vector.load %arg29[%c24, %c0_310] : memref<32x32xf32, #tpu.memory_space<vmem>>, vector<1x32xf32>
    tpu.vector_store %arg29[%c24, %c0_310], %1030 {strides = array<i32>} : memref<32x32xf32, #tpu.memory_space<vmem>>, vector<1x32xf32>,
    %1032 = arith.truncf %969 : vector<2x32xf32> to vector<2x32xbf16>
    %c0_311 = arith.constant 0 : index
    %c0_312 = arith.constant 0 : index
    %1033 = vector.load %arg17[%c0_311, %c0_312] : memref<32x96xbf16, #tpu.memory_space<vmem>>, vector<32x96xbf16>
    %cst_313 = arith.constant dense<0.000000e+00> : vector<2x96xf32>
    %1034 = tpu.matmul %1032, %1033, %cst_313 {dimension_numbers = #tpu.dot_dimension_numbers<[1], [0], [0], [1], [0, 0, 1, 1], [], []>} : vector<2x32xbf16>, vector<32x96xbf16>, vector<2x96xf32> -> vector<2x96xf32>
    %c0_314 = arith.constant 0 : index
    %c0_315 = arith.constant 0 : index
    %1035 = vector.load %arg18[%c0_314, %c0_315] : memref<1x96xf32, #tpu.memory_space<vmem>>, vector<1x96xf32>
    %1036 = vector.broadcast %1035 : vector<1x96xf32> to vector<2x96xf32>
    %1037 = arith.addf %1034, %1036 : vector<2x96xf32>
    %1038 = vector.extract_strided_slice %89 {offsets = [0, 0], sizes = [2, 32], strides = [1, 1]} : vector<2x96xf32> to vector<2x32xf32>
    %1039 = vector.extract_strided_slice %1037 {offsets = [0, 0], sizes = [2, 32], strides = [1, 1]} : vector<2x96xf32> to vector<2x32xf32>
    %1040 = arith.addf %1038, %1039 : vector<2x32xf32>
    %1041 = arith.negf %1040 : vector<2x32xf32>
    %1042 = math.exp %1041 : vector<2x32xf32>
    %cst_316 = arith.constant 1.000000e+00 : f32
    %1043 = vector.broadcast %cst_316 : f32 to vector<2x32xf32>
    %1044 = arith.addf %1043, %1042 : vector<2x32xf32>
    %1045 = arith.divf %1043, %1044 : vector<2x32xf32>
    %1046 = vector.extract_strided_slice %89 {offsets = [0, 32], sizes = [2, 32], strides = [1, 1]} : vector<2x96xf32> to vector<2x32xf32>
    %1047 = vector.extract_strided_slice %1037 {offsets = [0, 32], sizes = [2, 32], strides = [1, 1]} : vector<2x96xf32> to vector<2x32xf32>
    %1048 = arith.addf %1046, %1047 : vector<2x32xf32>
    %1049 = arith.negf %1048 : vector<2x32xf32>
    %1050 = math.exp %1049 : vector<2x32xf32>
    %cst_317 = arith.constant 1.000000e+00 : f32
    %1051 = vector.broadcast %cst_317 : f32 to vector<2x32xf32>
    %1052 = arith.addf %1051, %1050 : vector<2x32xf32>
    %1053 = arith.divf %1051, %1052 : vector<2x32xf32>
    %1054 = vector.extract_strided_slice %89 {offsets = [0, 64], sizes = [2, 32], strides = [1, 1]} : vector<2x96xf32> to vector<2x32xf32>
    %1055 = vector.extract_strided_slice %1037 {offsets = [0, 64], sizes = [2, 32], strides = [1, 1]} : vector<2x96xf32> to vector<2x32xf32>
    %1056 = arith.mulf %1045, %1055 : vector<2x32xf32>
    %1057 = arith.addf %1054, %1056 : vector<2x32xf32>
    %1058 = math.tanh %1057 : vector<2x32xf32>
    %cst_318 = arith.constant 1.000000e+00 : f32
    %1059 = vector.broadcast %cst_318 : f32 to vector<2x32xf32>
    %1060 = arith.subf %1059, %1053 : vector<2x32xf32>
    %1061 = arith.mulf %1060, %1058 : vector<2x32xf32>
    %1062 = arith.mulf %1053, %969 : vector<2x32xf32>
    %1063 = arith.addf %1061, %1062 : vector<2x32xf32>
    %1064 = tpu.concatenate %969, %998 in 1 : vector<2x32xf32>, vector<2x32xf32> -> vector<2x64xf32>
    %1065 = arith.truncf %1064 : vector<2x64xf32> to vector<2x64xbf16>
    %c0_319 = arith.constant 0 : index
    %c0_320 = arith.constant 0 : index
    %1066 = vector.load %arg19[%c0_319, %c0_320] : memref<64x128xbf16, #tpu.memory_space<vmem>>, vector<64x128xbf16>
    %cst_321 = arith.constant dense<0.000000e+00> : vector<2x128xf32>
    %1067 = tpu.matmul %1065, %1066, %cst_321 {dimension_numbers = #tpu.dot_dimension_numbers<[1], [0], [0], [1], [0, 0, 1, 1], [], []>} : vector<2x64xbf16>, vector<64x128xbf16>, vector<2x128xf32> -> vector<2x128xf32>
    %c0_322 = arith.constant 0 : index
    %c0_323 = arith.constant 0 : index
    %1068 = vector.load %arg20[%c0_322, %c0_323] : memref<1x128xf32, #tpu.memory_space<vmem>>, vector<1x128xf32>
    %1069 = vector.broadcast %1068 : vector<1x128xf32> to vector<2x128xf32>
    %1070 = arith.addf %1067, %1069 : vector<2x128xf32>
    %1071 = vector.extract_strided_slice %1070 {offsets = [0, 0], sizes = [2, 32], strides = [1, 1]} : vector<2x128xf32> to vector<2x32xf32>
    %1072 = arith.negf %1071 : vector<2x32xf32>
    %1073 = math.exp %1072 : vector<2x32xf32>
    %cst_324 = arith.constant 1.000000e+00 : f32
    %1074 = vector.broadcast %cst_324 : f32 to vector<2x32xf32>
    %1075 = arith.addf %1074, %1073 : vector<2x32xf32>
    %1076 = arith.divf %1074, %1075 : vector<2x32xf32>
    %1077 = vector.extract_strided_slice %1070 {offsets = [0, 32], sizes = [2, 32], strides = [1, 1]} : vector<2x128xf32> to vector<2x32xf32>
    %1078 = arith.negf %1077 : vector<2x32xf32>
    %1079 = math.exp %1078 : vector<2x32xf32>
    %cst_325 = arith.constant 1.000000e+00 : f32
    %1080 = vector.broadcast %cst_325 : f32 to vector<2x32xf32>
    %1081 = arith.addf %1080, %1079 : vector<2x32xf32>
    %1082 = arith.divf %1080, %1081 : vector<2x32xf32>
    %1083 = vector.extract_strided_slice %1070 {offsets = [0, 64], sizes = [2, 32], strides = [1, 1]} : vector<2x128xf32> to vector<2x32xf32>
    %1084 = vector.extract_strided_slice %1070 {offsets = [0, 96], sizes = [2, 32], strides = [1, 1]} : vector<2x128xf32> to vector<2x32xf32>
    %1085 = arith.mulf %1076, %1084 : vector<2x32xf32>
    %1086 = arith.addf %1083, %1085 : vector<2x32xf32>
    %1087 = math.tanh %1086 : vector<2x32xf32>
    %cst_326 = arith.constant 1.000000e+00 : f32
    %1088 = vector.broadcast %cst_326 : f32 to vector<2x32xf32>
    %1089 = arith.subf %1088, %1082 : vector<2x32xf32>
    %1090 = arith.mulf %1089, %1087 : vector<2x32xf32>
    %1091 = arith.mulf %1082, %998 : vector<2x32xf32>
    %1092 = arith.addf %1090, %1091 : vector<2x32xf32>
    %1093 = tpu.concatenate %998, %1027 in 1 : vector<2x32xf32>, vector<2x32xf32> -> vector<2x64xf32>
    %1094 = arith.truncf %1093 : vector<2x64xf32> to vector<2x64xbf16>
    %c0_327 = arith.constant 0 : index
    %c0_328 = arith.constant 0 : index
    %1095 = vector.load %arg21[%c0_327, %c0_328] : memref<64x128xbf16, #tpu.memory_space<vmem>>, vector<64x128xbf16>
    %cst_329 = arith.constant dense<0.000000e+00> : vector<2x128xf32>
    %1096 = tpu.matmul %1094, %1095, %cst_329 {dimension_numbers = #tpu.dot_dimension_numbers<[1], [0], [0], [1], [0, 0, 1, 1], [], []>} : vector<2x64xbf16>, vector<64x128xbf16>, vector<2x128xf32> -> vector<2x128xf32>
    %c0_330 = arith.constant 0 : index
    %c0_331 = arith.constant 0 : index
    %1097 = vector.load %arg22[%c0_330, %c0_331] : memref<1x128xf32, #tpu.memory_space<vmem>>, vector<1x128xf32>
    %1098 = vector.broadcast %1097 : vector<1x128xf32> to vector<2x128xf32>
    %1099 = arith.addf %1096, %1098 : vector<2x128xf32>
    %1100 = vector.extract_strided_slice %1099 {offsets = [0, 0], sizes = [2, 32], strides = [1, 1]} : vector<2x128xf32> to vector<2x32xf32>
    %1101 = arith.negf %1100 : vector<2x32xf32>
    %1102 = math.exp %1101 : vector<2x32xf32>
    %cst_332 = arith.constant 1.000000e+00 : f32
    %1103 = vector.broadcast %cst_332 : f32 to vector<2x32xf32>
    %1104 = arith.addf %1103, %1102 : vector<2x32xf32>
    %1105 = arith.divf %1103, %1104 : vector<2x32xf32>
    %1106 = vector.extract_strided_slice %1099 {offsets = [0, 32], sizes = [2, 32], strides = [1, 1]} : vector<2x128xf32> to vector<2x32xf32>
    %1107 = arith.negf %1106 : vector<2x32xf32>
    %1108 = math.exp %1107 : vector<2x32xf32>
    %cst_333 = arith.constant 1.000000e+00 : f32
    %1109 = vector.broadcast %cst_333 : f32 to vector<2x32xf32>
    %1110 = arith.addf %1109, %1108 : vector<2x32xf32>
    %1111 = arith.divf %1109, %1110 : vector<2x32xf32>
    %1112 = vector.extract_strided_slice %1099 {offsets = [0, 64], sizes = [2, 32], strides = [1, 1]} : vector<2x128xf32> to vector<2x32xf32>
    %1113 = vector.extract_strided_slice %1099 {offsets = [0, 96], sizes = [2, 32], strides = [1, 1]} : vector<2x128xf32> to vector<2x32xf32>
    %1114 = arith.mulf %1105, %1113 : vector<2x32xf32>
    %1115 = arith.addf %1112, %1114 : vector<2x32xf32>
    %1116 = math.tanh %1115 : vector<2x32xf32>
    %cst_334 = arith.constant 1.000000e+00 : f32
    %1117 = vector.broadcast %cst_334 : f32 to vector<2x32xf32>
    %1118 = arith.subf %1117, %1111 : vector<2x32xf32>
    %1119 = arith.mulf %1118, %1116 : vector<2x32xf32>
    %1120 = arith.mulf %1111, %1027 : vector<2x32xf32>
    %1121 = arith.addf %1119, %1120 : vector<2x32xf32>
    %1122 = vector.extract_strided_slice %1121 {offsets = [0, 0], sizes = [1, 32], strides = [1, 1]} : vector<2x32xf32> to vector<1x32xf32>
    %c9 = arith.constant 9 : index
    %c0_335 = arith.constant 0 : index
    %1123 = vector.load %arg29[%c9, %c0_335] : memref<32x32xf32, #tpu.memory_space<vmem>>, vector<1x32xf32>
    tpu.vector_store %arg29[%c9, %c0_335], %1122 {strides = array<i32>} : memref<32x32xf32, #tpu.memory_space<vmem>>, vector<1x32xf32>,
    %1124 = vector.extract_strided_slice %1121 {offsets = [1, 0], sizes = [1, 32], strides = [1, 1]} : vector<2x32xf32> to vector<1x32xf32>
    %c25 = arith.constant 25 : index
    %c0_336 = arith.constant 0 : index
    %1125 = vector.load %arg29[%c25, %c0_336] : memref<32x32xf32, #tpu.memory_space<vmem>>, vector<1x32xf32>
    tpu.vector_store %arg29[%c25, %c0_336], %1124 {strides = array<i32>} : memref<32x32xf32, #tpu.memory_space<vmem>>, vector<1x32xf32>,
    %1126 = arith.truncf %1063 : vector<2x32xf32> to vector<2x32xbf16>
    %c0_337 = arith.constant 0 : index
    %c0_338 = arith.constant 0 : index
    %1127 = vector.load %arg17[%c0_337, %c0_338] : memref<32x96xbf16, #tpu.memory_space<vmem>>, vector<32x96xbf16>
    %cst_339 = arith.constant dense<0.000000e+00> : vector<2x96xf32>
    %1128 = tpu.matmul %1126, %1127, %cst_339 {dimension_numbers = #tpu.dot_dimension_numbers<[1], [0], [0], [1], [0, 0, 1, 1], [], []>} : vector<2x32xbf16>, vector<32x96xbf16>, vector<2x96xf32> -> vector<2x96xf32>
    %c0_340 = arith.constant 0 : index
    %c0_341 = arith.constant 0 : index
    %1129 = vector.load %arg18[%c0_340, %c0_341] : memref<1x96xf32, #tpu.memory_space<vmem>>, vector<1x96xf32>
    %1130 = vector.broadcast %1129 : vector<1x96xf32> to vector<2x96xf32>
    %1131 = arith.addf %1128, %1130 : vector<2x96xf32>
    %1132 = vector.extract_strided_slice %89 {offsets = [0, 0], sizes = [2, 32], strides = [1, 1]} : vector<2x96xf32> to vector<2x32xf32>
    %1133 = vector.extract_strided_slice %1131 {offsets = [0, 0], sizes = [2, 32], strides = [1, 1]} : vector<2x96xf32> to vector<2x32xf32>
    %1134 = arith.addf %1132, %1133 : vector<2x32xf32>
    %1135 = arith.negf %1134 : vector<2x32xf32>
    %1136 = math.exp %1135 : vector<2x32xf32>
    %cst_342 = arith.constant 1.000000e+00 : f32
    %1137 = vector.broadcast %cst_342 : f32 to vector<2x32xf32>
    %1138 = arith.addf %1137, %1136 : vector<2x32xf32>
    %1139 = arith.divf %1137, %1138 : vector<2x32xf32>
    %1140 = vector.extract_strided_slice %89 {offsets = [0, 32], sizes = [2, 32], strides = [1, 1]} : vector<2x96xf32> to vector<2x32xf32>
    %1141 = vector.extract_strided_slice %1131 {offsets = [0, 32], sizes = [2, 32], strides = [1, 1]} : vector<2x96xf32> to vector<2x32xf32>
    %1142 = arith.addf %1140, %1141 : vector<2x32xf32>
    %1143 = arith.negf %1142 : vector<2x32xf32>
    %1144 = math.exp %1143 : vector<2x32xf32>
    %cst_343 = arith.constant 1.000000e+00 : f32
    %1145 = vector.broadcast %cst_343 : f32 to vector<2x32xf32>
    %1146 = arith.addf %1145, %1144 : vector<2x32xf32>
    %1147 = arith.divf %1145, %1146 : vector<2x32xf32>
    %1148 = vector.extract_strided_slice %89 {offsets = [0, 64], sizes = [2, 32], strides = [1, 1]} : vector<2x96xf32> to vector<2x32xf32>
    %1149 = vector.extract_strided_slice %1131 {offsets = [0, 64], sizes = [2, 32], strides = [1, 1]} : vector<2x96xf32> to vector<2x32xf32>
    %1150 = arith.mulf %1139, %1149 : vector<2x32xf32>
    %1151 = arith.addf %1148, %1150 : vector<2x32xf32>
    %1152 = math.tanh %1151 : vector<2x32xf32>
    %cst_344 = arith.constant 1.000000e+00 : f32
    %1153 = vector.broadcast %cst_344 : f32 to vector<2x32xf32>
    %1154 = arith.subf %1153, %1147 : vector<2x32xf32>
    %1155 = arith.mulf %1154, %1152 : vector<2x32xf32>
    %1156 = arith.mulf %1147, %1063 : vector<2x32xf32>
    %1157 = arith.addf %1155, %1156 : vector<2x32xf32>
    %1158 = tpu.concatenate %1063, %1092 in 1 : vector<2x32xf32>, vector<2x32xf32> -> vector<2x64xf32>
    %1159 = arith.truncf %1158 : vector<2x64xf32> to vector<2x64xbf16>
    %c0_345 = arith.constant 0 : index
    %c0_346 = arith.constant 0 : index
    %1160 = vector.load %arg19[%c0_345, %c0_346] : memref<64x128xbf16, #tpu.memory_space<vmem>>, vector<64x128xbf16>
    %cst_347 = arith.constant dense<0.000000e+00> : vector<2x128xf32>
    %1161 = tpu.matmul %1159, %1160, %cst_347 {dimension_numbers = #tpu.dot_dimension_numbers<[1], [0], [0], [1], [0, 0, 1, 1], [], []>} : vector<2x64xbf16>, vector<64x128xbf16>, vector<2x128xf32> -> vector<2x128xf32>
    %c0_348 = arith.constant 0 : index
    %c0_349 = arith.constant 0 : index
    %1162 = vector.load %arg20[%c0_348, %c0_349] : memref<1x128xf32, #tpu.memory_space<vmem>>, vector<1x128xf32>
    %1163 = vector.broadcast %1162 : vector<1x128xf32> to vector<2x128xf32>
    %1164 = arith.addf %1161, %1163 : vector<2x128xf32>
    %1165 = vector.extract_strided_slice %1164 {offsets = [0, 0], sizes = [2, 32], strides = [1, 1]} : vector<2x128xf32> to vector<2x32xf32>
    %1166 = arith.negf %1165 : vector<2x32xf32>
    %1167 = math.exp %1166 : vector<2x32xf32>
    %cst_350 = arith.constant 1.000000e+00 : f32
    %1168 = vector.broadcast %cst_350 : f32 to vector<2x32xf32>
    %1169 = arith.addf %1168, %1167 : vector<2x32xf32>
    %1170 = arith.divf %1168, %1169 : vector<2x32xf32>
    %1171 = vector.extract_strided_slice %1164 {offsets = [0, 32], sizes = [2, 32], strides = [1, 1]} : vector<2x128xf32> to vector<2x32xf32>
    %1172 = arith.negf %1171 : vector<2x32xf32>
    %1173 = math.exp %1172 : vector<2x32xf32>
    %cst_351 = arith.constant 1.000000e+00 : f32
    %1174 = vector.broadcast %cst_351 : f32 to vector<2x32xf32>
    %1175 = arith.addf %1174, %1173 : vector<2x32xf32>
    %1176 = arith.divf %1174, %1175 : vector<2x32xf32>
    %1177 = vector.extract_strided_slice %1164 {offsets = [0, 64], sizes = [2, 32], strides = [1, 1]} : vector<2x128xf32> to vector<2x32xf32>
    %1178 = vector.extract_strided_slice %1164 {offsets = [0, 96], sizes = [2, 32], strides = [1, 1]} : vector<2x128xf32> to vector<2x32xf32>
    %1179 = arith.mulf %1170, %1178 : vector<2x32xf32>
    %1180 = arith.addf %1177, %1179 : vector<2x32xf32>
    %1181 = math.tanh %1180 : vector<2x32xf32>
    %cst_352 = arith.constant 1.000000e+00 : f32
    %1182 = vector.broadcast %cst_352 : f32 to vector<2x32xf32>
    %1183 = arith.subf %1182, %1176 : vector<2x32xf32>
    %1184 = arith.mulf %1183, %1181 : vector<2x32xf32>
    %1185 = arith.mulf %1176, %1092 : vector<2x32xf32>
    %1186 = arith.addf %1184, %1185 : vector<2x32xf32>
    %1187 = tpu.concatenate %1092, %1121 in 1 : vector<2x32xf32>, vector<2x32xf32> -> vector<2x64xf32>
    %1188 = arith.truncf %1187 : vector<2x64xf32> to vector<2x64xbf16>
    %c0_353 = arith.constant 0 : index
    %c0_354 = arith.constant 0 : index
    %1189 = vector.load %arg21[%c0_353, %c0_354] : memref<64x128xbf16, #tpu.memory_space<vmem>>, vector<64x128xbf16>
    %cst_355 = arith.constant dense<0.000000e+00> : vector<2x128xf32>
    %1190 = tpu.matmul %1188, %1189, %cst_355 {dimension_numbers = #tpu.dot_dimension_numbers<[1], [0], [0], [1], [0, 0, 1, 1], [], []>} : vector<2x64xbf16>, vector<64x128xbf16>, vector<2x128xf32> -> vector<2x128xf32>
    %c0_356 = arith.constant 0 : index
    %c0_357 = arith.constant 0 : index
    %1191 = vector.load %arg22[%c0_356, %c0_357] : memref<1x128xf32, #tpu.memory_space<vmem>>, vector<1x128xf32>
    %1192 = vector.broadcast %1191 : vector<1x128xf32> to vector<2x128xf32>
    %1193 = arith.addf %1190, %1192 : vector<2x128xf32>
    %1194 = vector.extract_strided_slice %1193 {offsets = [0, 0], sizes = [2, 32], strides = [1, 1]} : vector<2x128xf32> to vector<2x32xf32>
    %1195 = arith.negf %1194 : vector<2x32xf32>
    %1196 = math.exp %1195 : vector<2x32xf32>
    %cst_358 = arith.constant 1.000000e+00 : f32
    %1197 = vector.broadcast %cst_358 : f32 to vector<2x32xf32>
    %1198 = arith.addf %1197, %1196 : vector<2x32xf32>
    %1199 = arith.divf %1197, %1198 : vector<2x32xf32>
    %1200 = vector.extract_strided_slice %1193 {offsets = [0, 32], sizes = [2, 32], strides = [1, 1]} : vector<2x128xf32> to vector<2x32xf32>
    %1201 = arith.negf %1200 : vector<2x32xf32>
    %1202 = math.exp %1201 : vector<2x32xf32>
    %cst_359 = arith.constant 1.000000e+00 : f32
    %1203 = vector.broadcast %cst_359 : f32 to vector<2x32xf32>
    %1204 = arith.addf %1203, %1202 : vector<2x32xf32>
    %1205 = arith.divf %1203, %1204 : vector<2x32xf32>
    %1206 = vector.extract_strided_slice %1193 {offsets = [0, 64], sizes = [2, 32], strides = [1, 1]} : vector<2x128xf32> to vector<2x32xf32>
    %1207 = vector.extract_strided_slice %1193 {offsets = [0, 96], sizes = [2, 32], strides = [1, 1]} : vector<2x128xf32> to vector<2x32xf32>
    %1208 = arith.mulf %1199, %1207 : vector<2x32xf32>
    %1209 = arith.addf %1206, %1208 : vector<2x32xf32>
    %1210 = math.tanh %1209 : vector<2x32xf32>
    %cst_360 = arith.constant 1.000000e+00 : f32
    %1211 = vector.broadcast %cst_360 : f32 to vector<2x32xf32>
    %1212 = arith.subf %1211, %1205 : vector<2x32xf32>
    %1213 = arith.mulf %1212, %1210 : vector<2x32xf32>
    %1214 = arith.mulf %1205, %1121 : vector<2x32xf32>
    %1215 = arith.addf %1213, %1214 : vector<2x32xf32>
    %1216 = vector.extract_strided_slice %1215 {offsets = [0, 0], sizes = [1, 32], strides = [1, 1]} : vector<2x32xf32> to vector<1x32xf32>
    %c10 = arith.constant 10 : index
    %c0_361 = arith.constant 0 : index
    %1217 = vector.load %arg29[%c10, %c0_361] : memref<32x32xf32, #tpu.memory_space<vmem>>, vector<1x32xf32>
    tpu.vector_store %arg29[%c10, %c0_361], %1216 {strides = array<i32>} : memref<32x32xf32, #tpu.memory_space<vmem>>, vector<1x32xf32>,
    %1218 = vector.extract_strided_slice %1215 {offsets = [1, 0], sizes = [1, 32], strides = [1, 1]} : vector<2x32xf32> to vector<1x32xf32>
    %c26 = arith.constant 26 : index
    %c0_362 = arith.constant 0 : index
    %1219 = vector.load %arg29[%c26, %c0_362] : memref<32x32xf32, #tpu.memory_space<vmem>>, vector<1x32xf32>
    tpu.vector_store %arg29[%c26, %c0_362], %1218 {strides = array<i32>} : memref<32x32xf32, #tpu.memory_space<vmem>>, vector<1x32xf32>,
    %1220 = arith.truncf %1157 : vector<2x32xf32> to vector<2x32xbf16>
    %c0_363 = arith.constant 0 : index
    %c0_364 = arith.constant 0 : index
    %1221 = vector.load %arg17[%c0_363, %c0_364] : memref<32x96xbf16, #tpu.memory_space<vmem>>, vector<32x96xbf16>
    %cst_365 = arith.constant dense<0.000000e+00> : vector<2x96xf32>
    %1222 = tpu.matmul %1220, %1221, %cst_365 {dimension_numbers = #tpu.dot_dimension_numbers<[1], [0], [0], [1], [0, 0, 1, 1], [], []>} : vector<2x32xbf16>, vector<32x96xbf16>, vector<2x96xf32> -> vector<2x96xf32>
    %c0_366 = arith.constant 0 : index
    %c0_367 = arith.constant 0 : index
    %1223 = vector.load %arg18[%c0_366, %c0_367] : memref<1x96xf32, #tpu.memory_space<vmem>>, vector<1x96xf32>
    %1224 = vector.broadcast %1223 : vector<1x96xf32> to vector<2x96xf32>
    %1225 = arith.addf %1222, %1224 : vector<2x96xf32>
    %1226 = vector.extract_strided_slice %89 {offsets = [0, 0], sizes = [2, 32], strides = [1, 1]} : vector<2x96xf32> to vector<2x32xf32>
    %1227 = vector.extract_strided_slice %1225 {offsets = [0, 0], sizes = [2, 32], strides = [1, 1]} : vector<2x96xf32> to vector<2x32xf32>
    %1228 = arith.addf %1226, %1227 : vector<2x32xf32>
    %1229 = arith.negf %1228 : vector<2x32xf32>
    %1230 = math.exp %1229 : vector<2x32xf32>
    %cst_368 = arith.constant 1.000000e+00 : f32
    %1231 = vector.broadcast %cst_368 : f32 to vector<2x32xf32>
    %1232 = arith.addf %1231, %1230 : vector<2x32xf32>
    %1233 = arith.divf %1231, %1232 : vector<2x32xf32>
    %1234 = vector.extract_strided_slice %89 {offsets = [0, 32], sizes = [2, 32], strides = [1, 1]} : vector<2x96xf32> to vector<2x32xf32>
    %1235 = vector.extract_strided_slice %1225 {offsets = [0, 32], sizes = [2, 32], strides = [1, 1]} : vector<2x96xf32> to vector<2x32xf32>
    %1236 = arith.addf %1234, %1235 : vector<2x32xf32>
    %1237 = arith.negf %1236 : vector<2x32xf32>
    %1238 = math.exp %1237 : vector<2x32xf32>
    %cst_369 = arith.constant 1.000000e+00 : f32
    %1239 = vector.broadcast %cst_369 : f32 to vector<2x32xf32>
    %1240 = arith.addf %1239, %1238 : vector<2x32xf32>
    %1241 = arith.divf %1239, %1240 : vector<2x32xf32>
    %1242 = vector.extract_strided_slice %89 {offsets = [0, 64], sizes = [2, 32], strides = [1, 1]} : vector<2x96xf32> to vector<2x32xf32>
    %1243 = vector.extract_strided_slice %1225 {offsets = [0, 64], sizes = [2, 32], strides = [1, 1]} : vector<2x96xf32> to vector<2x32xf32>
    %1244 = arith.mulf %1233, %1243 : vector<2x32xf32>
    %1245 = arith.addf %1242, %1244 : vector<2x32xf32>
    %1246 = math.tanh %1245 : vector<2x32xf32>
    %cst_370 = arith.constant 1.000000e+00 : f32
    %1247 = vector.broadcast %cst_370 : f32 to vector<2x32xf32>
    %1248 = arith.subf %1247, %1241 : vector<2x32xf32>
    %1249 = arith.mulf %1248, %1246 : vector<2x32xf32>
    %1250 = arith.mulf %1241, %1157 : vector<2x32xf32>
    %1251 = arith.addf %1249, %1250 : vector<2x32xf32>
    %1252 = tpu.concatenate %1157, %1186 in 1 : vector<2x32xf32>, vector<2x32xf32> -> vector<2x64xf32>
    %1253 = arith.truncf %1252 : vector<2x64xf32> to vector<2x64xbf16>
    %c0_371 = arith.constant 0 : index
    %c0_372 = arith.constant 0 : index
    %1254 = vector.load %arg19[%c0_371, %c0_372] : memref<64x128xbf16, #tpu.memory_space<vmem>>, vector<64x128xbf16>
    %cst_373 = arith.constant dense<0.000000e+00> : vector<2x128xf32>
    %1255 = tpu.matmul %1253, %1254, %cst_373 {dimension_numbers = #tpu.dot_dimension_numbers<[1], [0], [0], [1], [0, 0, 1, 1], [], []>} : vector<2x64xbf16>, vector<64x128xbf16>, vector<2x128xf32> -> vector<2x128xf32>
    %c0_374 = arith.constant 0 : index
    %c0_375 = arith.constant 0 : index
    %1256 = vector.load %arg20[%c0_374, %c0_375] : memref<1x128xf32, #tpu.memory_space<vmem>>, vector<1x128xf32>
    %1257 = vector.broadcast %1256 : vector<1x128xf32> to vector<2x128xf32>
    %1258 = arith.addf %1255, %1257 : vector<2x128xf32>
    %1259 = vector.extract_strided_slice %1258 {offsets = [0, 0], sizes = [2, 32], strides = [1, 1]} : vector<2x128xf32> to vector<2x32xf32>
    %1260 = arith.negf %1259 : vector<2x32xf32>
    %1261 = math.exp %1260 : vector<2x32xf32>
    %cst_376 = arith.constant 1.000000e+00 : f32
    %1262 = vector.broadcast %cst_376 : f32 to vector<2x32xf32>
    %1263 = arith.addf %1262, %1261 : vector<2x32xf32>
    %1264 = arith.divf %1262, %1263 : vector<2x32xf32>
    %1265 = vector.extract_strided_slice %1258 {offsets = [0, 32], sizes = [2, 32], strides = [1, 1]} : vector<2x128xf32> to vector<2x32xf32>
    %1266 = arith.negf %1265 : vector<2x32xf32>
    %1267 = math.exp %1266 : vector<2x32xf32>
    %cst_377 = arith.constant 1.000000e+00 : f32
    %1268 = vector.broadcast %cst_377 : f32 to vector<2x32xf32>
    %1269 = arith.addf %1268, %1267 : vector<2x32xf32>
    %1270 = arith.divf %1268, %1269 : vector<2x32xf32>
    %1271 = vector.extract_strided_slice %1258 {offsets = [0, 64], sizes = [2, 32], strides = [1, 1]} : vector<2x128xf32> to vector<2x32xf32>
    %1272 = vector.extract_strided_slice %1258 {offsets = [0, 96], sizes = [2, 32], strides = [1, 1]} : vector<2x128xf32> to vector<2x32xf32>
    %1273 = arith.mulf %1264, %1272 : vector<2x32xf32>
    %1274 = arith.addf %1271, %1273 : vector<2x32xf32>
    %1275 = math.tanh %1274 : vector<2x32xf32>
    %cst_378 = arith.constant 1.000000e+00 : f32
    %1276 = vector.broadcast %cst_378 : f32 to vector<2x32xf32>
    %1277 = arith.subf %1276, %1270 : vector<2x32xf32>
    %1278 = arith.mulf %1277, %1275 : vector<2x32xf32>
    %1279 = arith.mulf %1270, %1186 : vector<2x32xf32>
    %1280 = arith.addf %1278, %1279 : vector<2x32xf32>
    %1281 = tpu.concatenate %1186, %1215 in 1 : vector<2x32xf32>, vector<2x32xf32> -> vector<2x64xf32>
    %1282 = arith.truncf %1281 : vector<2x64xf32> to vector<2x64xbf16>
    %c0_379 = arith.constant 0 : index
    %c0_380 = arith.constant 0 : index
    %1283 = vector.load %arg21[%c0_379, %c0_380] : memref<64x128xbf16, #tpu.memory_space<vmem>>, vector<64x128xbf16>
    %cst_381 = arith.constant dense<0.000000e+00> : vector<2x128xf32>
    %1284 = tpu.matmul %1282, %1283, %cst_381 {dimension_numbers = #tpu.dot_dimension_numbers<[1], [0], [0], [1], [0, 0, 1, 1], [], []>} : vector<2x64xbf16>, vector<64x128xbf16>, vector<2x128xf32> -> vector<2x128xf32>
    %c0_382 = arith.constant 0 : index
    %c0_383 = arith.constant 0 : index
    %1285 = vector.load %arg22[%c0_382, %c0_383] : memref<1x128xf32, #tpu.memory_space<vmem>>, vector<1x128xf32>
    %1286 = vector.broadcast %1285 : vector<1x128xf32> to vector<2x128xf32>
    %1287 = arith.addf %1284, %1286 : vector<2x128xf32>
    %1288 = vector.extract_strided_slice %1287 {offsets = [0, 0], sizes = [2, 32], strides = [1, 1]} : vector<2x128xf32> to vector<2x32xf32>
    %1289 = arith.negf %1288 : vector<2x32xf32>
    %1290 = math.exp %1289 : vector<2x32xf32>
    %cst_384 = arith.constant 1.000000e+00 : f32
    %1291 = vector.broadcast %cst_384 : f32 to vector<2x32xf32>
    %1292 = arith.addf %1291, %1290 : vector<2x32xf32>
    %1293 = arith.divf %1291, %1292 : vector<2x32xf32>
    %1294 = vector.extract_strided_slice %1287 {offsets = [0, 32], sizes = [2, 32], strides = [1, 1]} : vector<2x128xf32> to vector<2x32xf32>
    %1295 = arith.negf %1294 : vector<2x32xf32>
    %1296 = math.exp %1295 : vector<2x32xf32>
    %cst_385 = arith.constant 1.000000e+00 : f32
    %1297 = vector.broadcast %cst_385 : f32 to vector<2x32xf32>
    %1298 = arith.addf %1297, %1296 : vector<2x32xf32>
    %1299 = arith.divf %1297, %1298 : vector<2x32xf32>
    %1300 = vector.extract_strided_slice %1287 {offsets = [0, 64], sizes = [2, 32], strides = [1, 1]} : vector<2x128xf32> to vector<2x32xf32>
    %1301 = vector.extract_strided_slice %1287 {offsets = [0, 96], sizes = [2, 32], strides = [1, 1]} : vector<2x128xf32> to vector<2x32xf32>
    %1302 = arith.mulf %1293, %1301 : vector<2x32xf32>
    %1303 = arith.addf %1300, %1302 : vector<2x32xf32>
    %1304 = math.tanh %1303 : vector<2x32xf32>
    %cst_386 = arith.constant 1.000000e+00 : f32
    %1305 = vector.broadcast %cst_386 : f32 to vector<2x32xf32>
    %1306 = arith.subf %1305, %1299 : vector<2x32xf32>
    %1307 = arith.mulf %1306, %1304 : vector<2x32xf32>
    %1308 = arith.mulf %1299, %1215 : vector<2x32xf32>
    %1309 = arith.addf %1307, %1308 : vector<2x32xf32>
    %1310 = vector.extract_strided_slice %1309 {offsets = [0, 0], sizes = [1, 32], strides = [1, 1]} : vector<2x32xf32> to vector<1x32xf32>
    %c11 = arith.constant 11 : index
    %c0_387 = arith.constant 0 : index
    %1311 = vector.load %arg29[%c11, %c0_387] : memref<32x32xf32, #tpu.memory_space<vmem>>, vector<1x32xf32>
    tpu.vector_store %arg29[%c11, %c0_387], %1310 {strides = array<i32>} : memref<32x32xf32, #tpu.memory_space<vmem>>, vector<1x32xf32>,
    %1312 = vector.extract_strided_slice %1309 {offsets = [1, 0], sizes = [1, 32], strides = [1, 1]} : vector<2x32xf32> to vector<1x32xf32>
    %c27 = arith.constant 27 : index
    %c0_388 = arith.constant 0 : index
    %1313 = vector.load %arg29[%c27, %c0_388] : memref<32x32xf32, #tpu.memory_space<vmem>>, vector<1x32xf32>
    tpu.vector_store %arg29[%c27, %c0_388], %1312 {strides = array<i32>} : memref<32x32xf32, #tpu.memory_space<vmem>>, vector<1x32xf32>,
    %1314 = arith.truncf %1251 : vector<2x32xf32> to vector<2x32xbf16>
    %c0_389 = arith.constant 0 : index
    %c0_390 = arith.constant 0 : index
    %1315 = vector.load %arg17[%c0_389, %c0_390] : memref<32x96xbf16, #tpu.memory_space<vmem>>, vector<32x96xbf16>
    %cst_391 = arith.constant dense<0.000000e+00> : vector<2x96xf32>
    %1316 = tpu.matmul %1314, %1315, %cst_391 {dimension_numbers = #tpu.dot_dimension_numbers<[1], [0], [0], [1], [0, 0, 1, 1], [], []>} : vector<2x32xbf16>, vector<32x96xbf16>, vector<2x96xf32> -> vector<2x96xf32>
    %c0_392 = arith.constant 0 : index
    %c0_393 = arith.constant 0 : index
    %1317 = vector.load %arg18[%c0_392, %c0_393] : memref<1x96xf32, #tpu.memory_space<vmem>>, vector<1x96xf32>
    %1318 = vector.broadcast %1317 : vector<1x96xf32> to vector<2x96xf32>
    %1319 = arith.addf %1316, %1318 : vector<2x96xf32>
    %1320 = vector.extract_strided_slice %89 {offsets = [0, 0], sizes = [2, 32], strides = [1, 1]} : vector<2x96xf32> to vector<2x32xf32>
    %1321 = vector.extract_strided_slice %1319 {offsets = [0, 0], sizes = [2, 32], strides = [1, 1]} : vector<2x96xf32> to vector<2x32xf32>
    %1322 = arith.addf %1320, %1321 : vector<2x32xf32>
    %1323 = arith.negf %1322 : vector<2x32xf32>
    %1324 = math.exp %1323 : vector<2x32xf32>
    %cst_394 = arith.constant 1.000000e+00 : f32
    %1325 = vector.broadcast %cst_394 : f32 to vector<2x32xf32>
    %1326 = arith.addf %1325, %1324 : vector<2x32xf32>
    %1327 = arith.divf %1325, %1326 : vector<2x32xf32>
    %1328 = vector.extract_strided_slice %89 {offsets = [0, 32], sizes = [2, 32], strides = [1, 1]} : vector<2x96xf32> to vector<2x32xf32>
    %1329 = vector.extract_strided_slice %1319 {offsets = [0, 32], sizes = [2, 32], strides = [1, 1]} : vector<2x96xf32> to vector<2x32xf32>
    %1330 = arith.addf %1328, %1329 : vector<2x32xf32>
    %1331 = arith.negf %1330 : vector<2x32xf32>
    %1332 = math.exp %1331 : vector<2x32xf32>
    %cst_395 = arith.constant 1.000000e+00 : f32
    %1333 = vector.broadcast %cst_395 : f32 to vector<2x32xf32>
    %1334 = arith.addf %1333, %1332 : vector<2x32xf32>
    %1335 = arith.divf %1333, %1334 : vector<2x32xf32>
    %1336 = vector.extract_strided_slice %89 {offsets = [0, 64], sizes = [2, 32], strides = [1, 1]} : vector<2x96xf32> to vector<2x32xf32>
    %1337 = vector.extract_strided_slice %1319 {offsets = [0, 64], sizes = [2, 32], strides = [1, 1]} : vector<2x96xf32> to vector<2x32xf32>
    %1338 = arith.mulf %1327, %1337 : vector<2x32xf32>
    %1339 = arith.addf %1336, %1338 : vector<2x32xf32>
    %1340 = math.tanh %1339 : vector<2x32xf32>
    %cst_396 = arith.constant 1.000000e+00 : f32
    %1341 = vector.broadcast %cst_396 : f32 to vector<2x32xf32>
    %1342 = arith.subf %1341, %1335 : vector<2x32xf32>
    %1343 = arith.mulf %1342, %1340 : vector<2x32xf32>
    %1344 = arith.mulf %1335, %1251 : vector<2x32xf32>
    %1345 = arith.addf %1343, %1344 : vector<2x32xf32>
    %1346 = tpu.concatenate %1251, %1280 in 1 : vector<2x32xf32>, vector<2x32xf32> -> vector<2x64xf32>
    %1347 = arith.truncf %1346 : vector<2x64xf32> to vector<2x64xbf16>
    %c0_397 = arith.constant 0 : index
    %c0_398 = arith.constant 0 : index
    %1348 = vector.load %arg19[%c0_397, %c0_398] : memref<64x128xbf16, #tpu.memory_space<vmem>>, vector<64x128xbf16>
    %cst_399 = arith.constant dense<0.000000e+00> : vector<2x128xf32>
    %1349 = tpu.matmul %1347, %1348, %cst_399 {dimension_numbers = #tpu.dot_dimension_numbers<[1], [0], [0], [1], [0, 0, 1, 1], [], []>} : vector<2x64xbf16>, vector<64x128xbf16>, vector<2x128xf32> -> vector<2x128xf32>
    %c0_400 = arith.constant 0 : index
    %c0_401 = arith.constant 0 : index
    %1350 = vector.load %arg20[%c0_400, %c0_401] : memref<1x128xf32, #tpu.memory_space<vmem>>, vector<1x128xf32>
    %1351 = vector.broadcast %1350 : vector<1x128xf32> to vector<2x128xf32>
    %1352 = arith.addf %1349, %1351 : vector<2x128xf32>
    %1353 = vector.extract_strided_slice %1352 {offsets = [0, 0], sizes = [2, 32], strides = [1, 1]} : vector<2x128xf32> to vector<2x32xf32>
    %1354 = arith.negf %1353 : vector<2x32xf32>
    %1355 = math.exp %1354 : vector<2x32xf32>
    %cst_402 = arith.constant 1.000000e+00 : f32
    %1356 = vector.broadcast %cst_402 : f32 to vector<2x32xf32>
    %1357 = arith.addf %1356, %1355 : vector<2x32xf32>
    %1358 = arith.divf %1356, %1357 : vector<2x32xf32>
    %1359 = vector.extract_strided_slice %1352 {offsets = [0, 32], sizes = [2, 32], strides = [1, 1]} : vector<2x128xf32> to vector<2x32xf32>
    %1360 = arith.negf %1359 : vector<2x32xf32>
    %1361 = math.exp %1360 : vector<2x32xf32>
    %cst_403 = arith.constant 1.000000e+00 : f32
    %1362 = vector.broadcast %cst_403 : f32 to vector<2x32xf32>
    %1363 = arith.addf %1362, %1361 : vector<2x32xf32>
    %1364 = arith.divf %1362, %1363 : vector<2x32xf32>
    %1365 = vector.extract_strided_slice %1352 {offsets = [0, 64], sizes = [2, 32], strides = [1, 1]} : vector<2x128xf32> to vector<2x32xf32>
    %1366 = vector.extract_strided_slice %1352 {offsets = [0, 96], sizes = [2, 32], strides = [1, 1]} : vector<2x128xf32> to vector<2x32xf32>
    %1367 = arith.mulf %1358, %1366 : vector<2x32xf32>
    %1368 = arith.addf %1365, %1367 : vector<2x32xf32>
    %1369 = math.tanh %1368 : vector<2x32xf32>
    %cst_404 = arith.constant 1.000000e+00 : f32
    %1370 = vector.broadcast %cst_404 : f32 to vector<2x32xf32>
    %1371 = arith.subf %1370, %1364 : vector<2x32xf32>
    %1372 = arith.mulf %1371, %1369 : vector<2x32xf32>
    %1373 = arith.mulf %1364, %1280 : vector<2x32xf32>
    %1374 = arith.addf %1372, %1373 : vector<2x32xf32>
    %1375 = tpu.concatenate %1280, %1309 in 1 : vector<2x32xf32>, vector<2x32xf32> -> vector<2x64xf32>
    %1376 = arith.truncf %1375 : vector<2x64xf32> to vector<2x64xbf16>
    %c0_405 = arith.constant 0 : index
    %c0_406 = arith.constant 0 : index
    %1377 = vector.load %arg21[%c0_405, %c0_406] : memref<64x128xbf16, #tpu.memory_space<vmem>>, vector<64x128xbf16>
    %cst_407 = arith.constant dense<0.000000e+00> : vector<2x128xf32>
    %1378 = tpu.matmul %1376, %1377, %cst_407 {dimension_numbers = #tpu.dot_dimension_numbers<[1], [0], [0], [1], [0, 0, 1, 1], [], []>} : vector<2x64xbf16>, vector<64x128xbf16>, vector<2x128xf32> -> vector<2x128xf32>
    %c0_408 = arith.constant 0 : index
    %c0_409 = arith.constant 0 : index
    %1379 = vector.load %arg22[%c0_408, %c0_409] : memref<1x128xf32, #tpu.memory_space<vmem>>, vector<1x128xf32>
    %1380 = vector.broadcast %1379 : vector<1x128xf32> to vector<2x128xf32>
    %1381 = arith.addf %1378, %1380 : vector<2x128xf32>
    %1382 = vector.extract_strided_slice %1381 {offsets = [0, 0], sizes = [2, 32], strides = [1, 1]} : vector<2x128xf32> to vector<2x32xf32>
    %1383 = arith.negf %1382 : vector<2x32xf32>
    %1384 = math.exp %1383 : vector<2x32xf32>
    %cst_410 = arith.constant 1.000000e+00 : f32
    %1385 = vector.broadcast %cst_410 : f32 to vector<2x32xf32>
    %1386 = arith.addf %1385, %1384 : vector<2x32xf32>
    %1387 = arith.divf %1385, %1386 : vector<2x32xf32>
    %1388 = vector.extract_strided_slice %1381 {offsets = [0, 32], sizes = [2, 32], strides = [1, 1]} : vector<2x128xf32> to vector<2x32xf32>
    %1389 = arith.negf %1388 : vector<2x32xf32>
    %1390 = math.exp %1389 : vector<2x32xf32>
    %cst_411 = arith.constant 1.000000e+00 : f32
    %1391 = vector.broadcast %cst_411 : f32 to vector<2x32xf32>
    %1392 = arith.addf %1391, %1390 : vector<2x32xf32>
    %1393 = arith.divf %1391, %1392 : vector<2x32xf32>
    %1394 = vector.extract_strided_slice %1381 {offsets = [0, 64], sizes = [2, 32], strides = [1, 1]} : vector<2x128xf32> to vector<2x32xf32>
    %1395 = vector.extract_strided_slice %1381 {offsets = [0, 96], sizes = [2, 32], strides = [1, 1]} : vector<2x128xf32> to vector<2x32xf32>
    %1396 = arith.mulf %1387, %1395 : vector<2x32xf32>
    %1397 = arith.addf %1394, %1396 : vector<2x32xf32>
    %1398 = math.tanh %1397 : vector<2x32xf32>
    %cst_412 = arith.constant 1.000000e+00 : f32
    %1399 = vector.broadcast %cst_412 : f32 to vector<2x32xf32>
    %1400 = arith.subf %1399, %1393 : vector<2x32xf32>
    %1401 = arith.mulf %1400, %1398 : vector<2x32xf32>
    %1402 = arith.mulf %1393, %1309 : vector<2x32xf32>
    %1403 = arith.addf %1401, %1402 : vector<2x32xf32>
    %1404 = vector.extract_strided_slice %1403 {offsets = [0, 0], sizes = [1, 32], strides = [1, 1]} : vector<2x32xf32> to vector<1x32xf32>
    %c12 = arith.constant 12 : index
    %c0_413 = arith.constant 0 : index
    %1405 = vector.load %arg29[%c12, %c0_413] : memref<32x32xf32, #tpu.memory_space<vmem>>, vector<1x32xf32>
    tpu.vector_store %arg29[%c12, %c0_413], %1404 {strides = array<i32>} : memref<32x32xf32, #tpu.memory_space<vmem>>, vector<1x32xf32>,
    %1406 = vector.extract_strided_slice %1403 {offsets = [1, 0], sizes = [1, 32], strides = [1, 1]} : vector<2x32xf32> to vector<1x32xf32>
    %c28 = arith.constant 28 : index
    %c0_414 = arith.constant 0 : index
    %1407 = vector.load %arg29[%c28, %c0_414] : memref<32x32xf32, #tpu.memory_space<vmem>>, vector<1x32xf32>
    tpu.vector_store %arg29[%c28, %c0_414], %1406 {strides = array<i32>} : memref<32x32xf32, #tpu.memory_space<vmem>>, vector<1x32xf32>,
    %1408 = arith.truncf %1345 : vector<2x32xf32> to vector<2x32xbf16>
    %c0_415 = arith.constant 0 : index
    %c0_416 = arith.constant 0 : index
    %1409 = vector.load %arg17[%c0_415, %c0_416] : memref<32x96xbf16, #tpu.memory_space<vmem>>, vector<32x96xbf16>
    %cst_417 = arith.constant dense<0.000000e+00> : vector<2x96xf32>
    %1410 = tpu.matmul %1408, %1409, %cst_417 {dimension_numbers = #tpu.dot_dimension_numbers<[1], [0], [0], [1], [0, 0, 1, 1], [], []>} : vector<2x32xbf16>, vector<32x96xbf16>, vector<2x96xf32> -> vector<2x96xf32>
    %c0_418 = arith.constant 0 : index
    %c0_419 = arith.constant 0 : index
    %1411 = vector.load %arg18[%c0_418, %c0_419] : memref<1x96xf32, #tpu.memory_space<vmem>>, vector<1x96xf32>
    %1412 = vector.broadcast %1411 : vector<1x96xf32> to vector<2x96xf32>
    %1413 = arith.addf %1410, %1412 : vector<2x96xf32>
    %1414 = vector.extract_strided_slice %89 {offsets = [0, 0], sizes = [2, 32], strides = [1, 1]} : vector<2x96xf32> to vector<2x32xf32>
    %1415 = vector.extract_strided_slice %1413 {offsets = [0, 0], sizes = [2, 32], strides = [1, 1]} : vector<2x96xf32> to vector<2x32xf32>
    %1416 = arith.addf %1414, %1415 : vector<2x32xf32>
    %1417 = arith.negf %1416 : vector<2x32xf32>
    %1418 = math.exp %1417 : vector<2x32xf32>
    %cst_420 = arith.constant 1.000000e+00 : f32
    %1419 = vector.broadcast %cst_420 : f32 to vector<2x32xf32>
    %1420 = arith.addf %1419, %1418 : vector<2x32xf32>
    %1421 = arith.divf %1419, %1420 : vector<2x32xf32>
    %1422 = vector.extract_strided_slice %89 {offsets = [0, 32], sizes = [2, 32], strides = [1, 1]} : vector<2x96xf32> to vector<2x32xf32>
    %1423 = vector.extract_strided_slice %1413 {offsets = [0, 32], sizes = [2, 32], strides = [1, 1]} : vector<2x96xf32> to vector<2x32xf32>
    %1424 = arith.addf %1422, %1423 : vector<2x32xf32>
    %1425 = arith.negf %1424 : vector<2x32xf32>
    %1426 = math.exp %1425 : vector<2x32xf32>
    %cst_421 = arith.constant 1.000000e+00 : f32
    %1427 = vector.broadcast %cst_421 : f32 to vector<2x32xf32>
    %1428 = arith.addf %1427, %1426 : vector<2x32xf32>
    %1429 = arith.divf %1427, %1428 : vector<2x32xf32>
    %1430 = vector.extract_strided_slice %89 {offsets = [0, 64], sizes = [2, 32], strides = [1, 1]} : vector<2x96xf32> to vector<2x32xf32>
    %1431 = vector.extract_strided_slice %1413 {offsets = [0, 64], sizes = [2, 32], strides = [1, 1]} : vector<2x96xf32> to vector<2x32xf32>
    %1432 = arith.mulf %1421, %1431 : vector<2x32xf32>
    %1433 = arith.addf %1430, %1432 : vector<2x32xf32>
    %1434 = math.tanh %1433 : vector<2x32xf32>
    %cst_422 = arith.constant 1.000000e+00 : f32
    %1435 = vector.broadcast %cst_422 : f32 to vector<2x32xf32>
    %1436 = arith.subf %1435, %1429 : vector<2x32xf32>
    %1437 = arith.mulf %1436, %1434 : vector<2x32xf32>
    %1438 = arith.mulf %1429, %1345 : vector<2x32xf32>
    %1439 = arith.addf %1437, %1438 : vector<2x32xf32>
    %1440 = tpu.concatenate %1345, %1374 in 1 : vector<2x32xf32>, vector<2x32xf32> -> vector<2x64xf32>
    %1441 = arith.truncf %1440 : vector<2x64xf32> to vector<2x64xbf16>
    %c0_423 = arith.constant 0 : index
    %c0_424 = arith.constant 0 : index
    %1442 = vector.load %arg19[%c0_423, %c0_424] : memref<64x128xbf16, #tpu.memory_space<vmem>>, vector<64x128xbf16>
    %cst_425 = arith.constant dense<0.000000e+00> : vector<2x128xf32>
    %1443 = tpu.matmul %1441, %1442, %cst_425 {dimension_numbers = #tpu.dot_dimension_numbers<[1], [0], [0], [1], [0, 0, 1, 1], [], []>} : vector<2x64xbf16>, vector<64x128xbf16>, vector<2x128xf32> -> vector<2x128xf32>
    %c0_426 = arith.constant 0 : index
    %c0_427 = arith.constant 0 : index
    %1444 = vector.load %arg20[%c0_426, %c0_427] : memref<1x128xf32, #tpu.memory_space<vmem>>, vector<1x128xf32>
    %1445 = vector.broadcast %1444 : vector<1x128xf32> to vector<2x128xf32>
    %1446 = arith.addf %1443, %1445 : vector<2x128xf32>
    %1447 = vector.extract_strided_slice %1446 {offsets = [0, 0], sizes = [2, 32], strides = [1, 1]} : vector<2x128xf32> to vector<2x32xf32>
    %1448 = arith.negf %1447 : vector<2x32xf32>
    %1449 = math.exp %1448 : vector<2x32xf32>
    %cst_428 = arith.constant 1.000000e+00 : f32
    %1450 = vector.broadcast %cst_428 : f32 to vector<2x32xf32>
    %1451 = arith.addf %1450, %1449 : vector<2x32xf32>
    %1452 = arith.divf %1450, %1451 : vector<2x32xf32>
    %1453 = vector.extract_strided_slice %1446 {offsets = [0, 32], sizes = [2, 32], strides = [1, 1]} : vector<2x128xf32> to vector<2x32xf32>
    %1454 = arith.negf %1453 : vector<2x32xf32>
    %1455 = math.exp %1454 : vector<2x32xf32>
    %cst_429 = arith.constant 1.000000e+00 : f32
    %1456 = vector.broadcast %cst_429 : f32 to vector<2x32xf32>
    %1457 = arith.addf %1456, %1455 : vector<2x32xf32>
    %1458 = arith.divf %1456, %1457 : vector<2x32xf32>
    %1459 = vector.extract_strided_slice %1446 {offsets = [0, 64], sizes = [2, 32], strides = [1, 1]} : vector<2x128xf32> to vector<2x32xf32>
    %1460 = vector.extract_strided_slice %1446 {offsets = [0, 96], sizes = [2, 32], strides = [1, 1]} : vector<2x128xf32> to vector<2x32xf32>
    %1461 = arith.mulf %1452, %1460 : vector<2x32xf32>
    %1462 = arith.addf %1459, %1461 : vector<2x32xf32>
    %1463 = math.tanh %1462 : vector<2x32xf32>
    %cst_430 = arith.constant 1.000000e+00 : f32
    %1464 = vector.broadcast %cst_430 : f32 to vector<2x32xf32>
    %1465 = arith.subf %1464, %1458 : vector<2x32xf32>
    %1466 = arith.mulf %1465, %1463 : vector<2x32xf32>
    %1467 = arith.mulf %1458, %1374 : vector<2x32xf32>
    %1468 = arith.addf %1466, %1467 : vector<2x32xf32>
    %1469 = tpu.concatenate %1374, %1403 in 1 : vector<2x32xf32>, vector<2x32xf32> -> vector<2x64xf32>
    %1470 = arith.truncf %1469 : vector<2x64xf32> to vector<2x64xbf16>
    %c0_431 = arith.constant 0 : index
    %c0_432 = arith.constant 0 : index
    %1471 = vector.load %arg21[%c0_431, %c0_432] : memref<64x128xbf16, #tpu.memory_space<vmem>>, vector<64x128xbf16>
    %cst_433 = arith.constant dense<0.000000e+00> : vector<2x128xf32>
    %1472 = tpu.matmul %1470, %1471, %cst_433 {dimension_numbers = #tpu.dot_dimension_numbers<[1], [0], [0], [1], [0, 0, 1, 1], [], []>} : vector<2x64xbf16>, vector<64x128xbf16>, vector<2x128xf32> -> vector<2x128xf32>
    %c0_434 = arith.constant 0 : index
    %c0_435 = arith.constant 0 : index
    %1473 = vector.load %arg22[%c0_434, %c0_435] : memref<1x128xf32, #tpu.memory_space<vmem>>, vector<1x128xf32>
    %1474 = vector.broadcast %1473 : vector<1x128xf32> to vector<2x128xf32>
    %1475 = arith.addf %1472, %1474 : vector<2x128xf32>
    %1476 = vector.extract_strided_slice %1475 {offsets = [0, 0], sizes = [2, 32], strides = [1, 1]} : vector<2x128xf32> to vector<2x32xf32>
    %1477 = arith.negf %1476 : vector<2x32xf32>
    %1478 = math.exp %1477 : vector<2x32xf32>
    %cst_436 = arith.constant 1.000000e+00 : f32
    %1479 = vector.broadcast %cst_436 : f32 to vector<2x32xf32>
    %1480 = arith.addf %1479, %1478 : vector<2x32xf32>
    %1481 = arith.divf %1479, %1480 : vector<2x32xf32>
    %1482 = vector.extract_strided_slice %1475 {offsets = [0, 32], sizes = [2, 32], strides = [1, 1]} : vector<2x128xf32> to vector<2x32xf32>
    %1483 = arith.negf %1482 : vector<2x32xf32>
    %1484 = math.exp %1483 : vector<2x32xf32>
    %cst_437 = arith.constant 1.000000e+00 : f32
    %1485 = vector.broadcast %cst_437 : f32 to vector<2x32xf32>
    %1486 = arith.addf %1485, %1484 : vector<2x32xf32>
    %1487 = arith.divf %1485, %1486 : vector<2x32xf32>
    %1488 = vector.extract_strided_slice %1475 {offsets = [0, 64], sizes = [2, 32], strides = [1, 1]} : vector<2x128xf32> to vector<2x32xf32>
    %1489 = vector.extract_strided_slice %1475 {offsets = [0, 96], sizes = [2, 32], strides = [1, 1]} : vector<2x128xf32> to vector<2x32xf32>
    %1490 = arith.mulf %1481, %1489 : vector<2x32xf32>
    %1491 = arith.addf %1488, %1490 : vector<2x32xf32>
    %1492 = math.tanh %1491 : vector<2x32xf32>
    %cst_438 = arith.constant 1.000000e+00 : f32
    %1493 = vector.broadcast %cst_438 : f32 to vector<2x32xf32>
    %1494 = arith.subf %1493, %1487 : vector<2x32xf32>
    %1495 = arith.mulf %1494, %1492 : vector<2x32xf32>
    %1496 = arith.mulf %1487, %1403 : vector<2x32xf32>
    %1497 = arith.addf %1495, %1496 : vector<2x32xf32>
    %1498 = vector.extract_strided_slice %1497 {offsets = [0, 0], sizes = [1, 32], strides = [1, 1]} : vector<2x32xf32> to vector<1x32xf32>
    %c13 = arith.constant 13 : index
    %c0_439 = arith.constant 0 : index
    %1499 = vector.load %arg29[%c13, %c0_439] : memref<32x32xf32, #tpu.memory_space<vmem>>, vector<1x32xf32>
    tpu.vector_store %arg29[%c13, %c0_439], %1498 {strides = array<i32>} : memref<32x32xf32, #tpu.memory_space<vmem>>, vector<1x32xf32>,
    %1500 = vector.extract_strided_slice %1497 {offsets = [1, 0], sizes = [1, 32], strides = [1, 1]} : vector<2x32xf32> to vector<1x32xf32>
    %c29 = arith.constant 29 : index
    %c0_440 = arith.constant 0 : index
    %1501 = vector.load %arg29[%c29, %c0_440] : memref<32x32xf32, #tpu.memory_space<vmem>>, vector<1x32xf32>
    tpu.vector_store %arg29[%c29, %c0_440], %1500 {strides = array<i32>} : memref<32x32xf32, #tpu.memory_space<vmem>>, vector<1x32xf32>,
    %1502 = tpu.concatenate %1439, %1468 in 1 : vector<2x32xf32>, vector<2x32xf32> -> vector<2x64xf32>
    %1503 = arith.truncf %1502 : vector<2x64xf32> to vector<2x64xbf16>
    %c0_441 = arith.constant 0 : index
    %c0_442 = arith.constant 0 : index
    %1504 = vector.load %arg19[%c0_441, %c0_442] : memref<64x128xbf16, #tpu.memory_space<vmem>>, vector<64x128xbf16>
    %cst_443 = arith.constant dense<0.000000e+00> : vector<2x128xf32>
    %1505 = tpu.matmul %1503, %1504, %cst_443 {dimension_numbers = #tpu.dot_dimension_numbers<[1], [0], [0], [1], [0, 0, 1, 1], [], []>} : vector<2x64xbf16>, vector<64x128xbf16>, vector<2x128xf32> -> vector<2x128xf32>
    %c0_444 = arith.constant 0 : index
    %c0_445 = arith.constant 0 : index
    %1506 = vector.load %arg20[%c0_444, %c0_445] : memref<1x128xf32, #tpu.memory_space<vmem>>, vector<1x128xf32>
    %1507 = vector.broadcast %1506 : vector<1x128xf32> to vector<2x128xf32>
    %1508 = arith.addf %1505, %1507 : vector<2x128xf32>
    %1509 = vector.extract_strided_slice %1508 {offsets = [0, 0], sizes = [2, 32], strides = [1, 1]} : vector<2x128xf32> to vector<2x32xf32>
    %1510 = arith.negf %1509 : vector<2x32xf32>
    %1511 = math.exp %1510 : vector<2x32xf32>
    %cst_446 = arith.constant 1.000000e+00 : f32
    %1512 = vector.broadcast %cst_446 : f32 to vector<2x32xf32>
    %1513 = arith.addf %1512, %1511 : vector<2x32xf32>
    %1514 = arith.divf %1512, %1513 : vector<2x32xf32>
    %1515 = vector.extract_strided_slice %1508 {offsets = [0, 32], sizes = [2, 32], strides = [1, 1]} : vector<2x128xf32> to vector<2x32xf32>
    %1516 = arith.negf %1515 : vector<2x32xf32>
    %1517 = math.exp %1516 : vector<2x32xf32>
    %cst_447 = arith.constant 1.000000e+00 : f32
    %1518 = vector.broadcast %cst_447 : f32 to vector<2x32xf32>
    %1519 = arith.addf %1518, %1517 : vector<2x32xf32>
    %1520 = arith.divf %1518, %1519 : vector<2x32xf32>
    %1521 = vector.extract_strided_slice %1508 {offsets = [0, 64], sizes = [2, 32], strides = [1, 1]} : vector<2x128xf32> to vector<2x32xf32>
    %1522 = vector.extract_strided_slice %1508 {offsets = [0, 96], sizes = [2, 32], strides = [1, 1]} : vector<2x128xf32> to vector<2x32xf32>
    %1523 = arith.mulf %1514, %1522 : vector<2x32xf32>
    %1524 = arith.addf %1521, %1523 : vector<2x32xf32>
    %1525 = math.tanh %1524 : vector<2x32xf32>
    %cst_448 = arith.constant 1.000000e+00 : f32
    %1526 = vector.broadcast %cst_448 : f32 to vector<2x32xf32>
    %1527 = arith.subf %1526, %1520 : vector<2x32xf32>
    %1528 = arith.mulf %1527, %1525 : vector<2x32xf32>
    %1529 = arith.mulf %1520, %1468 : vector<2x32xf32>
    %1530 = arith.addf %1528, %1529 : vector<2x32xf32>
    %1531 = tpu.concatenate %1468, %1497 in 1 : vector<2x32xf32>, vector<2x32xf32> -> vector<2x64xf32>
    %1532 = arith.truncf %1531 : vector<2x64xf32> to vector<2x64xbf16>
    %c0_449 = arith.constant 0 : index
    %c0_450 = arith.constant 0 : index
    %1533 = vector.load %arg21[%c0_449, %c0_450] : memref<64x128xbf16, #tpu.memory_space<vmem>>, vector<64x128xbf16>
    %cst_451 = arith.constant dense<0.000000e+00> : vector<2x128xf32>
    %1534 = tpu.matmul %1532, %1533, %cst_451 {dimension_numbers = #tpu.dot_dimension_numbers<[1], [0], [0], [1], [0, 0, 1, 1], [], []>} : vector<2x64xbf16>, vector<64x128xbf16>, vector<2x128xf32> -> vector<2x128xf32>
    %c0_452 = arith.constant 0 : index
    %c0_453 = arith.constant 0 : index
    %1535 = vector.load %arg22[%c0_452, %c0_453] : memref<1x128xf32, #tpu.memory_space<vmem>>, vector<1x128xf32>
    %1536 = vector.broadcast %1535 : vector<1x128xf32> to vector<2x128xf32>
    %1537 = arith.addf %1534, %1536 : vector<2x128xf32>
    %1538 = vector.extract_strided_slice %1537 {offsets = [0, 0], sizes = [2, 32], strides = [1, 1]} : vector<2x128xf32> to vector<2x32xf32>
    %1539 = arith.negf %1538 : vector<2x32xf32>
    %1540 = math.exp %1539 : vector<2x32xf32>
    %cst_454 = arith.constant 1.000000e+00 : f32
    %1541 = vector.broadcast %cst_454 : f32 to vector<2x32xf32>
    %1542 = arith.addf %1541, %1540 : vector<2x32xf32>
    %1543 = arith.divf %1541, %1542 : vector<2x32xf32>
    %1544 = vector.extract_strided_slice %1537 {offsets = [0, 32], sizes = [2, 32], strides = [1, 1]} : vector<2x128xf32> to vector<2x32xf32>
    %1545 = arith.negf %1544 : vector<2x32xf32>
    %1546 = math.exp %1545 : vector<2x32xf32>
    %cst_455 = arith.constant 1.000000e+00 : f32
    %1547 = vector.broadcast %cst_455 : f32 to vector<2x32xf32>
    %1548 = arith.addf %1547, %1546 : vector<2x32xf32>
    %1549 = arith.divf %1547, %1548 : vector<2x32xf32>
    %1550 = vector.extract_strided_slice %1537 {offsets = [0, 64], sizes = [2, 32], strides = [1, 1]} : vector<2x128xf32> to vector<2x32xf32>
    %1551 = vector.extract_strided_slice %1537 {offsets = [0, 96], sizes = [2, 32], strides = [1, 1]} : vector<2x128xf32> to vector<2x32xf32>
    %1552 = arith.mulf %1543, %1551 : vector<2x32xf32>
    %1553 = arith.addf %1550, %1552 : vector<2x32xf32>
    %1554 = math.tanh %1553 : vector<2x32xf32>
    %cst_456 = arith.constant 1.000000e+00 : f32
    %1555 = vector.broadcast %cst_456 : f32 to vector<2x32xf32>
    %1556 = arith.subf %1555, %1549 : vector<2x32xf32>
    %1557 = arith.mulf %1556, %1554 : vector<2x32xf32>
    %1558 = arith.mulf %1549, %1497 : vector<2x32xf32>
    %1559 = arith.addf %1557, %1558 : vector<2x32xf32>
    %1560 = vector.extract_strided_slice %1559 {offsets = [0, 0], sizes = [1, 32], strides = [1, 1]} : vector<2x32xf32> to vector<1x32xf32>
    %c14 = arith.constant 14 : index
    %c0_457 = arith.constant 0 : index
    %1561 = vector.load %arg29[%c14, %c0_457] : memref<32x32xf32, #tpu.memory_space<vmem>>, vector<1x32xf32>
    tpu.vector_store %arg29[%c14, %c0_457], %1560 {strides = array<i32>} : memref<32x32xf32, #tpu.memory_space<vmem>>, vector<1x32xf32>,
    %1562 = vector.extract_strided_slice %1559 {offsets = [1, 0], sizes = [1, 32], strides = [1, 1]} : vector<2x32xf32> to vector<1x32xf32>
    %c30 = arith.constant 30 : index
    %c0_458 = arith.constant 0 : index
    %1563 = vector.load %arg29[%c30, %c0_458] : memref<32x32xf32, #tpu.memory_space<vmem>>, vector<1x32xf32>
    tpu.vector_store %arg29[%c30, %c0_458], %1562 {strides = array<i32>} : memref<32x32xf32, #tpu.memory_space<vmem>>, vector<1x32xf32>,
    %1564 = tpu.concatenate %1530, %1559 in 1 : vector<2x32xf32>, vector<2x32xf32> -> vector<2x64xf32>
    %1565 = arith.truncf %1564 : vector<2x64xf32> to vector<2x64xbf16>
    %c0_459 = arith.constant 0 : index
    %c0_460 = arith.constant 0 : index
    %1566 = vector.load %arg21[%c0_459, %c0_460] : memref<64x128xbf16, #tpu.memory_space<vmem>>, vector<64x128xbf16>
    %cst_461 = arith.constant dense<0.000000e+00> : vector<2x128xf32>
    %1567 = tpu.matmul %1565, %1566, %cst_461 {dimension_numbers = #tpu.dot_dimension_numbers<[1], [0], [0], [1], [0, 0, 1, 1], [], []>} : vector<2x64xbf16>, vector<64x128xbf16>, vector<2x128xf32> -> vector<2x128xf32>
    %c0_462 = arith.constant 0 : index
    %c0_463 = arith.constant 0 : index
    %1568 = vector.load %arg22[%c0_462, %c0_463] : memref<1x128xf32, #tpu.memory_space<vmem>>, vector<1x128xf32>
    %1569 = vector.broadcast %1568 : vector<1x128xf32> to vector<2x128xf32>
    %1570 = arith.addf %1567, %1569 : vector<2x128xf32>
    %1571 = vector.extract_strided_slice %1570 {offsets = [0, 0], sizes = [2, 32], strides = [1, 1]} : vector<2x128xf32> to vector<2x32xf32>
    %1572 = arith.negf %1571 : vector<2x32xf32>
    %1573 = math.exp %1572 : vector<2x32xf32>
    %cst_464 = arith.constant 1.000000e+00 : f32
    %1574 = vector.broadcast %cst_464 : f32 to vector<2x32xf32>
    %1575 = arith.addf %1574, %1573 : vector<2x32xf32>
    %1576 = arith.divf %1574, %1575 : vector<2x32xf32>
    %1577 = vector.extract_strided_slice %1570 {offsets = [0, 32], sizes = [2, 32], strides = [1, 1]} : vector<2x128xf32> to vector<2x32xf32>
    %1578 = arith.negf %1577 : vector<2x32xf32>
    %1579 = math.exp %1578 : vector<2x32xf32>
    %cst_465 = arith.constant 1.000000e+00 : f32
    %1580 = vector.broadcast %cst_465 : f32 to vector<2x32xf32>
    %1581 = arith.addf %1580, %1579 : vector<2x32xf32>
    %1582 = arith.divf %1580, %1581 : vector<2x32xf32>
    %1583 = vector.extract_strided_slice %1570 {offsets = [0, 64], sizes = [2, 32], strides = [1, 1]} : vector<2x128xf32> to vector<2x32xf32>
    %1584 = vector.extract_strided_slice %1570 {offsets = [0, 96], sizes = [2, 32], strides = [1, 1]} : vector<2x128xf32> to vector<2x32xf32>
    %1585 = arith.mulf %1576, %1584 : vector<2x32xf32>
    %1586 = arith.addf %1583, %1585 : vector<2x32xf32>
    %1587 = math.tanh %1586 : vector<2x32xf32>
    %cst_466 = arith.constant 1.000000e+00 : f32
    %1588 = vector.broadcast %cst_466 : f32 to vector<2x32xf32>
    %1589 = arith.subf %1588, %1582 : vector<2x32xf32>
    %1590 = arith.mulf %1589, %1587 : vector<2x32xf32>
    %1591 = arith.mulf %1582, %1559 : vector<2x32xf32>
    %1592 = arith.addf %1590, %1591 : vector<2x32xf32>
    %1593 = vector.extract_strided_slice %1592 {offsets = [0, 0], sizes = [1, 32], strides = [1, 1]} : vector<2x32xf32> to vector<1x32xf32>
    %c15 = arith.constant 15 : index
    %c0_467 = arith.constant 0 : index
    %1594 = vector.load %arg29[%c15, %c0_467] : memref<32x32xf32, #tpu.memory_space<vmem>>, vector<1x32xf32>
    tpu.vector_store %arg29[%c15, %c0_467], %1593 {strides = array<i32>} : memref<32x32xf32, #tpu.memory_space<vmem>>, vector<1x32xf32>,
    %1595 = vector.extract_strided_slice %1592 {offsets = [1, 0], sizes = [1, 32], strides = [1, 1]} : vector<2x32xf32> to vector<1x32xf32>
    %c31 = arith.constant 31 : index
    %c0_468 = arith.constant 0 : index
    %1596 = vector.load %arg29[%c31, %c0_468] : memref<32x32xf32, #tpu.memory_space<vmem>>, vector<1x32xf32>
    tpu.vector_store %arg29[%c31, %c0_468], %1595 {strides = array<i32>} : memref<32x32xf32, #tpu.memory_space<vmem>>, vector<1x32xf32>,
    %c0_469 = arith.constant 0 : index
    %c0_470 = arith.constant 0 : index
    %1597 = vector.load %arg29[%c0_469, %c0_470] : memref<32x32xf32, #tpu.memory_space<vmem>>, vector<32x32xf32>
    %1598 = arith.truncf %1597 : vector<32x32xf32> to vector<32x32xbf16>
    %c0_471 = arith.constant 0 : index
    %c0_472 = arith.constant 0 : index
    %1599 = vector.load %arg23[%c0_471, %c0_472] : memref<32x8xbf16, #tpu.memory_space<vmem>>, vector<32x8xbf16>
    %cst_473 = arith.constant dense<0.000000e+00> : vector<32x8xf32>
    %1600 = tpu.matmul %1598, %1599, %cst_473 {dimension_numbers = #tpu.dot_dimension_numbers<[1], [0], [0], [1], [0, 0, 1, 1], [], []>} : vector<32x32xbf16>, vector<32x8xbf16>, vector<32x8xf32> -> vector<32x8xf32>
    %c0_474 = arith.constant 0 : index
    %c0_475 = arith.constant 0 : index
    %1601 = vector.load %arg24[%c0_474, %c0_475] : memref<1x8xf32, #tpu.memory_space<vmem>>, vector<1x8xf32>
    %1602 = vector.broadcast %1601 : vector<1x8xf32> to vector<32x8xf32>
    %1603 = arith.addf %1600, %1602 : vector<32x8xf32>
    %c0_476 = arith.constant 0 : index
    %c0_477 = arith.constant 0 : index
    %1604 = vector.load %arg28[%c0_476, %c0_477] : memref<32x8xf32, #tpu.memory_space<vmem>>, vector<32x8xf32>
    tpu.vector_store %arg28[%c0_476, %c0_477], %1603 {strides = array<i32>} : memref<32x8xf32, #tpu.memory_space<vmem>>, vector<32x8xf32>,
    return
  }
  func.func @transform_0(%arg0: i32) -> (i32, i32) {
    %c0_i32 = arith.constant 0 : i32
    %c0_i32_0 = arith.constant 0 : i32
    %c0_i32_1 = arith.constant 0 : i32
    return %c0_i32, %c0_i32_0 : i32, i32
  }
  func.func @transform_1(%arg0: i32) -> (i32, i32) {
    %c0_i32 = arith.constant 0 : i32
    %c0_i32_0 = arith.constant 0 : i32
    %c0_i32_1 = arith.constant 0 : i32
    return %c0_i32, %c0_i32_0 : i32, i32
  }
  func.func @transform_2(%arg0: i32) -> (i32, i32) {
    %c0_i32 = arith.constant 0 : i32
    %c0_i32_0 = arith.constant 0 : i32
    %c0_i32_1 = arith.constant 0 : i32
    return %c0_i32, %c0_i32_0 : i32, i32
  }
  func.func @transform_3(%arg0: i32) -> (i32, i32) {
    %c0_i32 = arith.constant 0 : i32
    %c0_i32_0 = arith.constant 0 : i32
    %c0_i32_1 = arith.constant 0 : i32
    return %c0_i32, %c0_i32_0 : i32, i32
  }
  func.func @transform_4(%arg0: i32) -> (i32, i32) {
    %c0_i32 = arith.constant 0 : i32
    %c0_i32_0 = arith.constant 0 : i32
    %c0_i32_1 = arith.constant 0 : i32
    return %c0_i32, %c0_i32_0 : i32, i32
  }
  func.func @transform_5(%arg0: i32) -> (i32, i32) {
    %c0_i32 = arith.constant 0 : i32
    %c0_i32_0 = arith.constant 0 : i32
    %c0_i32_1 = arith.constant 0 : i32
    return %c0_i32, %c0_i32_0 : i32, i32
  }
  func.func @transform_6(%arg0: i32) -> (i32, i32) {
    %c0_i32 = arith.constant 0 : i32
    %c0_i32_0 = arith.constant 0 : i32
    %c0_i32_1 = arith.constant 0 : i32
    return %c0_i32, %c0_i32_0 : i32, i32
  }
  func.func @transform_7(%arg0: i32) -> (i32, i32) {
    %c0_i32 = arith.constant 0 : i32
    %c0_i32_0 = arith.constant 0 : i32
    %c0_i32_1 = arith.constant 0 : i32
    return %c0_i32, %c0_i32_0 : i32, i32
  }
  func.func @transform_8(%arg0: i32) -> (i32, i32) {
    %c0_i32 = arith.constant 0 : i32
    %c0_i32_0 = arith.constant 0 : i32
    %c0_i32_1 = arith.constant 0 : i32
    return %c0_i32, %c0_i32_0 : i32, i32
  }
  func.func @transform_9(%arg0: i32) -> (i32, i32) {
    %c0_i32 = arith.constant 0 : i32
    %c0_i32_0 = arith.constant 0 : i32
    %c0_i32_1 = arith.constant 0 : i32
    return %c0_i32, %c0_i32_0 : i32, i32
  }
  func.func @transform_10(%arg0: i32) -> (i32, i32) {
    %c0_i32 = arith.constant 0 : i32
    %c0_i32_0 = arith.constant 0 : i32
    %c0_i32_1 = arith.constant 0 : i32
    return %c0_i32, %c0_i32_0 : i32, i32
  }
  func.func @transform_11(%arg0: i32) -> (i32, i32) {
    %c0_i32 = arith.constant 0 : i32
    %c0_i32_0 = arith.constant 0 : i32
    %c0_i32_1 = arith.constant 0 : i32
    return %c0_i32, %c0_i32_0 : i32, i32
  }
  func.func @transform_12(%arg0: i32) -> (i32, i32) {
    %c0_i32 = arith.constant 0 : i32
    %c0_i32_0 = arith.constant 0 : i32
    %c0_i32_1 = arith.constant 0 : i32
    return %c0_i32, %c0_i32_0 : i32, i32
  }
  func.func @transform_13(%arg0: i32) -> (i32, i32) {
    %c0_i32 = arith.constant 0 : i32
    %c0_i32_0 = arith.constant 0 : i32
    %c0_i32_1 = arith.constant 0 : i32
    return %c0_i32, %c0_i32_0 : i32, i32
  }
  func.func @transform_14(%arg0: i32) -> (i32, i32) {
    %c0_i32 = arith.constant 0 : i32
    %c0_i32_0 = arith.constant 0 : i32
    %c0_i32_1 = arith.constant 0 : i32
    return %c0_i32, %c0_i32_0 : i32, i32
  }
  func.func @transform_15(%arg0: i32) -> (i32, i32) {
    %c0_i32 = arith.constant 0 : i32
    %c0_i32_0 = arith.constant 0 : i32
    %c0_i32_1 = arith.constant 0 : i32
    return %c0_i32, %c0_i32_0 : i32, i32
  }
  func.func @transform_16(%arg0: i32) -> (i32, i32) {
    %c0_i32 = arith.constant 0 : i32
    %c0_i32_0 = arith.constant 0 : i32
    %c0_i32_1 = arith.constant 0 : i32
    return %c0_i32, %c0_i32_0 : i32, i32
  }
  func.func @transform_17(%arg0: i32) -> (i32, i32) {
    %c0_i32 = arith.constant 0 : i32
    %c0_i32_0 = arith.constant 0 : i32
    %c0_i32_1 = arith.constant 0 : i32
    return %c0_i32, %c0_i32_0 : i32, i32
  }
  func.func @transform_18(%arg0: i32) -> (i32, i32) {
    %c0_i32 = arith.constant 0 : i32
    %c0_i32_0 = arith.constant 0 : i32
    %c0_i32_1 = arith.constant 0 : i32
    return %c0_i32, %c0_i32_0 : i32, i32
  }
  func.func @transform_19(%arg0: i32) -> (i32, i32) {
    %c0_i32 = arith.constant 0 : i32
    %c0_i32_0 = arith.constant 0 : i32
    %c0_i32_1 = arith.constant 0 : i32
    return %c0_i32, %c0_i32_0 : i32, i32
  }
  func.func @transform_20(%arg0: i32) -> (i32, i32) {
    %c0_i32 = arith.constant 0 : i32
    %c0_i32_0 = arith.constant 0 : i32
    %c0_i32_1 = arith.constant 0 : i32
    return %c0_i32, %c0_i32_0 : i32, i32
  }
  func.func @transform_21(%arg0: i32) -> (i32, i32) {
    %c0_i32 = arith.constant 0 : i32
    %c0_i32_0 = arith.constant 0 : i32
    %c0_i32_1 = arith.constant 0 : i32
    return %c0_i32, %c0_i32_0 : i32, i32
  }
  func.func @transform_22(%arg0: i32) -> (i32, i32) {
    %c0_i32 = arith.constant 0 : i32
    %c0_i32_0 = arith.constant 0 : i32
    %c0_i32_1 = arith.constant 0 : i32
    return %c0_i32, %c0_i32_0 : i32, i32
  }
  func.func @transform_23(%arg0: i32) -> (i32, i32) {
    %c0_i32 = arith.constant 0 : i32
    %c0_i32_0 = arith.constant 0 : i32
    %c0_i32_1 = arith.constant 0 : i32
    return %c0_i32, %c0_i32_0 : i32, i32
  }
  func.func @transform_24(%arg0: i32) -> (i32, i32) {
    %c0_i32 = arith.constant 0 : i32
    %c0_i32_0 = arith.constant 0 : i32
    %c0_i32_1 = arith.constant 0 : i32
    return %c0_i32, %c0_i32_0 : i32, i32
  }
  func.func @transform_25(%arg0: i32) -> (i32, i32) {
    %c0_i32 = arith.constant 0 : i32
    %c0_i32_0 = arith.constant 0 : i32
    %c0_i32_1 = arith.constant 0 : i32
    return %c0_i32, %c0_i32_0 : i32, i32
  }
  func.func @transform_26(%arg0: i32) -> (i32, i32) {
    %c0_i32 = arith.constant 0 : i32
    %c0_i32_0 = arith.constant 0 : i32
    %c0_i32_1 = arith.constant 0 : i32
    return %c0_i32, %c0_i32_0 : i32, i32
  }
  func.func @transform_27(%arg0: i32) -> (i32, i32) {
    %c0_i32 = arith.constant 0 : i32
    %c0_i32_0 = arith.constant 0 : i32
    %c0_i32_1 = arith.constant 0 : i32
    return %c0_i32, %c0_i32_0 : i32, i32
  }
}

</mosaic_0001>

<bundles_post_ra>
// kernel: sgvae_forward.1
= control target key start
LH: loop header
LB: loop body
LE: loop exit
PB: predicated region body
PF: predicated region fallthrough
CT: control target
= control target key end

     0   :  { %s10054_s0 = inlined_call_operand.vmem [shape: f32[32,8], index: 0, kind: input, shape index: {}]   ;;  %s10055_s1 = inlined_call_operand.vmem [shape: f32[2,8], index: 1, kind: input, shape index: {}]   ;;  %s10056_s2 = inlined_call_operand.vmem [shape: bf16[24,6], index: 2, kind: input, shape index: {}]   ;;  %s10057_s3 = inlined_call_operand.vmem [shape: f32[1,6], index: 3, kind: input, shape index: {}]   ;;  %s10058_s4 = inlined_call_operand.vmem [shape: bf16[18,6], index: 4, kind: input, shape index: {}]   ;;  %s10059_s5 = inlined_call_operand.vmem [shape: f32[1,6], index: 5, kind: input, shape index: {}]   ;;  %s10060_s6 = inlined_call_operand.vmem [shape: bf16[18,8], index: 6, kind: input, shape index: {}]   ;;  %s10061_s7 = inlined_call_operand.vmem [shape: f32[1,8], index: 7, kind: input, shape index: {}]   ;;  %s10062_s8 = inlined_call_operand.vmem [shape: bf16[80,32], index: 8, kind: input, shape index: {}]   ;;  %s10063_s9 = inlined_call_operand.vmem [shape: f32[1,32], index: 9, kind: input, shape index: {}]   ;;  %s10064_s10 = inlined_call_operand.vmem [shape: bf16[32,16], index: 10, kind: input, shape index: {}]   ;;  %s10065_s11 = inlined_call_operand.vmem [shape: f32[1,16], index: 11, kind: input, shape index: {}]   ;;  %s10066_s12 = inlined_call_operand.vmem [shape: bf16[8,32], index: 12, kind: input, shape index: {}]   ;;  %s10067_s13 = inlined_call_operand.vmem [shape: f32[1,32], index: 13, kind: input, shape index: {}]   ;;  %s10068_s14 = inlined_call_operand.vmem [shape: bf16[32,96], index: 14, kind: input, shape index: {}]   ;;  %s10069_s15 = inlined_call_operand.vmem [shape: f32[1,96], index: 15, kind: input, shape index: {}]   ;;  %s10070_s16 = inlined_call_operand.vmem [shape: bf16[32,96], index: 16, kind: input, shape index: {}]   ;;  %s10071_s17 = inlined_call_operand.vmem [shape: f32[1,96], index: 17, kind: input, shape index: {}]   ;;  %s10072_s18 = inlined_call_operand.vmem [shape: bf16[64,128], index: 18, kind: input, shape index: {}]   ;;  %s10073_s19 = inlined_call_operand.vmem [shape: f32[1,128], index: 19, kind: input, shape index: {}]   ;;  %s10074_s20 = inlined_call_operand.vmem [shape: bf16[64,128], index: 20, kind: input, shape index: {}]   ;;  %s10075_s21 = inlined_call_operand.vmem [shape: f32[1,128], index: 21, kind: input, shape index: {}]   ;;  %s10076_s22 = inlined_call_operand.vmem [shape: bf16[32,8], index: 22, kind: input, shape index: {}]   ;;  %s10077_s23 = inlined_call_operand.vmem [shape: f32[1,8], index: 23, kind: input, shape index: {}]   ;;  %s10078_s24 = inlined_call_operand.hbm [shape: f32[2,8], index: 24, kind: output, shape index: {0}]   ;;  %s10079_s25 = inlined_call_operand.hbm [shape: f32[2,8], index: 25, kind: output, shape index: {1}]   ;;  %s10080_s26 = inlined_call_operand.hbm [shape: f32[2,8], index: 26, kind: output, shape index: {2}]   ;;  %s10081_s27 = inlined_call_operand.vmem [shape: f32[32,8], index: 27, kind: output, shape index: {3}]  }
   0x1   :  { %10088 = sst [smem:[#allocation10_spill]] %s10054_s0 }
   0x2   :  { %10089 = sst [smem:[#allocation11_spill]] %s10055_s1 }
   0x3   :  { %10090 = sst [smem:[#allocation12_spill]] %s10056_s2 }
   0x4   :  { %10091 = sst [smem:[#allocation13_spill]] %s10057_s3 }
   0x5   :  { %10092 = sst [smem:[#allocation14_spill]] %s10058_s4 }
   0x6   :  { %10093 = sst [smem:[#allocation15_spill]] %s10059_s5 }
   0x7   :  { %10094 = sst [smem:[#allocation16_spill]] %s10060_s6 }
   0x8   :  { %10095 = sst [smem:[#allocation17_spill]] %s10061_s7 }
   0x9   :  { %10096 = sst [smem:[#allocation18_spill]] %s10062_s8 }
   0xa   :  { %10097 = sst [smem:[#allocation19_spill]] %s10063_s9 }
   0xb   :  { %10098 = sst [smem:[#allocation20_spill]] %s10064_s10 }
   0xc   :  { %10099 = sst [smem:[#allocation21_spill]] %s10065_s11 }
   0xd   :  { %33 = vsyncpa [#allocation4], 0  ;;  %s10100_s8 = sld [smem:[#allocation10_spill]]  ;;  %vm92_vm0 = vcmask 1046528   ;;  %vm112_vm1 = vcmask 1045504   ;;  %s10101_s6 = sld [smem:[#allocation12_spill]] }
   0xe   :  { %vm170_vm2 = vcmask 1043456   ;;  %s8075_s3 = smov 8   ;;  %s8076_s7 = smov 16  }
  0x13   :  { %v84_v0 = vld [vmem:[%s10100_s8] sm:$0xff]  ;;  %v85_v1 = vld [vmem:[%s10100_s8 + $0x8] sm:$0xff]  ;;  %v86_v2 = vld [vmem:[%s10100_s8 + $0x10] sm:$0xff] }
  0x14   :  { %v93_v3 = vrot.slane %v84_v0, 1  ;;  %v94_v4 = vrot.slane %v85_v1, 1  ;;  %v96_v5 = vrot.slane %v86_v2, 1  ;;  %v113_v6 = vrot.slane %v84_v0, 2  ;;  %v87_v7 = vld [vmem:[%s10100_s8 + $0x18] sm:$0xff]  ;;  %v7546_v14 = vld [vmem:[%s10101_s6] sm:$0xff]  }
  0x15   :  { %v114_v8 = vrot.slane %v85_v1, 2  ;;  %v116_v9 = vrot.slane %v86_v2, 2  ;;  %v98_v10 = vrot.slane %v87_v7, 1  ;;  %v118_v11 = vrot.slane %v87_v7, 2  ;;  %v7547_v19 = vld [vmem:[%s10101_s6 + $0x8] ss:$0 sps:$4 sm:$0xff]   ;;  %6839 = vmatprep.subr.bf16.mxu0 %v7546_v14 }
  0x16   :  { %v95_v12 = vsel %vm92_vm0, %v93_v3, %v94_v4  ;;  %v97_v13 = vsel %vm92_vm0, %v94_v4, %v96_v5  ;;  %6840 = vmatpush3.bf16.msra.mxu0 %v7546_v14  ;;  %v172_v23 = vsel %vm170_vm2, %v7547_v19, 0 }
  0x17   :  { %v7441_v15 = vpack.i.bf16 %v97_v13, %v95_v12  ;;  %v115_v16 = vsel %vm112_vm1, %v113_v6, %v114_v8  ;;  %v117_v17 = vsel %vm112_vm1, %v114_v8, %v116_v9  ;;  %v99_v18 = vsel %vm92_vm0, %v96_v5, %v98_v10  ;;  %7419 = vmatprep.subr.msk.bf16.mxu0 %vm170_vm2, %v7547_v19 }
  0x18   :  { %v7451_v20 = vpack.i.bf16 %v117_v17, %v115_v16  ;;  %v119_v21 = vsel %vm112_vm1, %v116_v9, %v118_v11  ;;  %v7446_v22 = vpack.i.bf16 %v98_v10, %v99_v18 }
  0x19   :  { %7442 = vrot.lane.b32.xlu0 %v7441_v15, %s8075_s3  ;;  %v7456_v24 = vpack.i.bf16 %v118_v11, %v119_v21 }
  0x1a   :  { %7452 = vrot.lane.b32.xlu1 %v7451_v20, %s8076_s7  ;;  %6842 = vmatpush3.bf16.msra.mxu0 %v172_v23 }
  0x1d   :  { %7447 = vrot.lane.b32.xlu0 %v7446_v22, %s8075_s3 }
  0x1e   :  { %7457 = vrot.lane.b32.xlu1 %v7456_v24, %s8076_s7 }
  0x1f   :  { %34 = vsyncpa [#allocation6], 0  ;;  %vm132_vm3 = vcmask 64512   ;;  %vm137_vm4 = vcmask 130048   ;;  %vm163_vm5 = vcmask 195584   ;;  %s10102_s30 = sld [smem:[#allocation13_spill]] }
  0x20   :  { %s10103_s28 = sld [smem:[#allocation14_spill]]  ;;  %vm307_vm6 = vcmask 1040384   ;;  %s8077_s29 = smov 6   ;;  %vm269_vm7 = vcmask 48128   ;;  %vm274_vm8 = vcmask 97280   ;;  %vm300_vm9 = vcmask 146432  }
  0x21   :  { %s8078_s1 = smov 12   ;;  %s10104_s2 = sld [smem:[#allocation15_spill]]  ;;  %vm528_vm10 = vcmask 1044480   ;;  %vm557_vm11 = vcmask 1042432   ;;  %vm572_vm12 = vcmask 1041408   ;;  %vm631_vm13 = vcmask 261120  }
  0x22   :  { %s10106_s10 = sld [smem:[#allocation17_spill]]  ;;  %s8081_s4 = smov 32   ;;  %vm635_vm14 = vcmask 326656   ;;  %vm639_vm15 = vcmask 392192  }
  0x23   :  { %s8085_s8 = smov 72   ;;  %s10110_s11 = sld [smem:[#allocation19_spill]] }
  0x24   :  { %s8088_s5 = smov 120  }
  0x25   :  { %v6270_v47 = vld [vmem:[%s10102_s30] ss:$0 sm:$0xff]  ;;  %s10105_s30 = sld [smem:[#allocation16_spill]] }
  0x26   :  { %v7548_v51 = vld [vmem:[%s10103_s28] sm:$0xff]   ;;  %v7549_v60 = vld [vmem:[%s10103_s28 + $0x8] ss:$0 sps:$4 sm:$0x11]   ;;  %s8083_s28 = smov 48  }
  0x27   :  { %6847 = vmatprep.subr.bf16.mxu1 %v7548_v51 }
  0x28   :  { %6848 = vmatpush3.bf16.msra.mxu1 %v7548_v51 }
  0x29   :  { %7420 = vmatprep.subr.msk.bf16.mxu1 %vm307_vm6, %v7549_v60 }
  0x8b   :  { %v7443_v25 = vpop.permute.xlu0 %7442 }
  0x8c   :  { %v7445_v26 = vunpack.i.h.bf16 %v7443_v25  ;;  %v7444_v27 = vunpack.i.l.bf16 %v7443_v25  ;;  %v7453_v28 = vpop.permute.xlu1 %7452 }
  0x8d   :  { %v7455_v29 = vunpack.i.h.bf16 %v7453_v28  ;;  %v7454_v30 = vunpack.i.l.bf16 %v7453_v28 }
  0x8e   :  { %v133_v31 = vsel %vm132_vm3, %v84_v0, %v7444_v27  ;;  %v134_v32 = vsel %vm132_vm3, %v85_v1, %v7445_v26  ;;  %v309_v1 = vsel %vm307_vm6, %v7549_v60, 0 }
  0x8f   :  { %v7448_v33 = vpop.permute.xlu0 %7447  ;;  %v138_v34 = vsel %vm137_vm4, %v133_v31, %v7454_v30  ;;  %v139_v35 = vsel %vm137_vm4, %v134_v32, %v7455_v29  ;;  %6850 = vmatpush3.bf16.msra.mxu1 %v309_v1 }
  0x90   :  { %v7450_v36 = vunpack.i.h.bf16 %v7448_v33  ;;  %v7449_v37 = vunpack.i.l.bf16 %v7448_v33  ;;  %v7458_v38 = vpop.permute.xlu1 %7457  ;;  %v142_v39 = vpack.c.bf16 %v139_v35, %v138_v34 }
  0x91   :  { %v7460_v40 = vunpack.i.h.bf16 %v7458_v38  ;;  %v7459_v41 = vunpack.i.l.bf16 %v7458_v38 }
  0x92   :  { %v136_v42 = vsel %vm132_vm3, %v87_v7, %v7450_v36  ;;  %v135_v43 = vsel %vm132_vm3, %v86_v2, %v7449_v37  ;;  %6843 = vmatprep.mubr.msk.bf16.mxu0 %vm163_vm5, %v142_v39  ;;  %v6275_v39 = vld [vmem:[%s10104_s2] ss:$0 sm:$0xff]  ;;  %s10107_s2 = sld [smem:[#allocation18_spill]] }
  0x93   :  { %v140_v44 = vsel %vm137_vm4, %v135_v43, %v7459_v41  ;;  %v141_v45 = vsel %vm137_vm4, %v136_v42, %v7460_v40  ;;  %v7550_v43 = vld [vmem:[%s10105_s30] sm:$0xff]  }
  0x94   :  { %v143_v46 = vpack.c.bf16 %v141_v45, %v140_v44  ;;  %6855 = vmatprep.subr.bf16.mxu0 %v7550_v43 }
  0x96   :  { %6844 = vmatmul.mubr.msk.bf16.vlgmr.msra.gmra.mrb[0].mxu0 %vm163_vm5, %v143_v46 }
  0x97   :  { %6856 = vmatpush3.bf16.msra.mxu0 %v7550_v43 }
 0x169   :  { %v6845_v48 = vpop.f32.mrb[0].mxu0 }
 0x16a   :  { %v217_v49 = vadd.f32 %v6845_v48, %v6270_v47  ;;  %v208_v50 = vpop.f32.mrb[1].mxu0 }
 0x16b   :  { %v209_v52 = vadd.f32 %v6270_v47, %v208_v50  ;;  %v6846_v53 = vpop.f32.mrb[2].mxu0 }
 0x16c   :  { %v225_v54 = vmax.f32 %v217_v49, 0.0  ;;  %v220_v55 = vadd.f32 %v6846_v53, %v6270_v47  ;;  %v211_v56 = vpop.f32.mrb[3].mxu0 }
 0x16d   :  { %v223_v57 = vmax.f32 %v209_v52, 0.0  ;;  %v212_v58 = vadd.f32 %v6270_v47, %v211_v56  ;;  %v7551_v52 = vld [vmem:[%s10105_s30 + $0x8] ss:$0 sps:$4 sm:$0x11]  }
 0x16e   :  { %v226_v59 = vmax.f32 %v220_v55, 0.0  ;;  %v234_v62 = vrot.slane %v225_v54, 1  ;;  %v253_v5 = vrot.slane %v225_v54, 2  ;;  %7421 = vmatprep.subr.msk.bf16.mxu0 %vm307_vm6, %v7551_v52 }
 0x16f   :  { %v224_v61 = vmax.f32 %v212_v58, 0.0  ;;  %v231_v2 = vrot.slane %v223_v57, 1  ;;  %v250_v7 = vrot.slane %v223_v57, 2 }
 0x170   :  { %v236_v63 = vrot.slane %v226_v59, 1  ;;  %v255_v0 = vrot.slane %v226_v59, 2 }
 0x171   :  { %v232_v3 = vrot.slane %v224_v61, 1  ;;  %v251_v4 = vrot.slane %v224_v61, 2 }
 0x172   :  { %v237_v6 = vsel %vm92_vm0, %v234_v62, %v236_v63  ;;  %v256_v12 = vsel %vm112_vm1, %v253_v5, %v255_v0 }
 0x173   :  { %v7461_v8 = vpack.i.bf16 %v236_v63, %v237_v6  ;;  %v233_v9 = vsel %vm92_vm0, %v231_v2, %v232_v3  ;;  %v235_v10 = vsel %vm92_vm0, %v232_v3, %v234_v62  ;;  %v252_v13 = vsel %vm112_vm1, %v250_v7, %v251_v4 }
 0x174   :  { %v7466_v11 = vpack.i.bf16 %v235_v10, %v233_v9  ;;  %v254_v14 = vsel %vm112_vm1, %v251_v4, %v253_v5  ;;  %v7476_v15 = vpack.i.bf16 %v255_v0, %v256_v12 }
 0x175   :  { %7462 = vrot.lane.b32.xlu1 %v7461_v8, %s8077_s29  ;;  %v7471_v16 = vpack.i.bf16 %v254_v14, %v252_v13 }
 0x176   :  { %7467 = vrot.lane.b32.xlu0 %v7466_v11, %s8077_s29 }
 0x179   :  { %7477 = vrot.lane.b32.xlu1 %v7476_v15, %s8078_s1 }
 0x17a   :  { %7472 = vrot.lane.b32.xlu0 %v7471_v16, %s8078_s1 }
 0x1e7   :  { %v7463_v17 = vpop.permute.xlu1 %7462 }
 0x1e8   :  { %v7468_v18 = vpop.permute.xlu0 %7467  ;;  %v7465_v19 = vunpack.i.h.bf16 %v7463_v17  ;;  %v7464_v20 = vunpack.i.l.bf16 %v7463_v17 }
 0x1e9   :  { %v7470_v21 = vunpack.i.h.bf16 %v7468_v18  ;;  %v7469_v22 = vunpack.i.l.bf16 %v7468_v18 }
 0x1ea   :  { %v273_v27 = vsel %vm269_vm7, %v226_v59, %v7465_v19  ;;  %v272_v28 = vsel %vm269_vm7, %v225_v54, %v7464_v20 }
 0x1eb   :  { %v7478_v23 = vpop.permute.xlu1 %7477  ;;  %v270_v33 = vsel %vm269_vm7, %v223_v57, %v7469_v22  ;;  %v271_v34 = vsel %vm269_vm7, %v224_v61, %v7470_v21  ;;  %v442_v57 = vsel %vm307_vm6, %v7551_v52, 0 }
 0x1ec   :  { %v7480_v24 = vunpack.i.h.bf16 %v7478_v23  ;;  %v7479_v25 = vunpack.i.l.bf16 %v7478_v23  ;;  %v7473_v26 = vpop.permute.xlu0 %7472  ;;  %6858 = vmatpush3.bf16.msra.mxu0 %v442_v57  ;;  %v7552_v57 = vld [vmem:[%s10107_s2] sm:$0xff]  }
 0x1ed   :  { %v7475_v29 = vunpack.i.h.bf16 %v7473_v26  ;;  %v7474_v30 = vunpack.i.l.bf16 %v7473_v26  ;;  %6863 = vmatprep.subr.bf16.mxu1 %v7552_v57 }
 0x1ee   :  { %v277_v31 = vsel %vm274_vm8, %v272_v28, %v7479_v25  ;;  %v278_v32 = vsel %vm274_vm8, %v273_v27, %v7480_v24 }
 0x1ef   :  { %v275_v35 = vsel %vm274_vm8, %v270_v33, %v7474_v30  ;;  %v276_v36 = vsel %vm274_vm8, %v271_v34, %v7475_v29  ;;  %v280_v38 = vpack.c.bf16 %v278_v32, %v277_v31  ;;  %v6280_v31 = vld [vmem:[%s10106_s10] ss:$0 sm:$0xff]  ;;  %s10109_s10 = sld [smem:[#allocation11_spill]] }
 0x1f0   :  { %v279_v37 = vpack.c.bf16 %v276_v36, %v275_v35 }
 0x1f2   :  { %6851 = vmatprep.mubr.msk.bf16.mxu1 %vm300_vm9, %v279_v37 }
 0x1f3   :  { %6852 = vmatmul.mubr.msk.bf16.vlgmr.msra.gmra.mrb[0].mxu1 %vm300_vm9, %v280_v38 }
 0x1f4   :  { %6864 = vmatpush3.bf16.msra.mxu1 %v7552_v57 }
 0x2c6   :  { %v6853_v40 = vpop.f32.mrb[0].mxu1 }
 0x2c7   :  { %v354_v41 = vadd.f32 %v6853_v40, %v6275_v39  ;;  %v345_v42 = vpop.f32.mrb[1].mxu1 }
 0x2c8   :  { %v346_v44 = vadd.f32 %v6275_v39, %v345_v42  ;;  %v6854_v45 = vpop.f32.mrb[2].mxu1 }
 0x2c9   :  { %v362_v46 = vmax.f32 %v354_v41, 0.0  ;;  %v357_v47 = vadd.f32 %v6854_v45, %v6275_v39  ;;  %v348_v48 = vpop.f32.mrb[3].mxu1 }
 0x2ca   :  { %v360_v49 = vmax.f32 %v346_v44, 0.0  ;;  %v349_v50 = vadd.f32 %v6275_v39, %v348_v48 }
 0x2cb   :  { %v363_v51 = vmax.f32 %v357_v47, 0.0  ;;  %v371_v54 = vrot.slane %v362_v46, 1  ;;  %v390_v61 = vrot.slane %v362_v46, 2 }
 0x2cc   :  { %v361_v53 = vmax.f32 %v349_v50, 0.0  ;;  %v368_v58 = vrot.slane %v360_v49, 1  ;;  %v387_v63 = vrot.slane %v360_v49, 2 }
 0x2cd   :  { %v373_v55 = vrot.slane %v363_v51, 1  ;;  %v392_v56 = vrot.slane %v363_v51, 2 }
 0x2ce   :  { %v369_v59 = vrot.slane %v361_v53, 1  ;;  %v388_v60 = vrot.slane %v361_v53, 2 }
 0x2cf   :  { %v374_v62 = vsel %vm92_vm0, %v371_v54, %v373_v55  ;;  %v393_v4 = vsel %vm112_vm1, %v390_v61, %v392_v56 }
 0x2d0   :  { %v7481_v0 = vpack.i.bf16 %v373_v55, %v374_v62  ;;  %v370_v1 = vsel %vm92_vm0, %v368_v58, %v369_v59  ;;  %v372_v2 = vsel %vm92_vm0, %v369_v59, %v371_v54  ;;  %v389_v5 = vsel %vm112_vm1, %v387_v63, %v388_v60 }
 0x2d1   :  { %v7486_v3 = vpack.i.bf16 %v372_v2, %v370_v1  ;;  %v391_v6 = vsel %vm112_vm1, %v388_v60, %v390_v61  ;;  %v7496_v7 = vpack.i.bf16 %v392_v56, %v393_v4 }
 0x2d2   :  { %7482 = vrot.lane.b32.xlu1 %v7481_v0, %s8077_s29  ;;  %v7491_v8 = vpack.i.bf16 %v391_v6, %v389_v5  ;;  %v7553_v0 = vld [vmem:[%s10107_s2 + $0x8] sm:$0xff]  }
 0x2d3   :  { %7487 = vrot.lane.b32.xlu0 %v7486_v3, %s8077_s29  ;;  %s8079_s29 = smov 64   ;;  %6865 = vmatprep.subr.bf16.mxu1 %v7553_v0 }
 0x2d4   :  { %6866 = vmatpush3.bf16.msra.mxu1 %v7553_v0 }
 0x2d6   :  { %7497 = vrot.lane.b32.xlu1 %v7496_v7, %s8078_s1  ;;  %v7554_v7 = vld [vmem:[%s10107_s2 + $0x10] sm:$0xff]  }
 0x2d7   :  { %7492 = vrot.lane.b32.xlu0 %v7491_v8, %s8078_s1  ;;  %s8080_s1 = smov 24   ;;  %6867 = vmatprep.subr.bf16.mxu1 %v7554_v7 }
 0x2d8   :  { %6868 = vmatpush3.bf16.msra.mxu1 %v7554_v7 }
 0x344   :  { %v7483_v9 = vpop.permute.xlu1 %7482 }
 0x345   :  { %v7488_v10 = vpop.permute.xlu0 %7487  ;;  %v7485_v11 = vunpack.i.h.bf16 %v7483_v9  ;;  %v7484_v12 = vunpack.i.l.bf16 %v7483_v9 }
 0x346   :  { %v7490_v13 = vunpack.i.h.bf16 %v7488_v10  ;;  %v7489_v14 = vunpack.i.l.bf16 %v7488_v10 }
 0x347   :  { %v409_v19 = vsel %vm269_vm7, %v363_v51, %v7485_v11  ;;  %v408_v20 = vsel %vm269_vm7, %v362_v46, %v7484_v12 }
 0x348   :  { %v7498_v15 = vpop.permute.xlu1 %7497  ;;  %v407_v23 = vsel %vm269_vm7, %v361_v53, %v7490_v13  ;;  %v406_v24 = vsel %vm269_vm7, %v360_v49, %v7489_v14  ;;  %vm8087_vm7 = vmmov 0  }
 0x349   :  { %v7500_v16 = vunpack.i.h.bf16 %v7498_v15  ;;  %v7499_v17 = vunpack.i.l.bf16 %v7498_v15  ;;  %v7493_v18 = vpop.permute.xlu0 %7492  ;;  %v7555_v15 = vld [vmem:[%s10107_s2 + $0x18] sm:$0xff]  }
 0x34a   :  { %v7495_v21 = vunpack.i.h.bf16 %v7493_v18  ;;  %v7494_v22 = vunpack.i.l.bf16 %v7493_v18  ;;  %6869 = vmatprep.subr.bf16.mxu1 %v7555_v15 }
 0x34b   :  { %v412_v25 = vsel %vm274_vm8, %v408_v20, %v7499_v17  ;;  %v413_v26 = vsel %vm274_vm8, %v409_v19, %v7500_v16  ;;  %6870 = vmatpush3.bf16.msra.mxu1 %v7555_v15 }
 0x34c   :  { %v410_v27 = vsel %vm274_vm8, %v406_v24, %v7494_v22  ;;  %v411_v28 = vsel %vm274_vm8, %v407_v23, %v7495_v21  ;;  %v415_v30 = vpack.c.bf16 %v413_v26, %v412_v25  ;;  %v7556_v23 = vld [vmem:[%s10107_s2 + $0x20] sm:$0xff]   ;;  %vm1520_vm8 = vcmask 254977  }
 0x34d   :  { %v414_v29 = vpack.c.bf16 %v411_v28, %v410_v27  ;;  %6871 = vmatprep.subr.bf16.mxu1 %v7556_v23 }
 0x34f   :  { %6859 = vmatprep.mubr.msk.bf16.mxu0 %vm300_vm9, %v414_v29  ;;  %6872 = vmatpush3.bf16.msra.mxu1 %v7556_v23 }
 0x350   :  { %6860 = vmatmul.mubr.msk.bf16.vlgmr.msra.gmra.mrb[4].mxu0 %vm300_vm9, %v415_v30 }
 0x423   :  { %v6861_v32 = vpop.f32.mrb[4].mxu0 }
 0x424   :  { %v487_v33 = vadd.f32 %v6861_v32, %v6280_v31  ;;  %v478_v34 = vpop.f32.mrb[5].mxu0 }
 0x425   :  { %v479_v35 = vadd.f32 %v6280_v31, %v478_v34  ;;  %v6862_v36 = vpop.f32.mrb[6].mxu0 }
 0x426   :  { %v8339_v37 = vmax.f32 %v487_v33, 0.0  ;;  %v481_v38 = vpop.f32.mrb[7].mxu0  ;;  %v490_v8 = vadd.f32 %v6862_v36, %v6280_v31 }
 0x427   :  { %v8341_v39 = vmax.f32 %v479_v35, 0.0  ;;  %v482_v40 = vadd.f32 %v6280_v31, %v481_v38 }
 0x428   :  { %v8344_v41 = vrot.slane %v8339_v37, 1  ;;  %v517_v46 = vrot.slane %v8339_v37, 2  ;;  %v532_v52 = vrot.slane %v8339_v37, 3  ;;  %v546_v59 = vrot.slane %v8339_v37, 4 }
 0x429   :  { %v8346_v42 = vmax.f32 %v482_v40, 0.0  ;;  %v500_v44 = vrot.slane %v8341_v39, 1  ;;  %v514_v51 = vrot.slane %v8341_v39, 2  ;;  %v529_v56 = vrot.slane %v8341_v39, 3 }
 0x42a   :  { %509 = vrot.lane.b32.xlu1 %v8344_v41, %s8075_s3  ;;  %v543_v63 = vrot.slane %v8341_v39, 4  ;;  %v561_v2 = vrot.slane %v8339_v37, 5  ;;  %v558_v6 = vrot.slane %v8341_v39, 5  ;;  %v576_v10 = vrot.slane %v8339_v37, 6 }
 0x42b   :  { %v7501_v43 = vpack.i.bf16 %v8339_v37, %v8346_v42  ;;  %v501_v45 = vrot.slane %v8346_v42, 1  ;;  %v515_v47 = vrot.slane %v8346_v42, 2  ;;  %v530_v55 = vrot.slane %v8346_v42, 3 }
 0x42c   :  { %v544_v62 = vrot.slane %v8346_v42, 4  ;;  %v559_v5 = vrot.slane %v8346_v42, 5  ;;  %v574_v13 = vrot.slane %v8346_v42, 6  ;;  %v573_v14 = vrot.slane %v8341_v39, 6 }
 0x42d   :  { %7502 = vrot.lane.b32.xlu0 %v7501_v43, %s8079_s29  ;;  %v502_v48 = vsel %vm92_vm0, %v500_v44, %v501_v45  ;;  %v8360_v49 = vsel %vm92_vm0, %v501_v45, %v8344_v41  ;;  %v516_v53 = vsel %vm112_vm1, %v514_v51, %v515_v47  ;;  %v518_v54 = vsel %vm112_vm1, %v515_v47, %v517_v46 }
 0x42e   :  { %523 = vrot.lane.b32.xlu1 %v517_v46, %s8076_s7  ;;  %v7506_v50 = vpack.i.bf16 %v8360_v49, %v502_v48  ;;  %v7511_v58 = vpack.i.bf16 %v518_v54, %v516_v53  ;;  %v531_v60 = vsel %vm528_vm10, %v529_v56, %v530_v55  ;;  %v533_v61 = vsel %vm528_vm10, %v530_v55, %v532_v52 }
 0x42f   :  { %v7516_v1 = vpack.i.bf16 %v533_v61, %v531_v60  ;;  %v545_v3 = vsel %vm170_vm2, %v543_v63, %v544_v62  ;;  %v547_v4 = vsel %vm170_vm2, %v544_v62, %v546_v59  ;;  %v560_v11 = vsel %vm557_vm11, %v558_v6, %v559_v5 }
 0x430   :  { %v7521_v9 = vpack.i.bf16 %v547_v4, %v545_v3  ;;  %v562_v12 = vsel %vm557_vm11, %v559_v5, %v561_v2  ;;  %v496_v16 = vmax.f32 %v490_v8, 0.0  ;;  %v590_v18 = vrot.slane %v8339_v37, 7 }
 0x431   :  { %7507 = vrot.lane.b32.xlu0 %v7506_v50, %s8075_s3  ;;  %v7526_v17 = vpack.i.bf16 %v562_v12, %v560_v11  ;;  %v575_v19 = vsel %vm572_vm12, %v573_v14, %v574_v13  ;;  %v577_v20 = vsel %vm572_vm12, %v574_v13, %v576_v10  ;;  %v588_v21 = vrot.slane %v8346_v42, 7 }
 0x432   :  { %538 = vrot.lane.b32.xlu1 %v532_v52, %s8080_s1  ;;  %v587_v22 = vrot.slane %v8341_v39, 7  ;;  %v7531_v24 = vpack.i.bf16 %v577_v20, %v575_v19  ;;  %v611_v25 = vrot.slane %v496_v16, 1  ;;  %vm647_vm1 = vcmask 523264  }
 0x433   :  { %v591_v27 = vsel %vm307_vm6, %v588_v21, %v590_v18 }
 0x434   :  { %v589_v26 = vsel %vm307_vm6, %v587_v22, %v588_v21  ;;  %v612_v29 = vsel %vm92_vm0, %v8344_v41, %v611_v25  ;;  %vm643_vm0 = vcmask 457728  }
 0x435   :  { %7512 = vrot.lane.b32.xlu0 %v7511_v58, %s8076_s7  ;;  %s8082_s7 = smov 40   ;;  %v7536_v28 = vpack.i.bf16 %v591_v27, %v589_v26  ;;  %v7541_v30 = vpack.i.bf16 %v612_v29, %v8360_v49 }
 0x436   :  { %552 = vrot.lane.b32.xlu1 %v546_v59, %s8081_s4 }
 0x439   :  { %7517 = vrot.lane.b32.xlu0 %v7516_v1, %s8080_s1  ;;  %s8084_s1 = smov 56  }
 0x43a   :  { %567 = vrot.lane.b32.xlu1 %v561_v2, %s8082_s7 }
 0x43d   :  { %7522 = vrot.lane.b32.xlu0 %v7521_v9, %s8081_s4 }
 0x43e   :  { %582 = vrot.lane.b32.xlu1 %v576_v10, %s8083_s28 }
 0x441   :  { %7527 = vrot.lane.b32.xlu0 %v7526_v17, %s8082_s7  ;;  %s10108_s7 = sld [smem:[#allocation20_spill]] }
 0x442   :  { %596 = vrot.lane.b32.xlu1 %v590_v18, %s8084_s1 }
 0x445   :  { %7532 = vrot.lane.b32.xlu0 %v7531_v24, %s8083_s28 }
 0x446   :  { %606 = vrot.lane.b32.xlu1 %v496_v16, %s8079_s29 }
 0x449   :  { %7537 = vrot.lane.b32.xlu0 %v7536_v28, %s8084_s1 }
 0x44a   :  { %617 = vrot.lane.b32.xlu1 %v611_v25, %s8085_s8 }
 0x44d   :  { %7542 = vrot.lane.b32.xlu0 %v7541_v30, %s8085_s8  ;;  %s8092_s8 = smov [#allocation3]  }
 0x44e   :  { %s6231_s2 = sshll.u32 %s8092_s8, 4  ;;  %s6232_s2 = int_to_ptr.vmem [resolvable:$true] %s6231_s2 }
 0x49c   :  { %v510_v31 = vpop.permute.xlu1 %509 }
 0x49d   :  { %v624_v49 = vsel %vm132_vm3, %v8339_v37, %v510_v31 }
 0x49f   :  { %v8409_v32 = vpop.permute.xlu0 %7502 }
 0x4a0   :  { %v524_v33 = vpop.permute.xlu1 %523  ;;  %v7505_v18 = vunpack.i.h.bf16 %v8409_v32  ;;  %v7504_v19 = vunpack.i.l.bf16 %v8409_v32  ;;  %v7557_v32 = vld [vmem:[%s10108_s7] sm:$0xff]  }
 0x4a1   :  { %v627_v54 = vsel %vm137_vm4, %v624_v49, %v524_v33  ;;  %v8086_v33 = vmov 0.0   ;;  %v854_v49 = vld [vmem:[%s10066_s12] sm:$0xf] }
 0x4a2   :  { %6877 = vmatprep.subr.bf16.mxu0 %v8086_v33  ;;  %6881 = vmatprep.mubr.msk.bf16.mxu0 %vm8087_vm7, %v8086_v33 }
 0x4a3   :  { %v7508_v34 = vpop.permute.xlu0 %7507  ;;  %6878 = vmatpush3.bf16.msra.mxu0 %v7557_v32  ;;  %6891 = vmatprep.subr.bf16.mxu1 %v8086_v33 }
 0x4a4   :  { %v539_v35 = vpop.permute.xlu1 %538  ;;  %v7510_v41 = vunpack.i.h.bf16 %v7508_v34  ;;  %v7509_v47 = vunpack.i.l.bf16 %v7508_v34  ;;  %v7558_v34 = vld [vmem:[%s10108_s7 + $0x8] sm:$0xff]   ;;  %6879 = vmatprep.subr.bf16.mxu0 %v8086_v33  ;;  %s10111_s7 = sld [smem:[#allocation21_spill]] }
 0x4a5   :  { %v630_v2 = vsel %vm163_vm5, %v627_v54, %v539_v35  ;;  %v834_v35 = vld [vmem:[%s10109_s10] sm:$0x3] }
 0x4a6   :  { %v623_v58 = vsel %vm132_vm3, %v8346_v42, %v7510_v41  ;;  %v622_v59 = vsel %vm132_vm3, %v8341_v39, %v7509_v47  ;;  %836 = vrot.lane.b32.xlu0 %v834_v35, %s8075_s3 }
 0x4a7   :  { %v7513_v36 = vpop.permute.xlu0 %7512  ;;  %6880 = vmatpush3.bf16.msra.mxu0 %v7558_v34 }
 0x4a8   :  { %v553_v38 = vpop.permute.xlu1 %552  ;;  %v7515_v50 = vunpack.i.h.bf16 %v7513_v36  ;;  %v7514_v51 = vunpack.i.l.bf16 %v7513_v36  ;;  %6885 = vmatprep.subr.bf16.mxu0 %v8086_v33  ;;  %v6285_v36 = vld [vmem:[%s10110_s11] ss:$0 sm:$0xff] }
 0x4a9   :  { %v634_v42 = vsel %vm631_vm13, %v630_v2, %v553_v38  ;;  %v8484_v2 = vld [vmem:[%s10070_s16] sm:$0xff]  }
 0x4aa   :  { %v625_v37 = vsel %vm137_vm4, %v622_v59, %v7514_v51  ;;  %v626_v63 = vsel %vm137_vm4, %v623_v58, %v7515_v50  ;;  %vm651_vm4 = vcmask 588800  }
 0x4ab   :  { %v7518_v40 = vpop.permute.xlu0 %7517 }
 0x4ac   :  { %v568_v43 = vpop.permute.xlu1 %567  ;;  %v7520_v52 = vunpack.i.h.bf16 %v7518_v40  ;;  %v7519_v53 = vunpack.i.l.bf16 %v7518_v40 }
 0x4ad   :  { %v638_v11 = vsel %vm635_vm14, %v634_v42, %v568_v43  ;;  %v8089_v42 = vmov 0  }
 0x4ae   :  { %v628_v3 = vsel %vm163_vm5, %v625_v37, %v7519_v53  ;;  %v629_v4 = vsel %vm163_vm5, %v626_v63, %v7520_v52  ;;  %vm704_vm5 = vcmask 654336   ;;  %v866_v52 = vsel %vm170_vm2, %v854_v49, 0  ;;  %v6293_v53 = vld [vmem:[%s10111_s7] ss:$0 sm:$0xff] }
 0x4af   :  { %v7523_v44 = vpop.permute.xlu0 %7522  ;;  %v7561_v63 = vld [vmem:[%s10068_s14] sm:$0xff]   ;;  %vm1518_vm2 = vcmask 253952  }
 0x4b0   :  { %v583_v45 = vpop.permute.xlu1 %582  ;;  %v7525_v55 = vunpack.i.h.bf16 %v7523_v44  ;;  %v7524_v56 = vunpack.i.l.bf16 %v7523_v44 }
 0x4b1   :  { %v642_v14 = vsel %vm639_vm15, %v638_v11, %v583_v45 }
 0x4b2   :  { %v632_v39 = vsel %vm631_vm13, %v628_v3, %v7524_v56  ;;  %v633_v5 = vsel %vm631_vm13, %v629_v4, %v7525_v55  ;;  %v8492_v4 = vld [vmem:[%s10070_s16 + $0x8] sm:$0xff]  }
 0x4b3   :  { %v7528_v46 = vpop.permute.xlu0 %7527 }
 0x4b4   :  { %v597_v48 = vpop.permute.xlu1 %596  ;;  %v7530_v60 = vunpack.i.h.bf16 %v7528_v46  ;;  %v7529_v61 = vunpack.i.l.bf16 %v7528_v46 }
 0x4b5   :  { %v646_v20 = vsel %vm643_vm0, %v642_v14, %v597_v48 }
 0x4b6   :  { %v636_v7 = vsel %vm635_vm14, %v632_v39, %v7529_v61  ;;  %v637_v8 = vsel %vm635_vm14, %v633_v5, %v7530_v60  ;;  %v7562_v39 = vld [vmem:[%s10068_s14 + $0x8] sm:$0xff]   ;;  %v6297_v5 = vld [vmem:[%s10067_s13] ss:$0 sm:$0xff] }
 0x4b7   :  { %v7533_v57 = vpop.permute.xlu0 %7532 }
 0x4b8   :  { %v607_v62 = vpop.permute.xlu1 %606  ;;  %v7535_v0 = vunpack.i.h.bf16 %v7533_v57  ;;  %v7534_v1 = vunpack.i.l.bf16 %v7533_v57 }
 0x4b9   :  { %v650_v22 = vsel %vm647_vm1, %v646_v20, %v607_v62 }
 0x4ba   :  { %v640_v12 = vsel %vm639_vm15, %v636_v7, %v7534_v1  ;;  %v641_v13 = vsel %vm639_vm15, %v637_v8, %v7535_v0 }
 0x4bb   :  { %v7538_v6 = vpop.permute.xlu0 %7537 }
 0x4bc   :  { %v7540_v9 = vunpack.i.h.bf16 %v7538_v6  ;;  %v7539_v10 = vunpack.i.l.bf16 %v7538_v6  ;;  %v618_v17 = vpop.permute.xlu1 %617 }
 0x4bd   :  { %v654_v25 = vsel %vm651_vm4, %v650_v22, %v618_v17 }
 0x4be   :  { %v644_v15 = vsel %vm643_vm0, %v640_v12, %v7539_v10  ;;  %v645_v16 = vsel %vm643_vm0, %v641_v13, %v7540_v9  ;;  %v656_v31 = vpack.c.bf16 %v654_v25, %v654_v25  ;;  %v8511_v13 = vld [vmem:[%s10071_s17] ss:$0 sm:$0xff] }
 0x4bf   :  { %v7543_v21 = vpop.permute.xlu0 %7542  ;;  %v648_v26 = vsel %vm647_vm1, %v644_v15, %v7504_v19  ;;  %v649_v27 = vsel %vm647_vm1, %v645_v16, %v7505_v18  ;;  %v6299_v19 = vld [vmem:[%s10069_s15] ss:$0 sm:$0xff]  ;;  %s8090_s15 = smov 96  }
 0x4c0   :  { %v7545_v23 = vunpack.i.h.bf16 %v7543_v21  ;;  %v7544_v24 = vunpack.i.l.bf16 %v7543_v21 }
 0x4c2   :  { %v652_v28 = vsel %vm651_vm4, %v648_v26, %v7544_v24  ;;  %v653_v29 = vsel %vm651_vm4, %v649_v27, %v7545_v23 }
 0x4c3   :  { %v655_v30 = vpack.c.bf16 %v653_v29, %v652_v28 }
 0x4c5   :  { %6873 = vmatprep.mubr.msk.bf16.mxu1 %vm704_vm5, %v655_v30 }
 0x4c6   :  { %6874 = vmatmul.mubr.msk.bf16.vlgmr.msra.gmra.mrb[4].mxu1 %vm704_vm5, %v656_v31 }
 0x4c7   :  { %6895 = vmatprep.mubr.msk.bf16.mxu1 %vm8087_vm7, %v8086_v33  ;;  %6892 = vmatpush3.bf16.msra.mxu1 %v7561_v63  ;;  %v7566_v63 = vld [vmem:[%s10072_s18 + $0x18] sm:$0xff]  }
 0x4c8   :  { %6893 = vmatprep.subr.bf16.mxu1 %v8086_v33 }
 0x4cb   :  { %6894 = vmatpush3.bf16.msra.mxu1 %v7562_v39 }
 0x4cc   :  { %6907 = vmatprep.subr.bf16.mxu1 %v8086_v33 }
 0x518   :  { %v837_v61 = vpop.permute.xlu0 %836 }
 0x599   :  { %v6875_v38 = vpop.f32.mrb[4].mxu1 }
 0x59a   :  { %v753_v40 = vadd.f32 %v6875_v38, %v6285_v36  ;;  %v745_v43 = vpop.f32.mrb[5].mxu1 }
 0x59b   :  { %v746_v44 = vadd.f32 %v6285_v36, %v745_v43  ;;  %v6876_v45 = vpop.f32.mrb[6].mxu1 }
 0x59c   :  { %v759_v46 = vmax.f32 %v753_v40, 0.0  ;;  %v748_v41 = vpop.f32.mrb[7].mxu1 }
 0x59d   :  { %v758_v47 = vmax.f32 %v746_v44, 0.0 }
 0x59e   :  { %v761_v48 = vrot.slane %v759_v46, 7 }
 0x5a0   :  { %v763_v50 = vsel %vm307_vm6, %v758_v47, %v761_v48  ;;  %vm845_vm6 = vcmask 58368  }
 0x5a1   :  { %v764_v51 = vpack.c.bf16 %v763_v50, %v763_v50 }
 0x5a3   :  { %6882 = vmatmul.mubr.msk.bf16.vlgmr.msra.gmra.mrb[8].mxu0 %vm631_vm13, %v764_v51 }
 0x5a4   :  { %6887 = vmatprep.mubr.msk.bf16.mxu0 %vm8087_vm7, %v8086_v33  ;;  %6886 = vmatpush3.bf16.msra.mxu0 %v866_v52 }
 0x5a5   :  { %6899 = vmatprep.subr.bf16.mxu0 %v8086_v33 }
 0x676   :  { %v825_v54 = vpop.f32.mrb[8].mxu0 }
 0x677   :  { %v8470_v55 = vadd.f32 %v6293_v53, %v825_v54  ;;  %v6883_v56 = vpop.f32.mrb[9].mxu0 }
 0x678   :  { %v828_v57 = vpop.f32.mrb[10].mxu0 }
 0x679   :  { %v831_v58 = vmul.f32 0.5, %v8470_v55  ;;  %v6884_v59 = vpop.f32.mrb[11].mxu0  ;;  %846 = vst.msk [vmem:[#allocation3] sm:$0x3] %vm845_vm6, %v8470_v55 }
 0x67a   :  { %v7563_v59 = vld [vmem:[%s10072_s18] sm:$0xff]  }
 0x67b   :  { %v832_v60 = vmul.f32 1.442695, %v831_v58 }
 0x67d   :  { %7715 = vpow2.f32 %v832_v60  ;;  %v7564_v60 = vld [vmem:[%s10072_s18 + $0x8] sm:$0xff]  }
 0x687   :  { %v7716_v62 = vpop.eup %7715 }
 0x688   :  { %v839_v37 = vmul.f32 %v7716_v62, %v837_v61 }
 0x68a   :  { %841 = vrot.lane.b32.xlu1 %v839_v37, %s8088_s5  ;;  %v7565_v37 = vld [vmem:[%s10072_s18 + $0x10] sm:$0xff]  }
 0x6fc   :  { %v842_v0 = vpop.permute.xlu1 %841 }
 0x6fd   :  { %v844_v1 = vadd.f32 %v842_v0, %v8470_v55 }
 0x6ff   :  { %v853_v3 = vpack.c.bf16 %v844_v1, %v844_v1  ;;  %852 = vst.msk [vmem:[#allocation7] sm:$0x3] %vm845_vm6, %v844_v1 }
 0x701   :  { %6888 = vmatmul.mubr.msk.bf16.vlgmr.msra.gmra.mrb[12].mxu0 %vm132_vm3, %v853_v3 }
 0x702   :  { %6900 = vmatpush3.bf16.msra.mxu0 %v8484_v2  ;;  %6903 = vmatprep.mubr.msk.bf16.mxu0 %vm8087_vm7, %v8086_v33 }
 0x703   :  { %6901 = vmatprep.subr.bf16.mxu0 %v8086_v33 }
 0x706   :  { %6902 = vmatpush3.bf16.msra.mxu0 %v8492_v4 }
 0x707   :  { %6915 = vmatprep.subr.bf16.mxu0 %v8086_v33 }
 0x709   :  { %6904 = vmatmul.mubr.bf16.vlgmr.msra.gmra.mrb[16].mxu0 %v8089_v42 }
 0x70a   :  { %6923 = vmatprep.mubr.msk.bf16.mxu0 %vm8087_vm7, %v8086_v33  ;;  %6916 = vmatpush3.bf16.msra.mxu0 %v7563_v59 }
 0x70b   :  { %6917 = vmatprep.subr.bf16.mxu0 %v8086_v33 }
 0x70e   :  { %6918 = vmatpush3.bf16.msra.mxu0 %v7564_v60 }
 0x70f   :  { %6919 = vmatprep.subr.bf16.mxu0 %v8086_v33 }
 0x712   :  { %6920 = vmatpush3.bf16.msra.mxu0 %v7565_v37 }
 0x713   :  { %6921 = vmatprep.subr.bf16.mxu0 %v8086_v33 }
 0x716   :  { %6922 = vmatpush3.bf16.msra.mxu0 %v7566_v63 }
 0x717   :  { %6947 = vmatprep.subr.bf16.mxu0 %v8086_v33 }
 0x7d4   :  { %v902_v6 = vpop.f32.mrb[12].mxu0 }
 0x7d5   :  { %v903_v7 = vadd.f32 %v6297_v5, %v902_v6  ;;  %v6889_v8 = vpop.f32.mrb[13].mxu0 }
 0x7d6   :  { %v905_v9 = vpop.f32.mrb[14].mxu0 }
 0x7d7   :  { %v908_v10 = vmax.f32 %v903_v7, 0.0  ;;  %v6890_v11 = vpop.f32.mrb[15].mxu0  ;;  %v8581_v9 = vld [vmem:[%s10073_s19] ss:$0 sm:$0xff] }
 0x7d9   :  { %v909_v12 = vpack.c.bf16 %v908_v10, %v908_v10 }
 0x7db   :  { %6896 = vmatmul.mubr.msk.bf16.vlgmr.msra.gmra.mrb[8].mxu1 %vm631_vm13, %v909_v12 }
 0x7dc   :  { %v1036_v14 = vpop.f32.mrb[16].mxu0  ;;  %6908 = vmatpush3.bf16.msra.mxu1 %v8484_v2  ;;  %6911 = vmatprep.mubr.msk.bf16.mxu1 %vm8087_vm7, %v8086_v33 }
 0x7dd   :  { %v1037_v15 = vadd.f32 %v8511_v13, %v1036_v14  ;;  %v6905_v16 = vpop.f32.mrb[17].mxu0  ;;  %6909 = vmatprep.subr.bf16.mxu1 %v8086_v33 }
 0x7de   :  { %v1039_v17 = vpop.f32.mrb[18].mxu0 }
 0x7df   :  { %v6906_v18 = vpop.f32.mrb[19].mxu0  ;;  %1050 = vrot.lane.b32.xlu0 %v1037_v15, %s8079_s29 }
 0x7e0   :  { %6910 = vmatpush3.bf16.msra.mxu1 %v8492_v4 }
 0x7e1   :  { %6927 = vmatprep.subr.bf16.mxu1 %v8086_v33 }
 0x851   :  { %v1051_v29 = vpop.permute.xlu0 %1050 }
 0x8ae   :  { %v970_v20 = vpop.f32.mrb[8].mxu1 }
 0x8af   :  { %v8525_v21 = vadd.f32 %v6299_v19, %v970_v20  ;;  %v6897_v22 = vpop.f32.mrb[9].mxu1 }
 0x8b0   :  { %v973_v23 = vpop.f32.mrb[10].mxu1 }
 0x8b1   :  { %v1042_v24 = vadd.f32 %v1037_v15, %v8525_v21  ;;  %v6898_v25 = vpop.f32.mrb[11].mxu1 }
 0x8b3   :  { %v6306_v26 = vmul.f32 -1.442695, %v1042_v24 }
 0x8b5   :  { %7717 = vpow2.f32 %v6306_v26 }
 0x8bf   :  { %v7718_v27 = vpop.eup %7717 }
 0x8c0   :  { %v1046_v28 = vadd.f32 1.0, %v7718_v27 }
 0x8c2   :  { %7719 = vrcp.f32 %v1046_v28 }
 0x8cc   :  { %v7720_v30 = vpop.eup %7719 }
 0x8cd   :  { %v1053_v31 = vmul.f32 %v7720_v30, %v1051_v29  ;;  %v1060_v36 = vsub.f32 1.0, %v7720_v30  ;;  %v1066_v40 = vmul.f32 0.0, %v7720_v30 }
 0x8cf   :  { %1055 = vrot.lane.b32.xlu1 %v1053_v31, %s8079_s29 }
 0x941   :  { %v1056_v32 = vpop.permute.xlu1 %1055 }
 0x942   :  { %v1058_v34 = vadd.f32 %v1056_v32, %v8525_v21 }
 0x944   :  { %7721 = vtanh.f32 %v1058_v34 }
 0x94e   :  { %v7722_v35 = vpop.eup %7721 }
 0x94f   :  { %1062 = vrot.lane.b32.xlu0 %v7722_v35, %s8090_s15 }
 0x9c1   :  { %v1063_v38 = vpop.permute.xlu0 %1062 }
 0x9c2   :  { %v1065_v43 = vmul.f32 %v1063_v38, %v1060_v36 }
 0x9c4   :  { %v1067_v44 = vadd.f32 %v1066_v40, %v1065_v43 }
 0x9c6   :  { %v1068_v45 = vpack.c.bf16 %v1067_v44, %v1067_v44 }
 0x9c8   :  { %1070 = vrot.lane.b32.xlu1 %v1068_v45, %s8090_s15 }
 0xa3a   :  { %v1071_v46 = vpop.permute.xlu1 %1070 }
 0xa3b   :  { %6912 = vmatmul.mubr.msk.bf16.vlgmr.msra.gmra.mrb[12].mxu1 %vm631_vm13, %v1071_v46 }
 0xa3c   :  { %6928 = vmatpush3.bf16.msra.mxu1 %v8484_v2  ;;  %6931 = vmatprep.mubr.msk.bf16.mxu1 %vm8087_vm7, %v8086_v33 }
 0xa3d   :  { %6929 = vmatprep.subr.bf16.mxu1 %v8086_v33 }
 0xa40   :  { %6930 = vmatpush3.bf16.msra.mxu1 %v8492_v4 }
 0xa41   :  { %6935 = vmatprep.subr.bf16.mxu1 %v8086_v33 }
 0xb0e   :  { %v1109_v41 = vpop.f32.mrb[12].mxu1 }
 0xb0f   :  { %v1110_v47 = vadd.f32 %v8511_v13, %v1109_v41  ;;  %v6913_v48 = vpop.f32.mrb[13].mxu1 }
 0xb10   :  { %v1112_v50 = vpop.f32.mrb[14].mxu1 }
 0xb11   :  { %1123 = vrot.lane.b32.xlu0 %v1110_v47, %s8079_s29  ;;  %v6914_v51 = vpop.f32.mrb[15].mxu1  ;;  %v1115_v49 = vadd.f32 %v1110_v47, %v8525_v21 }
 0xb13   :  { %v6308_v52 = vmul.f32 -1.442695, %v1115_v49 }
 0xb15   :  { %7723 = vpow2.f32 %v6308_v52 }
 0xb1f   :  { %v7724_v53 = vpop.eup %7723 }
 0xb20   :  { %v1119_v54 = vadd.f32 1.0, %v7724_v53 }
 0xb22   :  { %7725 = vrcp.f32 %v1119_v54 }
 0xb2c   :  { %v7726_v56 = vpop.eup %7725 }
 0xb2d   :  { %v1133_v1 = vsub.f32 1.0, %v7726_v56  ;;  %v1139_v3 = vmul.f32 %v7726_v56, %v1067_v44 }
 0xb83   :  { %v1124_v57 = vpop.permute.xlu0 %1123 }
 0xb84   :  { %v1126_v58 = vmul.f32 %v7726_v56, %v1124_v57 }
 0xb86   :  { %1128 = vrot.lane.b32.xlu1 %v1126_v58, %s8079_s29 }
 0xbf8   :  { %v1129_v61 = vpop.permute.xlu1 %1128 }
 0xbf9   :  { %v1131_v62 = vadd.f32 %v1129_v61, %v8525_v21  ;;  %v7568_v61 = vld [vmem:[%s10070_s16 + $0x8] sm:$0xff]  }
 0xbfb   :  { %7727 = vtanh.f32 %v1131_v62 }
 0xc05   :  { %v7728_v0 = vpop.eup %7727 }
 0xc06   :  { %1135 = vrot.lane.b32.xlu0 %v7728_v0, %s8090_s15 }
 0xc0a   :  { %1142 = vrot.lane.b32.xlu0 %v1067_v44, %s8090_s15 }
 0xc78   :  { %v1136_v2 = vpop.permute.xlu0 %1135 }
 0xc79   :  { %v1138_v4 = vmul.f32 %v1136_v2, %v1133_v1 }
 0xc7b   :  { %v8562_v42 = vadd.f32 %v1139_v3, %v1138_v4 }
 0xc7c   :  { %v1143_v39 = vpop.permute.xlu0 %1142 }
 0xc7d   :  { %v1145_v5 = vsel %vm631_vm13, %v1143_v39, 0.0  ;;  %v1254_v6 = vpack.c.bf16 %v8562_v42, %v8562_v42 }
 0xc7e   :  { %v1146_v7 = vpack.c.bf16 %v1145_v5, %v1145_v5 }
 0xc7f   :  { %1256 = vrot.lane.b32.xlu1 %v1254_v6, %s8090_s15 }
 0xc80   :  { %6924 = vmatmul.mubr.msk.bf16.vlgmr.msra.gmra.mrb[20].mxu0 %vm647_vm1, %v1146_v7 }
 0xc81   :  { %6955 = vmatprep.mubr.msk.bf16.mxu0 %vm8087_vm7, %v8086_v33 }
 0xcf1   :  { %v1257_v8 = vpop.permute.xlu1 %1256 }
 0xcf2   :  { %6932 = vmatmul.mubr.msk.bf16.vlgmr.msra.gmra.mrb[16].mxu1 %vm631_vm13, %v1257_v8 }
 0xcf3   :  { %6936 = vmatpush3.bf16.msra.mxu1 %v7563_v59  ;;  %6943 = vmatprep.mubr.msk.bf16.mxu1 %vm8087_vm7, %v8086_v33  ;;  %v7567_v59 = vld [vmem:[%s10070_s16] sm:$0xff]  }
 0xcf4   :  { %6937 = vmatprep.subr.bf16.mxu1 %v8086_v33 }
 0xcf7   :  { %6938 = vmatpush3.bf16.msra.mxu1 %v7564_v60 }
 0xcf8   :  { %6939 = vmatprep.subr.bf16.mxu1 %v8086_v33 }
 0xcfb   :  { %6940 = vmatpush3.bf16.msra.mxu1 %v7565_v37 }
 0xcfc   :  { %6941 = vmatprep.subr.bf16.mxu1 %v8086_v33 }
 0xcff   :  { %6942 = vmatpush3.bf16.msra.mxu1 %v7566_v63 }
 0xd00   :  { %6959 = vmatprep.subr.bf16.mxu1 %v8086_v33 }
 0xd53   :  { %v1223_v10 = vpop.f32.mrb[20].mxu0 }
 0xd54   :  { %v1224_v11 = vadd.f32 %v8581_v9, %v1223_v10  ;;  %v6925_v12 = vpop.f32.mrb[21].mxu0 }
 0xd55   :  { %v1226_v14 = vpop.f32.mrb[22].mxu0 }
 0xd56   :  { %1236 = vrot.lane.b32.xlu0 %v1224_v11, %s8081_s4  ;;  %v6926_v15 = vpop.f32.mrb[23].mxu0  ;;  %v6315_v16 = vmul.f32 -1.442695, %v1224_v11  ;;  %v7569_v14 = vld [vmem:[%s10074_s20] sm:$0xff]  }
 0xd57   :  { %6948 = vmatpush3.bf16.msra.mxu0 %v7569_v14  ;;  %v7570_v15 = vld [vmem:[%s10074_s20 + $0x8] sm:$0xff]  }
 0xd58   :  { %7729 = vpow2.f32 %v6315_v16  ;;  %6949 = vmatprep.subr.bf16.mxu0 %v8086_v33 }
 0xd5b   :  { %6950 = vmatpush3.bf16.msra.mxu0 %v7570_v15 }
 0xd5c   :  { %6951 = vmatprep.subr.bf16.mxu0 %v8086_v33 }
 0xd62   :  { %v7730_v17 = vpop.eup %7729 }
 0xd63   :  { %v1232_v18 = vadd.f32 1.0, %v7730_v17 }
 0xd65   :  { %7731 = vrcp.f32 %v1232_v18 }
 0xd6f   :  { %v7732_v24 = vpop.eup %7731 }
 0xd70   :  { %v1246_v41 = vsub.f32 1.0, %v7732_v24  ;;  %v1252_v51 = vmul.f32 0.0, %v7732_v24 }
 0xdc5   :  { %v1295_v19 = vpop.f32.mrb[16].mxu1 }
 0xdc6   :  { %v1296_v20 = vadd.f32 %v8511_v13, %v1295_v19  ;;  %v6933_v22 = vpop.f32.mrb[17].mxu1 }
 0xdc7   :  { %v1298_v23 = vpop.f32.mrb[18].mxu1  ;;  %v7572_v22 = vld [vmem:[%s10074_s20 + $0x18] sm:$0xff]  }
 0xdc8   :  { %1309 = vrot.lane.b32.xlu1 %v1296_v20, %s8079_s29  ;;  %v6934_v25 = vpop.f32.mrb[19].mxu1  ;;  %v1237_v26 = vpop.permute.xlu0 %1236  ;;  %v1301_v28 = vadd.f32 %v1296_v20, %v8525_v21  ;;  %v7571_v20 = vld [vmem:[%s10074_s20 + $0x10] sm:$0xff]  }
 0xdc9   :  { %v1239_v27 = vmul.f32 %v7732_v24, %v1237_v26  ;;  %6952 = vmatpush3.bf16.msra.mxu0 %v7571_v20  ;;  %v7581_v20 = vld [vmem:[%s10074_s20 + $0x10] sm:$0xff]  }
 0xdca   :  { %v6317_v29 = vmul.f32 -1.442695, %v1301_v28  ;;  %6953 = vmatprep.subr.bf16.mxu0 %v8086_v33 }
 0xdcb   :  { %1241 = vrot.lane.b32.xlu0 %v1239_v27, %s8079_s29 }
 0xdcc   :  { %7733 = vpow2.f32 %v6317_v29 }
 0xdcd   :  { %6954 = vmatpush3.bf16.msra.mxu0 %v7572_v22 }
 0xdce   :  { %6967 = vmatprep.subr.bf16.mxu0 %v8086_v33 }
 0xdd6   :  { %v7734_v30 = vpop.eup %7733 }
 0xdd7   :  { %v1305_v31 = vadd.f32 1.0, %v7734_v30 }
 0xdd9   :  { %7735 = vrcp.f32 %v1305_v31 }
 0xde3   :  { %v7736_v32 = vpop.eup %7735 }
 0xde4   :  { %v1319_v48 = vsub.f32 1.0, %v7736_v32  ;;  %v1325_v49 = vmul.f32 %v7736_v32, %v8562_v42 }
 0xe3a   :  { %v1310_v34 = vpop.permute.xlu1 %1309 }
 0xe3b   :  { %v1312_v35 = vmul.f32 %v7736_v32, %v1310_v34  ;;  %v7573_v34 = vld [vmem:[%s10072_s18] sm:$0xff]  }
 0xe3d   :  { %1314 = vrot.lane.b32.xlu1 %v1312_v35, %s8079_s29  ;;  %v1242_v36 = vpop.permute.xlu0 %1241 }
 0xe3e   :  { %v1244_v38 = vadd.f32 %v1242_v36, %v1224_v11  ;;  %v7574_v36 = vld [vmem:[%s10072_s18 + $0x8] sm:$0xff]  }
 0xe40   :  { %7737 = vtanh.f32 %v1244_v38 }
 0xe4a   :  { %v7738_v40 = vpop.eup %7737 }
 0xe4b   :  { %1248 = vrot.lane.b32.xlu0 %v7738_v40, %s8090_s15  ;;  %v7575_v40 = vld [vmem:[%s10072_s18 + $0x10] sm:$0xff]  }
 0xeaf   :  { %v1315_v43 = vpop.permute.xlu1 %1314 }
 0xeb0   :  { %v1317_v44 = vadd.f32 %v1315_v43, %v8525_v21  ;;  %v7576_v43 = vld [vmem:[%s10072_s18 + $0x18] sm:$0xff]  }
 0xeb2   :  { %7739 = vtanh.f32 %v1317_v44 }
 0xebc   :  { %v7740_v45 = vpop.eup %7739 }
 0xebd   :  { %1321 = vrot.lane.b32.xlu1 %v7740_v45, %s8090_s15  ;;  %v1249_v46 = vpop.permute.xlu0 %1248 }
 0xebe   :  { %v1251_v47 = vmul.f32 %v1249_v46, %v1246_v41 }
 0xec0   :  { %v8596_v53 = vadd.f32 %v1252_v51, %v1251_v47 }
 0xec1   :  { %1328 = vrot.lane.b32.xlu1 %v8562_v42, %s8090_s15 }
 0xf2f   :  { %v1322_v50 = vpop.permute.xlu1 %1321 }
 0xf30   :  { %v1324_v52 = vmul.f32 %v1322_v50, %v1319_v48 }
 0xf32   :  { %v8598_v54 = vadd.f32 %v1325_v49, %v1324_v52 }
 0xf33   :  { %v1329_v56 = vpop.permute.xlu1 %1328 }
 0xf34   :  { %v1331_v57 = vsel %vm631_vm13, %v1329_v56, %v8596_v53  ;;  %v1522_v58 = vpack.c.bf16 %v8598_v54, %v8598_v54 }
 0xf35   :  { %v1332_v60 = vpack.c.bf16 %v1331_v57, %v1331_v57 }
 0xf36   :  { %1535 = vrot.lane.b32.xlu0 %v1522_v58, %s8090_s15 }
 0xf37   :  { %6944 = vmatmul.mubr.msk.bf16.vlgmr.msra.gmra.mrb[20].mxu1 %vm647_vm1, %v1332_v60 }
 0xf38   :  { %6960 = vmatpush3.bf16.msra.mxu1 %v7567_v59  ;;  %6963 = vmatprep.mubr.msk.bf16.mxu1 %vm8087_vm7, %v8086_v33  ;;  %v7577_v59 = vld [vmem:[%s10070_s16] sm:$0xff]  }
 0xf39   :  { %6961 = vmatprep.subr.bf16.mxu1 %v8086_v33 }
 0xf3c   :  { %6962 = vmatpush3.bf16.msra.mxu1 %v7568_v61 }
 0xf3d   :  { %6979 = vmatprep.subr.bf16.mxu1 %v8086_v33 }
 0xfa8   :  { %v1536_v62 = vpop.permute.xlu0 %1535 }
 0xfa9   :  { %6964 = vmatmul.mubr.msk.bf16.vlgmr.msra.gmra.mrb[24].mxu1 %vm631_vm13, %v1536_v62 }
 0xfaa   :  { %6987 = vmatprep.mubr.msk.bf16.mxu1 %vm8087_vm7, %v8086_v33 }
0x100a   :  { %v1370_v37 = vpop.f32.mrb[20].mxu1 }
0x100b   :  { %v1371_v63 = vadd.f32 %v8581_v9, %v1370_v37  ;;  %v6945_v0 = vpop.f32.mrb[21].mxu1 }
0x100c   :  { %v1373_v1 = vpop.f32.mrb[22].mxu1 }
0x100d   :  { %1383 = vrot.lane.b32.xlu0 %v1371_v63, %s8081_s4  ;;  %v6946_v2 = vpop.f32.mrb[23].mxu1  ;;  %v6319_v3 = vmul.f32 -1.442695, %v1371_v63 }
0x100f   :  { %7741 = vpow2.f32 %v6319_v3 }
0x1019   :  { %v7742_v4 = vpop.eup %7741 }
0x101a   :  { %v1379_v42 = vadd.f32 1.0, %v7742_v4 }
0x101c   :  { %7743 = vrcp.f32 %v1379_v42 }
0x1026   :  { %v7744_v8 = vpop.eup %7743 }
0x1027   :  { %v1393_v45 = vsub.f32 1.0, %v7744_v8  ;;  %v1399_v48 = vmul.f32 %v7744_v8, %v8596_v53 }
0x107c   :  { %v1586_v39 = vpop.f32.mrb[24].mxu1 }
0x107d   :  { %v1587_v5 = vadd.f32 %v8511_v13, %v1586_v39  ;;  %v6965_v6 = vpop.f32.mrb[25].mxu1 }
0x107e   :  { %v1589_v7 = vpop.f32.mrb[26].mxu1 }
0x107f   :  { %1600 = vrot.lane.b32.xlu1 %v1587_v5, %s8079_s29  ;;  %v6966_v10 = vpop.f32.mrb[27].mxu1  ;;  %v1384_v11 = vpop.permute.xlu0 %1383  ;;  %v1592_v16 = vadd.f32 %v1587_v5, %v8525_v21 }
0x1080   :  { %v1386_v12 = vmul.f32 %v7744_v8, %v1384_v11 }
0x1081   :  { %v6331_v17 = vmul.f32 -1.442695, %v1592_v16 }
0x1082   :  { %1388 = vrot.lane.b32.xlu0 %v1386_v12, %s8079_s29  ;;  %v7579_v12 = vld [vmem:[%s10074_s20] sm:$0xff]  }
0x1083   :  { %7745 = vpow2.f32 %v6331_v17  ;;  %6980 = vmatpush3.bf16.msra.mxu1 %v7579_v12  ;;  %v7580_v17 = vld [vmem:[%s10074_s20 + $0x8] sm:$0xff]  }
0x1084   :  { %6981 = vmatprep.subr.bf16.mxu1 %v8086_v33 }
0x1087   :  { %6982 = vmatpush3.bf16.msra.mxu1 %v7580_v17 }
0x1088   :  { %6983 = vmatprep.subr.bf16.mxu1 %v8086_v33 }
0x108b   :  { %6984 = vmatpush3.bf16.msra.mxu1 %v7581_v20 }
0x108c   :  { %6985 = vmatprep.subr.bf16.mxu1 %v8086_v33 }
0x108d   :  { %v7746_v18 = vpop.eup %7745 }
0x108e   :  { %v1596_v19 = vadd.f32 1.0, %v7746_v18 }
0x1090   :  { %7747 = vrcp.f32 %v1596_v19 }
0x109a   :  { %v7748_v23 = vpop.eup %7747 }
0x109b   :  { %v1610_v41 = vsub.f32 1.0, %v7748_v23  ;;  %v1616_v50 = vmul.f32 %v7748_v23, %v8598_v54 }
0x10f1   :  { %v1601_v24 = vpop.permute.xlu1 %1600 }
0x10f2   :  { %v1603_v25 = vmul.f32 %v7748_v23, %v1601_v24 }
0x10f4   :  { %1605 = vrot.lane.b32.xlu1 %v1603_v25, %s8079_s29  ;;  %v1389_v26 = vpop.permute.xlu0 %1388  ;;  %v7582_v25 = vld [vmem:[%s10074_s20 + $0x18] sm:$0xff]  }
0x10f5   :  { %v1391_v27 = vadd.f32 %v1389_v26, %v1371_v63  ;;  %6986 = vmatpush3.bf16.msra.mxu1 %v7582_v25 }
0x10f6   :  { %6999 = vmatprep.subr.bf16.mxu1 %v8086_v33 }
0x10f7   :  { %7749 = vtanh.f32 %v1391_v27 }
0x10f8   :  { %1402 = vrot.lane.b32.xlu1 %v8596_v53, %s8090_s15  ;;  %v7578_v53 = vld [vmem:[%s10070_s16 + $0x8] sm:$0xff]  }
0x1101   :  { %v7750_v28 = vpop.eup %7749 }
0x1102   :  { %1395 = vrot.lane.b32.xlu1 %v7750_v28, %s8090_s15 }
0x1166   :  { %v1606_v29 = vpop.permute.xlu1 %1605 }
0x1167   :  { %v1608_v30 = vadd.f32 %v1606_v29, %v8525_v21 }
0x1169   :  { %7751 = vtanh.f32 %v1608_v30 }
0x116a   :  { %v1403_v31 = vpop.permute.xlu1 %1402 }
0x116b   :  { %v1405_v32 = vsel %vm631_vm13, %v1403_v31, 0.0 }
0x116c   :  { %v1406_v35 = vpack.c.bf16 %v1405_v32, %v1405_v32 }
0x116e   :  { %6956 = vmatmul.mubr.msk.bf16.vlgmr.msra.gmra.mrb[24].mxu0 %vm647_vm1, %v1406_v35 }
0x116f   :  { %6968 = vmatpush3.bf16.msra.mxu0 %v7573_v34  ;;  %6975 = vmatprep.mubr.msk.bf16.mxu0 %vm8087_vm7, %v8086_v33 }
0x1170   :  { %6969 = vmatprep.subr.bf16.mxu0 %v8086_v33 }
0x1173   :  { %v7752_v38 = vpop.eup %7751  ;;  %6970 = vmatpush3.bf16.msra.mxu0 %v7574_v36 }
0x1174   :  { %1612 = vrot.lane.b32.xlu0 %v7752_v38, %s8090_s15  ;;  %6971 = vmatprep.subr.bf16.mxu0 %v8086_v33  ;;  %v1396_v44 = vpop.permute.xlu1 %1395 }
0x1175   :  { %v1398_v46 = vmul.f32 %v1396_v44, %v1393_v45 }
0x1177   :  { %6972 = vmatpush3.bf16.msra.mxu0 %v7575_v40  ;;  %v8671_v49 = vadd.f32 %v1399_v48, %v1398_v46 }
0x1178   :  { %1619 = vrot.lane.b32.xlu0 %v8598_v54, %s8090_s15  ;;  %6973 = vmatprep.subr.bf16.mxu0 %v8086_v33  ;;  %v8694_v54 = vld [vmem:[%s10075_s21] ss:$0 sm:$0xff] }
0x117b   :  { %6974 = vmatpush3.bf16.msra.mxu0 %v7576_v43 }
0x117c   :  { %6991 = vmatprep.subr.bf16.mxu0 %v8086_v33 }
0x11e6   :  { %v1613_v47 = vpop.permute.xlu0 %1612 }
0x11e7   :  { %v1615_v51 = vmul.f32 %v1613_v47, %v1610_v41 }
0x11e9   :  { %v8673_v52 = vadd.f32 %v1616_v50, %v1615_v51 }
0x11ea   :  { %v1620_v56 = vpop.permute.xlu0 %1619 }
0x11eb   :  { %v1622_v57 = vsel %vm631_vm13, %v1620_v56, %v8671_v49  ;;  %v1850_v58 = vpack.c.bf16 %v8673_v52, %v8673_v52 }
0x11ec   :  { %v1623_v60 = vpack.c.bf16 %v1622_v57, %v1622_v57 }
0x11ed   :  { %1863 = vrot.lane.b32.xlu1 %v1850_v58, %s8090_s15 }
0x11ee   :  { %6976 = vmatmul.mubr.msk.bf16.vlgmr.msra.gmra.mrb[28].mxu0 %vm647_vm1, %v1623_v60  ;;  %v7584_v60 = vld [vmem:[%s10072_s18 + $0x8] sm:$0xff]  }
0x11ef   :  { %6992 = vmatpush3.bf16.msra.mxu0 %v7577_v59  ;;  %6995 = vmatprep.mubr.msk.bf16.mxu0 %vm8087_vm7, %v8086_v33  ;;  %v7583_v59 = vld [vmem:[%s10072_s18] sm:$0xff]  }
0x11f0   :  { %6993 = vmatprep.subr.bf16.mxu0 %v8086_v33 }
0x11f3   :  { %6994 = vmatpush3.bf16.msra.mxu0 %v7578_v53 }
0x11f4   :  { %7011 = vmatprep.subr.bf16.mxu0 %v8086_v33 }
0x1241   :  { %v1483_v61 = vpop.f32.mrb[24].mxu0 }
0x1242   :  { %v1484_v62 = vadd.f32 %v8694_v54, %v1483_v61  ;;  %v6957_v37 = vpop.f32.mrb[25].mxu0 }
0x1243   :  { %v1486_v63 = vpop.f32.mrb[26].mxu0  ;;  %v7586_v37 = vld [vmem:[%s10072_s18 + $0x18] sm:$0xff]  }
0x1244   :  { %1496 = vrot.lane.b32.xlu0 %v1484_v62, %s8081_s4  ;;  %v6958_v0 = vpop.f32.mrb[27].mxu0  ;;  %v6326_v2 = vmul.f32 -1.442695, %v1484_v62 }
0x1246   :  { %7753 = vpow2.f32 %v6326_v2 }
0x1250   :  { %v7754_v3 = vpop.eup %7753 }
0x1251   :  { %v1492_v4 = vadd.f32 1.0, %v7754_v3 }
0x1253   :  { %7755 = vrcp.f32 %v1492_v4 }
0x125d   :  { %v7756_v42 = vpop.eup %7755 }
0x125e   :  { %v1506_v46 = vsub.f32 1.0, %v7756_v42  ;;  %v1512_v48 = vmul.f32 0.0, %v7756_v42 }
0x125f   :  { %v1864_v1 = vpop.permute.xlu1 %1863 }
0x1260   :  { %6996 = vmatmul.mubr.msk.bf16.vlgmr.msra.gmra.mrb[32].mxu0 %vm631_vm13, %v1864_v1 }
0x1261   :  { %7019 = vmatprep.mubr.msk.bf16.mxu0 %vm8087_vm7, %v8086_v33 }
0x12b6   :  { %v1497_v39 = vpop.permute.xlu0 %1496 }
0x12b7   :  { %v1499_v5 = vmul.f32 %v7756_v42, %v1497_v39 }
0x12b9   :  { %1501 = vrot.lane.b32.xlu1 %v1499_v5, %s8079_s29 }
0x12c1   :  { %v1700_v6 = vpop.f32.mrb[28].mxu0 }
0x12c2   :  { %v1701_v7 = vadd.f32 %v8581_v9, %v1700_v6  ;;  %v6977_v8 = vpop.f32.mrb[29].mxu0 }
0x12c3   :  { %v1703_v10 = vpop.f32.mrb[30].mxu0 }
0x12c4   :  { %1713 = vrot.lane.b32.xlu1 %v1701_v7, %s8081_s4  ;;  %v6978_v11 = vpop.f32.mrb[31].mxu0  ;;  %v6338_v14 = vmul.f32 -1.442695, %v1701_v7 }
0x12c6   :  { %7757 = vpow2.f32 %v6338_v14 }
0x12c8   :  { %1732 = vrot.lane.b32.xlu1 %v8671_v49, %s8090_s15 }
0x12d0   :  { %v7758_v15 = vpop.eup %7757 }
0x12d1   :  { %v1709_v16 = vadd.f32 1.0, %v7758_v15 }
0x12d3   :  { %7759 = vrcp.f32 %v1709_v16 }
0x12dd   :  { %v8722_v27 = vpop.eup %7759 }
0x12de   :  { %v1723_v39 = vsub.f32 1.0, %v8722_v27  ;;  %v1729_v8 = vmul.f32 %v8722_v27, %v8671_v49  ;;  %v7588_v49 = vld [vmem:[%s10070_s16 + $0x8] sm:$0xff]  }
0x132b   :  { %v1502_v18 = vpop.permute.xlu1 %1501 }
0x132c   :  { %v1504_v19 = vadd.f32 %v1502_v18, %v1484_v62  ;;  %v7585_v62 = vld [vmem:[%s10072_s18 + $0x10] sm:$0xff]   ;;  %v7587_v18 = vld [vmem:[%s10070_s16] sm:$0xff]  }
0x132e   :  { %7761 = vtanh.f32 %v1504_v19 }
0x1333   :  { %v1914_v22 = vpop.f32.mrb[32].mxu0 }
0x1334   :  { %v1915_v23 = vadd.f32 %v8511_v13, %v1914_v22  ;;  %v6997_v24 = vpop.f32.mrb[33].mxu0 }
0x1335   :  { %v1917_v26 = vpop.f32.mrb[34].mxu0 }
0x1336   :  { %v1714_v28 = vpop.permute.xlu1 %1713  ;;  %1928 = vrot.lane.b32.xlu0 %v1915_v23, %s8079_s29  ;;  %v6998_v29 = vpop.f32.mrb[35].mxu0  ;;  %v1920_v32 = vadd.f32 %v1915_v23, %v8525_v21  ;;  %v7589_v26 = vld [vmem:[%s10074_s20] sm:$0xff]  }
0x1337   :  { %v1716_v30 = vmul.f32 %v8722_v27, %v1714_v28  ;;  %7012 = vmatpush3.bf16.msra.mxu0 %v7589_v26 }
0x1338   :  { %v7762_v31 = vpop.eup %7761  ;;  %v6350_v34 = vmul.f32 -1.442695, %v1920_v32  ;;  %7013 = vmatprep.subr.bf16.mxu0 %v8086_v33  ;;  %v7591_v32 = vld [vmem:[%s10074_s20 + $0x10] sm:$0xff]  }
0x1339   :  { %1718 = vrot.lane.b32.xlu1 %v1716_v30, %s8079_s29  ;;  %v7590_v30 = vld [vmem:[%s10074_s20 + $0x8] sm:$0xff]  }
0x133a   :  { %1508 = vrot.lane.b32.xlu0 %v7762_v31, %s8090_s15  ;;  %7763 = vpow2.f32 %v6350_v34  ;;  %v1733_v38 = vpop.permute.xlu1 %1732 }
0x133b   :  { %7014 = vmatpush3.bf16.msra.mxu0 %v7590_v30 }
0x133c   :  { %7015 = vmatprep.subr.bf16.mxu0 %v8086_v33 }
0x133f   :  { %7016 = vmatpush3.bf16.msra.mxu0 %v7591_v32 }
0x1340   :  { %7017 = vmatprep.subr.bf16.mxu0 %v8086_v33 }
0x1344   :  { %v7764_v35 = vpop.eup %7763 }
0x1345   :  { %v1924_v36 = vadd.f32 1.0, %v7764_v35 }
0x1347   :  { %7765 = vrcp.f32 %v1924_v36 }
0x1351   :  { %v7766_v40 = vpop.eup %7765 }
0x1352   :  { %v1938_v6 = vsub.f32 1.0, %v7766_v40  ;;  %v1944_v10 = vmul.f32 %v7766_v40, %v8673_v52 }
0x13a8   :  { %v1929_v43 = vpop.permute.xlu0 %1928 }
0x13a9   :  { %v1931_v44 = vmul.f32 %v7766_v40, %v1929_v43 }
0x13ab   :  { %v1719_v45 = vpop.permute.xlu1 %1718  ;;  %1933 = vrot.lane.b32.xlu0 %v1931_v44, %s8079_s29 }
0x13ac   :  { %v1721_v41 = vadd.f32 %v1719_v45, %v1701_v7  ;;  %v1509_v47 = vpop.permute.xlu0 %1508 }
0x13ad   :  { %v1511_v50 = vmul.f32 %v1509_v47, %v1506_v46 }
0x13ae   :  { %7767 = vtanh.f32 %v1721_v41 }
0x13af   :  { %v8731_v51 = vadd.f32 %v1512_v48, %v1511_v50 }
0x13b1   :  { %v1735_v56 = vsel %vm631_vm13, %v1733_v38, %v8731_v51  ;;  %v7592_v38 = vld [vmem:[%s10074_s20 + $0x18] sm:$0xff]  }
0x13b2   :  { %v1736_v57 = vpack.c.bf16 %v1735_v56, %v1735_v56  ;;  %7018 = vmatpush3.bf16.msra.mxu0 %v7592_v38 }
0x13b3   :  { %7031 = vmatprep.subr.bf16.mxu0 %v8086_v33 }
0x13b4   :  { %6988 = vmatmul.mubr.msk.bf16.vlgmr.msra.gmra.mrb[28].mxu1 %vm647_vm1, %v1736_v57 }
0x13b5   :  { %7007 = vmatprep.mubr.msk.bf16.mxu1 %vm8087_vm7, %v8086_v33  ;;  %7000 = vmatpush3.bf16.msra.mxu1 %v7583_v59 }
0x13b6   :  { %7001 = vmatprep.subr.bf16.mxu1 %v8086_v33 }
0x13b8   :  { %v7768_v58 = vpop.eup %7767 }
0x13b9   :  { %1725 = vrot.lane.b32.xlu1 %v7768_v58, %s8090_s15  ;;  %7002 = vmatpush3.bf16.msra.mxu1 %v7584_v60 }
0x13ba   :  { %7003 = vmatprep.subr.bf16.mxu1 %v8086_v33 }
0x13bd   :  { %7004 = vmatpush3.bf16.msra.mxu1 %v7585_v62 }
0x13be   :  { %7005 = vmatprep.subr.bf16.mxu1 %v8086_v33 }
0x13c1   :  { %7006 = vmatpush3.bf16.msra.mxu1 %v7586_v37 }
0x13c2   :  { %7023 = vmatprep.subr.bf16.mxu1 %v8086_v33 }
0x141d   :  { %v1934_v53 = vpop.permute.xlu0 %1933 }
0x141e   :  { %v1936_v61 = vadd.f32 %v1934_v53, %v8525_v21 }
0x1420   :  { %7769 = vtanh.f32 %v1936_v61 }
0x142a   :  { %v7770_v63 = vpop.eup %7769 }
0x142b   :  { %1940 = vrot.lane.b32.xlu0 %v7770_v63, %s8090_s15  ;;  %v1726_v42 = vpop.permute.xlu1 %1725 }
0x142c   :  { %v1728_v5 = vmul.f32 %v1726_v42, %v1723_v39 }
0x142e   :  { %v8765_v12 = vadd.f32 %v1729_v8, %v1728_v5 }
0x142f   :  { %1947 = vrot.lane.b32.xlu0 %v8673_v52, %s8090_s15 }
0x1487   :  { %v1813_v0 = vpop.f32.mrb[28].mxu1 }
0x1488   :  { %v1814_v1 = vadd.f32 %v8694_v54, %v1813_v0  ;;  %v6989_v2 = vpop.f32.mrb[29].mxu1 }
0x1489   :  { %v1816_v3 = vpop.f32.mrb[30].mxu1 }
0x148a   :  { %v6990_v4 = vpop.f32.mrb[31].mxu1  ;;  %1826 = vrot.lane.b32.xlu0 %v1814_v1, %s8081_s4  ;;  %v6345_v52 = vmul.f32 -1.442695, %v1814_v1 }
0x148c   :  { %7771 = vpow2.f32 %v6345_v52  ;;  %v7596_v52 = vld [vmem:[%s10072_s18 + $0x18] sm:$0xff]  }
0x1496   :  { %v7772_v20 = vpop.eup %7771 }
0x1497   :  { %v1822_v22 = vadd.f32 1.0, %v7772_v20 }
0x1499   :  { %7773 = vrcp.f32 %v1822_v22 }
0x149d   :  { %v1941_v7 = vpop.permute.xlu0 %1940 }
0x149e   :  { %v1943_v11 = vmul.f32 %v1941_v7, %v1938_v6  ;;  %v7593_v6 = vld [vmem:[%s10072_s18] sm:$0xff]  }
0x14a0   :  { %v8767_v14 = vadd.f32 %v1944_v10, %v1943_v11 }
0x14a1   :  { %v1948_v15 = vpop.permute.xlu0 %1947 }
0x14a2   :  { %v1950_v16 = vsel %vm631_vm13, %v1948_v15, %v8765_v12  ;;  %v2178_v17 = vpack.c.bf16 %v8767_v14, %v8767_v14 }
0x14a3   :  { %v1951_v19 = vpack.c.bf16 %v1950_v16, %v1950_v16  ;;  %v7774_v23 = vpop.eup %7773 }
0x14a4   :  { %2191 = vrot.lane.b32.xlu1 %v2178_v17, %s8090_s15  ;;  %v1836_v48 = vsub.f32 1.0, %v7774_v23  ;;  %v1842_v56 = vmul.f32 %v7774_v23, %v8731_v51  ;;  %v7594_v17 = vld [vmem:[%s10072_s18 + $0x8] sm:$0xff]  }
0x14a5   :  { %7008 = vmatmul.mubr.msk.bf16.vlgmr.msra.gmra.mrb[32].mxu1 %vm647_vm1, %v1951_v19 }
0x14a6   :  { %7024 = vmatpush3.bf16.msra.mxu1 %v7587_v18  ;;  %7027 = vmatprep.mubr.msk.bf16.mxu1 %vm8087_vm7, %v8086_v33 }
0x14a7   :  { %7025 = vmatprep.subr.bf16.mxu1 %v8086_v33 }
0x14aa   :  { %7026 = vmatpush3.bf16.msra.mxu1 %v7588_v49  ;;  %v7595_v49 = vld [vmem:[%s10072_s18 + $0x10] sm:$0xff]  }
0x14ab   :  { %7043 = vmatprep.subr.bf16.mxu1 %v8086_v33 }
0x14fc   :  { %v1827_v24 = vpop.permute.xlu0 %1826 }
0x14fd   :  { %v1829_v25 = vmul.f32 %v7774_v23, %v1827_v24 }
0x14ff   :  { %1831 = vrot.lane.b32.xlu1 %v1829_v25, %s8079_s29 }
0x1516   :  { %v2192_v27 = vpop.permute.xlu1 %2191 }
0x1517   :  { %7028 = vmatmul.mubr.msk.bf16.vlgmr.msra.gmra.mrb[36].mxu1 %vm631_vm13, %v2192_v27 }
0x1518   :  { %7051 = vmatprep.mubr.msk.bf16.mxu1 %vm8087_vm7, %v8086_v33 }
0x1571   :  { %v1832_v28 = vpop.permute.xlu1 %1831 }
0x1572   :  { %v1834_v29 = vadd.f32 %v1832_v28, %v1814_v1 }
0x1574   :  { %7775 = vtanh.f32 %v1834_v29 }
0x1578   :  { %v2028_v31 = vpop.f32.mrb[32].mxu1 }
0x1579   :  { %v7009_v34 = vpop.f32.mrb[33].mxu1  ;;  %v2029_v47 = vadd.f32 %v8581_v9, %v2028_v31 }
0x157a   :  { %v2031_v35 = vpop.f32.mrb[34].mxu1 }
0x157b   :  { %v7010_v36 = vpop.f32.mrb[35].mxu1  ;;  %v6357_v62 = vmul.f32 -1.442695, %v2029_v47 }
0x157e   :  { %v7776_v40 = vpop.eup %7775 }
0x157f   :  { %1838 = vrot.lane.b32.xlu0 %v7776_v40, %s8090_s15 }
0x1583   :  { %2060 = vrot.lane.b32.xlu0 %v8765_v12, %s8090_s15 }
0x15ea   :  { %v2242_v43 = vpop.f32.mrb[36].mxu1 }
0x15eb   :  { %v2243_v44 = vadd.f32 %v8511_v13, %v2242_v43  ;;  %v7029_v45 = vpop.f32.mrb[37].mxu1 }
0x15ec   :  { %v2245_v46 = vpop.f32.mrb[38].mxu1 }
0x15ed   :  { %v7030_v41 = vpop.f32.mrb[39].mxu1  ;;  %2256 = vrot.lane.b32.xlu1 %v2243_v44, %s8079_s29  ;;  %v2248_v53 = vadd.f32 %v2243_v44, %v8525_v21 }
0x15ee   :  { %v7597_v41 = vld [vmem:[%s10070_s16] sm:$0xff]  }
0x15ef   :  { %v6369_v61 = vmul.f32 -1.442695, %v2248_v53 }
0x15f1   :  { %2041 = vrot.lane.b32.xlu1 %v2029_v47, %s8081_s4  ;;  %v1839_v50 = vpop.permute.xlu0 %1838  ;;  %7777 = vpow2.f32 %v6369_v61 }
0x15f2   :  { %v1841_v57 = vmul.f32 %v1839_v50, %v1836_v48  ;;  %7779 = vpow2.f32 %v6357_v62  ;;  %v7599_v48 = vld [vmem:[%s10074_s20] sm:$0xff]   ;;  %v7600_v50 = vld [vmem:[%s10074_s20 + $0x8] sm:$0xff]  }
0x15f3   :  { %7044 = vmatpush3.bf16.msra.mxu1 %v7599_v48 }
0x15f4   :  { %v8813_v58 = vadd.f32 %v1842_v56, %v1841_v57  ;;  %7045 = vmatprep.subr.bf16.mxu1 %v8086_v33 }
0x15f5   :  { %v2061_v59 = vpop.permute.xlu0 %2060 }
0x15f6   :  { %v2063_v13 = vsel %vm631_vm13, %v2061_v59, %v8813_v58 }
0x15f7   :  { %v2064_v60 = vpack.c.bf16 %v2063_v13, %v2063_v13  ;;  %7046 = vmatpush3.bf16.msra.mxu1 %v7600_v50  ;;  %v7601_v13 = vld [vmem:[%s10074_s20 + $0x10] sm:$0xff]  }
0x15f8   :  { %7047 = vmatprep.subr.bf16.mxu1 %v8086_v33 }
0x15f9   :  { %7020 = vmatmul.mubr.msk.bf16.vlgmr.msra.gmra.mrb[36].mxu0 %vm647_vm1, %v2064_v60  ;;  %v7602_v60 = vld [vmem:[%s10074_s20 + $0x18] sm:$0xff]  }
0x15fa   :  { %7039 = vmatprep.mubr.msk.bf16.mxu0 %vm8087_vm7, %v8086_v33  ;;  %7032 = vmatpush3.bf16.msra.mxu0 %v7593_v6 }
0x15fb   :  { %v7778_v37 = vpop.eup %7777  ;;  %7033 = vmatprep.subr.bf16.mxu0 %v8086_v33  ;;  %7048 = vmatpush3.bf16.msra.mxu1 %v7601_v13 }
0x15fc   :  { %v2252_v63 = vadd.f32 1.0, %v7778_v37  ;;  %v7780_v0 = vpop.eup %7779  ;;  %7049 = vmatprep.subr.bf16.mxu1 %v8086_v33 }
0x15fd   :  { %v2037_v1 = vadd.f32 1.0, %v7780_v0 }
0x15fe   :  { %7781 = vrcp.f32 %v2252_v63  ;;  %7034 = vmatpush3.bf16.msra.mxu0 %v7594_v17 }
0x15ff   :  { %7783 = vrcp.f32 %v2037_v1  ;;  %7035 = vmatprep.subr.bf16.mxu0 %v8086_v33  ;;  %7050 = vmatpush3.bf16.msra.mxu1 %v7602_v60 }
0x1600   :  { %7063 = vmatprep.subr.bf16.mxu1 %v8086_v33 }
0x1602   :  { %7036 = vmatpush3.bf16.msra.mxu0 %v7595_v49 }
0x1603   :  { %7037 = vmatprep.subr.bf16.mxu0 %v8086_v33 }
0x1606   :  { %7038 = vmatpush3.bf16.msra.mxu0 %v7596_v52 }
0x1607   :  { %7055 = vmatprep.subr.bf16.mxu0 %v8086_v33 }
0x1608   :  { %v7782_v2 = vpop.eup %7781 }
0x1609   :  { %v7784_v42 = vpop.eup %7783  ;;  %v2266_v27 = vsub.f32 1.0, %v7782_v2  ;;  %v2272_v29 = vmul.f32 %v7782_v2, %v8767_v14 }
0x160a   :  { %v2051_v32 = vsub.f32 1.0, %v7784_v42  ;;  %v2057_v36 = vmul.f32 %v7784_v42, %v8765_v12  ;;  %v7598_v12 = vld [vmem:[%s10070_s16 + $0x8] sm:$0xff]  }
0x165f   :  { %v2257_v3 = vpop.permute.xlu1 %2256 }
0x1660   :  { %v2259_v4 = vmul.f32 %v7782_v2, %v2257_v3 }
0x1662   :  { %2261 = vrot.lane.b32.xlu0 %v2259_v4, %s8079_s29 }
0x1663   :  { %v2042_v39 = vpop.permute.xlu1 %2041 }
0x1664   :  { %v2044_v5 = vmul.f32 %v7784_v42, %v2042_v39 }
0x1666   :  { %2046 = vrot.lane.b32.xlu1 %v2044_v5, %s8079_s29 }
0x16cc   :  { %v2141_v7 = vpop.f32.mrb[36].mxu0 }
0x16cd   :  { %v7021_v8 = vpop.f32.mrb[37].mxu0  ;;  %v2142_v23 = vadd.f32 %v8694_v54, %v2141_v7 }
0x16ce   :  { %v2144_v10 = vpop.f32.mrb[38].mxu0 }
0x16cf   :  { %v7022_v11 = vpop.f32.mrb[39].mxu0  ;;  %v6364_v24 = vmul.f32 -1.442695, %v2142_v23  ;;  %v8904_v10 = vld [vmem:[%s10071_s17] ss:$0 sm:$0xff] }
0x16d4   :  { %v2262_v15 = vpop.permute.xlu0 %2261 }
0x16d5   :  { %v2264_v16 = vadd.f32 %v2262_v15, %v8525_v21 }
0x16d7   :  { %7785 = vtanh.f32 %v2264_v16 }
0x16d8   :  { %v2047_v18 = vpop.permute.xlu1 %2046 }
0x16d9   :  { %v2049_v19 = vadd.f32 %v2047_v18, %v2029_v47 }
0x16db   :  { %7787 = vtanh.f32 %v2049_v19 }
0x16dc   :  { %7789 = vpow2.f32 %v6364_v24 }
0x16e1   :  { %v7786_v20 = vpop.eup %7785 }
0x16e2   :  { %2268 = vrot.lane.b32.xlu0 %v7786_v20, %s8090_s15 }
0x16e5   :  { %v7788_v22 = vpop.eup %7787 }
0x16e6   :  { %2275 = vrot.lane.b32.xlu0 %v8767_v14, %s8090_s15  ;;  %2053 = vrot.lane.b32.xlu1 %v7788_v22, %s8090_s15  ;;  %v7790_v25 = vpop.eup %7789 }
0x16e7   :  { %v2150_v26 = vadd.f32 1.0, %v7790_v25 }
0x16e9   :  { %7791 = vrcp.f32 %v2150_v26 }
0x16ea   :  { %2154 = vrot.lane.b32.xlu0 %v2142_v23, %s8081_s4 }
0x16f3   :  { %v7792_v44 = vpop.eup %7791 }
0x16f4   :  { %v2164_v1 = vsub.f32 1.0, %v7792_v44  ;;  %v2170_v3 = vmul.f32 %v7792_v44, %v8813_v58 }
0x1754   :  { %v2269_v28 = vpop.permute.xlu0 %2268 }
0x1755   :  { %v2271_v30 = vmul.f32 %v2269_v28, %v2266_v27 }
0x1757   :  { %v8847_v31 = vadd.f32 %v2272_v29, %v2271_v30  ;;  %v7603_v30 = vld [vmem:[%s10072_s18] sm:$0xff]  }
0x1758   :  { %v2276_v34 = vpop.permute.xlu0 %2275  ;;  %v2054_v35 = vpop.permute.xlu1 %2053 }
0x1759   :  { %v2056_v38 = vmul.f32 %v2054_v35, %v2051_v32  ;;  %v2506_v40 = vpack.c.bf16 %v8847_v31, %v8847_v31  ;;  %v7604_v32 = vld [vmem:[%s10072_s18 + $0x8] sm:$0xff]  }
0x175b   :  { %v8852_v43 = vadd.f32 %v2057_v36, %v2056_v38  ;;  %2519 = vrot.lane.b32.xlu1 %v2506_v40, %s8090_s15 }
0x175c   :  { %v2155_v45 = vpop.permute.xlu0 %2154 }
0x175d   :  { %v2278_v14 = vsel %vm631_vm13, %v2276_v34, %v8852_v43  ;;  %v2157_v46 = vmul.f32 %v7792_v44, %v2155_v45 }
0x175e   :  { %v2279_v47 = vpack.c.bf16 %v2278_v14, %v2278_v14  ;;  %v7605_v14 = vld [vmem:[%s10072_s18 + $0x10] sm:$0xff]  }
0x175f   :  { %2159 = vrot.lane.b32.xlu1 %v2157_v46, %s8079_s29  ;;  %v7606_v46 = vld [vmem:[%s10072_s18 + $0x18] sm:$0xff]  }
0x1760   :  { %7040 = vmatmul.mubr.msk.bf16.vlgmr.msra.gmra.mrb[40].mxu0 %vm647_vm1, %v2279_v47 }
0x1761   :  { %7056 = vmatpush3.bf16.msra.mxu0 %v7597_v41  ;;  %7059 = vmatprep.mubr.msk.bf16.mxu0 %vm8087_vm7, %v8086_v33 }
0x1762   :  { %7057 = vmatprep.subr.bf16.mxu0 %v8086_v33 }
0x1763   :  { %2388 = vrot.lane.b32.xlu1 %v8852_v43, %s8090_s15 }
0x1765   :  { %7058 = vmatpush3.bf16.msra.mxu0 %v7598_v12 }
0x1766   :  { %7075 = vmatprep.subr.bf16.mxu0 %v8086_v33 }
0x17cd   :  { %v2520_v56 = vpop.permute.xlu1 %2519 }
0x17ce   :  { %7060 = vmatmul.mubr.msk.bf16.vlgmr.msra.gmra.mrb[44].mxu0 %vm631_vm13, %v2520_v56 }
0x17cf   :  { %7083 = vmatprep.mubr.msk.bf16.mxu0 %vm8087_vm7, %v8086_v33 }
0x17d1   :  { %v2160_v57 = vpop.permute.xlu1 %2159 }
0x17d2   :  { %v2162_v59 = vadd.f32 %v2160_v57, %v2142_v23 }
0x17d4   :  { %7793 = vtanh.f32 %v2162_v59 }
0x17d5   :  { %v2389_v39 = vpop.permute.xlu1 %2388 }
0x17de   :  { %v7794_v53 = vpop.eup %7793 }
0x17df   :  { %2166 = vrot.lane.b32.xlu0 %v7794_v53, %s8090_s15 }
0x1833   :  { %v2356_v61 = vpop.f32.mrb[40].mxu0 }
0x1834   :  { %v2357_v62 = vadd.f32 %v8581_v9, %v2356_v61  ;;  %v7041_v37 = vpop.f32.mrb[41].mxu0 }
0x1835   :  { %v2359_v63 = vpop.f32.mrb[42].mxu0 }
0x1836   :  { %2369 = vrot.lane.b32.xlu1 %v2357_v62, %s8081_s4  ;;  %v7042_v0 = vpop.f32.mrb[43].mxu0  ;;  %v6376_v9 = vmul.f32 -1.442695, %v2357_v62 }
0x1838   :  { %7795 = vpow2.f32 %v6376_v9  ;;  %v7610_v9 = vld [vmem:[%s10074_s20 + $0x8] sm:$0xff]  }
0x1842   :  { %v7796_v7 = vpop.eup %7795 }
0x1843   :  { %v2365_v8 = vadd.f32 1.0, %v7796_v7 }
0x1845   :  { %7797 = vrcp.f32 %v2365_v8 }
0x184f   :  { %v7798_v19 = vpop.eup %7797 }
0x1850   :  { %v2379_v57 = vsub.f32 1.0, %v7798_v19  ;;  %v2385_v53 = vmul.f32 %v7798_v19, %v8852_v43 }
0x1851   :  { %v2167_v2 = vpop.permute.xlu0 %2166 }
0x1852   :  { %v2169_v4 = vmul.f32 %v2167_v2, %v2164_v1 }
0x1854   :  { %v8894_v42 = vadd.f32 %v2170_v3, %v2169_v4  ;;  %v7607_v3 = vld [vmem:[%s10070_s16] sm:$0xff]  }
0x1856   :  { %v2391_v5 = vsel %vm631_vm13, %v2389_v39, %v8894_v42 }
0x1857   :  { %v2392_v6 = vpack.c.bf16 %v2391_v5, %v2391_v5  ;;  %v7608_v5 = vld [vmem:[%s10070_s16 + $0x8] sm:$0xff]  }
0x1859   :  { %7052 = vmatmul.mubr.msk.bf16.vlgmr.msra.gmra.mrb[40].mxu1 %vm647_vm1, %v2392_v6  ;;  %v7609_v6 = vld [vmem:[%s10074_s20] sm:$0xff]  }
0x185a   :  { %7071 = vmatprep.mubr.msk.bf16.mxu1 %vm8087_vm7, %v8086_v33  ;;  %7064 = vmatpush3.bf16.msra.mxu1 %v7603_v30 }
0x185b   :  { %7065 = vmatprep.subr.bf16.mxu1 %v8086_v33  ;;  %7076 = vmatpush3.bf16.msra.mxu0 %v7609_v6  ;;  %v7616_v6 = vld [vmem:[%s10072_s18 + $0x18] sm:$0xff]  }
0x185c   :  { %7077 = vmatprep.subr.bf16.mxu0 %v8086_v33 }
0x185e   :  { %7066 = vmatpush3.bf16.msra.mxu1 %v7604_v32 }
0x185f   :  { %7067 = vmatprep.subr.bf16.mxu1 %v8086_v33  ;;  %7078 = vmatpush3.bf16.msra.mxu0 %v7610_v9 }
0x1860   :  { %7079 = vmatprep.subr.bf16.mxu0 %v8086_v33 }
0x1862   :  { %7068 = vmatpush3.bf16.msra.mxu1 %v7605_v14 }
0x1863   :  { %7069 = vmatprep.subr.bf16.mxu1 %v8086_v33 }
0x1866   :  { %7070 = vmatpush3.bf16.msra.mxu1 %v7606_v46 }
0x1867   :  { %7087 = vmatprep.subr.bf16.mxu1 %v8086_v33 }
0x18a1   :  { %v2570_v11 = vpop.f32.mrb[44].mxu0 }
0x18a2   :  { %v2571_v15 = vadd.f32 %v8904_v10, %v2570_v11  ;;  %v7061_v16 = vpop.f32.mrb[45].mxu0 }
0x18a3   :  { %v2573_v17 = vpop.f32.mrb[46].mxu0  ;;  %v7612_v16 = vld [vmem:[%s10074_s20 + $0x18] sm:$0xff]  }
0x18a4   :  { %2584 = vrot.lane.b32.xlu0 %v2571_v15, %s8079_s29  ;;  %v7062_v18 = vpop.f32.mrb[47].mxu0  ;;  %v2576_v20 = vadd.f32 %v2571_v15, %v8525_v21  ;;  %v7611_v15 = vld [vmem:[%s10074_s20 + $0x10] sm:$0xff]  }
0x18a5   :  { %7080 = vmatpush3.bf16.msra.mxu0 %v7611_v15  ;;  %v8982_v18 = vld [vmem:[%s10073_s19] ss:$0 sm:$0xff] }
0x18a6   :  { %v6388_v22 = vmul.f32 -1.442695, %v2576_v20  ;;  %7081 = vmatprep.subr.bf16.mxu0 %v8086_v33 }
0x18a8   :  { %v2370_v49 = vpop.permute.xlu1 %2369  ;;  %7799 = vpow2.f32 %v6388_v22 }
0x18a9   :  { %v2372_v52 = vmul.f32 %v7798_v19, %v2370_v49  ;;  %7082 = vmatpush3.bf16.msra.mxu0 %v7612_v16  ;;  %v7619_v16 = vld [vmem:[%s10074_s20] sm:$0xff]  }
0x18aa   :  { %7095 = vmatprep.subr.bf16.mxu0 %v8086_v33 }
0x18ab   :  { %2374 = vrot.lane.b32.xlu1 %v2372_v52, %s8079_s29 }
0x18b2   :  { %v7800_v23 = vpop.eup %7799 }
0x18b3   :  { %v2580_v24 = vadd.f32 1.0, %v7800_v23 }
0x18b5   :  { %7801 = vrcp.f32 %v2580_v24 }
0x18bf   :  { %v7802_v25 = vpop.eup %7801 }
0x18c0   :  { %v2594_v13 = vsub.f32 1.0, %v7802_v25  ;;  %v2600_v61 = vmul.f32 %v7802_v25, %v8847_v31 }
0x1916   :  { %v2585_v26 = vpop.permute.xlu0 %2584 }
0x1917   :  { %v2587_v27 = vmul.f32 %v7802_v25, %v2585_v26 }
0x1919   :  { %2589 = vrot.lane.b32.xlu0 %v2587_v27, %s8079_s29 }
0x191d   :  { %v2375_v28 = vpop.permute.xlu1 %2374 }
0x191e   :  { %v2377_v29 = vadd.f32 %v2375_v28, %v2357_v62 }
0x1920   :  { %7803 = vtanh.f32 %v2377_v29 }
0x192a   :  { %v7804_v34 = vpop.eup %7803 }
0x192b   :  { %2381 = vrot.lane.b32.xlu1 %v7804_v34, %s8090_s15 }
0x192c   :  { %v2469_v35 = vpop.f32.mrb[40].mxu1 }
0x192d   :  { %v7053_v36 = vpop.f32.mrb[41].mxu1  ;;  %v2470_v47 = vadd.f32 %v8694_v54, %v2469_v35 }
0x192e   :  { %v2472_v38 = vpop.f32.mrb[42].mxu1 }
0x192f   :  { %v7054_v40 = vpop.f32.mrb[43].mxu1  ;;  %v6383_v12 = vmul.f32 -1.442695, %v2470_v47 }
0x198b   :  { %v2590_v44 = vpop.permute.xlu0 %2589 }
0x198c   :  { %v2592_v45 = vadd.f32 %v2590_v44, %v8525_v21 }
0x198e   :  { %7805 = vtanh.f32 %v2592_v45 }
0x198f   :  { %7807 = vpow2.f32 %v6383_v12 }
0x1998   :  { %v7806_v41 = vpop.eup %7805 }
0x1999   :  { %2596 = vrot.lane.b32.xlu0 %v7806_v41, %s8090_s15  ;;  %v7808_v48 = vpop.eup %7807 }
0x199a   :  { %v2478_v50 = vadd.f32 1.0, %v7808_v48 }
0x199c   :  { %7809 = vrcp.f32 %v2478_v50 }
0x199d   :  { %2603 = vrot.lane.b32.xlu0 %v8847_v31, %s8090_s15  ;;  %v2382_v56 = vpop.permute.xlu1 %2381 }
0x199e   :  { %v2384_v59 = vmul.f32 %v2382_v56, %v2379_v57 }
0x19a0   :  { %v8936_v37 = vadd.f32 %v2385_v53, %v2384_v59 }
0x19a1   :  { %2482 = vrot.lane.b32.xlu0 %v2470_v47, %s8081_s4 }
0x19a6   :  { %v7810_v31 = vpop.eup %7809 }
0x19a7   :  { %v2492_v23 = vsub.f32 1.0, %v7810_v31  ;;  %v2498_v25 = vmul.f32 %v7810_v31, %v8894_v42 }
0x1a0b   :  { %v2597_v60 = vpop.permute.xlu0 %2596 }
0x1a0c   :  { %v2599_v62 = vmul.f32 %v2597_v60, %v2594_v13  ;;  %v7613_v13 = vld [vmem:[%s10072_s18] sm:$0xff]  }
0x1a0e   :  { %v8938_v63 = vadd.f32 %v2600_v61, %v2599_v62 }
0x1a0f   :  { %v2604_v0 = vpop.permute.xlu0 %2603 }
0x1a10   :  { %v2606_v1 = vsel %vm631_vm13, %v2604_v0, %v8936_v37  ;;  %v2834_v2 = vpack.c.bf16 %v8938_v63, %v8938_v63 }
0x1a11   :  { %v2607_v4 = vpack.c.bf16 %v2606_v1, %v2606_v1 }
0x1a12   :  { %2847 = vrot.lane.b32.xlu1 %v2834_v2, %s8090_s15 }
0x1a13   :  { %7072 = vmatmul.mubr.msk.bf16.vlgmr.msra.gmra.mrb[44].mxu1 %vm647_vm1, %v2607_v4  ;;  %v2483_v43 = vpop.permute.xlu0 %2482 }
0x1a14   :  { %v2485_v39 = vmul.f32 %v7810_v31, %v2483_v43  ;;  %7088 = vmatpush3.bf16.msra.mxu1 %v7607_v3  ;;  %7091 = vmatprep.mubr.msk.bf16.mxu1 %vm8087_vm7, %v8086_v33 }
0x1a15   :  { %7089 = vmatprep.subr.bf16.mxu1 %v8086_v33 }
0x1a16   :  { %2487 = vrot.lane.b32.xlu1 %v2485_v39, %s8079_s29 }
0x1a18   :  { %7090 = vmatpush3.bf16.msra.mxu1 %v7608_v5  ;;  %v7615_v5 = vld [vmem:[%s10072_s18 + $0x10] sm:$0xff]  }
0x1a19   :  { %7107 = vmatprep.subr.bf16.mxu1 %v8086_v33 }
0x1a1a   :  { %2716 = vrot.lane.b32.xlu1 %v8936_v37, %s8090_s15 }
0x1a84   :  { %v2848_v7 = vpop.permute.xlu1 %2847 }
0x1a85   :  { %7092 = vmatmul.mubr.msk.bf16.vlgmr.msra.gmra.mrb[48].mxu1 %vm631_vm13, %v2848_v7 }
0x1a86   :  { %7115 = vmatprep.mubr.msk.bf16.mxu1 %vm8087_vm7, %v8086_v33  ;;  %7108 = vmatpush3.bf16.msra.mxu1 %v7619_v16 }
0x1a87   :  { %7109 = vmatprep.subr.bf16.mxu1 %v8086_v33 }
0x1a88   :  { %v2488_v8 = vpop.permute.xlu1 %2487 }
0x1a89   :  { %v2490_v11 = vadd.f32 %v2488_v8, %v2470_v47 }
0x1a8b   :  { %7811 = vtanh.f32 %v2490_v11 }
0x1a8c   :  { %v2717_v28 = vpop.permute.xlu1 %2716 }
0x1a95   :  { %v7812_v17 = vpop.eup %7811 }
0x1a96   :  { %2494 = vrot.lane.b32.xlu0 %v7812_v17, %s8090_s15  ;;  %v7620_v17 = vld [vmem:[%s10074_s20 + $0x8] sm:$0xff]  }
0x1a97   :  { %7110 = vmatpush3.bf16.msra.mxu1 %v7620_v17 }
0x1a98   :  { %7111 = vmatprep.subr.bf16.mxu1 %v8086_v33 }
0x1ae6   :  { %v2684_v19 = vpop.f32.mrb[44].mxu1 }
0x1ae7   :  { %v2685_v49 = vadd.f32 %v8982_v18, %v2684_v19  ;;  %v7073_v52 = vpop.f32.mrb[45].mxu1 }
0x1ae8   :  { %v2687_v20 = vpop.f32.mrb[46].mxu1 }
0x1ae9   :  { %v7074_v22 = vpop.f32.mrb[47].mxu1  ;;  %2697 = vrot.lane.b32.xlu1 %v2685_v49, %s8081_s4  ;;  %v6395_v32 = vmul.f32 -1.442695, %v2685_v49 }
0x1aeb   :  { %7813 = vpow2.f32 %v6395_v32  ;;  %v7617_v32 = vld [vmem:[%s10070_s16] sm:$0xff]  }
0x1af5   :  { %v7814_v34 = vpop.eup %7813 }
0x1af6   :  { %v2693_v35 = vadd.f32 1.0, %v7814_v34 }
0x1af8   :  { %7815 = vrcp.f32 %v2693_v35 }
0x1b02   :  { %v8995_v45 = vpop.eup %7815 }
0x1b08   :  { %v2495_v24 = vpop.permute.xlu0 %2494 }
0x1b09   :  { %v2497_v26 = vmul.f32 %v2495_v24, %v2492_v23  ;;  %v2707_v23 = vsub.f32 1.0, %v8995_v45 }
0x1b0b   :  { %v8987_v27 = vadd.f32 %v2498_v25, %v2497_v26  ;;  %v2713_v25 = vmul.f32 %v8995_v45, %v8936_v37 }
0x1b0d   :  { %v2719_v29 = vsel %vm631_vm13, %v2717_v28, %v8987_v27 }
0x1b0e   :  { %v2720_v30 = vpack.c.bf16 %v2719_v29, %v2719_v29 }
0x1b10   :  { %7084 = vmatmul.mubr.msk.bf16.vlgmr.msra.gmra.mrb[48].mxu0 %vm647_vm1, %v2720_v30 }
0x1b11   :  { %7103 = vmatprep.mubr.msk.bf16.mxu0 %vm8087_vm7, %v8086_v33  ;;  %7096 = vmatpush3.bf16.msra.mxu0 %v7613_v13 }
0x1b12   :  { %7097 = vmatprep.subr.bf16.mxu0 %v8086_v33 }
0x1b58   :  { %v2898_v36 = vpop.f32.mrb[48].mxu1 }
0x1b59   :  { %v2899_v38 = vadd.f32 %v8904_v10, %v2898_v36  ;;  %v7093_v40 = vpop.f32.mrb[49].mxu1  ;;  %v7618_v36 = vld [vmem:[%s10070_s16 + $0x8] sm:$0xff]  }
0x1b5a   :  { %v2901_v44 = vpop.f32.mrb[50].mxu1  ;;  %v7622_v40 = vld [vmem:[%s10074_s20 + $0x18] sm:$0xff]  }
0x1b5b   :  { %v7094_v14 = vpop.f32.mrb[51].mxu1  ;;  %2912 = vrot.lane.b32.xlu0 %v2899_v38, %s8079_s29  ;;  %v2698_v46 = vpop.permute.xlu1 %2697  ;;  %v2904_v47 = vadd.f32 %v2899_v38, %v8525_v21  ;;  %v7621_v38 = vld [vmem:[%s10074_s20 + $0x10] sm:$0xff]  }
0x1b5c   :  { %v2700_v41 = vmul.f32 %v8995_v45, %v2698_v46  ;;  %7112 = vmatpush3.bf16.msra.mxu1 %v7621_v38  ;;  %v7625_v38 = vld [vmem:[%s10072_s18 + $0x10] sm:$0xff]  }
0x1b5d   :  { %v6407_v12 = vmul.f32 -1.442695, %v2904_v47  ;;  %7113 = vmatprep.subr.bf16.mxu1 %v8086_v33 }
0x1b5e   :  { %2702 = vrot.lane.b32.xlu1 %v2700_v41, %s8079_s29 }
0x1b5f   :  { %7817 = vpow2.f32 %v6407_v12 }
0x1b60   :  { %7114 = vmatpush3.bf16.msra.mxu1 %v7622_v40  ;;  %v7626_v40 = vld [vmem:[%s10072_s18 + $0x18] sm:$0xff]  }
0x1b61   :  { %7127 = vmatprep.subr.bf16.mxu1 %v8086_v33 }
0x1b69   :  { %v7818_v48 = vpop.eup %7817 }
0x1b6a   :  { %v2908_v50 = vadd.f32 1.0, %v7818_v48 }
0x1b6c   :  { %7819 = vrcp.f32 %v2908_v50 }
0x1b76   :  { %v7820_v56 = vpop.eup %7819 }
0x1b77   :  { %v2922_v19 = vsub.f32 1.0, %v7820_v56  ;;  %v2928_v52 = vmul.f32 %v7820_v56, %v8938_v63 }
0x1bcd   :  { %v2913_v57 = vpop.permute.xlu0 %2912 }
0x1bce   :  { %v2915_v59 = vmul.f32 %v7820_v56, %v2913_v57 }
0x1bd0   :  { %2917 = vrot.lane.b32.xlu0 %v2915_v59, %s8079_s29  ;;  %v2703_v2 = vpop.permute.xlu1 %2702 }
0x1bd1   :  { %v2705_v31 = vadd.f32 %v2703_v2, %v2685_v49 }
0x1be3   :  { %v2797_v60 = vpop.f32.mrb[48].mxu0 }
0x1be4   :  { %v2798_v53 = vadd.f32 %v8694_v54, %v2797_v60  ;;  %v7085_v61 = vpop.f32.mrb[49].mxu0  ;;  %v7614_v54 = vld [vmem:[%s10072_s18 + $0x8] sm:$0xff]  }
0x1be5   :  { %v2800_v62 = vpop.f32.mrb[50].mxu0  ;;  %7098 = vmatpush3.bf16.msra.mxu0 %v7614_v54 }
0x1be6   :  { %2810 = vrot.lane.b32.xlu1 %v2798_v53, %s8081_s4  ;;  %v7086_v0 = vpop.f32.mrb[51].mxu0  ;;  %v6402_v1 = vmul.f32 -1.442695, %v2798_v53  ;;  %7099 = vmatprep.subr.bf16.mxu0 %v8086_v33 }
0x1be8   :  { %7821 = vpow2.f32 %v6402_v1 }
0x1be9   :  { %7100 = vmatpush3.bf16.msra.mxu0 %v7615_v5 }
0x1bea   :  { %2931 = vrot.lane.b32.xlu1 %v8938_v63, %s8090_s15  ;;  %7101 = vmatprep.subr.bf16.mxu0 %v8086_v33 }
0x1bed   :  { %7102 = vmatpush3.bf16.msra.mxu0 %v7616_v6 }
0x1bee   :  { %7119 = vmatprep.subr.bf16.mxu0 %v8086_v33 }
0x1bf2   :  { %v7822_v43 = vpop.eup %7821 }
0x1bf3   :  { %v2806_v39 = vadd.f32 1.0, %v7822_v43 }
0x1c42   :  { %v2918_v3 = vpop.permute.xlu0 %2917 }
0x1c43   :  { %v2920_v4 = vadd.f32 %v2918_v3, %v8525_v21  ;;  %v9087_v3 = vld [vmem:[%s10075_s21] ss:$0 sm:$0xff] }
0x1c45   :  { %7823 = vtanh.f32 %v2920_v4 }
0x1c46   :  { %7825 = vtanh.f32 %v2705_v31 }
0x1c47   :  { %7827 = vrcp.f32 %v2806_v39 }
0x1c4f   :  { %v7824_v9 = vpop.eup %7823 }
0x1c50   :  { %2924 = vrot.lane.b32.xlu0 %v7824_v9, %s8090_s15  ;;  %v7826_v7 = vpop.eup %7825 }
0x1c51   :  { %v7828_v8 = vpop.eup %7827 }
0x1c52   :  { %v2820_v14 = vsub.f32 1.0, %v7828_v8  ;;  %v2826_v41 = vmul.f32 %v7828_v8, %v8987_v27 }
0x1c54   :  { %2709 = vrot.lane.b32.xlu0 %v7826_v7, %s8090_s15 }
0x1c58   :  { %v2811_v11 = vpop.permute.xlu1 %2810 }
0x1c59   :  { %v2813_v15 = vmul.f32 %v7828_v8, %v2811_v11 }
0x1c5b   :  { %2815 = vrot.lane.b32.xlu1 %v2813_v15, %s8079_s29 }
0x1c5c   :  { %v2932_v29 = vpop.permute.xlu1 %2931 }
0x1cc2   :  { %v2925_v49 = vpop.permute.xlu0 %2924 }
0x1cc3   :  { %v2927_v20 = vmul.f32 %v2925_v49, %v2922_v19 }
0x1cc5   :  { %v9035_v22 = vadd.f32 %v2928_v52, %v2927_v20 }
0x1cc6   :  { %v2710_v24 = vpop.permute.xlu0 %2709 }
0x1cc7   :  { %v2712_v26 = vmul.f32 %v2710_v24, %v2707_v23  ;;  %v3162_v28 = vpack.c.bf16 %v9035_v22, %v9035_v22 }
0x1cc9   :  { %v9042_v30 = vadd.f32 %v2713_v25, %v2712_v26  ;;  %3175 = vrot.lane.b32.xlu0 %v3162_v28, %s8090_s15 }
0x1ccb   :  { %v2934_v63 = vsel %vm631_vm13, %v2932_v29, %v9042_v30  ;;  %3044 = vrot.lane.b32.xlu1 %v9042_v30, %s8090_s15 }
0x1ccc   :  { %v2935_v37 = vpack.c.bf16 %v2934_v63, %v2934_v63  ;;  %v7623_v63 = vld [vmem:[%s10072_s18] sm:$0xff]  }
0x1ccd   :  { %v2816_v34 = vpop.permute.xlu1 %2815 }
0x1cce   :  { %v2818_v35 = vadd.f32 %v2816_v34, %v2798_v53  ;;  %7104 = vmatmul.mubr.msk.bf16.vlgmr.msra.gmra.mrb[52].mxu0 %vm647_vm1, %v2935_v37  ;;  %v7624_v34 = vld [vmem:[%s10072_s18 + $0x8] sm:$0xff]  }
0x1ccf   :  { %7120 = vmatpush3.bf16.msra.mxu0 %v7617_v32  ;;  %7123 = vmatprep.mubr.msk.bf16.mxu0 %vm8087_vm7, %v8086_v33 }
0x1cd0   :  { %7829 = vtanh.f32 %v2818_v35  ;;  %7121 = vmatprep.subr.bf16.mxu0 %v8086_v33 }
0x1cd3   :  { %7122 = vmatpush3.bf16.msra.mxu0 %v7618_v36 }
0x1cd4   :  { %7139 = vmatprep.subr.bf16.mxu0 %v8086_v33 }
0x1cda   :  { %v7830_v44 = vpop.eup %7829 }
0x1cdb   :  { %2822 = vrot.lane.b32.xlu0 %v7830_v44, %s8090_s15 }
0x1d3b   :  { %v3176_v45 = vpop.permute.xlu0 %3175 }
0x1d3c   :  { %7124 = vmatmul.mubr.msk.bf16.vlgmr.msra.gmra.mrb[56].mxu0 %vm631_vm13, %v3176_v45 }
0x1d3d   :  { %7147 = vmatprep.mubr.msk.bf16.mxu0 %vm8087_vm7, %v8086_v33  ;;  %v3045_v48 = vpop.permute.xlu1 %3044 }
0x1d4d   :  { %v2823_v46 = vpop.permute.xlu0 %2822 }
0x1d4e   :  { %v2825_v47 = vmul.f32 %v2823_v46, %v2820_v14 }
0x1d50   :  { %v9073_v12 = vadd.f32 %v2826_v41, %v2825_v47  ;;  %v7627_v41 = vld [vmem:[%s10074_s20] sm:$0xff]   ;;  %v7629_v47 = vld [vmem:[%s10074_s20 + $0x8] sm:$0xff]  }
0x1d51   :  { %7140 = vmatpush3.bf16.msra.mxu0 %v7627_v41 }
0x1d52   :  { %v3047_v50 = vsel %vm631_vm13, %v3045_v48, %v9073_v12  ;;  %7141 = vmatprep.subr.bf16.mxu0 %v8086_v33 }
0x1d53   :  { %v3048_v56 = vpack.c.bf16 %v3047_v50, %v3047_v50  ;;  %v7631_v50 = vld [vmem:[%s10074_s20 + $0x10] sm:$0xff]  }
0x1d55   :  { %7116 = vmatmul.mubr.msk.bf16.vlgmr.msra.gmra.mrb[52].mxu1 %vm647_vm1, %v3048_v56  ;;  %7142 = vmatpush3.bf16.msra.mxu0 %v7629_v47 }
0x1d56   :  { %7135 = vmatprep.mubr.msk.bf16.mxu1 %vm8087_vm7, %v8086_v33  ;;  %7128 = vmatpush3.bf16.msra.mxu1 %v7623_v63 }
0x1d57   :  { %7129 = vmatprep.subr.bf16.mxu1 %v8086_v33  ;;  %7143 = vmatprep.subr.bf16.mxu0 %v8086_v33 }
0x1d59   :  { %7144 = vmatpush3.bf16.msra.mxu0 %v7631_v50 }
0x1d5a   :  { %7130 = vmatpush3.bf16.msra.mxu1 %v7624_v34  ;;  %7145 = vmatprep.subr.bf16.mxu0 %v8086_v33 }
0x1d5b   :  { %7131 = vmatprep.subr.bf16.mxu1 %v8086_v33 }
0x1d5e   :  { %7132 = vmatpush3.bf16.msra.mxu1 %v7625_v38 }
0x1d5f   :  { %7133 = vmatprep.subr.bf16.mxu1 %v8086_v33 }
0x1d62   :  { %7134 = vmatpush3.bf16.msra.mxu1 %v7626_v40 }
0x1d63   :  { %7151 = vmatprep.subr.bf16.mxu1 %v8086_v33 }
0x1da1   :  { %v3012_v57 = vpop.f32.mrb[52].mxu0 }
0x1da2   :  { %v3013_v59 = vadd.f32 %v8982_v18, %v3012_v57  ;;  %v7105_v13 = vpop.f32.mrb[53].mxu0  ;;  %v7632_v57 = vld [vmem:[%s10074_s20 + $0x18] sm:$0xff]  }
0x1da3   :  { %v3015_v60 = vpop.f32.mrb[54].mxu0  ;;  %7146 = vmatpush3.bf16.msra.mxu0 %v7632_v57 }
0x1da4   :  { %3025 = vrot.lane.b32.xlu1 %v3013_v59, %s8081_s4  ;;  %v7106_v53 = vpop.f32.mrb[55].mxu0  ;;  %v6414_v9 = vmul.f32 -1.442695, %v3013_v59  ;;  %7159 = vmatprep.subr.bf16.mxu0 %v8086_v33 }
0x1e0f   :  { %v3226_v61 = vpop.f32.mrb[56].mxu0 }
0x1e10   :  { %v3227_v62 = vadd.f32 %v8904_v10, %v3226_v61  ;;  %v7125_v0 = vpop.f32.mrb[57].mxu0 }
0x1e11   :  { %v3229_v1 = vpop.f32.mrb[58].mxu0 }
0x1e12   :  { %3240 = vrot.lane.b32.xlu0 %v3227_v62, %s8079_s29  ;;  %v7126_v2 = vpop.f32.mrb[59].mxu0  ;;  %v3232_v5 = vadd.f32 %v3227_v62, %v8525_v21 }
0x1e14   :  { %v6426_v6 = vmul.f32 -1.442695, %v3232_v5 }
0x1e16   :  { %7831 = vpow2.f32 %v6426_v6  ;;  %v3026_v52 = vpop.permute.xlu1 %3025 }
0x1e17   :  { %7833 = vpow2.f32 %v6414_v9 }
0x1e20   :  { %v7832_v7 = vpop.eup %7831 }
0x1e21   :  { %v3236_v8 = vadd.f32 1.0, %v7832_v7  ;;  %v7834_v11 = vpop.eup %7833 }
0x1e22   :  { %v3021_v15 = vadd.f32 1.0, %v7834_v11 }
0x1e23   :  { %7835 = vrcp.f32 %v3236_v8 }
0x1e24   :  { %7837 = vrcp.f32 %v3021_v15 }
0x1e28   :  { %v3125_v4 = vpop.f32.mrb[52].mxu1 }
0x1e29   :  { %v3126_v31 = vadd.f32 %v9087_v3, %v3125_v4  ;;  %v7117_v54 = vpop.f32.mrb[53].mxu1 }
0x1e2a   :  { %v3128_v43 = vpop.f32.mrb[54].mxu1  ;;  %v7628_v54 = vld [vmem:[%s10070_s16] sm:$0xff]  }
0x1e2b   :  { %v7118_v39 = vpop.f32.mrb[55].mxu1  ;;  %3138 = vrot.lane.b32.xlu1 %v3126_v31, %s8081_s4  ;;  %v6421_v16 = vmul.f32 -1.442695, %v3126_v31 }
0x1e2d   :  { %7839 = vpow2.f32 %v6421_v16  ;;  %v7836_v17 = vpop.eup %7835 }
0x1e2e   :  { %v7838_v20 = vpop.eup %7837  ;;  %v3250_v56 = vsub.f32 1.0, %v7836_v17  ;;  %v3256_v13 = vmul.f32 %v7836_v17, %v9035_v22 }
0x1e2f   :  { %v3028_v23 = vmul.f32 %v7838_v20, %v3026_v52  ;;  %v3035_v61 = vsub.f32 1.0, %v7838_v20  ;;  %v3041_v0 = vmul.f32 %v7838_v20, %v9042_v30  ;;  %v7630_v30 = vld [vmem:[%s10070_s16 + $0x8] sm:$0xff]  }
0x1e37   :  { %v7840_v24 = vpop.eup %7839 }
0x1e38   :  { %v3134_v25 = vadd.f32 1.0, %v7840_v24 }
0x1e3a   :  { %7841 = vrcp.f32 %v3134_v25 }
0x1e44   :  { %v9094_v26 = vpop.eup %7841 }
0x1e45   :  { %v3148_v5 = vsub.f32 1.0, %v9094_v26  ;;  %v3154_v7 = vmul.f32 %v9094_v26, %v9073_v12 }
0x1e84   :  { %v3241_v19 = vpop.permute.xlu0 %3240 }
0x1e85   :  { %v3243_v49 = vmul.f32 %v7836_v17, %v3241_v19 }
0x1e87   :  { %3245 = vrot.lane.b32.xlu0 %v3243_v49, %s8079_s29 }
0x1e8b   :  { %3030 = vrot.lane.b32.xlu0 %v3028_v23, %s8079_s29 }
0x1e9d   :  { %v3139_v28 = vpop.permute.xlu1 %3138 }
0x1e9e   :  { %v3141_v29 = vmul.f32 %v9094_v26, %v3139_v28 }
0x1ea0   :  { %3143 = vrot.lane.b32.xlu0 %v3141_v29, %s8079_s29 }
0x1ea4   :  { %3259 = vrot.lane.b32.xlu0 %v9035_v22, %s8090_s15 }
0x1ef9   :  { %v3246_v32 = vpop.permute.xlu0 %3245 }
0x1efa   :  { %v3248_v37 = vadd.f32 %v3246_v32, %v8525_v21 }
0x1efc   :  { %7843 = vtanh.f32 %v3248_v37 }
0x1efd   :  { %v3031_v35 = vpop.permute.xlu0 %3030 }
0x1efe   :  { %v3033_v36 = vadd.f32 %v3031_v35, %v3013_v59 }
0x1f00   :  { %7845 = vtanh.f32 %v3033_v36 }
0x1f06   :  { %v7844_v44 = vpop.eup %7843 }
0x1f07   :  { %3252 = vrot.lane.b32.xlu1 %v7844_v44, %s8090_s15 }
0x1f0a   :  { %v7846_v45 = vpop.eup %7845 }
0x1f0b   :  { %3037 = vrot.lane.b32.xlu1 %v7846_v45, %s8090_s15 }
0x1f12   :  { %v3144_v14 = vpop.permute.xlu0 %3143 }
0x1f13   :  { %v3146_v46 = vadd.f32 %v3144_v14, %v3126_v31 }
0x1f15   :  { %7847 = vtanh.f32 %v3146_v46 }
0x1f16   :  { %v3260_v31 = vpop.permute.xlu0 %3259 }
0x1f1f   :  { %v7848_v48 = vpop.eup %7847 }
0x1f20   :  { %3150 = vrot.lane.b32.xlu0 %v7848_v48, %s8090_s15 }
0x1f79   :  { %v3253_v59 = vpop.permute.xlu1 %3252 }
0x1f7a   :  { %v3255_v60 = vmul.f32 %v3253_v59, %v3250_v56  ;;  %v7633_v56 = vld [vmem:[%s10072_s18] sm:$0xff]  }
0x1f7c   :  { %v9137_v53 = vadd.f32 %v3256_v13, %v3255_v60  ;;  %v7634_v60 = vld [vmem:[%s10072_s18 + $0x8] sm:$0xff]  }
0x1f7d   :  { %v3038_v62 = vpop.permute.xlu1 %3037 }
0x1f7e   :  { %v3040_v1 = vmul.f32 %v3038_v62, %v3035_v61  ;;  %v3490_v2 = vpack.c.bf16 %v9137_v53, %v9137_v53 }
0x1f80   :  { %v9142_v4 = vadd.f32 %v3041_v0, %v3040_v1  ;;  %3503 = vrot.lane.b32.xlu1 %v3490_v2, %s8090_s15 }
0x1f82   :  { %v3262_v22 = vsel %vm631_vm13, %v3260_v31, %v9142_v4  ;;  %v7635_v31 = vld [vmem:[%s10072_s18 + $0x10] sm:$0xff]  }
0x1f83   :  { %v3263_v43 = vpack.c.bf16 %v3262_v22, %v3262_v22  ;;  %v7636_v22 = vld [vmem:[%s10072_s18 + $0x18] sm:$0xff]  }
0x1f84   :  { %3372 = vrot.lane.b32.xlu1 %v9142_v4, %s8090_s15 }
0x1f85   :  { %7136 = vmatmul.mubr.msk.bf16.vlgmr.msra.gmra.mrb[56].mxu1 %vm647_vm1, %v3263_v43 }
0x1f86   :  { %7152 = vmatpush3.bf16.msra.mxu1 %v7628_v54  ;;  %7155 = vmatprep.mubr.msk.bf16.mxu1 %vm8087_vm7, %v8086_v33  ;;  %v7637_v54 = vld [vmem:[%s10074_s20] sm:$0xff]  }
0x1f87   :  { %7153 = vmatprep.subr.bf16.mxu1 %v8086_v33 }
0x1f8a   :  { %7154 = vmatpush3.bf16.msra.mxu1 %v7630_v30 }
0x1f8b   :  { %7171 = vmatprep.subr.bf16.mxu1 %v8086_v33 }
0x1f92   :  { %v3151_v39 = vpop.permute.xlu0 %3150 }
0x1f93   :  { %v3153_v6 = vmul.f32 %v3151_v39, %v3148_v5  ;;  %v7638_v5 = vld [vmem:[%s10074_s20 + $0x8] sm:$0xff]  }
0x1f95   :  { %v9166_v8 = vadd.f32 %v3154_v7, %v3153_v6  ;;  %v7639_v7 = vld [vmem:[%s10074_s20 + $0x10] sm:$0xff]  }
0x1ff2   :  { %v3504_v9 = vpop.permute.xlu1 %3503 }
0x1ff3   :  { %7156 = vmatmul.mubr.msk.bf16.vlgmr.msra.gmra.mrb[60].mxu1 %vm631_vm13, %v3504_v9 }
0x1ff4   :  { %7179 = vmatprep.mubr.msk.bf16.mxu1 %vm8087_vm7, %v8086_v33  ;;  %7172 = vmatpush3.bf16.msra.mxu1 %v7637_v54 }
0x1ff5   :  { %7173 = vmatprep.subr.bf16.mxu1 %v8086_v33 }
0x1ff6   :  { %v3373_v11 = vpop.permute.xlu1 %3372 }
0x1ff7   :  { %v3375_v15 = vsel %vm631_vm13, %v3373_v11, %v9166_v8 }
0x1ff8   :  { %v3376_v16 = vpack.c.bf16 %v3375_v15, %v3375_v15  ;;  %7174 = vmatpush3.bf16.msra.mxu1 %v7638_v5  ;;  %v7640_v15 = vld [vmem:[%s10074_s20 + $0x18] sm:$0xff]  }
0x1ff9   :  { %7175 = vmatprep.subr.bf16.mxu1 %v8086_v33 }
0x1ffa   :  { %7148 = vmatmul.mubr.msk.bf16.vlgmr.msra.gmra.mrb[60].mxu0 %vm647_vm1, %v3376_v16 }
0x1ffb   :  { %7167 = vmatprep.mubr.msk.bf16.mxu0 %vm8087_vm7, %v8086_v33  ;;  %7160 = vmatpush3.bf16.msra.mxu0 %v7633_v56 }
0x1ffc   :  { %7161 = vmatprep.subr.bf16.mxu0 %v8086_v33  ;;  %7176 = vmatpush3.bf16.msra.mxu1 %v7639_v7 }
0x1ffd   :  { %7177 = vmatprep.subr.bf16.mxu1 %v8086_v33 }
0x1fff   :  { %7162 = vmatpush3.bf16.msra.mxu0 %v7634_v60 }
0x2000   :  { %7163 = vmatprep.subr.bf16.mxu0 %v8086_v33  ;;  %7178 = vmatpush3.bf16.msra.mxu1 %v7640_v15 }
0x2001   :  { %7191 = vmatprep.subr.bf16.mxu1 %v8086_v33 }
0x2003   :  { %7164 = vmatpush3.bf16.msra.mxu0 %v7635_v31 }
0x2004   :  { %7165 = vmatprep.subr.bf16.mxu0 %v8086_v33 }
0x2007   :  { %7166 = vmatpush3.bf16.msra.mxu0 %v7636_v22 }
0x2008   :  { %7183 = vmatprep.subr.bf16.mxu0 %v8086_v33 }
0x2058   :  { %v3340_v17 = vpop.f32.mrb[56].mxu1 }
0x2059   :  { %v3341_v19 = vadd.f32 %v8982_v18, %v3340_v17  ;;  %v7137_v49 = vpop.f32.mrb[57].mxu1 }
0x205a   :  { %v3343_v52 = vpop.f32.mrb[58].mxu1 }
0x205b   :  { %3353 = vrot.lane.b32.xlu0 %v3341_v19, %s8081_s4  ;;  %v7138_v20 = vpop.f32.mrb[59].mxu1  ;;  %v6433_v23 = vmul.f32 -1.442695, %v3341_v19 }
0x205d   :  { %7849 = vpow2.f32 %v6433_v23 }
0x2067   :  { %v7850_v24 = vpop.eup %7849 }
0x2068   :  { %v3349_v25 = vadd.f32 1.0, %v7850_v24 }
0x206a   :  { %7851 = vrcp.f32 %v3349_v25 }
0x2074   :  { %v9177_v37 = vpop.eup %7851 }
0x2075   :  { %v3363_v16 = vsub.f32 1.0, %v9177_v37 }
0x20c6   :  { %v3554_v26 = vpop.f32.mrb[60].mxu1 }
0x20c7   :  { %v3555_v28 = vadd.f32 %v8904_v10, %v3554_v26  ;;  %v7157_v29 = vpop.f32.mrb[61].mxu1  ;;  %v7642_v26 = vld [vmem:[%s10070_s16 + $0x8] sm:$0xff]  }
0x20c8   :  { %v3557_v63 = vpop.f32.mrb[62].mxu1 }
0x20c9   :  { %3568 = vrot.lane.b32.xlu1 %v3555_v28, %s8079_s29  ;;  %v7158_v32 = vpop.f32.mrb[63].mxu1  ;;  %v3560_v45 = vadd.f32 %v3555_v28, %v8525_v21 }
0x20cb   :  { %v6445_v14 = vmul.f32 -1.442695, %v3560_v45 }
0x20cd   :  { %v3354_v34 = vpop.permute.xlu0 %3353  ;;  %v3453_v35 = vpop.f32.mrb[60].mxu0  ;;  %7853 = vpow2.f32 %v6445_v14 }
0x20ce   :  { %v3356_v36 = vmul.f32 %v9177_v37, %v3354_v34  ;;  %v3454_v38 = vadd.f32 %v9087_v3, %v3453_v35  ;;  %v7149_v40 = vpop.f32.mrb[61].mxu0 }
0x20cf   :  { %v3456_v44 = vpop.f32.mrb[62].mxu0 }
0x20d0   :  { %3358 = vrot.lane.b32.xlu1 %v3356_v36, %s8079_s29  ;;  %3466 = vrot.lane.b32.xlu0 %v3454_v38, %s8081_s4  ;;  %v7150_v10 = vpop.f32.mrb[63].mxu0  ;;  %v6440_v46 = vmul.f32 -1.442695, %v3454_v38 }
0x20d2   :  { %7855 = vpow2.f32 %v6440_v46 }
0x20d7   :  { %v7854_v41 = vpop.eup %7853 }
0x20d8   :  { %v3564_v47 = vadd.f32 1.0, %v7854_v41 }
0x20da   :  { %7857 = vrcp.f32 %v3564_v47 }
0x20dc   :  { %v7856_v48 = vpop.eup %7855 }
0x20dd   :  { %v3462_v50 = vadd.f32 1.0, %v7856_v48 }
0x20df   :  { %7859 = vrcp.f32 %v3462_v50 }
0x20e4   :  { %v9187_v57 = vpop.eup %7857 }
0x20e5   :  { %v3578_v28 = vsub.f32 1.0, %v9187_v57  ;;  %v3584_v63 = vmul.f32 %v9187_v57, %v9137_v53 }
0x20e9   :  { %v9196_v61 = vpop.eup %7859 }
0x20ea   :  { %v3476_v35 = vsub.f32 1.0, %v9196_v61 }
0x213b   :  { %v3569_v59 = vpop.permute.xlu1 %3568 }
0x213c   :  { %v3571_v13 = vmul.f32 %v9187_v57, %v3569_v59 }
0x213e   :  { %3573 = vrot.lane.b32.xlu0 %v3571_v13, %s8079_s29 }
0x2142   :  { %v3359_v62 = vpop.permute.xlu1 %3358  ;;  %v3467_v0 = vpop.permute.xlu0 %3466 }
0x2143   :  { %v3361_v1 = vadd.f32 %v3359_v62, %v3341_v19  ;;  %v3469_v2 = vmul.f32 %v9196_v61, %v3467_v0  ;;  %v3369_v19 = vmul.f32 %v9177_v37, %v9142_v4  ;;  %v7641_v4 = vld [vmem:[%s10070_s16] sm:$0xff]  }
0x2145   :  { %7861 = vtanh.f32 %v3361_v1  ;;  %3471 = vrot.lane.b32.xlu1 %v3469_v2, %s8079_s29 }
0x2149   :  { %3587 = vrot.lane.b32.xlu1 %v9137_v53, %s8090_s15 }
0x214f   :  { %v7862_v43 = vpop.eup %7861 }
0x2150   :  { %3365 = vrot.lane.b32.xlu0 %v7862_v43, %s8090_s15  ;;  %v9282_v43 = vld [vmem:[%s10071_s17] ss:$0 sm:$0xff] }
0x21b0   :  { %v3574_v30 = vpop.permute.xlu0 %3573 }
0x21b1   :  { %v3576_v39 = vadd.f32 %v3574_v30, %v8525_v21 }
0x21b3   :  { %7863 = vtanh.f32 %v3576_v39 }
0x21b7   :  { %v3472_v6 = vpop.permute.xlu1 %3471 }
0x21b8   :  { %v3474_v9 = vadd.f32 %v3472_v6, %v3454_v38  ;;  %v3482_v38 = vmul.f32 %v9196_v61, %v9166_v8 }
0x21ba   :  { %7865 = vtanh.f32 %v3474_v9 }
0x21bb   :  { %v3588_v23 = vpop.permute.xlu1 %3587 }
0x21bd   :  { %v7864_v11 = vpop.eup %7863 }
0x21be   :  { %3580 = vrot.lane.b32.xlu0 %v7864_v11, %s8090_s15 }
0x21c2   :  { %v3366_v17 = vpop.permute.xlu0 %3365 }
0x21c3   :  { %v3368_v49 = vmul.f32 %v3366_v17, %v3363_v16 }
0x21c4   :  { %v7866_v52 = vpop.eup %7865 }
0x21c5   :  { %v9232_v20 = vadd.f32 %v3369_v19, %v3368_v49  ;;  %3478 = vrot.lane.b32.xlu1 %v7866_v52, %s8090_s15  ;;  %v7643_v19 = vld [vmem:[%s10072_s18] sm:$0xff]   ;;  %v7644_v49 = vld [vmem:[%s10072_s18 + $0x8] sm:$0xff]  }
0x21c7   :  { %v3590_v24 = vsel %vm631_vm13, %v3588_v23, %v9232_v20  ;;  %3700 = vrot.lane.b32.xlu0 %v9232_v20, %s8090_s15 }
0x21c8   :  { %v3591_v25 = vpack.c.bf16 %v3590_v24, %v3590_v24 }
0x21ca   :  { %7168 = vmatmul.mubr.msk.bf16.vlgmr.msra.gmra.mrb[64].mxu0 %vm647_vm1, %v3591_v25 }
0x21cb   :  { %7187 = vmatprep.mubr.msk.bf16.mxu0 %vm8087_vm7, %v8086_v33  ;;  %7184 = vmatpush3.bf16.msra.mxu0 %v7641_v4 }
0x21cc   :  { %7185 = vmatprep.subr.bf16.mxu0 %v8086_v33 }
0x21cf   :  { %7186 = vmatpush3.bf16.msra.mxu0 %v7642_v26  ;;  %v7645_v26 = vld [vmem:[%s10072_s18 + $0x10] sm:$0xff]  }
0x21d0   :  { %7203 = vmatprep.subr.bf16.mxu0 %v8086_v33 }
0x2230   :  { %v3581_v29 = vpop.permute.xlu0 %3580 }
0x2231   :  { %v3583_v32 = vmul.f32 %v3581_v29, %v3578_v28  ;;  %v7646_v28 = vld [vmem:[%s10072_s18 + $0x18] sm:$0xff]   ;;  %v7647_v29 = vld [vmem:[%s10074_s20] sm:$0xff]  }
0x2233   :  { %v9253_v37 = vadd.f32 %v3584_v63, %v3583_v32 }
0x2235   :  { %v3818_v34 = vpack.c.bf16 %v9253_v37, %v9253_v37 }
0x2237   :  { %3831 = vrot.lane.b32.xlu1 %v3818_v34, %s8090_s15  ;;  %v3479_v36 = vpop.permute.xlu1 %3478 }
0x2238   :  { %v3481_v40 = vmul.f32 %v3479_v36, %v3476_v35  ;;  %v7648_v35 = vld [vmem:[%s10074_s20 + $0x8] sm:$0xff]  }
0x2239   :  { %v3701_v10 = vpop.permute.xlu0 %3700 }
0x223a   :  { %v9261_v44 = vadd.f32 %v3482_v38, %v3481_v40  ;;  %v7649_v40 = vld [vmem:[%s10074_s20 + $0x10] sm:$0xff]  }
0x223c   :  { %v3703_v53 = vsel %vm631_vm13, %v3701_v10, %v9261_v44  ;;  %v7650_v10 = vld [vmem:[%s10074_s20 + $0x18] sm:$0xff]  }
0x223d   :  { %v3704_v45 = vpack.c.bf16 %v3703_v53, %v3703_v53 }
0x223f   :  { %7180 = vmatmul.mubr.msk.bf16.vlgmr.msra.gmra.mrb[64].mxu1 %vm647_vm1, %v3704_v45 }
0x2240   :  { %7199 = vmatprep.mubr.msk.bf16.mxu1 %vm8087_vm7, %v8086_v33  ;;  %7192 = vmatpush3.bf16.msra.mxu1 %v7643_v19 }
0x2241   :  { %7193 = vmatprep.subr.bf16.mxu1 %v8086_v33 }
0x2244   :  { %7194 = vmatpush3.bf16.msra.mxu1 %v7644_v49 }
0x2245   :  { %7195 = vmatprep.subr.bf16.mxu1 %v8086_v33 }
0x2248   :  { %7196 = vmatpush3.bf16.msra.mxu1 %v7645_v26 }
0x2249   :  { %7197 = vmatprep.subr.bf16.mxu1 %v8086_v33 }
0x224c   :  { %7198 = vmatpush3.bf16.msra.mxu1 %v7646_v28 }
0x224d   :  { %7215 = vmatprep.subr.bf16.mxu1 %v8086_v33 }
0x229d   :  { %v3668_v14 = vpop.f32.mrb[64].mxu0 }
0x229e   :  { %v3669_v46 = vadd.f32 %v8982_v18, %v3668_v14  ;;  %v7169_v41 = vpop.f32.mrb[65].mxu0 }
0x229f   :  { %v3671_v47 = vpop.f32.mrb[66].mxu0 }
0x22a0   :  { %3681 = vrot.lane.b32.xlu0 %v3669_v46, %s8081_s4  ;;  %v7170_v48 = vpop.f32.mrb[67].mxu0  ;;  %v6452_v56 = vmul.f32 -1.442695, %v3669_v46 }
0x22a2   :  { %7867 = vpow2.f32 %v6452_v56 }
0x22a9   :  { %v3832_v50 = vpop.permute.xlu1 %3831 }
0x22aa   :  { %7188 = vmatmul.mubr.msk.bf16.vlgmr.msra.gmra.mrb[68].mxu0 %vm631_vm13, %v3832_v50 }
0x22ab   :  { %7211 = vmatprep.mubr.msk.bf16.mxu0 %vm8087_vm7, %v8086_v33  ;;  %7204 = vmatpush3.bf16.msra.mxu0 %v7647_v29 }
0x22ac   :  { %v7868_v57 = vpop.eup %7867  ;;  %7205 = vmatprep.subr.bf16.mxu0 %v8086_v33 }
0x22ad   :  { %v3677_v59 = vadd.f32 1.0, %v7868_v57 }
0x22af   :  { %7869 = vrcp.f32 %v3677_v59  ;;  %7206 = vmatpush3.bf16.msra.mxu0 %v7648_v35 }
0x22b0   :  { %7207 = vmatprep.subr.bf16.mxu0 %v8086_v33 }
0x22b3   :  { %7208 = vmatpush3.bf16.msra.mxu0 %v7649_v40 }
0x22b4   :  { %7209 = vmatprep.subr.bf16.mxu0 %v8086_v33 }
0x22b7   :  { %7210 = vmatpush3.bf16.msra.mxu0 %v7650_v10  ;;  %v7653_v10 = vld [vmem:[%s10072_s18] sm:$0xff]  }
0x22b8   :  { %7223 = vmatprep.subr.bf16.mxu0 %v8086_v33 }
0x22b9   :  { %v9273_v13 = vpop.eup %7869 }
0x22ba   :  { %v3691_v53 = vsub.f32 1.0, %v9273_v13  ;;  %v3697_v14 = vmul.f32 %v9273_v13, %v9232_v20 }
0x2312   :  { %v3781_v60 = vpop.f32.mrb[64].mxu1  ;;  %v3682_v18 = vpop.permute.xlu0 %3681 }
0x2313   :  { %v3782_v61 = vadd.f32 %v9087_v3, %v3781_v60  ;;  %v3684_v62 = vmul.f32 %v9273_v13, %v3682_v18  ;;  %v7181_v0 = vpop.f32.mrb[65].mxu1 }
0x2314   :  { %v3784_v1 = vpop.f32.mrb[66].mxu1 }
0x2315   :  { %3794 = vrot.lane.b32.xlu1 %v3782_v61, %s8081_s4  ;;  %v7182_v2 = vpop.f32.mrb[67].mxu1  ;;  %3686 = vrot.lane.b32.xlu0 %v3684_v62, %s8079_s29  ;;  %v6459_v31 = vmul.f32 -1.442695, %v3782_v61 }
0x2317   :  { %7871 = vpow2.f32 %v6459_v31  ;;  %v7651_v31 = vld [vmem:[%s10070_s16] sm:$0xff]  }
0x2321   :  { %v7872_v22 = vpop.eup %7871 }
0x2322   :  { %v3790_v54 = vadd.f32 1.0, %v7872_v22  ;;  %v7652_v22 = vld [vmem:[%s10070_s16 + $0x8] sm:$0xff]  }
0x2324   :  { %7873 = vrcp.f32 %v3790_v54 }
0x232e   :  { %v9286_v7 = vpop.eup %7873 }
0x232f   :  { %v3804_v13 = vsub.f32 1.0, %v9286_v7  ;;  %v3810_v18 = vmul.f32 %v9286_v7, %v9261_v44 }
0x237d   :  { %v3882_v30 = vpop.f32.mrb[68].mxu0 }
0x237e   :  { %v3883_v39 = vadd.f32 %v9282_v43, %v3882_v30  ;;  %v7189_v5 = vpop.f32.mrb[69].mxu0 }
0x237f   :  { %v3885_v6 = vpop.f32.mrb[70].mxu0 }
0x2380   :  { %3896 = vrot.lane.b32.xlu1 %v3883_v39, %s8079_s29  ;;  %v7190_v9 = vpop.f32.mrb[71].mxu0  ;;  %v3888_v23 = vadd.f32 %v3883_v39, %v8525_v21 }
0x2382   :  { %v6464_v24 = vmul.f32 -1.442695, %v3888_v23 }
0x2387   :  { %v3795_v11 = vpop.permute.xlu1 %3794  ;;  %v3687_v15 = vpop.permute.xlu0 %3686 }
0x2388   :  { %v3797_v16 = vmul.f32 %v9286_v7, %v3795_v11  ;;  %v3689_v17 = vadd.f32 %v3687_v15, %v3669_v46  ;;  %v9369_v7 = vld [vmem:[%s10073_s19] ss:$0 sm:$0xff] }
0x238a   :  { %7875 = vtanh.f32 %v3689_v17  ;;  %3799 = vrot.lane.b32.xlu0 %v3797_v16, %s8079_s29 }
0x238b   :  { %7877 = vpow2.f32 %v6464_v24 }
0x2394   :  { %v7876_v52 = vpop.eup %7875 }
0x2395   :  { %3693 = vrot.lane.b32.xlu0 %v7876_v52, %s8090_s15  ;;  %v7878_v25 = vpop.eup %7877 }
0x2396   :  { %v3892_v4 = vadd.f32 1.0, %v7878_v25 }
0x2398   :  { %7879 = vrcp.f32 %v3892_v4 }
0x23a2   :  { %v7880_v63 = vpop.eup %7879 }
0x23a3   :  { %v3906_v54 = vsub.f32 1.0, %v7880_v63  ;;  %v3912_v39 = vmul.f32 %v7880_v63, %v9253_v37 }
0x23f2   :  { %v3897_v32 = vpop.permute.xlu1 %3896 }
0x23f3   :  { %v3899_v34 = vmul.f32 %v7880_v63, %v3897_v32 }
0x23f5   :  { %3901 = vrot.lane.b32.xlu1 %v3899_v34, %s8079_s29 }
0x23f9   :  { %3915 = vrot.lane.b32.xlu1 %v9253_v37, %s8090_s15 }
0x23fc   :  { %v3800_v36 = vpop.permute.xlu0 %3799 }
0x23fd   :  { %v3802_v38 = vadd.f32 %v3800_v36, %v3782_v61 }
0x23ff   :  { %7881 = vtanh.f32 %v3802_v38 }
0x2407   :  { %v3694_v45 = vpop.permute.xlu0 %3693 }
0x2408   :  { %v3696_v46 = vmul.f32 %v3694_v45, %v3691_v53  ;;  %v7654_v53 = vld [vmem:[%s10072_s18 + $0x8] sm:$0xff]  }
0x2409   :  { %v7882_v41 = vpop.eup %7881 }
0x240a   :  { %v9330_v47 = vadd.f32 %v3697_v14, %v3696_v46  ;;  %3806 = vrot.lane.b32.xlu0 %v7882_v41, %s8090_s15  ;;  %v7655_v46 = vld [vmem:[%s10072_s18 + $0x10] sm:$0xff]   ;;  %v7656_v41 = vld [vmem:[%s10072_s18 + $0x18] sm:$0xff]  }
0x240c   :  { %4028 = vrot.lane.b32.xlu1 %v9330_v47, %s8090_s15 }
0x2467   :  { %v3902_v48 = vpop.permute.xlu1 %3901 }
0x2468   :  { %v3904_v50 = vadd.f32 %v3902_v48, %v8525_v21 }
0x246a   :  { %7883 = vtanh.f32 %v3904_v50 }
0x246b   :  { %v3916_v56 = vpop.permute.xlu1 %3915 }
0x246c   :  { %v3918_v57 = vsel %vm631_vm13, %v3916_v56, %v9330_v47 }
0x246d   :  { %v3919_v59 = vpack.c.bf16 %v3918_v57, %v3918_v57 }
0x246f   :  { %7200 = vmatmul.mubr.msk.bf16.vlgmr.msra.gmra.mrb[68].mxu1 %vm647_vm1, %v3919_v59 }
0x2470   :  { %7219 = vmatprep.mubr.msk.bf16.mxu1 %vm8087_vm7, %v8086_v33  ;;  %7216 = vmatpush3.bf16.msra.mxu1 %v7651_v31 }
0x2471   :  { %7217 = vmatprep.subr.bf16.mxu1 %v8086_v33 }
0x2474   :  { %v7884_v20 = vpop.eup %7883  ;;  %7218 = vmatpush3.bf16.msra.mxu1 %v7652_v22 }
0x2475   :  { %3908 = vrot.lane.b32.xlu0 %v7884_v20, %s8090_s15  ;;  %7235 = vmatprep.subr.bf16.mxu1 %v8086_v33 }
0x247c   :  { %v3807_v60 = vpop.permute.xlu0 %3806 }
0x247d   :  { %v3809_v61 = vmul.f32 %v3807_v60, %v3804_v13 }
0x247e   :  { %v4029_v0 = vpop.permute.xlu1 %4028 }
0x247f   :  { %v9345_v62 = vadd.f32 %v3810_v18, %v3809_v61  ;;  %v7657_v18 = vld [vmem:[%s10074_s20] sm:$0xff]   ;;  %v7658_v61 = vld [vmem:[%s10074_s20 + $0x8] sm:$0xff]  }
0x2481   :  { %v4031_v1 = vsel %vm631_vm13, %v4029_v0, %v9345_v62 }
0x2482   :  { %v4032_v2 = vpack.c.bf16 %v4031_v1, %v4031_v1 }
0x2484   :  { %7212 = vmatmul.mubr.msk.bf16.vlgmr.msra.gmra.mrb[72].mxu0 %vm647_vm1, %v4032_v2 }
0x2485   :  { %7231 = vmatprep.mubr.msk.bf16.mxu0 %vm8087_vm7, %v8086_v33  ;;  %7224 = vmatpush3.bf16.msra.mxu0 %v7653_v10  ;;  %v7661_v10 = vld [vmem:[%s10070_s16] sm:$0xff]  }
0x2486   :  { %7225 = vmatprep.subr.bf16.mxu0 %v8086_v33 }
0x2489   :  { %7226 = vmatpush3.bf16.msra.mxu0 %v7654_v53  ;;  %v7662_v53 = vld [vmem:[%s10070_s16 + $0x8] sm:$0xff]  }
0x248a   :  { %7227 = vmatprep.subr.bf16.mxu0 %v8086_v33 }
0x248d   :  { %7228 = vmatpush3.bf16.msra.mxu0 %v7655_v46 }
0x248e   :  { %7229 = vmatprep.subr.bf16.mxu0 %v8086_v33 }
0x2491   :  { %7230 = vmatpush3.bf16.msra.mxu0 %v7656_v41 }
0x2492   :  { %7247 = vmatprep.subr.bf16.mxu0 %v8086_v33 }
0x24e7   :  { %v3909_v30 = vpop.permute.xlu0 %3908 }
0x24e8   :  { %v3911_v5 = vmul.f32 %v3909_v30, %v3906_v54  ;;  %v7659_v54 = vld [vmem:[%s10074_s20 + $0x10] sm:$0xff]   ;;  %v7660_v30 = vld [vmem:[%s10074_s20 + $0x18] sm:$0xff]  }
0x24ea   :  { %v9361_v6 = vadd.f32 %v3912_v39, %v3911_v5 }
0x24ec   :  { %v4146_v9 = vpack.c.bf16 %v9361_v6, %v9361_v6 }
0x24ee   :  { %4159 = vrot.lane.b32.xlu1 %v4146_v9, %s8090_s15 }
0x2542   :  { %v3996_v11 = vpop.f32.mrb[68].mxu1 }
0x2543   :  { %v3997_v15 = vadd.f32 %v9369_v7, %v3996_v11  ;;  %v7201_v16 = vpop.f32.mrb[69].mxu1 }
0x2544   :  { %v3999_v17 = vpop.f32.mrb[70].mxu1 }
0x2545   :  { %4009 = vrot.lane.b32.xlu0 %v3997_v15, %s8081_s4  ;;  %v7202_v37 = vpop.f32.mrb[71].mxu1  ;;  %v6471_v4 = vmul.f32 -1.442695, %v3997_v15 }
0x2547   :  { %7885 = vpow2.f32 %v6471_v4 }
0x2551   :  { %v7886_v26 = vpop.eup %7885 }
0x2552   :  { %v4005_v28 = vadd.f32 1.0, %v7886_v26 }
0x2554   :  { %7887 = vrcp.f32 %v4005_v28 }
0x2557   :  { %v4109_v19 = vpop.f32.mrb[72].mxu0 }
0x2558   :  { %v4110_v49 = vadd.f32 %v9087_v3, %v4109_v19  ;;  %v7213_v52 = vpop.f32.mrb[73].mxu0 }
0x2559   :  { %v4112_v23 = vpop.f32.mrb[74].mxu0 }
0x255a   :  { %4122 = vrot.lane.b32.xlu1 %v4110_v49, %s8081_s4  ;;  %v7214_v24 = vpop.f32.mrb[75].mxu0  ;;  %v6478_v29 = vmul.f32 -1.442695, %v4110_v49 }
0x255c   :  { %7889 = vpow2.f32 %v6478_v29 }
0x255e   :  { %v9378_v63 = vpop.eup %7887 }
0x255f   :  { %v4019_v11 = vsub.f32 1.0, %v9378_v63  ;;  %v4025_v16 = vmul.f32 %v9378_v63, %v9330_v47 }
0x2560   :  { %v4160_v25 = vpop.permute.xlu1 %4159 }
0x2561   :  { %7220 = vmatmul.mubr.msk.bf16.vlgmr.msra.gmra.mrb[72].mxu1 %vm631_vm13, %v4160_v25 }
0x2562   :  { %7243 = vmatprep.mubr.msk.bf16.mxu1 %vm8087_vm7, %v8086_v33  ;;  %7236 = vmatpush3.bf16.msra.mxu1 %v7657_v18 }
0x2563   :  { %7237 = vmatprep.subr.bf16.mxu1 %v8086_v33 }
0x2566   :  { %v7890_v34 = vpop.eup %7889  ;;  %7238 = vmatpush3.bf16.msra.mxu1 %v7658_v61 }
0x2567   :  { %v4118_v35 = vadd.f32 1.0, %v7890_v34  ;;  %7239 = vmatprep.subr.bf16.mxu1 %v8086_v33 }
0x2569   :  { %7891 = vrcp.f32 %v4118_v35 }
0x256a   :  { %7240 = vmatpush3.bf16.msra.mxu1 %v7659_v54 }
0x256b   :  { %7241 = vmatprep.subr.bf16.mxu1 %v8086_v33 }
0x256e   :  { %7242 = vmatpush3.bf16.msra.mxu1 %v7660_v30 }
0x256f   :  { %7255 = vmatprep.subr.bf16.mxu1 %v8086_v33 }
0x2573   :  { %v9382_v36 = vpop.eup %7891 }
0x2574   :  { %v4132_v24 = vsub.f32 1.0, %v9382_v36  ;;  %v4138_v26 = vmul.f32 %v9382_v36, %v9345_v62 }
0x25b7   :  { %v4010_v3 = vpop.permute.xlu0 %4009 }
0x25b8   :  { %v4012_v32 = vmul.f32 %v9378_v63, %v4010_v3 }
0x25ba   :  { %4014 = vrot.lane.b32.xlu0 %v4012_v32, %s8079_s29 }
0x25cc   :  { %v4123_v38 = vpop.permute.xlu1 %4122 }
0x25cd   :  { %v4125_v40 = vmul.f32 %v9382_v36, %v4123_v38 }
0x25cf   :  { %4127 = vrot.lane.b32.xlu1 %v4125_v40, %s8079_s29 }
0x262c   :  { %v4015_v45 = vpop.permute.xlu0 %4014 }
0x262d   :  { %v4017_v14 = vadd.f32 %v4015_v45, %v3997_v15 }
0x262f   :  { %7893 = vtanh.f32 %v4017_v14 }
0x2634   :  { %v4210_v48 = vpop.f32.mrb[72].mxu1 }
0x2635   :  { %v4211_v50 = vadd.f32 %v9282_v43, %v4210_v48  ;;  %v7221_v56 = vpop.f32.mrb[73].mxu1 }
0x2636   :  { %v4213_v57 = vpop.f32.mrb[74].mxu1 }
0x2637   :  { %4224 = vrot.lane.b32.xlu0 %v4211_v50, %s8079_s29  ;;  %v7222_v59 = vpop.f32.mrb[75].mxu1  ;;  %v4216_v1 = vadd.f32 %v4211_v50, %v8525_v21 }
0x2639   :  { %v7894_v20 = vpop.eup %7893  ;;  %v6483_v2 = vmul.f32 -1.442695, %v4216_v1 }
0x263a   :  { %4021 = vrot.lane.b32.xlu1 %v7894_v20, %s8090_s15  ;;  %v9469_v20 = vld [vmem:[%s10075_s21] ss:$0 sm:$0xff] }
0x263b   :  { %4243 = vrot.lane.b32.xlu0 %v9361_v6, %s8090_s15 }
0x2641   :  { %v4128_v13 = vpop.permute.xlu1 %4127 }
0x2642   :  { %v4130_v60 = vadd.f32 %v4128_v13, %v4110_v49 }
0x2644   :  { %7895 = vtanh.f32 %v4130_v60 }
0x2645   :  { %7897 = vpow2.f32 %v6483_v2 }
0x264e   :  { %v7896_v0 = vpop.eup %7895 }
0x264f   :  { %4134 = vrot.lane.b32.xlu0 %v7896_v0, %s8090_s15  ;;  %v7898_v31 = vpop.eup %7897 }
0x2650   :  { %v4220_v22 = vadd.f32 1.0, %v7898_v31 }
0x2652   :  { %7899 = vrcp.f32 %v4220_v22 }
0x265c   :  { %v7900_v39 = vpop.eup %7899 }
0x265d   :  { %v4234_v45 = vsub.f32 1.0, %v7900_v39  ;;  %v4240_v46 = vmul.f32 %v7900_v39, %v9361_v6 }
0x26a9   :  { %v4225_v5 = vpop.permute.xlu0 %4224 }
0x26aa   :  { %v4227_v9 = vmul.f32 %v7900_v39, %v4225_v5  ;;  %v7663_v39 = vld [vmem:[%s10072_s18] sm:$0xff]  }
0x26ac   :  { %4229 = vrot.lane.b32.xlu1 %v4227_v9, %s8079_s29  ;;  %v4022_v15 = vpop.permute.xlu1 %4021 }
0x26ad   :  { %v4024_v17 = vmul.f32 %v4022_v15, %v4019_v11  ;;  %v4244_v19 = vpop.permute.xlu0 %4243 }
0x26af   :  { %v9429_v37 = vadd.f32 %v4025_v16, %v4024_v17  ;;  %v7664_v17 = vld [vmem:[%s10072_s18 + $0x8] sm:$0xff]  }
0x26b1   :  { %v4246_v49 = vsel %vm631_vm13, %v4244_v19, %v9429_v37  ;;  %4356 = vrot.lane.b32.xlu1 %v9429_v37, %s8090_s15  ;;  %v7665_v19 = vld [vmem:[%s10072_s18 + $0x10] sm:$0xff]  }
0x26b2   :  { %v4247_v52 = vpack.c.bf16 %v4246_v49, %v4246_v49  ;;  %v7666_v49 = vld [vmem:[%s10072_s18 + $0x18] sm:$0xff]  }
0x26b4   :  { %7232 = vmatmul.mubr.msk.bf16.vlgmr.msra.gmra.mrb[76].mxu0 %vm647_vm1, %v4247_v52 }
0x26b5   :  { %7251 = vmatprep.mubr.msk.bf16.mxu0 %vm8087_vm7, %v8086_v33  ;;  %7248 = vmatpush3.bf16.msra.mxu0 %v7661_v10 }
0x26b6   :  { %7249 = vmatprep.subr.bf16.mxu0 %v8086_v33 }
0x26b9   :  { %7250 = vmatpush3.bf16.msra.mxu0 %v7662_v53 }
0x26ba   :  { %7267 = vmatprep.subr.bf16.mxu0 %v8086_v33 }
0x26c1   :  { %v4135_v23 = vpop.permute.xlu0 %4134 }
0x26c2   :  { %v4137_v47 = vmul.f32 %v4135_v23, %v4132_v24  ;;  %v7667_v23 = vld [vmem:[%s10074_s20] sm:$0xff]   ;;  %v7668_v24 = vld [vmem:[%s10074_s20 + $0x8] sm:$0xff]  }
0x26c4   :  { %v9442_v28 = vadd.f32 %v4138_v26, %v4137_v47  ;;  %v7670_v26 = vld [vmem:[%s10074_s20 + $0x18] sm:$0xff]  }
0x271e   :  { %v4230_v25 = vpop.permute.xlu1 %4229 }
0x271f   :  { %v4232_v4 = vadd.f32 %v4230_v25, %v8525_v21 }
0x2721   :  { %7901 = vtanh.f32 %v4232_v4  ;;  %v7669_v4 = vld [vmem:[%s10074_s20 + $0x10] sm:$0xff]  }
0x2723   :  { %v4357_v29 = vpop.permute.xlu1 %4356 }
0x2724   :  { %v4359_v63 = vsel %vm631_vm13, %v4357_v29, %v9442_v28 }
0x2725   :  { %v4360_v3 = vpack.c.bf16 %v4359_v63, %v4359_v63 }
0x2727   :  { %7244 = vmatmul.mubr.msk.bf16.vlgmr.msra.gmra.mrb[76].mxu1 %vm647_vm1, %v4360_v3 }
0x2728   :  { %7263 = vmatprep.mubr.msk.bf16.mxu1 %vm8087_vm7, %v8086_v33  ;;  %7256 = vmatpush3.bf16.msra.mxu1 %v7663_v39 }
0x2729   :  { %7257 = vmatprep.subr.bf16.mxu1 %v8086_v33 }
0x272b   :  { %v7902_v32 = vpop.eup %7901 }
0x272c   :  { %4236 = vrot.lane.b32.xlu0 %v7902_v32, %s8090_s15  ;;  %7258 = vmatpush3.bf16.msra.mxu1 %v7664_v17 }
0x272d   :  { %7259 = vmatprep.subr.bf16.mxu1 %v8086_v33 }
0x2730   :  { %7260 = vmatpush3.bf16.msra.mxu1 %v7665_v19 }
0x2731   :  { %7261 = vmatprep.subr.bf16.mxu1 %v8086_v33 }
0x2734   :  { %7262 = vmatpush3.bf16.msra.mxu1 %v7666_v49 }
0x2735   :  { %7279 = vmatprep.subr.bf16.mxu1 %v8086_v33 }
0x2787   :  { %v4324_v34 = vpop.f32.mrb[76].mxu0 }
0x2788   :  { %v4325_v35 = vadd.f32 %v9369_v7, %v4324_v34  ;;  %v7233_v36 = vpop.f32.mrb[77].mxu0 }
0x2789   :  { %v4327_v38 = vpop.f32.mrb[78].mxu0 }
0x278a   :  { %4337 = vrot.lane.b32.xlu0 %v4325_v35, %s8081_s4  ;;  %v7234_v40 = vpop.f32.mrb[79].mxu0  ;;  %v6490_v56 = vmul.f32 -1.442695, %v4325_v35 }
0x278c   :  { %7903 = vpow2.f32 %v6490_v56 }
0x2796   :  { %v7904_v57 = vpop.eup %7903 }
0x2797   :  { %v4333_v59 = vadd.f32 1.0, %v7904_v57 }
0x2799   :  { %7905 = vrcp.f32 %v4333_v59 }
0x279e   :  { %v4237_v14 = vpop.permute.xlu0 %4236 }
0x279f   :  { %v4239_v41 = vmul.f32 %v4237_v14, %v4234_v45 }
0x27a1   :  { %v9461_v48 = vadd.f32 %v4240_v46, %v4239_v41 }
0x27a3   :  { %v4474_v50 = vpack.c.bf16 %v9461_v48, %v9461_v48  ;;  %v9472_v18 = vpop.eup %7905 }
0x27a4   :  { %v4353_v40 = vmul.f32 %v9472_v18, %v9429_v37 }
0x27a5   :  { %4487 = vrot.lane.b32.xlu1 %v4474_v50, %s8090_s15 }
0x27fa   :  { %v4437_v13 = vpop.f32.mrb[76].mxu1 }
0x27fb   :  { %v4438_v6 = vadd.f32 %v9469_v20, %v4437_v13  ;;  %v7245_v60 = vpop.f32.mrb[77].mxu1 }
0x27fc   :  { %v4440_v61 = vpop.f32.mrb[78].mxu1  ;;  %v4338_v0 = vpop.permute.xlu0 %4337 }
0x27fd   :  { %v4340_v1 = vmul.f32 %v9472_v18, %v4338_v0  ;;  %4450 = vrot.lane.b32.xlu1 %v4438_v6, %s8081_s4  ;;  %v7246_v2 = vpop.f32.mrb[79].mxu1  ;;  %v6497_v22 = vmul.f32 -1.442695, %v4438_v6 }
0x27ff   :  { %4342 = vrot.lane.b32.xlu0 %v4340_v1, %s8079_s29  ;;  %7907 = vpow2.f32 %v6497_v22 }
0x2809   :  { %v7908_v54 = vpop.eup %7907 }
0x280a   :  { %v4446_v30 = vadd.f32 1.0, %v7908_v54 }
0x280c   :  { %7909 = vrcp.f32 %v4446_v30 }
0x2816   :  { %v9484_v5 = vpop.eup %7909 }
0x2817   :  { %v4488_v31 = vpop.permute.xlu1 %4487 }
0x2818   :  { %7252 = vmatmul.mubr.msk.bf16.vlgmr.msra.gmra.mrb[80].mxu0 %vm631_vm13, %v4488_v31 }
0x2819   :  { %7275 = vmatprep.mubr.msk.bf16.mxu0 %vm8087_vm7, %v8086_v33  ;;  %7268 = vmatpush3.bf16.msra.mxu0 %v7667_v23 }
0x281a   :  { %7269 = vmatprep.subr.bf16.mxu0 %v8086_v33 }
0x281d   :  { %7270 = vmatpush3.bf16.msra.mxu0 %v7668_v24 }
0x281e   :  { %7271 = vmatprep.subr.bf16.mxu0 %v8086_v33 }
0x2821   :  { %7272 = vmatpush3.bf16.msra.mxu0 %v7669_v4 }
0x2822   :  { %7273 = vmatprep.subr.bf16.mxu0 %v8086_v33 }
0x2825   :  { %7274 = vmatpush3.bf16.msra.mxu0 %v7670_v26 }
0x2826   :  { %7287 = vmatprep.subr.bf16.mxu0 %v8086_v33 }
0x286f   :  { %v4451_v9 = vpop.permute.xlu1 %4450 }
0x2870   :  { %v4453_v11 = vmul.f32 %v9484_v5, %v4451_v9 }
0x2871   :  { %v4343_v15 = vpop.permute.xlu0 %4342 }
0x2872   :  { %v4345_v16 = vadd.f32 %v4343_v15, %v4325_v35  ;;  %4455 = vrot.lane.b32.xlu1 %v4453_v11, %s8079_s29  ;;  %v4347_v35 = vsub.f32 1.0, %v9472_v18  ;;  %v4466_v18 = vmul.f32 %v9484_v5, %v9442_v28  ;;  %v7671_v11 = vld [vmem:[%s10070_s16] sm:$0xff]  }
0x2874   :  { %7911 = vtanh.f32 %v4345_v16  ;;  %v7672_v16 = vld [vmem:[%s10070_s16 + $0x8] sm:$0xff]  }
0x2876   :  { %4571 = vrot.lane.b32.xlu1 %v9461_v48, %s8090_s15 }
0x287e   :  { %v7912_v52 = vpop.eup %7911 }
0x287f   :  { %4349 = vrot.lane.b32.xlu0 %v7912_v52, %s8090_s15 }
0x28e4   :  { %v4456_v47 = vpop.permute.xlu1 %4455 }
0x28e5   :  { %v4458_v25 = vadd.f32 %v4456_v47, %v4438_v6  ;;  %v4460_v6 = vsub.f32 1.0, %v9484_v5 }
0x28e7   :  { %7913 = vtanh.f32 %v4458_v25 }
0x28e8   :  { %v4572_v45 = vpop.permute.xlu1 %4571 }
0x28eb   :  { %v4538_v29 = vpop.f32.mrb[80].mxu0 }
0x28ec   :  { %v4539_v63 = vadd.f32 %v9282_v43, %v4538_v29  ;;  %v7253_v3 = vpop.f32.mrb[81].mxu0 }
0x28ed   :  { %v4541_v32 = vpop.f32.mrb[82].mxu0 }
0x28ee   :  { %4552 = vrot.lane.b32.xlu0 %v4539_v63, %s8079_s29  ;;  %v7254_v34 = vpop.f32.mrb[83].mxu0  ;;  %v4544_v37 = vadd.f32 %v4539_v63, %v8525_v21 }
0x28f0   :  { %v6502_v41 = vmul.f32 -1.442695, %v4544_v37 }
0x28f1   :  { %v7914_v36 = vpop.eup %7913  ;;  %v4350_v38 = vpop.permute.xlu0 %4349 }
0x28f2   :  { %v4352_v10 = vmul.f32 %v4350_v38, %v4347_v35  ;;  %4462 = vrot.lane.b32.xlu1 %v7914_v36, %s8090_s15  ;;  %7915 = vpow2.f32 %v6502_v41  ;;  %v7673_v38 = vld [vmem:[%s10072_s18] sm:$0xff]  }
0x28f4   :  { %v9525_v53 = vadd.f32 %v4353_v40, %v4352_v10 }
0x28f6   :  { %v4574_v14 = vsel %vm631_vm13, %v4572_v45, %v9525_v53  ;;  %4684 = vrot.lane.b32.xlu0 %v9525_v53, %s8090_s15 }
0x28f7   :  { %v4575_v46 = vpack.c.bf16 %v4574_v14, %v4574_v14  ;;  %v7674_v14 = vld [vmem:[%s10072_s18 + $0x8] sm:$0xff]  }
0x28f9   :  { %7264 = vmatmul.mubr.msk.bf16.vlgmr.msra.gmra.mrb[80].mxu1 %vm647_vm1, %v4575_v46 }
0x28fa   :  { %7283 = vmatprep.mubr.msk.bf16.mxu1 %vm8087_vm7, %v8086_v33  ;;  %7280 = vmatpush3.bf16.msra.mxu1 %v7671_v11 }
0x28fb   :  { %7281 = vmatprep.subr.bf16.mxu1 %v8086_v33 }
0x28fc   :  { %v7916_v50 = vpop.eup %7915 }
0x28fd   :  { %v4548_v56 = vadd.f32 1.0, %v7916_v50 }
0x28fe   :  { %7282 = vmatpush3.bf16.msra.mxu1 %v7672_v16 }
0x28ff   :  { %7917 = vrcp.f32 %v4548_v56  ;;  %7299 = vmatprep.subr.bf16.mxu1 %v8086_v33 }
0x2909   :  { %v7918_v57 = vpop.eup %7917 }
0x290a   :  { %v4562_v4 = vsub.f32 1.0, %v7918_v57  ;;  %v4568_v29 = vmul.f32 %v7918_v57, %v9461_v48 }
0x2960   :  { %v4553_v59 = vpop.permute.xlu0 %4552 }
0x2961   :  { %v4555_v13 = vmul.f32 %v7918_v57, %v4553_v59  ;;  %v7675_v59 = vld [vmem:[%s10072_s18 + $0x10] sm:$0xff]  }
0x2963   :  { %4557 = vrot.lane.b32.xlu1 %v4555_v13, %s8079_s29  ;;  %v7676_v13 = vld [vmem:[%s10072_s18 + $0x18] sm:$0xff]  }
0x2964   :  { %v4463_v60 = vpop.permute.xlu1 %4462 }
0x2965   :  { %v4465_v61 = vmul.f32 %v4463_v60, %v4460_v6  ;;  %v7677_v60 = vld [vmem:[%s10074_s20] sm:$0xff]  }
0x2967   :  { %v9539_v0 = vadd.f32 %v4466_v18, %v4465_v61  ;;  %v7678_v18 = vld [vmem:[%s10074_s20 + $0x8] sm:$0xff]  }
0x2968   :  { %v4685_v1 = vpop.permute.xlu0 %4684 }
0x2969   :  { %v4687_v2 = vsel %vm631_vm13, %v4685_v1, %v9539_v0 }
0x296a   :  { %v4688_v31 = vpack.c.bf16 %v4687_v2, %v4687_v2 }
0x296c   :  { %7276 = vmatmul.mubr.msk.bf16.vlgmr.msra.gmra.mrb[84].mxu0 %vm647_vm1, %v4688_v31  ;;  %v7679_v31 = vld [vmem:[%s10074_s20 + $0x10] sm:$0xff]  }
0x296d   :  { %7295 = vmatprep.mubr.msk.bf16.mxu0 %vm8087_vm7, %v8086_v33  ;;  %7288 = vmatpush3.bf16.msra.mxu0 %v7673_v38 }
0x296e   :  { %7289 = vmatprep.subr.bf16.mxu0 %v8086_v33 }
0x2971   :  { %7290 = vmatpush3.bf16.msra.mxu0 %v7674_v14 }
0x2972   :  { %7291 = vmatprep.subr.bf16.mxu0 %v8086_v33 }
0x2975   :  { %7292 = vmatpush3.bf16.msra.mxu0 %v7675_v59 }
0x2976   :  { %7293 = vmatprep.subr.bf16.mxu0 %v8086_v33 }
0x2979   :  { %7294 = vmatpush3.bf16.msra.mxu0 %v7676_v13 }
0x297a   :  { %7311 = vmatprep.subr.bf16.mxu0 %v8086_v33 }
0x29cc   :  { %v4652_v22 = vpop.f32.mrb[80].mxu1 }
0x29cd   :  { %v7265_v54 = vpop.f32.mrb[81].mxu1  ;;  %v4653_v17 = vadd.f32 %v9369_v7, %v4652_v22 }
0x29ce   :  { %v4655_v30 = vpop.f32.mrb[82].mxu1 }
0x29cf   :  { %v7266_v39 = vpop.f32.mrb[83].mxu1  ;;  %v6509_v19 = vmul.f32 -1.442695, %v4653_v17 }
0x29d0   :  { %v7680_v39 = vld [vmem:[%s10074_s20 + $0x18] sm:$0xff]  }
0x29d5   :  { %v4558_v9 = vpop.permute.xlu1 %4557 }
0x29d6   :  { %v4560_v5 = vadd.f32 %v4558_v9, %v8525_v21 }
0x29d8   :  { %7919 = vtanh.f32 %v4560_v5 }
0x29d9   :  { %7921 = vpow2.f32 %v6509_v19 }
0x29e2   :  { %v7920_v15 = vpop.eup %7919 }
0x29e3   :  { %4564 = vrot.lane.b32.xlu0 %v7920_v15, %s8090_s15  ;;  %v7922_v47 = vpop.eup %7921 }
0x29e4   :  { %v4661_v25 = vadd.f32 1.0, %v7922_v47 }
0x29e6   :  { %7923 = vrcp.f32 %v4661_v25 }
0x29e7   :  { %4665 = vrot.lane.b32.xlu0 %v4653_v17, %s8081_s4 }
0x29f0   :  { %v7924_v32 = vpop.eup %7923 }
0x29f1   :  { %v4675_v2 = vsub.f32 1.0, %v7924_v32  ;;  %v4681_v54 = vmul.f32 %v7924_v32, %v9525_v53 }
0x2a3f   :  { %v4765_v49 = vpop.f32.mrb[84].mxu0 }
0x2a40   :  { %v7277_v52 = vpop.f32.mrb[85].mxu0  ;;  %v4766_v40 = vadd.f32 %v9469_v20, %v4765_v49 }
0x2a41   :  { %v4768_v23 = vpop.f32.mrb[86].mxu0 }
0x2a42   :  { %v7278_v24 = vpop.f32.mrb[87].mxu0  ;;  %v6516_v48 = vmul.f32 -1.442695, %v4766_v40 }
0x2a44   :  { %7925 = vpow2.f32 %v6516_v48 }
0x2a4e   :  { %v7926_v10 = vpop.eup %7925 }
0x2a4f   :  { %v4774_v45 = vadd.f32 1.0, %v7926_v10 }
0x2a51   :  { %7927 = vrcp.f32 %v4774_v45 }
0x2a55   :  { %v4565_v26 = vpop.permute.xlu0 %4564 }
0x2a56   :  { %v4567_v63 = vmul.f32 %v4565_v26, %v4562_v4 }
0x2a58   :  { %v9559_v3 = vadd.f32 %v4568_v29, %v4567_v63 }
0x2a59   :  { %v4666_v34 = vpop.permute.xlu0 %4665 }
0x2a5a   :  { %v4802_v35 = vpack.c.bf16 %v9559_v3, %v9559_v3  ;;  %v4668_v36 = vmul.f32 %v7924_v32, %v4666_v34 }
0x2a5b   :  { %v7928_v50 = vpop.eup %7927 }
0x2a5c   :  { %4815 = vrot.lane.b32.xlu1 %v4802_v35, %s8090_s15  ;;  %4670 = vrot.lane.b32.xlu0 %v4668_v36, %s8079_s29  ;;  %v4788_v23 = vsub.f32 1.0, %v7928_v50  ;;  %v4794_v47 = vmul.f32 %v7928_v50, %v9539_v0 }
0x2a60   :  { %4778 = vrot.lane.b32.xlu1 %v4766_v40, %s8081_s4 }
0x2ace   :  { %v4816_v46 = vpop.permute.xlu1 %4815  ;;  %v4671_v37 = vpop.permute.xlu0 %4670 }
0x2acf   :  { %v4673_v41 = vadd.f32 %v4671_v37, %v4653_v17  ;;  %7284 = vmatmul.mubr.msk.bf16.vlgmr.msra.gmra.mrb[84].mxu1 %vm631_vm13, %v4816_v46 }
0x2ad0   :  { %7307 = vmatprep.mubr.msk.bf16.mxu1 %vm8087_vm7, %v8086_v33  ;;  %7300 = vmatpush3.bf16.msra.mxu1 %v7677_v60 }
0x2ad1   :  { %7929 = vtanh.f32 %v4673_v41  ;;  %7301 = vmatprep.subr.bf16.mxu1 %v8086_v33 }
0x2ad2   :  { %v4779_v56 = vpop.permute.xlu1 %4778 }
0x2ad3   :  { %v4781_v57 = vmul.f32 %v7928_v50, %v4779_v56  ;;  %v7681_v56 = vld [vmem:[%s10070_s16] sm:$0xff]  }
0x2ad4   :  { %7302 = vmatpush3.bf16.msra.mxu1 %v7678_v18 }
0x2ad5   :  { %4783 = vrot.lane.b32.xlu1 %v4781_v57, %s8079_s29  ;;  %7303 = vmatprep.subr.bf16.mxu1 %v8086_v33 }
0x2ad8   :  { %7304 = vmatpush3.bf16.msra.mxu1 %v7679_v31 }
0x2ad9   :  { %4899 = vrot.lane.b32.xlu1 %v9559_v3, %s8090_s15  ;;  %7305 = vmatprep.subr.bf16.mxu1 %v8086_v33 }
0x2adb   :  { %v7930_v6 = vpop.eup %7929 }
0x2adc   :  { %4677 = vrot.lane.b32.xlu0 %v7930_v6, %s8090_s15  ;;  %7306 = vmatpush3.bf16.msra.mxu1 %v7680_v39 }
0x2add   :  { %7319 = vmatprep.subr.bf16.mxu1 %v8086_v33 }
0x2b47   :  { %v4784_v61 = vpop.permute.xlu1 %4783 }
0x2b48   :  { %v4786_v1 = vadd.f32 %v4784_v61, %v4766_v40 }
0x2b4a   :  { %7931 = vtanh.f32 %v4786_v1 }
0x2b4b   :  { %v4900_v5 = vpop.permute.xlu1 %4899 }
0x2b4e   :  { %v4678_v22 = vpop.permute.xlu0 %4677 }
0x2b4f   :  { %v4680_v30 = vmul.f32 %v4678_v22, %v4675_v2 }
0x2b51   :  { %v9606_v9 = vadd.f32 %v4681_v54, %v4680_v30 }
0x2b53   :  { %v4902_v11 = vsel %vm631_vm13, %v4900_v5, %v9606_v9  ;;  %5012 = vrot.lane.b32.xlu1 %v9606_v9, %s8090_s15 }
0x2b54   :  { %v7932_v15 = vpop.eup %7931  ;;  %v4903_v53 = vpack.c.bf16 %v4902_v11, %v4902_v11 }
0x2b55   :  { %4790 = vrot.lane.b32.xlu0 %v7932_v15, %s8090_s15 }
0x2b56   :  { %7296 = vmatmul.mubr.msk.bf16.vlgmr.msra.gmra.mrb[88].mxu0 %vm647_vm1, %v4903_v53 }
0x2b57   :  { %7315 = vmatprep.mubr.msk.bf16.mxu0 %vm8087_vm7, %v8086_v33  ;;  %7312 = vmatpush3.bf16.msra.mxu0 %v7681_v56 }
0x2b58   :  { %7313 = vmatprep.subr.bf16.mxu0 %v8086_v33 }
0x2ba2   :  { %v4866_v16 = vpop.f32.mrb[84].mxu1 }
0x2ba3   :  { %v4867_v17 = vadd.f32 %v9282_v43, %v4866_v16  ;;  %v7285_v19 = vpop.f32.mrb[85].mxu1 }
0x2ba4   :  { %v4869_v49 = vpop.f32.mrb[86].mxu1 }
0x2ba5   :  { %v7286_v52 = vpop.f32.mrb[87].mxu1  ;;  %4880 = vrot.lane.b32.xlu0 %v4867_v17, %s8079_s29  ;;  %v4872_v43 = vadd.f32 %v4867_v17, %v8525_v21 }
0x2ba7   :  { %v6521_v32 = vmul.f32 -1.442695, %v4872_v43  ;;  %v7686_v43 = vld [vmem:[%s10072_s18 + $0x18] sm:$0xff]  }
0x2ba9   :  { %7933 = vpow2.f32 %v6521_v32 }
0x2bb3   :  { %v7934_v34 = vpop.eup %7933 }
0x2bb4   :  { %v4876_v35 = vadd.f32 1.0, %v7934_v34 }
0x2bb6   :  { %7935 = vrcp.f32 %v4876_v35  ;;  %v7687_v35 = vld [vmem:[%s10074_s20] sm:$0xff]  }
0x2bc0   :  { %v7936_v36 = vpop.eup %7935 }
0x2bc1   :  { %v4890_v54 = vsub.f32 1.0, %v7936_v36  ;;  %v4896_v39 = vmul.f32 %v7936_v36, %v9559_v3  ;;  %v7683_v3 = vld [vmem:[%s10072_s18] sm:$0xff]  }
0x2bc5   :  { %v5013_v26 = vpop.permute.xlu1 %5012 }
0x2bc7   :  { %v4791_v24 = vpop.permute.xlu0 %4790 }
0x2bc8   :  { %v4793_v25 = vmul.f32 %v4791_v24, %v4788_v23  ;;  %v7684_v23 = vld [vmem:[%s10072_s18 + $0x8] sm:$0xff]  }
0x2bca   :  { %v9620_v4 = vadd.f32 %v4794_v47, %v4793_v25 }
0x2bcc   :  { %v5015_v29 = vsel %vm631_vm13, %v5013_v26, %v9620_v4 }
0x2bcd   :  { %v5016_v63 = vpack.c.bf16 %v5015_v29, %v5015_v29 }
0x2bcf   :  { %7308 = vmatmul.mubr.msk.bf16.vlgmr.msra.gmra.mrb[88].mxu1 %vm647_vm1, %v5016_v63  ;;  %v7685_v63 = vld [vmem:[%s10072_s18 + $0x10] sm:$0xff]  }
0x2bd0   :  { %7327 = vmatprep.mubr.msk.bf16.mxu1 %vm8087_vm7, %v8086_v33  ;;  %7320 = vmatpush3.bf16.msra.mxu1 %v7683_v3 }
0x2bd1   :  { %7321 = vmatprep.subr.bf16.mxu1 %v8086_v33 }
0x2bd4   :  { %7322 = vmatpush3.bf16.msra.mxu1 %v7684_v23 }
0x2bd5   :  { %7323 = vmatprep.subr.bf16.mxu1 %v8086_v33 }
0x2bd8   :  { %7324 = vmatpush3.bf16.msra.mxu1 %v7685_v63 }
0x2bd9   :  { %7325 = vmatprep.subr.bf16.mxu1 %v8086_v33 }
0x2bdc   :  { %7326 = vmatpush3.bf16.msra.mxu1 %v7686_v43 }
0x2bdd   :  { %7343 = vmatprep.subr.bf16.mxu1 %v8086_v33 }
0x2c17   :  { %v4881_v38 = vpop.permute.xlu0 %4880 }
0x2c18   :  { %v4883_v40 = vmul.f32 %v7936_v36, %v4881_v38  ;;  %v7688_v36 = vld [vmem:[%s10074_s20 + $0x8] sm:$0xff]   ;;  %v7689_v38 = vld [vmem:[%s10074_s20 + $0x10] sm:$0xff]  }
0x2c1a   :  { %4885 = vrot.lane.b32.xlu1 %v4883_v40, %s8079_s29  ;;  %v7690_v40 = vld [vmem:[%s10074_s20 + $0x18] sm:$0xff]  }
0x2c29   :  { %v4980_v48 = vpop.f32.mrb[88].mxu0 }
0x2c2a   :  { %v4981_v10 = vadd.f32 %v9369_v7, %v4980_v48  ;;  %v7297_v45 = vpop.f32.mrb[89].mxu0  ;;  %v7682_v7 = vld [vmem:[%s10070_s16 + $0x8] sm:$0xff]  }
0x2c2b   :  { %v4983_v14 = vpop.f32.mrb[90].mxu0  ;;  %7314 = vmatpush3.bf16.msra.mxu0 %v7682_v7 }
0x2c2c   :  { %4993 = vrot.lane.b32.xlu1 %v4981_v10, %s8081_s4  ;;  %v7298_v46 = vpop.f32.mrb[91].mxu0  ;;  %7331 = vmatprep.subr.bf16.mxu0 %v8086_v33  ;;  %v6528_v18 = vmul.f32 -1.442695, %v4981_v10 }
0x2c8c   :  { %v4886_v37 = vpop.permute.xlu1 %4885 }
0x2c8d   :  { %v4888_v41 = vadd.f32 %v4886_v37, %v8525_v21 }
0x2c8f   :  { %7937 = vtanh.f32 %v4888_v41 }
0x2c90   :  { %7939 = vpow2.f32 %v6528_v18 }
0x2c99   :  { %v7938_v50 = vpop.eup %7937 }
0x2c9a   :  { %4892 = vrot.lane.b32.xlu0 %v7938_v50, %s8090_s15  ;;  %v7940_v1 = vpop.eup %7939 }
0x2c9b   :  { %v4989_v31 = vadd.f32 1.0, %v7940_v1 }
0x2c9e   :  { %v4994_v53 = vpop.permute.xlu1 %4993 }
0x2ca2   :  { %v5093_v57 = vpop.f32.mrb[88].mxu1 }
0x2ca3   :  { %v5094_v59 = vadd.f32 %v9469_v20, %v5093_v57  ;;  %v7309_v13 = vpop.f32.mrb[89].mxu1 }
0x2ca4   :  { %v5096_v6 = vpop.f32.mrb[90].mxu1 }
0x2ca5   :  { %v7310_v60 = vpop.f32.mrb[91].mxu1  ;;  %5106 = vrot.lane.b32.xlu1 %v5094_v59, %s8081_s4  ;;  %v6535_v61 = vmul.f32 -1.442695, %v5094_v59 }
0x2ca7   :  { %7941 = vpow2.f32 %v6535_v61 }
0x2ca8   :  { %7943 = vrcp.f32 %v4989_v31 }
0x2cb1   :  { %v7942_v2 = vpop.eup %7941 }
0x2cb2   :  { %v5102_v22 = vadd.f32 1.0, %v7942_v2  ;;  %v7944_v16 = vpop.eup %7943 }
0x2cb3   :  { %v4996_v17 = vmul.f32 %v7944_v16, %v4994_v53  ;;  %v5003_v48 = vsub.f32 1.0, %v7944_v16  ;;  %v5009_v45 = vmul.f32 %v7944_v16, %v9606_v9  ;;  %v9706_v9 = vld [vmem:[%s10071_s17] ss:$0 sm:$0xff] }
0x2cb4   :  { %7945 = vrcp.f32 %v5102_v22 }
0x2cbe   :  { %v9649_v19 = vpop.eup %7945 }
0x2cbf   :  { %v5116_v60 = vsub.f32 1.0, %v9649_v19  ;;  %v5122_v61 = vmul.f32 %v9649_v19, %v9620_v4 }
0x2d0c   :  { %v4893_v30 = vpop.permute.xlu0 %4892 }
0x2d0d   :  { %v4895_v5 = vmul.f32 %v4893_v30, %v4890_v54 }
0x2d0f   :  { %v9644_v11 = vadd.f32 %v4896_v39, %v4895_v5 }
0x2d11   :  { %v5130_v15 = vpack.c.bf16 %v9644_v11, %v9644_v11 }
0x2d13   :  { %5143 = vrot.lane.b32.xlu0 %v5130_v15, %s8090_s15 }
0x2d17   :  { %v5107_v49 = vpop.permute.xlu1 %5106  ;;  %4998 = vrot.lane.b32.xlu0 %v4996_v17, %s8079_s29  ;;  %v9725_v17 = vld [vmem:[%s10073_s19] ss:$0 sm:$0xff] }
0x2d18   :  { %v5109_v52 = vmul.f32 %v9649_v19, %v5107_v49 }
0x2d1a   :  { %5111 = vrot.lane.b32.xlu1 %v5109_v52, %s8079_s29 }
0x2d1e   :  { %5227 = vrot.lane.b32.xlu1 %v9644_v11, %s8090_s15 }
0x2d85   :  { %v5144_v24 = vpop.permute.xlu0 %5143 }
0x2d86   :  { %7316 = vmatmul.mubr.msk.bf16.vlgmr.msra.gmra.mrb[92].mxu0 %vm631_vm13, %v5144_v24 }
0x2d87   :  { %7339 = vmatprep.mubr.msk.bf16.mxu0 %vm8087_vm7, %v8086_v33  ;;  %7332 = vmatpush3.bf16.msra.mxu0 %v7687_v35 }
0x2d88   :  { %7333 = vmatprep.subr.bf16.mxu0 %v8086_v33 }
0x2d89   :  { %v4999_v47 = vpop.permute.xlu0 %4998 }
0x2d8a   :  { %v5001_v25 = vadd.f32 %v4999_v47, %v4981_v10 }
0x2d8b   :  { %7334 = vmatpush3.bf16.msra.mxu0 %v7688_v36 }
0x2d8c   :  { %7947 = vtanh.f32 %v5001_v25  ;;  %v5112_v26 = vpop.permute.xlu1 %5111  ;;  %7335 = vmatprep.subr.bf16.mxu0 %v8086_v33 }
0x2d8d   :  { %v5114_v29 = vadd.f32 %v5112_v26, %v5094_v59 }
0x2d8f   :  { %7949 = vtanh.f32 %v5114_v29  ;;  %7336 = vmatpush3.bf16.msra.mxu0 %v7689_v38 }
0x2d90   :  { %7337 = vmatprep.subr.bf16.mxu0 %v8086_v33  ;;  %v5228_v37 = vpop.permute.xlu1 %5227 }
0x2d93   :  { %7338 = vmatpush3.bf16.msra.mxu0 %v7690_v40 }
0x2d94   :  { %7351 = vmatprep.subr.bf16.mxu0 %v8086_v33 }
0x2d96   :  { %v7948_v32 = vpop.eup %7947 }
0x2d97   :  { %5005 = vrot.lane.b32.xlu0 %v7948_v32, %s8090_s15 }
0x2d99   :  { %v7950_v34 = vpop.eup %7949 }
0x2d9b   :  { %5118 = vrot.lane.b32.xlu0 %v7950_v34, %s8090_s15 }
0x2e09   :  { %v5006_v10 = vpop.permute.xlu0 %5005 }
0x2e0a   :  { %v5008_v14 = vmul.f32 %v5006_v10, %v5003_v48  ;;  %v7691_v10 = vld [vmem:[%s10070_s16] sm:$0xff]  }
0x2e0c   :  { %v9694_v46 = vadd.f32 %v5009_v45, %v5008_v14 }
0x2e0d   :  { %v5119_v6 = vpop.permute.xlu0 %5118 }
0x2e0e   :  { %v5230_v41 = vsel %vm631_vm13, %v5228_v37, %v9694_v46  ;;  %5340 = vrot.lane.b32.xlu1 %v9694_v46, %s8090_s15  ;;  %v5121_v18 = vmul.f32 %v5119_v6, %v5116_v60 }
0x2e0f   :  { %v5231_v50 = vpack.c.bf16 %v5230_v41, %v5230_v41 }
0x2e10   :  { %v9713_v1 = vadd.f32 %v5122_v61, %v5121_v18 }
0x2e11   :  { %7328 = vmatmul.mubr.msk.bf16.vlgmr.msra.gmra.mrb[92].mxu1 %vm647_vm1, %v5231_v50 }
0x2e12   :  { %7347 = vmatprep.mubr.msk.bf16.mxu1 %vm8087_vm7, %v8086_v33  ;;  %7344 = vmatpush3.bf16.msra.mxu1 %v7691_v10 }
0x2e13   :  { %7345 = vmatprep.subr.bf16.mxu1 %v8086_v33 }
0x2e59   :  { %v5194_v56 = vpop.f32.mrb[92].mxu0 }
0x2e5a   :  { %v5195_v7 = vadd.f32 %v9706_v9, %v5194_v56  ;;  %v7317_v57 = vpop.f32.mrb[93].mxu0 }
0x2e5b   :  { %v5197_v59 = vpop.f32.mrb[94].mxu0  ;;  %v7693_v57 = vld [vmem:[%s10072_s18] sm:$0xff]  }
0x2e5c   :  { %5208 = vrot.lane.b32.xlu0 %v5195_v7, %s8079_s29  ;;  %v7318_v13 = vpop.f32.mrb[95].mxu0  ;;  %v5200_v54 = vadd.f32 %v5195_v7, %v8525_v21 }
0x2e5d   :  { %v7694_v13 = vld [vmem:[%s10072_s18 + $0x8] sm:$0xff]  }
0x2e5e   :  { %v6540_v30 = vmul.f32 -1.442695, %v5200_v54 }
0x2e60   :  { %7951 = vpow2.f32 %v6540_v30  ;;  %v7697_v30 = vld [vmem:[%s10074_s20] sm:$0xff]  }
0x2e6a   :  { %v7952_v39 = vpop.eup %7951 }
0x2e6b   :  { %v5204_v5 = vadd.f32 1.0, %v7952_v39 }
0x2e6d   :  { %7953 = vrcp.f32 %v5204_v5  ;;  %v7698_v5 = vld [vmem:[%s10074_s20 + $0x8] sm:$0xff]  }
0x2e77   :  { %v7954_v15 = vpop.eup %7953 }
0x2e78   :  { %v5218_v41 = vsub.f32 1.0, %v7954_v15  ;;  %v5224_v56 = vmul.f32 %v7954_v15, %v9644_v11 }
0x2e80   :  { %v5341_v2 = vpop.permute.xlu1 %5340 }
0x2e81   :  { %v5343_v31 = vsel %vm631_vm13, %v5341_v2, %v9713_v1 }
0x2e82   :  { %v5344_v22 = vpack.c.bf16 %v5343_v31, %v5343_v31  ;;  %v7695_v31 = vld [vmem:[%s10072_s18 + $0x10] sm:$0xff]  }
0x2e84   :  { %7340 = vmatmul.mubr.msk.bf16.vlgmr.msra.gmra.mrb[96].mxu0 %vm647_vm1, %v5344_v22  ;;  %v7696_v22 = vld [vmem:[%s10072_s18 + $0x18] sm:$0xff]  }
0x2e85   :  { %7359 = vmatprep.mubr.msk.bf16.mxu0 %vm8087_vm7, %v8086_v33  ;;  %7352 = vmatpush3.bf16.msra.mxu0 %v7693_v57 }
0x2e86   :  { %7353 = vmatprep.subr.bf16.mxu0 %v8086_v33 }
0x2e89   :  { %7354 = vmatpush3.bf16.msra.mxu0 %v7694_v13 }
0x2e8a   :  { %7355 = vmatprep.subr.bf16.mxu0 %v8086_v33 }
0x2e8d   :  { %7356 = vmatpush3.bf16.msra.mxu0 %v7695_v31  ;;  %v9820_v31 = vld [vmem:[%s10075_s21] ss:$0 sm:$0xff] }
0x2e8e   :  { %7357 = vmatprep.subr.bf16.mxu0 %v8086_v33 }
0x2e91   :  { %7358 = vmatpush3.bf16.msra.mxu0 %v7696_v22 }
0x2e92   :  { %7375 = vmatprep.subr.bf16.mxu0 %v8086_v33 }
0x2ece   :  { %v5209_v53 = vpop.permute.xlu0 %5208 }
0x2ecf   :  { %v5211_v16 = vmul.f32 %v7954_v15, %v5209_v53 }
0x2ed1   :  { %5213 = vrot.lane.b32.xlu1 %v5211_v16, %s8079_s29  ;;  %v7699_v16 = vld [vmem:[%s10074_s20 + $0x10] sm:$0xff]  }
0x2ee4   :  { %v5308_v19 = vpop.f32.mrb[92].mxu1 }
0x2ee5   :  { %v5309_v49 = vadd.f32 %v9725_v17, %v5308_v19  ;;  %v7329_v52 = vpop.f32.mrb[93].mxu1  ;;  %v7700_v19 = vld [vmem:[%s10074_s20 + $0x18] sm:$0xff]  }
0x2ee6   :  { %v5311_v3 = vpop.f32.mrb[94].mxu1 }
0x2ee7   :  { %v7330_v23 = vpop.f32.mrb[95].mxu1  ;;  %5321 = vrot.lane.b32.xlu0 %v5309_v49, %s8081_s4  ;;  %v6547_v24 = vmul.f32 -1.442695, %v5309_v49 }
0x2ee9   :  { %7955 = vpow2.f32 %v6547_v24 }
0x2ef3   :  { %v7956_v26 = vpop.eup %7955 }
0x2ef4   :  { %v5317_v29 = vadd.f32 1.0, %v7956_v26 }
0x2f43   :  { %v5214_v47 = vpop.permute.xlu1 %5213 }
0x2f44   :  { %v5216_v25 = vadd.f32 %v5214_v47, %v8525_v21 }
0x2f46   :  { %7957 = vtanh.f32 %v5216_v25 }
0x2f47   :  { %7959 = vrcp.f32 %v5317_v29 }
0x2f50   :  { %v7958_v63 = vpop.eup %7957 }
0x2f51   :  { %5220 = vrot.lane.b32.xlu1 %v7958_v63, %s8090_s15  ;;  %v9732_v35 = vpop.eup %7959 }
0x2f52   :  { %v5337_v23 = vmul.f32 %v9732_v35, %v9694_v46 }
0x2f57   :  { %v5421_v43 = vpop.f32.mrb[96].mxu0 }
0x2f58   :  { %v5422_v32 = vadd.f32 %v9469_v20, %v5421_v43  ;;  %v7341_v34 = vpop.f32.mrb[97].mxu0  ;;  %v7692_v20 = vld [vmem:[%s10070_s16 + $0x8] sm:$0xff]  }
0x2f59   :  { %v5322_v36 = vpop.permute.xlu0 %5321  ;;  %v5424_v38 = vpop.f32.mrb[98].mxu0  ;;  %7346 = vmatpush3.bf16.msra.mxu1 %v7692_v20 }
0x2f5a   :  { %v5324_v40 = vmul.f32 %v9732_v35, %v5322_v36  ;;  %5434 = vrot.lane.b32.xlu0 %v5422_v32, %s8081_s4  ;;  %v7342_v48 = vpop.f32.mrb[99].mxu0  ;;  %7363 = vmatprep.subr.bf16.mxu1 %v8086_v33  ;;  %v6554_v45 = vmul.f32 -1.442695, %v5422_v32 }
0x2f5c   :  { %5326 = vrot.lane.b32.xlu1 %v5324_v40, %s8079_s29  ;;  %7961 = vpow2.f32 %v6554_v45 }
0x2f66   :  { %v7962_v14 = vpop.eup %7961 }
0x2f67   :  { %v5430_v37 = vadd.f32 1.0, %v7962_v14 }
0x2f69   :  { %7963 = vrcp.f32 %v5430_v37 }
0x2f73   :  { %v7964_v11 = vpop.eup %7963 }
0x2f74   :  { %v5444_v63 = vsub.f32 1.0, %v7964_v11  ;;  %v5450_v43 = vmul.f32 %v7964_v11, %v9713_v1 }
0x2fc3   :  { %v5221_v50 = vpop.permute.xlu1 %5220 }
0x2fc4   :  { %v5223_v7 = vmul.f32 %v5221_v50, %v5218_v41 }
0x2fc6   :  { %v9749_v59 = vadd.f32 %v5224_v56, %v5223_v7 }
0x2fc8   :  { %v5458_v6 = vpack.c.bf16 %v9749_v59, %v9749_v59 }
0x2fca   :  { %5471 = vrot.lane.b32.xlu0 %v5458_v6, %s8090_s15 }
0x2fcc   :  { %v5435_v60 = vpop.permute.xlu0 %5434 }
0x2fcd   :  { %v5437_v18 = vmul.f32 %v7964_v11, %v5435_v60 }
0x2fce   :  { %v5327_v61 = vpop.permute.xlu1 %5326 }
0x2fcf   :  { %v5329_v2 = vadd.f32 %v5327_v61, %v5309_v49  ;;  %5439 = vrot.lane.b32.xlu1 %v5437_v18, %s8079_s29  ;;  %v5331_v49 = vsub.f32 1.0, %v9732_v35 }
0x2fd1   :  { %7965 = vtanh.f32 %v5329_v2 }
0x2fd3   :  { %5555 = vrot.lane.b32.xlu1 %v9749_v59, %s8090_s15 }
0x2fdb   :  { %v7966_v54 = vpop.eup %7965 }
0x2fdc   :  { %5333 = vrot.lane.b32.xlu0 %v7966_v54, %s8090_s15 }
0x303c   :  { %v5472_v39 = vpop.permute.xlu0 %5471 }
0x303d   :  { %7348 = vmatmul.mubr.msk.bf16.vlgmr.msra.gmra.mrb[96].mxu1 %vm631_vm13, %v5472_v39 }
0x303e   :  { %7364 = vmatpush3.bf16.msra.mxu1 %v7697_v30  ;;  %7371 = vmatprep.mubr.msk.bf16.mxu1 %vm8087_vm7, %v8086_v33 }
0x303f   :  { %7365 = vmatprep.subr.bf16.mxu1 %v8086_v33 }
0x3041   :  { %v5440_v15 = vpop.permute.xlu1 %5439 }
0x3042   :  { %v5442_v53 = vadd.f32 %v5440_v15, %v5422_v32  ;;  %7366 = vmatpush3.bf16.msra.mxu1 %v7698_v5 }
0x3043   :  { %7367 = vmatprep.subr.bf16.mxu1 %v8086_v33 }
0x3044   :  { %7967 = vtanh.f32 %v5442_v53 }
0x3045   :  { %v5556_v25 = vpop.permute.xlu1 %5555 }
0x3046   :  { %7368 = vmatpush3.bf16.msra.mxu1 %v7699_v16 }
0x3047   :  { %7369 = vmatprep.subr.bf16.mxu1 %v8086_v33 }
0x304a   :  { %7370 = vmatpush3.bf16.msra.mxu1 %v7700_v19 }
0x304b   :  { %7387 = vmatprep.subr.bf16.mxu1 %v8086_v33 }
0x304e   :  { %v7968_v52 = vpop.eup %7967  ;;  %v5334_v3 = vpop.permute.xlu0 %5333 }
0x304f   :  { %v5336_v24 = vmul.f32 %v5334_v3, %v5331_v49  ;;  %5446 = vrot.lane.b32.xlu0 %v7968_v52, %s8090_s15 }
0x3051   :  { %v9794_v47 = vadd.f32 %v5337_v23, %v5336_v24 }
0x3053   :  { %v5558_v26 = vsel %vm631_vm13, %v5556_v25, %v9794_v47  ;;  %5668 = vrot.lane.b32.xlu1 %v9794_v47, %s8090_s15 }
0x3054   :  { %v5559_v29 = vpack.c.bf16 %v5558_v26, %v5558_v26 }
0x3056   :  { %7360 = vmatmul.mubr.msk.bf16.vlgmr.msra.gmra.mrb[100].mxu0 %vm647_vm1, %v5559_v29 }
0x3057   :  { %7383 = vmatprep.mubr.msk.bf16.mxu0 %vm8087_vm7, %v8086_v33 }
0x30c1   :  { %v5447_v46 = vpop.permute.xlu0 %5446 }
0x30c2   :  { %v5449_v32 = vmul.f32 %v5447_v46, %v5444_v63 }
0x30c4   :  { %v9804_v34 = vadd.f32 %v5450_v43, %v5449_v32  ;;  %v7701_v43 = vld [vmem:[%s10072_s18] sm:$0xff]   ;;  %v7703_v32 = vld [vmem:[%s10072_s18 + $0x10] sm:$0xff]  }
0x30c5   :  { %v5669_v35 = vpop.permute.xlu1 %5668  ;;  %7376 = vmatpush3.bf16.msra.mxu0 %v7701_v43 }
0x30c6   :  { %v5671_v36 = vsel %vm631_vm13, %v5669_v35, %v9804_v34  ;;  %7377 = vmatprep.subr.bf16.mxu0 %v8086_v33 }
0x30c7   :  { %v5672_v38 = vpack.c.bf16 %v5671_v36, %v5671_v36  ;;  %v7704_v36 = vld [vmem:[%s10072_s18 + $0x18] sm:$0xff]  }
0x30c9   :  { %7372 = vmatmul.mubr.msk.bf16.vlgmr.msra.gmra.mrb[100].mxu1 %vm647_vm1, %v5672_v38  ;;  %v7705_v38 = vld [vmem:[%s10074_s20] sm:$0xff]  }
0x30ca   :  { %7395 = vmatprep.mubr.msk.bf16.mxu1 %vm8087_vm7, %v8086_v33  ;;  %7388 = vmatpush3.bf16.msra.mxu1 %v7705_v38 }
0x30cb   :  { %7389 = vmatprep.subr.bf16.mxu1 %v8086_v33 }
0x3110   :  { %v5522_v40 = vpop.f32.mrb[96].mxu1 }
0x3111   :  { %v5523_v48 = vadd.f32 %v9706_v9, %v5522_v40  ;;  %v7349_v10 = vpop.f32.mrb[97].mxu1  ;;  %v7706_v40 = vld [vmem:[%s10074_s20 + $0x8] sm:$0xff]  }
0x3112   :  { %v5525_v20 = vpop.f32.mrb[98].mxu1  ;;  %7390 = vmatpush3.bf16.msra.mxu1 %v7706_v40 }
0x3113   :  { %v7350_v45 = vpop.f32.mrb[99].mxu1  ;;  %5536 = vrot.lane.b32.xlu0 %v5523_v48, %s8079_s29  ;;  %v5528_v7 = vadd.f32 %v5523_v48, %v8525_v21  ;;  %7391 = vmatprep.subr.bf16.mxu1 %v8086_v33 }
0x3115   :  { %v6559_v57 = vmul.f32 -1.442695, %v5528_v7 }
0x3117   :  { %7969 = vpow2.f32 %v6559_v57 }
0x3121   :  { %v7970_v13 = vpop.eup %7969 }
0x3122   :  { %v5532_v6 = vadd.f32 1.0, %v7970_v13 }
0x3124   :  { %7971 = vrcp.f32 %v5532_v6 }
0x3129   :  { %v5636_v14 = vpop.f32.mrb[100].mxu0 }
0x312a   :  { %v5637_v37 = vadd.f32 %v9725_v17, %v5636_v14  ;;  %v7361_v41 = vpop.f32.mrb[101].mxu0 }
0x312b   :  { %v5639_v50 = vpop.f32.mrb[102].mxu0 }
0x312c   :  { %5649 = vrot.lane.b32.xlu1 %v5637_v37, %s8081_s4  ;;  %v7362_v56 = vpop.f32.mrb[103].mxu0  ;;  %v6566_v9 = vmul.f32 -1.442695, %v5637_v37  ;;  %v7707_v50 = vld [vmem:[%s10074_s20 + $0x10] sm:$0xff]  }
0x312d   :  { %7392 = vmatpush3.bf16.msra.mxu1 %v7707_v50  ;;  %v7711_v50 = vld [vmem:[%s10074_s20 + $0x10] sm:$0xff]  }
0x312e   :  { %7973 = vpow2.f32 %v6566_v9  ;;  %v7972_v11 = vpop.eup %7971  ;;  %7393 = vmatprep.subr.bf16.mxu1 %v8086_v33 }
0x312f   :  { %v5546_v48 = vsub.f32 1.0, %v7972_v11  ;;  %v5552_v20 = vmul.f32 %v7972_v11, %v9749_v59  ;;  %v7708_v59 = vld [vmem:[%s10074_s20 + $0x18] sm:$0xff]  }
0x3131   :  { %7394 = vmatpush3.bf16.msra.mxu1 %v7708_v59 }
0x3138   :  { %v7974_v61 = vpop.eup %7973 }
0x3139   :  { %v5645_v2 = vadd.f32 1.0, %v7974_v61 }
0x313b   :  { %7975 = vrcp.f32 %v5645_v2 }
0x3145   :  { %v9823_v39 = vpop.eup %7975 }
0x3146   :  { %v5659_v56 = vsub.f32 1.0, %v9823_v39  ;;  %v5665_v13 = vmul.f32 %v9823_v39, %v9794_v47 }
0x3185   :  { %v5537_v60 = vpop.permute.xlu0 %5536 }
0x3186   :  { %v5539_v18 = vmul.f32 %v7972_v11, %v5537_v60 }
0x3188   :  { %5541 = vrot.lane.b32.xlu0 %v5539_v18, %s8079_s29 }
0x319c   :  { %v5749_v22 = vpop.f32.mrb[100].mxu1 }
0x319d   :  { %v5750_v54 = vadd.f32 %v9820_v31, %v5749_v22  ;;  %v7373_v30 = vpop.f32.mrb[101].mxu1 }
0x319e   :  { %v5752_v5 = vpop.f32.mrb[102].mxu1  ;;  %v5650_v15 = vpop.permute.xlu1 %5649 }
0x319f   :  { %v5652_v53 = vmul.f32 %v9823_v39, %v5650_v15  ;;  %v7374_v16 = vpop.f32.mrb[103].mxu1  ;;  %5762 = vrot.lane.b32.xlu1 %v5750_v54, %s8081_s4  ;;  %v6573_v19 = vmul.f32 -1.442695, %v5750_v54 }
0x31a1   :  { %5654 = vrot.lane.b32.xlu0 %v5652_v53, %s8079_s29  ;;  %7977 = vpow2.f32 %v6573_v19 }
0x31ab   :  { %v7978_v3 = vpop.eup %7977 }
0x31ac   :  { %v5758_v23 = vadd.f32 1.0, %v7978_v3 }
0x31fa   :  { %v5542_v49 = vpop.permute.xlu0 %5541 }
0x31fb   :  { %v5544_v52 = vadd.f32 %v5542_v49, %v8525_v21  ;;  %v7702_v21 = vld [vmem:[%s10072_s18 + $0x8] sm:$0xff]  }
0x31fc   :  { %7378 = vmatpush3.bf16.msra.mxu0 %v7702_v21 }
0x31fd   :  { %7979 = vtanh.f32 %v5544_v52  ;;  %7379 = vmatprep.subr.bf16.mxu0 %v8086_v33 }
0x31fe   :  { %7981 = vrcp.f32 %v5758_v23 }
0x3200   :  { %7380 = vmatpush3.bf16.msra.mxu0 %v7703_v32 }
0x3201   :  { %7381 = vmatprep.subr.bf16.mxu0 %v8086_v33 }
0x3204   :  { %7382 = vmatpush3.bf16.msra.mxu0 %v7704_v36 }
0x3205   :  { %7399 = vmatprep.subr.bf16.mxu0 %v8086_v33 }
0x3207   :  { %v7980_v24 = vpop.eup %7979 }
0x3208   :  { %5548 = vrot.lane.b32.xlu1 %v7980_v24, %s8090_s15  ;;  %v7982_v25 = vpop.eup %7981 }
0x3209   :  { %v5772_v61 = vsub.f32 1.0, %v7982_v25  ;;  %v5778_v2 = vmul.f32 %v7982_v25, %v9804_v34 }
0x3211   :  { %v5763_v26 = vpop.permute.xlu1 %5762 }
0x3212   :  { %v5765_v29 = vmul.f32 %v7982_v25, %v5763_v26 }
0x3213   :  { %v5655_v63 = vpop.permute.xlu0 %5654 }
0x3214   :  { %v5657_v46 = vadd.f32 %v5655_v63, %v5637_v37  ;;  %5767 = vrot.lane.b32.xlu0 %v5765_v29, %s8079_s29 }
0x3216   :  { %7983 = vtanh.f32 %v5657_v46 }
0x3220   :  { %v7984_v35 = vpop.eup %7983 }
0x3221   :  { %5661 = vrot.lane.b32.xlu1 %v7984_v35, %s8090_s15 }
0x327a   :  { %v5549_v10 = vpop.permute.xlu1 %5548 }
0x327b   :  { %v5551_v45 = vmul.f32 %v5549_v10, %v5546_v48 }
0x327d   :  { %v5553_v14 = vadd.f32 %v5552_v20, %v5551_v45 }
0x327f   :  { %5787 = vrot.lane.b32.xlu0 %v5553_v14, %s8090_s15 }
0x3286   :  { %v5768_v37 = vpop.permute.xlu0 %5767 }
0x3287   :  { %v5770_v41 = vadd.f32 %v5768_v37, %v5750_v54  ;;  %v7709_v37 = vld [vmem:[%s10074_s20] sm:$0xff]  }
0x3289   :  { %7985 = vtanh.f32 %v5770_v41  ;;  %v7710_v41 = vld [vmem:[%s10074_s20 + $0x8] sm:$0xff]  }
0x3293   :  { %v7986_v7 = vpop.eup %7985  ;;  %v5662_v57 = vpop.permute.xlu1 %5661 }
0x3294   :  { %v5664_v6 = vmul.f32 %v5662_v57, %v5659_v56  ;;  %5774 = vrot.lane.b32.xlu1 %v7986_v7, %s8090_s15  ;;  %v7712_v56 = vld [vmem:[%s10074_s20 + $0x18] sm:$0xff]  }
0x3296   :  { %v9869_v9 = vadd.f32 %v5665_v13, %v5664_v6 }
0x3298   :  { %5900 = vrot.lane.b32.xlu0 %v9869_v9, %s8090_s15 }
0x32f1   :  { %v5788_v11 = vpop.permute.xlu0 %5787 }
0x32f2   :  { %v5790_v60 = vsel %vm631_vm13, %v5788_v11, %v9869_v9 }
0x32f3   :  { %v5791_v18 = vpack.c.bf16 %v5790_v60, %v5790_v60 }
0x32f5   :  { %7384 = vmatmul.mubr.msk.bf16.vlgmr.msra.gmra.mrb[104].mxu0 %vm647_vm1, %v5791_v18 }
0x32f6   :  { %7407 = vmatprep.mubr.msk.bf16.mxu0 %vm8087_vm7, %v8086_v33  ;;  %7400 = vmatpush3.bf16.msra.mxu0 %v7709_v37 }
0x32f7   :  { %7401 = vmatprep.subr.bf16.mxu0 %v8086_v33 }
0x32fa   :  { %7402 = vmatpush3.bf16.msra.mxu0 %v7710_v41 }
0x32fb   :  { %7403 = vmatprep.subr.bf16.mxu0 %v8086_v33 }
0x32fe   :  { %7404 = vmatpush3.bf16.msra.mxu0 %v7711_v50 }
0x32ff   :  { %7405 = vmatprep.subr.bf16.mxu0 %v8086_v33 }
0x3302   :  { %7406 = vmatpush3.bf16.msra.mxu0 %v7712_v56 }
0x3306   :  { %v5775_v47 = vpop.permute.xlu1 %5774 }
0x3307   :  { %v5777_v22 = vmul.f32 %v5775_v47, %v5772_v61 }
0x3309   :  { %v9879_v54 = vadd.f32 %v5778_v2, %v5777_v22 }
0x330a   :  { %v5901_v30 = vpop.permute.xlu0 %5900 }
0x330b   :  { %v5903_v39 = vsel %vm631_vm13, %v5901_v30, %v9879_v54 }
0x330c   :  { %v5904_v5 = vpack.c.bf16 %v5903_v39, %v5903_v39 }
0x330e   :  { %7396 = vmatmul.mubr.msk.bf16.vlgmr.msra.gmra.mrb[104].mxu1 %vm647_vm1, %v5904_v5 }
0x33c8   :  { %v5868_v15 = vpop.f32.mrb[104].mxu0 }
0x33c9   :  { %v5869_v53 = vadd.f32 %v9725_v17, %v5868_v15  ;;  %v7385_v16 = vpop.f32.mrb[105].mxu0 }
0x33ca   :  { %v5871_v19 = vpop.f32.mrb[106].mxu0 }
0x33cb   :  { %5881 = vrot.lane.b32.xlu1 %v5869_v53, %s8081_s4  ;;  %v7386_v49 = vpop.f32.mrb[107].mxu0  ;;  %v6580_v26 = vmul.f32 -1.442695, %v5869_v53 }
0x33cd   :  { %7987 = vpow2.f32 %v6580_v26 }
0x33d7   :  { %v7988_v29 = vpop.eup %7987 }
0x33d8   :  { %v5877_v63 = vadd.f32 1.0, %v7988_v29 }
0x33da   :  { %7989 = vrcp.f32 %v5877_v63 }
0x33e1   :  { %v5981_v52 = vpop.f32.mrb[104].mxu1 }
0x33e2   :  { %v5982_v3 = vadd.f32 %v9820_v31, %v5981_v52  ;;  %v7397_v23 = vpop.f32.mrb[105].mxu1 }
0x33e3   :  { %v5984_v24 = vpop.f32.mrb[106].mxu1 }
0x33e4   :  { %5994 = vrot.lane.b32.xlu0 %v5982_v3, %s8081_s4  ;;  %v7398_v25 = vpop.f32.mrb[107].mxu1  ;;  %v6587_v46 = vmul.f32 -1.442695, %v5982_v3  ;;  %v7990_v17 = vpop.eup %7989 }
0x33e5   :  { %v5891_v7 = vsub.f32 1.0, %v7990_v17  ;;  %v5897_v13 = vmul.f32 %v7990_v17, %v9869_v9 }
0x33e6   :  { %7991 = vpow2.f32 %v6587_v46 }
0x33f0   :  { %v7992_v32 = vpop.eup %7991 }
0x33f1   :  { %v5990_v35 = vadd.f32 1.0, %v7992_v32 }
0x33f3   :  { %7993 = vrcp.f32 %v5990_v35 }
0x33fd   :  { %v7994_v36 = vpop.eup %7993 }
0x33fe   :  { %v6004_v18 = vsub.f32 1.0, %v7994_v36  ;;  %v6010_v47 = vmul.f32 %v7994_v36, %v9879_v54 }
0x343d   :  { %v5882_v43 = vpop.permute.xlu1 %5881 }
0x343e   :  { %v5884_v21 = vmul.f32 %v7990_v17, %v5882_v43 }
0x3440   :  { %5886 = vrot.lane.b32.xlu1 %v5884_v21, %s8079_s29 }
0x3456   :  { %v5995_v38 = vpop.permute.xlu0 %5994 }
0x3457   :  { %v5997_v40 = vmul.f32 %v7994_v36, %v5995_v38 }
0x3459   :  { %5999 = vrot.lane.b32.xlu0 %v5997_v40, %s8079_s29 }
0x34b2   :  { %v5887_v48 = vpop.permute.xlu1 %5886 }
0x34b3   :  { %v5889_v10 = vadd.f32 %v5887_v48, %v5869_v53 }
0x34b5   :  { %7995 = vtanh.f32 %v5889_v10 }
0x34bf   :  { %v7996_v20 = vpop.eup %7995 }
0x34c0   :  { %5893 = vrot.lane.b32.xlu1 %v7996_v20, %s8090_s15 }
0x34cb   :  { %v6000_v45 = vpop.permute.xlu0 %5999 }
0x34cc   :  { %v6002_v14 = vadd.f32 %v6000_v45, %v5982_v3 }
0x34ce   :  { %7997 = vtanh.f32 %v6002_v14 }
0x34d8   :  { %v7998_v59 = vpop.eup %7997 }
0x34d9   :  { %6006 = vrot.lane.b32.xlu0 %v7998_v59, %s8090_s15 }
0x3532   :  { %v5894_v57 = vpop.permute.xlu1 %5893 }
0x3533   :  { %v5896_v6 = vmul.f32 %v5894_v57, %v5891_v7 }
0x3535   :  { %v5898_v11 = vadd.f32 %v5897_v13, %v5896_v6 }
0x3537   :  { %6019 = vrot.lane.b32.xlu1 %v5898_v11, %s8090_s15 }
0x354b   :  { %v6007_v60 = vpop.permute.xlu0 %6006 }
0x354c   :  { %v6009_v61 = vmul.f32 %v6007_v60, %v6004_v18 }
0x354e   :  { %v9910_v2 = vadd.f32 %v6010_v47, %v6009_v61 }
0x35a9   :  { %v6020_v33 = vpop.permute.xlu1 %6019 }
0x35aa   :  { %v6022_v22 = vsel %vm631_vm13, %v6020_v33, %v9910_v2 }
0x35ab   :  { %v6023_v30 = vpack.c.bf16 %v6022_v22, %v6022_v22 }
0x35ad   :  { %7408 = vmatmul.mubr.msk.bf16.vlgmr.msra.gmra.mrb[108].mxu0 %vm647_vm1, %v6023_v30 }
0x3680   :  { %v6100_v39 = vpop.f32.mrb[108].mxu0 }
0x3681   :  { %v6101_v9 = vadd.f32 %v9820_v31, %v6100_v39  ;;  %v7409_v5 = vpop.f32.mrb[109].mxu0 }
0x3682   :  { %v6103_v15 = vpop.f32.mrb[110].mxu0 }
0x3683   :  { %6113 = vrot.lane.b32.xlu0 %v6101_v9, %s8081_s4  ;;  %v7410_v53 = vpop.f32.mrb[111].mxu0  ;;  %v6594_v16 = vmul.f32 -1.442695, %v6101_v9 }
0x3685   :  { %7999 = vpow2.f32 %v6594_v16 }
0x368f   :  { %v8000_v19 = vpop.eup %7999 }
0x3690   :  { %v6109_v49 = vadd.f32 1.0, %v8000_v19 }
0x3692   :  { %8001 = vrcp.f32 %v6109_v49 }
0x369c   :  { %v9917_v52 = vpop.eup %8001 }
0x36f5   :  { %v6114_v3 = vpop.permute.xlu0 %6113 }
0x36f6   :  { %v6116_v23 = vmul.f32 %v9917_v52, %v6114_v3 }
0x36f8   :  { %6118 = vrot.lane.b32.xlu1 %v6116_v23, %s8079_s29 }
0x36fc   :  { %1515 = vrot.lane.b32.xlu1 %v8731_v51, %s8090_s15 }
0x3700   :  { %2173 = vrot.lane.b32.xlu1 %v8894_v42, %s8090_s15 }
0x3704   :  { %2829 = vrot.lane.b32.xlu1 %v9073_v12, %s8090_s15 }
0x3708   :  { %3485 = vrot.lane.b32.xlu1 %v9261_v44, %s8090_s15 }
0x370c   :  { %4141 = vrot.lane.b32.xlu1 %v9442_v28, %s8090_s15 }
0x3710   :  { %4797 = vrot.lane.b32.xlu1 %v9620_v4, %s8090_s15 }
0x3714   :  { %5453 = vrot.lane.b32.xlu1 %v9804_v34, %s8090_s15 }
0x3718   :  { %6013 = vrot.lane.b32.xlu1 %v9910_v2, %s8090_s15 }
0x371c   :  { %848 = vrot.lane.b32.xlu1 %v8470_v55, %s8088_s5 }
0x376a   :  { %v6119_v51 = vpop.permute.xlu1 %6118 }
0x376b   :  { %v6121_v42 = vadd.f32 %v6119_v51, %v6101_v9 }
0x376d   :  { %8003 = vtanh.f32 %v6121_v42 }
0x376e   :  { %v1516_v12 = vpop.permute.xlu1 %1515 }
0x376f   :  { %1519 = vst.msk [vmem:[#allocation2] sm:$0x1] %vm1518_vm2, %v1516_v12 }
0x3770   :  { %1521 = vst.msk [vmem:[#allocation2 + $0xf] sm:$0x2] %vm1520_vm8, %v1516_v12 }
0x3772   :  { %v2174_v44 = vpop.permute.xlu1 %2173 }
0x3773   :  { %2176 = vst.msk [vmem:[#allocation2 + $0x2] sm:$0x1] %vm1518_vm2, %v2174_v44 }
0x3774   :  { %2177 = vst.msk [vmem:[#allocation2 + $0x11] sm:$0x2] %vm1520_vm8, %v2174_v44 }
0x3776   :  { %v2830_v28 = vpop.permute.xlu1 %2829 }
0x3777   :  { %v8004_v4 = vpop.eup %8003  ;;  %2832 = vst.msk [vmem:[#allocation2 + $0x4] sm:$0x1] %vm1518_vm2, %v2830_v28 }
0x3778   :  { %2833 = vst.msk [vmem:[#allocation2 + $0x13] sm:$0x2] %vm1520_vm8, %v2830_v28  ;;  %6125 = vrot.lane.b32.xlu0 %v8004_v4, %s8090_s15 }
0x377a   :  { %v3486_v55 = vpop.permute.xlu1 %3485 }
0x377b   :  { %3488 = vst.msk [vmem:[#allocation2 + $0x6] sm:$0x1] %vm1518_vm2, %v3486_v55 }
0x377c   :  { %3489 = vst.msk [vmem:[#allocation2 + $0x15] sm:$0x2] %vm1520_vm8, %v3486_v55  ;;  %1845 = vrot.lane.b32.xlu0 %v8813_v58, %s8090_s15 }
0x377e   :  { %v4142_v34 = vpop.permute.xlu1 %4141 }
0x377f   :  { %4144 = vst.msk [vmem:[#allocation2 + $0x8] sm:$0x1] %vm1518_vm2, %v4142_v34 }
0x3780   :  { %4145 = vst.msk [vmem:[#allocation2 + $0x17] sm:$0x2] %vm1520_vm8, %v4142_v34  ;;  %2501 = vrot.lane.b32.xlu0 %v8987_v27, %s8090_s15 }
0x3782   :  { %v4798_v31 = vpop.permute.xlu1 %4797 }
0x3783   :  { %4800 = vst.msk [vmem:[#allocation2 + $0xa] sm:$0x1] %vm1518_vm2, %v4798_v31 }
0x3784   :  { %4801 = vst.msk [vmem:[#allocation2 + $0x19] sm:$0x2] %vm1520_vm8, %v4798_v31  ;;  %3157 = vrot.lane.b32.xlu0 %v9166_v8, %s8090_s15  ;;  %v7713_v8 = vld [vmem:[%s10076_s22] sm:$0xff]  }
0x3785   :  { %7411 = vmatprep.subr.bf16.mxu1 %v7713_v8 }
0x3786   :  { %v5454_v24 = vpop.permute.xlu1 %5453  ;;  %7412 = vmatpush3.bf16.msra.mxu1 %v7713_v8 }
0x3787   :  { %5456 = vst.msk [vmem:[#allocation2 + $0xc] sm:$0x1] %vm1518_vm2, %v5454_v24 }
0x3788   :  { %5457 = vst.msk [vmem:[#allocation2 + $0x1b] sm:$0x2] %vm1520_vm8, %v5454_v24  ;;  %3813 = vrot.lane.b32.xlu0 %v9345_v62, %s8090_s15  ;;  %v7714_v62 = vld [vmem:[%s10076_s22 + $0x8] sm:$0xff]   ;;  %s8091_s22 = smov [#allocation5]  }
0x3789   :  { %7413 = vmatprep.subr.bf16.mxu1 %v7714_v62 }
0x378a   :  { %v6014_v58 = vpop.permute.xlu1 %6013  ;;  %7414 = vmatpush3.bf16.msra.mxu1 %v7714_v62 }
0x378b   :  { %6016 = vst.msk [vmem:[#allocation2 + $0xe] sm:$0x1] %vm1518_vm2, %v6014_v58 }
0x378c   :  { %6017 = vst.msk [vmem:[#allocation2 + $0x1d] sm:$0x2] %vm1520_vm8, %v6014_v58  ;;  %4469 = vrot.lane.b32.xlu0 %v9539_v0, %s8090_s15  ;;  %v6123_v0 = vsub.f32 1.0, %v9917_v52 }
0x378e   :  { %v849_v27 = vpop.permute.xlu1 %848 }
0x378f   :  { %851 = vst.msk [vmem:[#allocation5] sm:$0x3] %vm845_vm6, %v849_v27 }
0x3790   :  { %5125 = vrot.lane.b32.xlu0 %v9713_v1, %s8090_s15  ;;  %v6129_v1 = vmul.f32 %v9917_v52, %v9910_v2 }
0x3794   :  { %5781 = vrot.lane.b32.xlu0 %v9879_v54, %s8090_s15 }
0x37ea   :  { %v6126_v25 = vpop.permute.xlu0 %6125 }
0x37eb   :  { %v6128_v26 = vmul.f32 %v6126_v25, %v6123_v0 }
0x37ed   :  { %v6130_v54 = vadd.f32 %v6129_v1, %v6128_v26 }
0x37ee   :  { %v1846_v29 = vpop.permute.xlu0 %1845 }
0x37ef   :  { %1848 = vst.msk [vmem:[#allocation2 + $0x1] sm:$0x1] %vm1518_vm2, %v1846_v29  ;;  %6132 = vrot.lane.b32.xlu0 %v6130_v54, %s8090_s15  ;;  %s6241_s15 = sshll.u32 %s8091_s22, 4  ;;  %s6242_s15 = int_to_ptr.vmem [resolvable:$true] %s6241_s15 }
0x37f0   :  { %1849 = vst.msk [vmem:[#allocation2 + $0x10] sm:$0x2] %vm1520_vm8, %v1846_v29  ;;  %s8005_s30 = scalar_lea.vmem %s6242_s15, 32  ;;  %p8010_p1 = scmp.lt.s32.totalorder %s6242_s15, %s6242_s15 }
0x37f1   :  { %p8006_p0 = scmp.ne.s32.totalorder %s6242_s15, %s8005_s30  ;;  %p8011_p2 = scmp.lt.s32.totalorder %s8005_s30, %s8005_s30 }
0x37f2   :  { %v2502_v63 = vpop.permute.xlu0 %2501 }
0x37f3   :  { %2504 = vst.msk [vmem:[#allocation2 + $0x3] sm:$0x1] %vm1518_vm2, %v2502_v63  ;;  %p8012_p3 = por %p8011_p2, %p8010_p1 }
0x37f4   :  { %2505 = vst.msk [vmem:[#allocation2 + $0x12] sm:$0x2] %vm1520_vm8, %v2502_v63 }
0x37f5   :  { %p8013_p4 = pnand %p8012_p3, %p8006_p0 }
0x37f6   :  { %v3158_v46 = vpop.permute.xlu0 %3157 }
0x37f7   :  { %3160 = vst.msk [vmem:[#allocation2 + $0x5] sm:$0x1] %vm1518_vm2, %v3158_v46 }
0x37f8   :  { %3161 = vst.msk [vmem:[#allocation2 + $0x14] sm:$0x2] %vm1520_vm8, %v3158_v46 }
0x37fa   :  { %v3814_v17 = vpop.permute.xlu0 %3813 }
0x37fb   :  { %3816 = vst.msk [vmem:[#allocation2 + $0x7] sm:$0x1] %vm1518_vm2, %v3814_v17 }
0x37fc   :  { %3817 = vst.msk [vmem:[#allocation2 + $0x16] sm:$0x2] %vm1520_vm8, %v3814_v17 }
0x37fe   :  { %v4470_v43 = vpop.permute.xlu0 %4469 }
0x37ff   :  { %4472 = vst.msk [vmem:[#allocation2 + $0x9] sm:$0x1] %vm1518_vm2, %v4470_v43 }
0x3800   :  { %4473 = vst.msk [vmem:[#allocation2 + $0x18] sm:$0x2] %vm1520_vm8, %v4470_v43 }
0x3802   :  { %v5126_v21 = vpop.permute.xlu0 %5125  ;;  %v6137_v36 = vld [vmem:[#allocation2] sm:$0xff] }
0x3803   :  { %5128 = vst.msk [vmem:[#allocation2 + $0xb] sm:$0x1] %vm1518_vm2, %v5126_v21  ;;  %v6139_v40 = vld [vmem:[#allocation2 + $0x10] sm:$0xff] }
0x3804   :  { %5129 = vst.msk [vmem:[#allocation2 + $0x1a] sm:$0x2] %vm1520_vm8, %v5126_v21 }
0x3806   :  { %v5782_v32 = vpop.permute.xlu0 %5781 }
0x3807   :  { %5784 = vst.msk [vmem:[#allocation2 + $0xd] sm:$0x1] %vm1518_vm2, %v5782_v32 }
0x3808   :  { %5785 = vst.msk [vmem:[#allocation2 + $0x1c] sm:$0x2] %vm1520_vm8, %v5782_v32 }
0x3861   :  { %v6133_v35 = vpop.permute.xlu0 %6132 }
0x3862   :  { %6135 = vst.msk [vmem:[#allocation2 + $0xf] sm:$0x1] %vm1518_vm2, %v6133_v35 }
0x3863   :  { %6136 = vst.msk [vmem:[#allocation2 + $0x1e] sm:$0x2] %vm1520_vm8, %v6133_v35 }
0x3869   :  { %v6138_v38 = vld [vmem:[#allocation2 + $0x8] sm:$0xff] }
0x386a   :  { %v6140_v48 = vld [vmem:[#allocation2 + $0x18] sm:$0xff]  ;;  %v6141_v10 = vpack.c.bf16 %v6138_v38, %v6137_v36 }
0x386b   :  { %v6142_v20 = vpack.c.bf16 %v6140_v48, %v6139_v40 }
0x386c   :  { %7415 = vmatprep.mubr.msk.bf16.mxu1 %vm631_vm13, %v6141_v10 }
0x386d   :  { %7416 = vmatmul.mubr.msk.bf16.vlgmr.msra.gmra.mrb[108].mxu1 %vm631_vm13, %v6142_v20 }
0x386e   :  { %8016 = shalt.err (!%p8013_p4)
}
0x386f   :  { %s8017_s7 = scalar_lea.hbm %s10079_s25, 32 }
0x3870   :  { %p8018_p5 = scmp.ne.s32.totalorder %s10079_s25, %s8017_s7  ;;  %p8021_p6 = scmp.lt.u32.totalorder %s8017_s7, %s10079_s25 }
0x3872   :  { %p8023_p7 = pnand %p8021_p6, %p8018_p5 }
0x3874   :  { %8026 = shalt.err (!%p8023_p7)
}
0x3875   :  { %6244 = dma.vmem_to_hbm [thread:$0]  %s6242_s15, 32, %s10079_s25, [#allocation6]  }
0x3876   :  { %s8027_s19 = scalar_lea.vmem %s6232_s2, 32  ;;  %p8032_p9 = scmp.lt.s32.totalorder %s6232_s2, %s6232_s2 }
0x3877   :  { %p8028_p8 = scmp.ne.s32.totalorder %s6232_s2, %s8027_s19  ;;  %p8033_p10 = scmp.lt.s32.totalorder %s8027_s19, %s8027_s19 }
0x3879   :  { %p8034_p11 = por %p8033_p10, %p8032_p9 }
0x387b   :  { %p8035_p12 = pnand %p8034_p11, %p8028_p8 }
0x387d   :  { %8038 = shalt.err (!%p8035_p12)
}
0x387e   :  { %s8039_s6 = scalar_lea.hbm %s10078_s24, 32 }
0x387f   :  { %p8040_p13 = scmp.ne.s32.totalorder %s10078_s24, %s8039_s6  ;;  %p8043_p0 = scmp.lt.u32.totalorder %s8039_s6, %s10078_s24 }
0x3881   :  { %p8045_p1 = pnand %p8043_p0, %p8040_p13 }
0x3883   :  { %8048 = shalt.err (!%p8045_p1)
}
0x3884   :  { %6234 = dma.vmem_to_hbm [thread:$0]  %s6232_s2, 32, %s10078_s24, [#allocation4]  }
0x3885   :  { %s8093_s29 = smov [#allocation7]  }
0x3886   :  { %s6251_s4 = sshll.u32 %s8093_s29, 4  ;;  %s6252_s4 = int_to_ptr.vmem [resolvable:$true] %s6251_s4 }
0x3887   :  { %s8049_s5 = scalar_lea.vmem %s6252_s4, 32  ;;  %p8054_p3 = scmp.lt.s32.totalorder %s6252_s4, %s6252_s4 }
0x3888   :  { %p8050_p2 = scmp.ne.s32.totalorder %s6252_s4, %s8049_s5  ;;  %p8055_p4 = scmp.lt.s32.totalorder %s8049_s5, %s8049_s5 }
0x388a   :  { %p8056_p5 = por %p8055_p4, %p8054_p3 }
0x388c   :  { %p8057_p6 = pnand %p8056_p5, %p8050_p2 }
0x388e   :  { %8060 = shalt.err (!%p8057_p6)
}
0x388f   :  { %s8061_s8 = scalar_lea.hbm %s10080_s26, 32 }
0x3890   :  { %p8062_p7 = scmp.ne.s32.totalorder %s10080_s26, %s8061_s8  ;;  %p8065_p8 = scmp.lt.u32.totalorder %s8061_s8, %s10080_s26 }
0x3892   :  { %p8067_p9 = pnand %p8065_p8, %p8062_p7 }
0x3894   :  { %8070 = shalt.err (!%p8067_p9)
}
0x3895   :  { %6254 = dma.vmem_to_hbm [thread:$0]  %s6252_s4, 32, %s10080_s26, [#allocation6]   ;;  %v6595_v45 = vld [vmem:[%s10077_s23] ss:$0 sm:$0xff] }
0x3940   :  { %v7417_v14 = vpop.f32.mrb[108].mxu1 }
0x3941   :  { %v6215_v37 = vadd.f32 %v7417_v14, %v6595_v45  ;;  %v6206_v41 = vpop.f32.mrb[109].mxu1 }
0x3942   :  { %v6207_v50 = vadd.f32 %v6595_v45, %v6206_v41  ;;  %v7418_v59 = vpop.f32.mrb[110].mxu1 }
0x3943   :  { %6223 = vst.msk [vmem:[%s10081_s27 + $0x10] sm:$0xff] %vm132_vm3, %v6215_v37  ;;  %v6218_v56 = vadd.f32 %v7418_v59, %v6595_v45  ;;  %v6209_v7 = vpop.f32.mrb[111].mxu1 }
0x3944   :  { %6221 = vst.msk [vmem:[%s10081_s27] sm:$0xff] %vm132_vm3, %v6207_v50  ;;  %v6210_v57 = vadd.f32 %v6595_v45, %v6209_v7 }
0x3945   :  { %6224 = vst.msk [vmem:[%s10081_s27 + $0x18] sm:$0xff] %vm132_vm3, %v6218_v56 }
0x3946   :  { %6222 = vst.msk [vmem:[%s10081_s27 + $0x8] sm:$0xff] %vm132_vm3, %v6210_v57 }
0x3947   :  { %8071 = dma.done.wait [#allocation4], 32  }
0x3948   :  { %8072 = vsyncadd [#allocation4], 4294967264 }
0x3949   :  { %8073 = dma.done.wait [#allocation6], 64  }
0x394a   :  { %8074 = vsyncadd [#allocation6], 4294967232 }
0x394b   :  { %6268 = vsyncpa [#allocation4], 1 }
0x394c   :  { %6269 = vsyncpa [#allocation6], 1 }

</bundles_post_ra>
